<compile_context>
chip_gen: v5e
topology: v5e:2x2
jax: 0.10.0
libtpu: 0.0.40
codegen_flags: <defaults>
</compile_context>

<pallas_src>
import functools
import math

import jax
import jax.numpy as jnp
from jax import lax
from jax.experimental import pallas as pl
from jax.experimental.pallas import tpu as pltpu

LN_EPS = 1e-5
BN_EPS = 1e-5
N_BNTF_PARAMS = 15        # per-network packed param count
N_PRED_PARAMS = 4         # predictor (BN folded) packed param count

# MXU operand dtype.  f32 preserves PyTorch numerics at demo scale; use
# jnp.bfloat16 on v6e/v7x for ~2-4x MXU throughput once compute-bound
# (accumulation stays f32, LayerNorm/softmax/loss stay f32 either way).
MATMUL_DTYPE = jnp.float32


# ----------------------------- kernel helpers --------------------------------

def _layernorm(v, g, b):
    mu = jnp.mean(v, axis=-1, keepdims=True)
    var = jnp.mean((v - mu) ** 2, axis=-1, keepdims=True)
    return (v - mu) * lax.rsqrt(var + LN_EPS) * g + b


def _leaky_relu(v):
    return jnp.where(v >= 0.0, v, 0.01 * v)


def _bntf_apply(h3, prm, *, depth, heads, mmdt):
    """Full BNTF forward for a block of samples.

    h3:  (Bblk, T, D) f32 value.
    prm: tuple of 15 refs (see pack_bntf_params for layout).
    returns (Bblk, F) f32 features.
    """
    bblk, t, d = h3.shape
    dh = d // heads
    bt = bblk * t
    scale = 1.0 / float(dh) ** 0.5

    def mm(a, b):                      # 2-D matmul, f32 accumulation
        return jnp.dot(a.astype(mmdt), b.astype(mmdt),
                       preferred_element_type=jnp.float32)

    def bdot(a, b, dims):              # sample-batched dot_general
        return lax.dot_general(a.astype(mmdt), b.astype(mmdt), dims,
                               preferred_element_type=jnp.float32)

    (wq, wk, wv, wo, qb, vecd, w1, b1, w2,
     dr_w, dr_b, fc1_w3, fc1_b, fc2_w, fc2_b) = prm

    # all token-wise matmuls operate on the flattened (Bblk*T, D) slab
    h2 = h3.reshape(bt, d)

    for l in range(depth):
        # ---- multi-head self-attention (per-head weight stacks, no lane slicing) ----
        attn = None
        for hd in range(heads):
            q = (mm(h2, wq[l, hd]) + qb[l, hd]).reshape(bblk, t, dh)
            k = (mm(h2, wk[l, hd]) + qb[l, heads + hd]).reshape(bblk, t, dh)
            v = (mm(h2, wv[l, hd]) + qb[l, 2 * heads + hd]).reshape(bblk, t, dh)
            # scores: (Bblk, T, T), batch dim = sample
            s = bdot(q, k, (((2,), (2,)), ((0,), (0,)))) * scale
            s = s - jnp.max(s, axis=-1, keepdims=True)
            e = jnp.exp(s)
            p = e * pl.reciprocal(jnp.sum(e, axis=-1, keepdims=True), approx=True)
            ctx = bdot(p, v, (((2,), (1,)), ((0,), (0,)))).reshape(bt, dh)
            contrib = mm(ctx, wo[l, hd])          # fold head into out-projection
            attn = contrib if attn is None else attn + contrib
        # post-norm: LN(x + attn + bo)
        h2 = _layernorm(h2 + attn + vecd[l, 0], vecd[l, 1], vecd[l, 2])

        # ---- feed-forward ----
        ff = jnp.maximum(mm(h2, w1[l]) + b1[l], 0.0)
        h2 = _layernorm(h2 + mm(ff, w2[l]) + vecd[l, 3], vecd[l, 4], vecd[l, 5])

    # ---- dim reduction + fc head ----
    drn = dr_w.shape[1]
    nf = _leaky_relu(mm(h2, dr_w[...]) + dr_b[...]).reshape(bblk, t, drn)

    # flatten(T, dr) followed by fc1  ==  sum_t nf[:, t, :] @ fc1_w3[t]
    # (fc1 weight pre-reshaped host-side to (T, dr, H); no scratch, no masked stores)
    acc = mm(nf[:, 0, :], fc1_w3[0])
    for tt in range(1, t):
        acc = acc + mm(nf[:, tt, :], fc1_w3[tt])
    f = _leaky_relu(acc + fc1_b[...])
    f = mm(f, fc2_w[...]) + fc2_b[...]            # (Bblk, F)
    return f


def _fused_byol_kernel(*refs, depth, heads, n_online, mmdt):
    """One grid step = BLOCK_B samples through online BNTF+predictor AND target BNTF."""
    x_ref = refs[0]
    online = refs[1:1 + n_online]
    target = refs[1 + n_online:-1]
    o_ref = refs[-1]

    h3 = x_ref[...].astype(jnp.float32)           # (Bblk, T, D)

    # --- online network + predictor ---
    f_on = _bntf_apply(h3, online[:N_BNTF_PARAMS], depth=depth, heads=heads, mmdt=mmdt)
    pw1, pb1, pw2, pb2 = online[N_BNTF_PARAMS:N_BNTF_PARAMS + N_PRED_PARAMS]
    g = jnp.maximum(
        jnp.dot(f_on.astype(mmdt), pw1[...].astype(mmdt),
                preferred_element_type=jnp.float32) + pb1[...], 0.0)
    pred = jnp.dot(g.astype(mmdt), pw2[...].astype(mmdt),
                   preferred_element_type=jnp.float32) + pb2[...]

    # --- target network (momentum encoder; gradient stopped on the host side) ---
    f_tg = _bntf_apply(h3, target, depth=depth, heads=heads, mmdt=mmdt)

    # single lane-packed output store: [:, :F]=online pred, [:, F:]=target feature
    o_ref[0] = jnp.concatenate([pred, f_tg], axis=-1)


# ----------------------------- host wrapper ----------------------------------

def fused_byol_forward(x, online_flat, target_flat, *, depth, heads, feature_dim,
                       block_b, matmul_dtype):
    """x: (N, T, D) -> (online preds (N, F), target feats (N, F)). One pallas_call."""
    n, t, d = x.shape
    assert n % block_b == 0, "batch must divide block_b"
    g = n // block_b
    flat_params = list(online_flat) + list(target_flat)

    in_specs = [pl.BlockSpec((block_b, t, d), lambda i: (i, 0, 0))]
    for prm in flat_params:
        # full-array, grid-invariant -> weight DMA'd once, stays VMEM-resident
        in_specs.append(pl.BlockSpec(prm.shape, lambda i, nd=prm.ndim: (0,) * nd))

    # advisory cost estimate (per review): rough flops / transcendentals / bytes
    dff = online_flat[6].shape[2]
    dr = online_flat[9].shape[1]
    h_fc = online_flat[11].shape[2]
    per_layer = 8 * t * d * d + 4 * t * t * d + 4 * t * d * dff
    head_fl = 2 * t * d * dr + 2 * t * dr * h_fc + 2 * h_fc * feature_dim
    pred_fl = 8 * feature_dim * feature_dim
    flops = n * (2 * (depth * per_layer + head_fl) + pred_fl)
    transcendentals = n * 2 * depth * heads * t * t
    params_bytes = sum(int(math.prod(p.shape)) * p.dtype.itemsize for p in flat_params)
    bytes_accessed = (int(math.prod(x.shape)) * x.dtype.itemsize
                      + params_bytes + n * 2 * feature_dim * 4)

    out = pl.pallas_call(
        functools.partial(_fused_byol_kernel, depth=depth, heads=heads,
                          n_online=len(online_flat), mmdt=matmul_dtype),
        out_shape=jax.ShapeDtypeStruct((g, block_b, 2 * feature_dim), jnp.float32),
        grid=(g,),
        in_specs=in_specs,
        out_specs=pl.BlockSpec((1, block_b, 2 * feature_dim), lambda i: (i, 0, 0)),
        compiler_params=pltpu.CompilerParams(
            dimension_semantics=("parallel",),
            vmem_limit_bytes=32 * 1024 * 1024),
        cost_estimate=pl.CostEstimate(flops=flops,
                                      transcendentals=transcendentals,
                                      bytes_accessed=bytes_accessed),
    )(x, *flat_params)

    out = out.reshape(n, 2 * feature_dim)
    return out[:, :feature_dim], out[:, feature_dim:]


# ----------------------------- param packing ---------------------------------

def pack_bntf_params(p, heads, predictor=None):
    """Pre-transpose / stack once into the consolidated layout the kernel expects."""
    depth = len(p["layers"])
    d = p["layers"][0]["wo"].shape[0]
    dh = d // heads
    wq, wk, wv, wo, qb, vecd, w1, b1, w2 = ([] for _ in range(9))
    for layer in p["layers"]:
        qkv_h = layer["wqkv"].reshape(3, heads, dh, d)          # [qkv, head, dh, D]
        wq.append(jnp.transpose(qkv_h[0], (0, 2, 1)))           # (heads, D, dh)
        wk.append(jnp.transpose(qkv_h[1], (0, 2, 1)))
        wv.append(jnp.transpose(qkv_h[2], (0, 2, 1)))
        wo.append(layer["wo"].T.reshape(heads, dh, d))          # (heads, dh, D)
        qb.append(layer["bqkv"].reshape(3 * heads, 1, dh))      # q|k|v per head
        vecd.append(jnp.stack([layer["bo"], layer["ln1_g"], layer["ln1_b"],
                               layer["b2"], layer["ln2_g"], layer["ln2_b"]])[:, None, :])
        w1.append(layer["w1"].T)                                # (D, dff)
        b1.append(layer["b1"][None, :])                         # (1, dff)
        w2.append(layer["w2"].T)                                # (dff, D)
    dr = p["dr_w"].shape[0]
    h_fc = p["fc1_w"].shape[0]
    t = p["fc1_w"].shape[1] // dr
    flat = [jnp.stack(wq), jnp.stack(wk), jnp.stack(wv), jnp.stack(wo),
            jnp.stack(qb), jnp.stack(vecd),
            jnp.stack(w1), jnp.stack(b1), jnp.stack(w2),
            p["dr_w"].T, p["dr_b"][None, :],
            p["fc1_w"].T.reshape(t, dr, h_fc),                  # (T, dr, H): flatten-free fc1
            p["fc1_b"][None, :],
            p["fc2_w"].T, p["fc2_b"][None, :]]
    if predictor is not None:
        # eval-mode BatchNorm1d (running_mean=0, running_var=1) folded into Linear1
        bn_scale = predictor["bn_g"] / jnp.sqrt(1.0 + BN_EPS)
        pw1_eff = predictor["w1"].T * bn_scale[None, :]
        pb1_eff = predictor["b1"] * bn_scale + predictor["bn_b"]
        flat += [pw1_eff, pb1_eff[None, :],
                 predictor["w2"].T, predictor["b2"][None, :]]
    return flat


# ----------------------------- byol forward ----------------------------------

def _regression_loss(x, y):
    # 2 - 2 * <normalize(x), normalize(y)>   (F.normalize eps = 1e-12)
    xn = x / jnp.maximum(jnp.sqrt(jnp.sum(x * x, axis=-1, keepdims=True)), 1e-12)
    yn = y / jnp.maximum(jnp.sqrt(jnp.sum(y * y, axis=-1, keepdims=True)), 1e-12)
    return 2.0 - 2.0 * jnp.sum(xn * yn, axis=-1)


@functools.partial(jax.jit, static_argnames=("heads", "block_b"))
def byol_forward(view1, view2, online, target, predictor, *, heads, block_b):
    B = view1.shape[0]
    depth = len(online["layers"])
    feature_dim = online["fc2_w"].shape[0]

    # both views through both networks in one concatenated batch / one kernel launch
    x_all = jnp.concatenate([view1, view2], axis=0)                    # (2B, T, D)

    online_flat = pack_bntf_params(online, heads, predictor)
    target_flat = pack_bntf_params(target, heads, None)

    preds, tgts = fused_byol_forward(x_all, online_flat, target_flat,
                                     depth=depth, heads=heads,
                                     feature_dim=feature_dim, block_b=block_b,
                                     matmul_dtype=MATMUL_DTYPE)
    tgts = lax.stop_gradient(tgts)                                     # torch.no_grad()

    pred1, pred2 = preds[:B], preds[B:]
    tgt_to_2, tgt_to_1 = tgts[:B], tgts[B:]
    loss = jnp.mean(_regression_loss(pred1, tgt_to_1)
                    + _regression_loss(pred2, tgt_to_2))
    return loss, 0.0, 0.0, 0.0


# ----------------------------- param init ------------------------------------

def init_bntf_params(key, node_num, depth, heads, dff, feature_dim, fc_hidden, dr_out=8):
    layers = []
    for _ in range(depth):
        key, k0, k1, k2, k3 = jax.random.split(key, 5)
        layers.append(dict(
            wqkv=0.02 * jax.random.normal(k0, (3 * node_num, node_num), jnp.float32),
            bqkv=jnp.zeros((3 * node_num,), jnp.float32),
            wo=0.02 * jax.random.normal(k1, (node_num, node_num), jnp.float32),
            bo=jnp.zeros((node_num,), jnp.float32),
            ln1_g=jnp.ones((node_num,), jnp.float32),
            ln1_b=jnp.zeros((node_num,), jnp.float32),
            w1=0.02 * jax.random.normal(k2, (dff, node_num), jnp.float32),
            b1=jnp.zeros((dff,), jnp.float32),
            w2=0.02 * jax.random.normal(k3, (node_num, dff), jnp.float32),
            b2=jnp.zeros((node_num,), jnp.float32),
            ln2_g=jnp.ones((node_num,), jnp.float32),
            ln2_b=jnp.zeros((node_num,), jnp.float32),
        ))
    key, k1, k2, k3 = jax.random.split(key, 4)
    return dict(
        layers=layers,
        dr_w=0.02 * jax.random.normal(k1, (dr_out, node_num), jnp.float32),
        dr_b=jnp.zeros((dr_out,), jnp.float32),
        fc1_w=0.02 * jax.random.normal(k2, (fc_hidden, dr_out * node_num), jnp.float32),
        fc1_b=jnp.zeros((fc_hidden,), jnp.float32),
        fc2_w=0.02 * jax.random.normal(k3, (feature_dim, fc_hidden), jnp.float32),
        fc2_b=jnp.zeros((feature_dim,), jnp.float32),
    )


def init_mlp_head_params(key, in_dim, hidden, out_dim):
    k1, k2 = jax.random.split(key)
    return dict(
        w1=0.02 * jax.random.normal(k1, (hidden, in_dim), jnp.float32),
        b1=jnp.zeros((hidden,), jnp.float32),
        bn_g=jnp.ones((hidden,), jnp.float32),
        bn_b=jnp.zeros((hidden,), jnp.float32),
        w2=0.02 * jax.random.normal(k2, (out_dim, hidden), jnp.float32),
        b2=jnp.zeros((out_dim,), jnp.float32),
    )


# --------------------------------- main ---------------------------------------

if __name__ == "__main__":
    # Small deterministic configuration (roi_num shrunk from 100 -> 16 for demo).
    B = 2
    NODE_NUM = 16          # ROI count; views are (B, NODE_NUM, NODE_NUM) correlation matrices
    DEPTH = 2
    HEADS = 2
    DIM_FF = 32
    FEATURE_DIM = 32
    FC_HIDDEN = 32
    BLOCK_B = 2            # samples per grid step (2B=4 samples -> grid=(2,), both v7x TCs busy)
                           # production: use 8-16+ samples/step to fill the MXU M dimension

    root = jax.random.PRNGKey(0)
    k_online, k_target, k_pred, k_v1, k_v2 = jax.random.split(root, 5)

    online_params = init_bntf_params(k_online, NODE_NUM, DEPTH, HEADS, DIM_FF,
                                     FEATURE_DIM, FC_HIDDEN)
    target_params = init_bntf_params(k_target, NODE_NUM, DEPTH, HEADS, DIM_FF,
                                     FEATURE_DIM, FC_HIDDEN)
    predictor_params = init_mlp_head_params(k_pred, FEATURE_DIM, 2 * FEATURE_DIM,
                                            FEATURE_DIM)

    batch_view_1 = jax.random.normal(k_v1, (B, NODE_NUM, NODE_NUM), jnp.float32)
    batch_view_2 = jax.random.normal(k_v2, (B, NODE_NUM, NODE_NUM), jnp.float32)

    loss, acc, nce, mse = byol_forward(batch_view_1, batch_view_2,
                                       online_params, target_params,
                                       predictor_params,
                                       heads=HEADS, block_b=BLOCK_B)
    loss = jax.block_until_ready(loss)
    assert loss.shape == () and bool(jnp.isfinite(loss))
    print("KERNEL_OK")
</pallas_src>

<mosaic_0001>
module attributes {stable_mosaic.version = 11 : i64} {
  func.func @_fused_byol_kernel(%arg0: i32, %arg1: memref<2x16x16xf32, #tpu.memory_space<vmem>>, %arg2: memref<2x2x16x8xf32, #tpu.memory_space<vmem>>, %arg3: memref<2x2x16x8xf32, #tpu.memory_space<vmem>>, %arg4: memref<2x2x16x8xf32, #tpu.memory_space<vmem>>, %arg5: memref<2x2x8x16xf32, #tpu.memory_space<vmem>>, %arg6: memref<2x6x1x8xf32, #tpu.memory_space<vmem>>, %arg7: memref<2x6x1x16xf32, #tpu.memory_space<vmem>>, %arg8: memref<2x16x32xf32, #tpu.memory_space<vmem>>, %arg9: memref<2x1x32xf32, #tpu.memory_space<vmem>>, %arg10: memref<2x32x16xf32, #tpu.memory_space<vmem>>, %arg11: memref<16x8xf32, #tpu.memory_space<vmem>>, %arg12: memref<1x8xf32, #tpu.memory_space<vmem>>, %arg13: memref<16x8x32xf32, #tpu.memory_space<vmem>>, %arg14: memref<1x32xf32, #tpu.memory_space<vmem>>, %arg15: memref<32x32xf32, #tpu.memory_space<vmem>>, %arg16: memref<1x32xf32, #tpu.memory_space<vmem>>, %arg17: memref<32x64xf32, #tpu.memory_space<vmem>>, %arg18: memref<1x64xf32, #tpu.memory_space<vmem>>, %arg19: memref<64x32xf32, #tpu.memory_space<vmem>>, %arg20: memref<1x32xf32, #tpu.memory_space<vmem>>, %arg21: memref<2x2x16x8xf32, #tpu.memory_space<vmem>>, %arg22: memref<2x2x16x8xf32, #tpu.memory_space<vmem>>, %arg23: memref<2x2x16x8xf32, #tpu.memory_space<vmem>>, %arg24: memref<2x2x8x16xf32, #tpu.memory_space<vmem>>, %arg25: memref<2x6x1x8xf32, #tpu.memory_space<vmem>>, %arg26: memref<2x6x1x16xf32, #tpu.memory_space<vmem>>, %arg27: memref<2x16x32xf32, #tpu.memory_space<vmem>>, %arg28: memref<2x1x32xf32, #tpu.memory_space<vmem>>, %arg29: memref<2x32x16xf32, #tpu.memory_space<vmem>>, %arg30: memref<16x8xf32, #tpu.memory_space<vmem>>, %arg31: memref<1x8xf32, #tpu.memory_space<vmem>>, %arg32: memref<16x8x32xf32, #tpu.memory_space<vmem>>, %arg33: memref<1x32xf32, #tpu.memory_space<vmem>>, %arg34: memref<32x32xf32, #tpu.memory_space<vmem>>, %arg35: memref<1x32xf32, #tpu.memory_space<vmem>>, %arg36: memref<1x2x64xf32, #tpu.memory_space<vmem>>) attributes {dimension_semantics = [#tpu.dimension_semantics<parallel>], iteration_bounds = array<i64: 2>, scalar_prefetch = 0 : i64, scratch_operands = 0 : i64, tpu.core_type = #tpu.core_type<tc>, window_params = [{transform_indices = @transform_0, window_bounds = array<i64: 2, 16, 16>}, {pipeline_mode = #tpu.pipeline_mode<synchronous>, transform_indices = @transform_1, window_bounds = array<i64: 2, 2, 16, 8>}, {pipeline_mode = #tpu.pipeline_mode<synchronous>, transform_indices = @transform_2, window_bounds = array<i64: 2, 2, 16, 8>}, {pipeline_mode = #tpu.pipeline_mode<synchronous>, transform_indices = @transform_3, window_bounds = array<i64: 2, 2, 16, 8>}, {pipeline_mode = #tpu.pipeline_mode<synchronous>, transform_indices = @transform_4, window_bounds = array<i64: 2, 2, 8, 16>}, {pipeline_mode = #tpu.pipeline_mode<synchronous>, transform_indices = @transform_5, window_bounds = array<i64: 2, 6, 1, 8>}, {pipeline_mode = #tpu.pipeline_mode<synchronous>, transform_indices = @transform_6, window_bounds = array<i64: 2, 6, 1, 16>}, {pipeline_mode = #tpu.pipeline_mode<synchronous>, transform_indices = @transform_7, window_bounds = array<i64: 2, 16, 32>}, {pipeline_mode = #tpu.pipeline_mode<synchronous>, transform_indices = @transform_8, window_bounds = array<i64: 2, 1, 32>}, {pipeline_mode = #tpu.pipeline_mode<synchronous>, transform_indices = @transform_9, window_bounds = array<i64: 2, 32, 16>}, {pipeline_mode = #tpu.pipeline_mode<synchronous>, transform_indices = @transform_10, window_bounds = array<i64: 16, 8>}, {pipeline_mode = #tpu.pipeline_mode<synchronous>, transform_indices = @transform_11, window_bounds = array<i64: 1, 8>}, {pipeline_mode = #tpu.pipeline_mode<synchronous>, transform_indices = @transform_12, window_bounds = array<i64: 16, 8, 32>}, {pipeline_mode = #tpu.pipeline_mode<synchronous>, transform_indices = @transform_13, window_bounds = array<i64: 1, 32>}, {pipeline_mode = #tpu.pipeline_mode<synchronous>, transform_indices = @transform_14, window_bounds = array<i64: 32, 32>}, {pipeline_mode = #tpu.pipeline_mode<synchronous>, transform_indices = @transform_15, window_bounds = array<i64: 1, 32>}, {pipeline_mode = #tpu.pipeline_mode<synchronous>, transform_indices = @transform_16, window_bounds = array<i64: 32, 64>}, {pipeline_mode = #tpu.pipeline_mode<synchronous>, transform_indices = @transform_17, window_bounds = array<i64: 1, 64>}, {pipeline_mode = #tpu.pipeline_mode<synchronous>, transform_indices = @transform_18, window_bounds = array<i64: 64, 32>}, {pipeline_mode = #tpu.pipeline_mode<synchronous>, transform_indices = @transform_19, window_bounds = array<i64: 1, 32>}, {pipeline_mode = #tpu.pipeline_mode<synchronous>, transform_indices = @transform_20, window_bounds = array<i64: 2, 2, 16, 8>}, {pipeline_mode = #tpu.pipeline_mode<synchronous>, transform_indices = @transform_21, window_bounds = array<i64: 2, 2, 16, 8>}, {pipeline_mode = #tpu.pipeline_mode<synchronous>, transform_indices = @transform_22, window_bounds = array<i64: 2, 2, 16, 8>}, {pipeline_mode = #tpu.pipeline_mode<synchronous>, transform_indices = @transform_23, window_bounds = array<i64: 2, 2, 8, 16>}, {pipeline_mode = #tpu.pipeline_mode<synchronous>, transform_indices = @transform_24, window_bounds = array<i64: 2, 6, 1, 8>}, {pipeline_mode = #tpu.pipeline_mode<synchronous>, transform_indices = @transform_25, window_bounds = array<i64: 2, 6, 1, 16>}, {pipeline_mode = #tpu.pipeline_mode<synchronous>, transform_indices = @transform_26, window_bounds = array<i64: 2, 16, 32>}, {pipeline_mode = #tpu.pipeline_mode<synchronous>, transform_indices = @transform_27, window_bounds = array<i64: 2, 1, 32>}, {pipeline_mode = #tpu.pipeline_mode<synchronous>, transform_indices = @transform_28, window_bounds = array<i64: 2, 32, 16>}, {pipeline_mode = #tpu.pipeline_mode<synchronous>, transform_indices = @transform_29, window_bounds = array<i64: 16, 8>}, {pipeline_mode = #tpu.pipeline_mode<synchronous>, transform_indices = @transform_30, window_bounds = array<i64: 1, 8>}, {pipeline_mode = #tpu.pipeline_mode<synchronous>, transform_indices = @transform_31, window_bounds = array<i64: 16, 8, 32>}, {pipeline_mode = #tpu.pipeline_mode<synchronous>, transform_indices = @transform_32, window_bounds = array<i64: 1, 32>}, {pipeline_mode = #tpu.pipeline_mode<synchronous>, transform_indices = @transform_33, window_bounds = array<i64: 32, 32>}, {pipeline_mode = #tpu.pipeline_mode<synchronous>, transform_indices = @transform_34, window_bounds = array<i64: 1, 32>}, {transform_indices = @transform_35, window_bounds = array<i64: 1, 2, 64>}]} {
    %c0 = arith.constant 0 : index
    %c0_0 = arith.constant 0 : index
    %c0_1 = arith.constant 0 : index
    %0 = vector.load %arg1[%c0, %c0_0, %c0_1] : memref<2x16x16xf32, #tpu.memory_space<vmem>>, vector<2x16x16xf32>
    %1 = vector.shape_cast %0 : vector<2x16x16xf32> to vector<32x16xf32>
    %c0_2 = arith.constant 0 : index
    %c0_3 = arith.constant 0 : index
    %c0_4 = arith.constant 0 : index
    %c0_5 = arith.constant 0 : index
    %2 = vector.load %arg2[%c0_2, %c0_3, %c0_4, %c0_5] : memref<2x2x16x8xf32, #tpu.memory_space<vmem>>, vector<1x1x16x8xf32>
    %3 = vector.shape_cast %2 : vector<1x1x16x8xf32> to vector<16x8xf32>
    %cst = arith.constant dense<0.000000e+00> : vector<32x8xf32>
    %4 = tpu.matmul %1, %3, %cst {dimension_numbers = #tpu.dot_dimension_numbers<[1], [0], [0], [1], [0, 0, 1, 1], [], []>} : vector<32x16xf32>, vector<16x8xf32>, vector<32x8xf32> -> vector<32x8xf32>
    %c0_6 = arith.constant 0 : index
    %c0_7 = arith.constant 0 : index
    %c0_8 = arith.constant 0 : index
    %c0_9 = arith.constant 0 : index
    %5 = vector.load %arg6[%c0_6, %c0_7, %c0_8, %c0_9] : memref<2x6x1x8xf32, #tpu.memory_space<vmem>>, vector<1x1x1x8xf32>
    %6 = vector.shape_cast %5 : vector<1x1x1x8xf32> to vector<1x8xf32>
    %7 = vector.broadcast %6 : vector<1x8xf32> to vector<32x8xf32>
    %8 = arith.addf %4, %7 : vector<32x8xf32>
    %9 = vector.shape_cast %8 : vector<32x8xf32> to vector<2x16x8xf32>
    %c0_10 = arith.constant 0 : index
    %c0_11 = arith.constant 0 : index
    %c0_12 = arith.constant 0 : index
    %c0_13 = arith.constant 0 : index
    %10 = vector.load %arg3[%c0_10, %c0_11, %c0_12, %c0_13] : memref<2x2x16x8xf32, #tpu.memory_space<vmem>>, vector<1x1x16x8xf32>
    %11 = vector.shape_cast %10 : vector<1x1x16x8xf32> to vector<16x8xf32>
    %cst_14 = arith.constant dense<0.000000e+00> : vector<32x8xf32>
    %12 = tpu.matmul %1, %11, %cst_14 {dimension_numbers = #tpu.dot_dimension_numbers<[1], [0], [0], [1], [0, 0, 1, 1], [], []>} : vector<32x16xf32>, vector<16x8xf32>, vector<32x8xf32> -> vector<32x8xf32>
    %c0_15 = arith.constant 0 : index
    %c2 = arith.constant 2 : index
    %c0_16 = arith.constant 0 : index
    %c0_17 = arith.constant 0 : index
    %13 = vector.load %arg6[%c0_15, %c2, %c0_16, %c0_17] : memref<2x6x1x8xf32, #tpu.memory_space<vmem>>, vector<1x1x1x8xf32>
    %14 = vector.shape_cast %13 : vector<1x1x1x8xf32> to vector<1x8xf32>
    %15 = vector.broadcast %14 : vector<1x8xf32> to vector<32x8xf32>
    %16 = arith.addf %12, %15 : vector<32x8xf32>
    %17 = vector.shape_cast %16 : vector<32x8xf32> to vector<2x16x8xf32>
    %c0_18 = arith.constant 0 : index
    %c0_19 = arith.constant 0 : index
    %c0_20 = arith.constant 0 : index
    %c0_21 = arith.constant 0 : index
    %18 = vector.load %arg4[%c0_18, %c0_19, %c0_20, %c0_21] : memref<2x2x16x8xf32, #tpu.memory_space<vmem>>, vector<1x1x16x8xf32>
    %19 = vector.shape_cast %18 : vector<1x1x16x8xf32> to vector<16x8xf32>
    %cst_22 = arith.constant dense<0.000000e+00> : vector<32x8xf32>
    %20 = tpu.matmul %1, %19, %cst_22 {dimension_numbers = #tpu.dot_dimension_numbers<[1], [0], [0], [1], [0, 0, 1, 1], [], []>} : vector<32x16xf32>, vector<16x8xf32>, vector<32x8xf32> -> vector<32x8xf32>
    %c0_23 = arith.constant 0 : index
    %c4 = arith.constant 4 : index
    %c0_24 = arith.constant 0 : index
    %c0_25 = arith.constant 0 : index
    %21 = vector.load %arg6[%c0_23, %c4, %c0_24, %c0_25] : memref<2x6x1x8xf32, #tpu.memory_space<vmem>>, vector<1x1x1x8xf32>
    %22 = vector.shape_cast %21 : vector<1x1x1x8xf32> to vector<1x8xf32>
    %23 = vector.broadcast %22 : vector<1x8xf32> to vector<32x8xf32>
    %24 = arith.addf %20, %23 : vector<32x8xf32>
    %25 = vector.shape_cast %24 : vector<32x8xf32> to vector<2x16x8xf32>
    %cst_26 = arith.constant dense<0.000000e+00> : vector<2x16x16xf32>
    %26 = tpu.matmul %9, %17, %cst_26 {dimension_numbers = #tpu.dot_dimension_numbers<[2], [2], [1], [1], [0, 0, 0, 1, 1, 1], [0], [0]>} : vector<2x16x8xf32>, vector<2x16x8xf32>, vector<2x16x16xf32> -> vector<2x16x16xf32>
    %cst_27 = arith.constant 0.353553385 : f32
    %27 = vector.broadcast %cst_27 : f32 to vector<2x16x16xf32>
    %28 = arith.mulf %26, %27 : vector<2x16x16xf32>
    %cst_28 = arith.constant dense<0xFF800000> : vector<2x16xf32>
    %29 = vector.multi_reduction <maximumf>, %28, %cst_28 [2] : vector<2x16x16xf32> to vector<2x16xf32>
    %30 = vector.shape_cast %29 : vector<2x16xf32> to vector<2x16x1xf32>
    %31 = vector.broadcast %30 : vector<2x16x1xf32> to vector<2x16x16xf32>
    %32 = arith.subf %28, %31 : vector<2x16x16xf32>
    %33 = math.exp %32 : vector<2x16x16xf32>
    %cst_29 = arith.constant dense<0.000000e+00> : vector<2x16xf32>
    %34 = vector.multi_reduction <add>, %33, %cst_29 [2] : vector<2x16x16xf32> to vector<2x16xf32>
    %35 = vector.shape_cast %34 : vector<2x16xf32> to vector<2x16x1xf32>
    %36 = tpu.reciprocal %35 {approx = true} : vector<2x16x1xf32> -> vector<2x16x1xf32>
    %37 = vector.broadcast %36 : vector<2x16x1xf32> to vector<2x16x16xf32>
    %38 = arith.mulf %33, %37 : vector<2x16x16xf32>
    %cst_30 = arith.constant dense<0.000000e+00> : vector<2x16x8xf32>
    %39 = tpu.matmul %38, %25, %cst_30 {dimension_numbers = #tpu.dot_dimension_numbers<[2], [1], [1], [2], [0, 0, 0, 1, 1, 2], [0], [0]>} : vector<2x16x16xf32>, vector<2x16x8xf32>, vector<2x16x8xf32> -> vector<2x16x8xf32>
    %40 = vector.shape_cast %39 : vector<2x16x8xf32> to vector<32x8xf32>
    %c0_31 = arith.constant 0 : index
    %c0_32 = arith.constant 0 : index
    %c0_33 = arith.constant 0 : index
    %c0_34 = arith.constant 0 : index
    %41 = vector.load %arg5[%c0_31, %c0_32, %c0_33, %c0_34] : memref<2x2x8x16xf32, #tpu.memory_space<vmem>>, vector<1x1x8x16xf32>
    %42 = vector.shape_cast %41 : vector<1x1x8x16xf32> to vector<8x16xf32>
    %cst_35 = arith.constant dense<0.000000e+00> : vector<32x16xf32>
    %43 = tpu.matmul %40, %42, %cst_35 {dimension_numbers = #tpu.dot_dimension_numbers<[1], [0], [0], [1], [0, 0, 1, 1], [], []>} : vector<32x8xf32>, vector<8x16xf32>, vector<32x16xf32> -> vector<32x16xf32>
    %c0_36 = arith.constant 0 : index
    %c1 = arith.constant 1 : index
    %c0_37 = arith.constant 0 : index
    %c0_38 = arith.constant 0 : index
    %44 = vector.load %arg2[%c0_36, %c1, %c0_37, %c0_38] : memref<2x2x16x8xf32, #tpu.memory_space<vmem>>, vector<1x1x16x8xf32>
    %45 = vector.shape_cast %44 : vector<1x1x16x8xf32> to vector<16x8xf32>
    %cst_39 = arith.constant dense<0.000000e+00> : vector<32x8xf32>
    %46 = tpu.matmul %1, %45, %cst_39 {dimension_numbers = #tpu.dot_dimension_numbers<[1], [0], [0], [1], [0, 0, 1, 1], [], []>} : vector<32x16xf32>, vector<16x8xf32>, vector<32x8xf32> -> vector<32x8xf32>
    %c0_40 = arith.constant 0 : index
    %c1_41 = arith.constant 1 : index
    %c0_42 = arith.constant 0 : index
    %c0_43 = arith.constant 0 : index
    %47 = vector.load %arg6[%c0_40, %c1_41, %c0_42, %c0_43] : memref<2x6x1x8xf32, #tpu.memory_space<vmem>>, vector<1x1x1x8xf32>
    %48 = vector.shape_cast %47 : vector<1x1x1x8xf32> to vector<1x8xf32>
    %49 = vector.broadcast %48 : vector<1x8xf32> to vector<32x8xf32>
    %50 = arith.addf %46, %49 : vector<32x8xf32>
    %51 = vector.shape_cast %50 : vector<32x8xf32> to vector<2x16x8xf32>
    %c0_44 = arith.constant 0 : index
    %c1_45 = arith.constant 1 : index
    %c0_46 = arith.constant 0 : index
    %c0_47 = arith.constant 0 : index
    %52 = vector.load %arg3[%c0_44, %c1_45, %c0_46, %c0_47] : memref<2x2x16x8xf32, #tpu.memory_space<vmem>>, vector<1x1x16x8xf32>
    %53 = vector.shape_cast %52 : vector<1x1x16x8xf32> to vector<16x8xf32>
    %cst_48 = arith.constant dense<0.000000e+00> : vector<32x8xf32>
    %54 = tpu.matmul %1, %53, %cst_48 {dimension_numbers = #tpu.dot_dimension_numbers<[1], [0], [0], [1], [0, 0, 1, 1], [], []>} : vector<32x16xf32>, vector<16x8xf32>, vector<32x8xf32> -> vector<32x8xf32>
    %c0_49 = arith.constant 0 : index
    %c3 = arith.constant 3 : index
    %c0_50 = arith.constant 0 : index
    %c0_51 = arith.constant 0 : index
    %55 = vector.load %arg6[%c0_49, %c3, %c0_50, %c0_51] : memref<2x6x1x8xf32, #tpu.memory_space<vmem>>, vector<1x1x1x8xf32>
    %56 = vector.shape_cast %55 : vector<1x1x1x8xf32> to vector<1x8xf32>
    %57 = vector.broadcast %56 : vector<1x8xf32> to vector<32x8xf32>
    %58 = arith.addf %54, %57 : vector<32x8xf32>
    %59 = vector.shape_cast %58 : vector<32x8xf32> to vector<2x16x8xf32>
    %c0_52 = arith.constant 0 : index
    %c1_53 = arith.constant 1 : index
    %c0_54 = arith.constant 0 : index
    %c0_55 = arith.constant 0 : index
    %60 = vector.load %arg4[%c0_52, %c1_53, %c0_54, %c0_55] : memref<2x2x16x8xf32, #tpu.memory_space<vmem>>, vector<1x1x16x8xf32>
    %61 = vector.shape_cast %60 : vector<1x1x16x8xf32> to vector<16x8xf32>
    %cst_56 = arith.constant dense<0.000000e+00> : vector<32x8xf32>
    %62 = tpu.matmul %1, %61, %cst_56 {dimension_numbers = #tpu.dot_dimension_numbers<[1], [0], [0], [1], [0, 0, 1, 1], [], []>} : vector<32x16xf32>, vector<16x8xf32>, vector<32x8xf32> -> vector<32x8xf32>
    %c0_57 = arith.constant 0 : index
    %c5 = arith.constant 5 : index
    %c0_58 = arith.constant 0 : index
    %c0_59 = arith.constant 0 : index
    %63 = vector.load %arg6[%c0_57, %c5, %c0_58, %c0_59] : memref<2x6x1x8xf32, #tpu.memory_space<vmem>>, vector<1x1x1x8xf32>
    %64 = vector.shape_cast %63 : vector<1x1x1x8xf32> to vector<1x8xf32>
    %65 = vector.broadcast %64 : vector<1x8xf32> to vector<32x8xf32>
    %66 = arith.addf %62, %65 : vector<32x8xf32>
    %67 = vector.shape_cast %66 : vector<32x8xf32> to vector<2x16x8xf32>
    %cst_60 = arith.constant dense<0.000000e+00> : vector<2x16x16xf32>
    %68 = tpu.matmul %51, %59, %cst_60 {dimension_numbers = #tpu.dot_dimension_numbers<[2], [2], [1], [1], [0, 0, 0, 1, 1, 1], [0], [0]>} : vector<2x16x8xf32>, vector<2x16x8xf32>, vector<2x16x16xf32> -> vector<2x16x16xf32>
    %cst_61 = arith.constant 0.353553385 : f32
    %69 = vector.broadcast %cst_61 : f32 to vector<2x16x16xf32>
    %70 = arith.mulf %68, %69 : vector<2x16x16xf32>
    %cst_62 = arith.constant dense<0xFF800000> : vector<2x16xf32>
    %71 = vector.multi_reduction <maximumf>, %70, %cst_62 [2] : vector<2x16x16xf32> to vector<2x16xf32>
    %72 = vector.shape_cast %71 : vector<2x16xf32> to vector<2x16x1xf32>
    %73 = vector.broadcast %72 : vector<2x16x1xf32> to vector<2x16x16xf32>
    %74 = arith.subf %70, %73 : vector<2x16x16xf32>
    %75 = math.exp %74 : vector<2x16x16xf32>
    %cst_63 = arith.constant dense<0.000000e+00> : vector<2x16xf32>
    %76 = vector.multi_reduction <add>, %75, %cst_63 [2] : vector<2x16x16xf32> to vector<2x16xf32>
    %77 = vector.shape_cast %76 : vector<2x16xf32> to vector<2x16x1xf32>
    %78 = tpu.reciprocal %77 {approx = true} : vector<2x16x1xf32> -> vector<2x16x1xf32>
    %79 = vector.broadcast %78 : vector<2x16x1xf32> to vector<2x16x16xf32>
    %80 = arith.mulf %75, %79 : vector<2x16x16xf32>
    %cst_64 = arith.constant dense<0.000000e+00> : vector<2x16x8xf32>
    %81 = tpu.matmul %80, %67, %cst_64 {dimension_numbers = #tpu.dot_dimension_numbers<[2], [1], [1], [2], [0, 0, 0, 1, 1, 2], [0], [0]>} : vector<2x16x16xf32>, vector<2x16x8xf32>, vector<2x16x8xf32> -> vector<2x16x8xf32>
    %82 = vector.shape_cast %81 : vector<2x16x8xf32> to vector<32x8xf32>
    %c0_65 = arith.constant 0 : index
    %c1_66 = arith.constant 1 : index
    %c0_67 = arith.constant 0 : index
    %c0_68 = arith.constant 0 : index
    %83 = vector.load %arg5[%c0_65, %c1_66, %c0_67, %c0_68] : memref<2x2x8x16xf32, #tpu.memory_space<vmem>>, vector<1x1x8x16xf32>
    %84 = vector.shape_cast %83 : vector<1x1x8x16xf32> to vector<8x16xf32>
    %cst_69 = arith.constant dense<0.000000e+00> : vector<32x16xf32>
    %85 = tpu.matmul %82, %84, %cst_69 {dimension_numbers = #tpu.dot_dimension_numbers<[1], [0], [0], [1], [0, 0, 1, 1], [], []>} : vector<32x8xf32>, vector<8x16xf32>, vector<32x16xf32> -> vector<32x16xf32>
    %86 = arith.addf %43, %85 : vector<32x16xf32>
    %87 = arith.addf %1, %86 : vector<32x16xf32>
    %c0_70 = arith.constant 0 : index
    %c0_71 = arith.constant 0 : index
    %c0_72 = arith.constant 0 : index
    %c0_73 = arith.constant 0 : index
    %88 = vector.load %arg7[%c0_70, %c0_71, %c0_72, %c0_73] : memref<2x6x1x16xf32, #tpu.memory_space<vmem>>, vector<1x1x1x16xf32>
    %89 = vector.shape_cast %88 : vector<1x1x1x16xf32> to vector<1x16xf32>
    %90 = vector.broadcast %89 : vector<1x16xf32> to vector<32x16xf32>
    %91 = arith.addf %87, %90 : vector<32x16xf32>
    %c0_74 = arith.constant 0 : index
    %c1_75 = arith.constant 1 : index
    %c0_76 = arith.constant 0 : index
    %c0_77 = arith.constant 0 : index
    %92 = vector.load %arg7[%c0_74, %c1_75, %c0_76, %c0_77] : memref<2x6x1x16xf32, #tpu.memory_space<vmem>>, vector<1x1x1x16xf32>
    %93 = vector.shape_cast %92 : vector<1x1x1x16xf32> to vector<1x16xf32>
    %c0_78 = arith.constant 0 : index
    %c2_79 = arith.constant 2 : index
    %c0_80 = arith.constant 0 : index
    %c0_81 = arith.constant 0 : index
    %94 = vector.load %arg7[%c0_78, %c2_79, %c0_80, %c0_81] : memref<2x6x1x16xf32, #tpu.memory_space<vmem>>, vector<1x1x1x16xf32>
    %95 = vector.shape_cast %94 : vector<1x1x1x16xf32> to vector<1x16xf32>
    %cst_82 = arith.constant dense<0.000000e+00> : vector<32xf32>
    %96 = vector.multi_reduction <add>, %91, %cst_82 [1] : vector<32x16xf32> to vector<32xf32>
    %97 = vector.shape_cast %96 : vector<32xf32> to vector<32x1xf32>
    %cst_83 = arith.constant 1.600000e+01 : f32
    %98 = vector.broadcast %cst_83 : f32 to vector<32x1xf32>
    %99 = arith.divf %97, %98 : vector<32x1xf32>
    %100 = vector.broadcast %99 : vector<32x1xf32> to vector<32x16xf32>
    %101 = arith.subf %91, %100 : vector<32x16xf32>
    %102 = arith.mulf %101, %101 : vector<32x16xf32>
    %cst_84 = arith.constant dense<0.000000e+00> : vector<32xf32>
    %103 = vector.multi_reduction <add>, %102, %cst_84 [1] : vector<32x16xf32> to vector<32xf32>
    %104 = vector.shape_cast %103 : vector<32xf32> to vector<32x1xf32>
    %cst_85 = arith.constant 1.600000e+01 : f32
    %105 = vector.broadcast %cst_85 : f32 to vector<32x1xf32>
    %106 = arith.divf %104, %105 : vector<32x1xf32>
    %107 = vector.broadcast %99 : vector<32x1xf32> to vector<32x16xf32>
    %108 = arith.subf %91, %107 : vector<32x16xf32>
    %cst_86 = arith.constant 9.99999974E-6 : f32
    %109 = vector.broadcast %cst_86 : f32 to vector<32x1xf32>
    %110 = arith.addf %106, %109 : vector<32x1xf32>
    %111 = math.rsqrt %110 : vector<32x1xf32>
    %112 = vector.broadcast %111 : vector<32x1xf32> to vector<32x16xf32>
    %113 = arith.mulf %108, %112 : vector<32x16xf32>
    %114 = vector.broadcast %93 : vector<1x16xf32> to vector<32x16xf32>
    %115 = arith.mulf %113, %114 : vector<32x16xf32>
    %116 = vector.broadcast %95 : vector<1x16xf32> to vector<32x16xf32>
    %117 = arith.addf %115, %116 : vector<32x16xf32>
    %c0_87 = arith.constant 0 : index
    %c0_88 = arith.constant 0 : index
    %c0_89 = arith.constant 0 : index
    %118 = vector.load %arg8[%c0_87, %c0_88, %c0_89] : memref<2x16x32xf32, #tpu.memory_space<vmem>>, vector<1x16x32xf32>
    %119 = vector.shape_cast %118 : vector<1x16x32xf32> to vector<16x32xf32>
    %cst_90 = arith.constant dense<0.000000e+00> : vector<32x32xf32>
    %120 = tpu.matmul %117, %119, %cst_90 {dimension_numbers = #tpu.dot_dimension_numbers<[1], [0], [0], [1], [0, 0, 1, 1], [], []>} : vector<32x16xf32>, vector<16x32xf32>, vector<32x32xf32> -> vector<32x32xf32>
    %c0_91 = arith.constant 0 : index
    %c0_92 = arith.constant 0 : index
    %c0_93 = arith.constant 0 : index
    %121 = vector.load %arg9[%c0_91, %c0_92, %c0_93] : memref<2x1x32xf32, #tpu.memory_space<vmem>>, vector<1x1x32xf32>
    %122 = vector.shape_cast %121 : vector<1x1x32xf32> to vector<1x32xf32>
    %123 = vector.broadcast %122 : vector<1x32xf32> to vector<32x32xf32>
    %124 = arith.addf %120, %123 : vector<32x32xf32>
    %cst_94 = arith.constant 0.000000e+00 : f32
    %125 = vector.broadcast %cst_94 : f32 to vector<32x32xf32>
    %126 = arith.maximumf %124, %125 : vector<32x32xf32>
    %c0_95 = arith.constant 0 : index
    %c0_96 = arith.constant 0 : index
    %c0_97 = arith.constant 0 : index
    %127 = vector.load %arg10[%c0_95, %c0_96, %c0_97] : memref<2x32x16xf32, #tpu.memory_space<vmem>>, vector<1x32x16xf32>
    %128 = vector.shape_cast %127 : vector<1x32x16xf32> to vector<32x16xf32>
    %cst_98 = arith.constant dense<0.000000e+00> : vector<32x16xf32>
    %129 = tpu.matmul %126, %128, %cst_98 {dimension_numbers = #tpu.dot_dimension_numbers<[1], [0], [0], [1], [0, 0, 1, 1], [], []>} : vector<32x32xf32>, vector<32x16xf32>, vector<32x16xf32> -> vector<32x16xf32>
    %130 = arith.addf %117, %129 : vector<32x16xf32>
    %c0_99 = arith.constant 0 : index
    %c3_100 = arith.constant 3 : index
    %c0_101 = arith.constant 0 : index
    %c0_102 = arith.constant 0 : index
    %131 = vector.load %arg7[%c0_99, %c3_100, %c0_101, %c0_102] : memref<2x6x1x16xf32, #tpu.memory_space<vmem>>, vector<1x1x1x16xf32>
    %132 = vector.shape_cast %131 : vector<1x1x1x16xf32> to vector<1x16xf32>
    %133 = vector.broadcast %132 : vector<1x16xf32> to vector<32x16xf32>
    %134 = arith.addf %130, %133 : vector<32x16xf32>
    %c0_103 = arith.constant 0 : index
    %c4_104 = arith.constant 4 : index
    %c0_105 = arith.constant 0 : index
    %c0_106 = arith.constant 0 : index
    %135 = vector.load %arg7[%c0_103, %c4_104, %c0_105, %c0_106] : memref<2x6x1x16xf32, #tpu.memory_space<vmem>>, vector<1x1x1x16xf32>
    %136 = vector.shape_cast %135 : vector<1x1x1x16xf32> to vector<1x16xf32>
    %c0_107 = arith.constant 0 : index
    %c5_108 = arith.constant 5 : index
    %c0_109 = arith.constant 0 : index
    %c0_110 = arith.constant 0 : index
    %137 = vector.load %arg7[%c0_107, %c5_108, %c0_109, %c0_110] : memref<2x6x1x16xf32, #tpu.memory_space<vmem>>, vector<1x1x1x16xf32>
    %138 = vector.shape_cast %137 : vector<1x1x1x16xf32> to vector<1x16xf32>
    %cst_111 = arith.constant dense<0.000000e+00> : vector<32xf32>
    %139 = vector.multi_reduction <add>, %134, %cst_111 [1] : vector<32x16xf32> to vector<32xf32>
    %140 = vector.shape_cast %139 : vector<32xf32> to vector<32x1xf32>
    %cst_112 = arith.constant 1.600000e+01 : f32
    %141 = vector.broadcast %cst_112 : f32 to vector<32x1xf32>
    %142 = arith.divf %140, %141 : vector<32x1xf32>
    %143 = vector.broadcast %142 : vector<32x1xf32> to vector<32x16xf32>
    %144 = arith.subf %134, %143 : vector<32x16xf32>
    %145 = arith.mulf %144, %144 : vector<32x16xf32>
    %cst_113 = arith.constant dense<0.000000e+00> : vector<32xf32>
    %146 = vector.multi_reduction <add>, %145, %cst_113 [1] : vector<32x16xf32> to vector<32xf32>
    %147 = vector.shape_cast %146 : vector<32xf32> to vector<32x1xf32>
    %cst_114 = arith.constant 1.600000e+01 : f32
    %148 = vector.broadcast %cst_114 : f32 to vector<32x1xf32>
    %149 = arith.divf %147, %148 : vector<32x1xf32>
    %150 = vector.broadcast %142 : vector<32x1xf32> to vector<32x16xf32>
    %151 = arith.subf %134, %150 : vector<32x16xf32>
    %cst_115 = arith.constant 9.99999974E-6 : f32
    %152 = vector.broadcast %cst_115 : f32 to vector<32x1xf32>
    %153 = arith.addf %149, %152 : vector<32x1xf32>
    %154 = math.rsqrt %153 : vector<32x1xf32>
    %155 = vector.broadcast %154 : vector<32x1xf32> to vector<32x16xf32>
    %156 = arith.mulf %151, %155 : vector<32x16xf32>
    %157 = vector.broadcast %136 : vector<1x16xf32> to vector<32x16xf32>
    %158 = arith.mulf %156, %157 : vector<32x16xf32>
    %159 = vector.broadcast %138 : vector<1x16xf32> to vector<32x16xf32>
    %160 = arith.addf %158, %159 : vector<32x16xf32>
    %c1_116 = arith.constant 1 : index
    %c0_117 = arith.constant 0 : index
    %c0_118 = arith.constant 0 : index
    %c0_119 = arith.constant 0 : index
    %161 = vector.load %arg2[%c1_116, %c0_117, %c0_118, %c0_119] : memref<2x2x16x8xf32, #tpu.memory_space<vmem>>, vector<1x1x16x8xf32>
    %162 = vector.shape_cast %161 : vector<1x1x16x8xf32> to vector<16x8xf32>
    %cst_120 = arith.constant dense<0.000000e+00> : vector<32x8xf32>
    %163 = tpu.matmul %160, %162, %cst_120 {dimension_numbers = #tpu.dot_dimension_numbers<[1], [0], [0], [1], [0, 0, 1, 1], [], []>} : vector<32x16xf32>, vector<16x8xf32>, vector<32x8xf32> -> vector<32x8xf32>
    %c1_121 = arith.constant 1 : index
    %c0_122 = arith.constant 0 : index
    %c0_123 = arith.constant 0 : index
    %c0_124 = arith.constant 0 : index
    %164 = vector.load %arg6[%c1_121, %c0_122, %c0_123, %c0_124] : memref<2x6x1x8xf32, #tpu.memory_space<vmem>>, vector<1x1x1x8xf32>
    %165 = vector.shape_cast %164 : vector<1x1x1x8xf32> to vector<1x8xf32>
    %166 = vector.broadcast %165 : vector<1x8xf32> to vector<32x8xf32>
    %167 = arith.addf %163, %166 : vector<32x8xf32>
    %168 = vector.shape_cast %167 : vector<32x8xf32> to vector<2x16x8xf32>
    %c1_125 = arith.constant 1 : index
    %c0_126 = arith.constant 0 : index
    %c0_127 = arith.constant 0 : index
    %c0_128 = arith.constant 0 : index
    %169 = vector.load %arg3[%c1_125, %c0_126, %c0_127, %c0_128] : memref<2x2x16x8xf32, #tpu.memory_space<vmem>>, vector<1x1x16x8xf32>
    %170 = vector.shape_cast %169 : vector<1x1x16x8xf32> to vector<16x8xf32>
    %cst_129 = arith.constant dense<0.000000e+00> : vector<32x8xf32>
    %171 = tpu.matmul %160, %170, %cst_129 {dimension_numbers = #tpu.dot_dimension_numbers<[1], [0], [0], [1], [0, 0, 1, 1], [], []>} : vector<32x16xf32>, vector<16x8xf32>, vector<32x8xf32> -> vector<32x8xf32>
    %c1_130 = arith.constant 1 : index
    %c2_131 = arith.constant 2 : index
    %c0_132 = arith.constant 0 : index
    %c0_133 = arith.constant 0 : index
    %172 = vector.load %arg6[%c1_130, %c2_131, %c0_132, %c0_133] : memref<2x6x1x8xf32, #tpu.memory_space<vmem>>, vector<1x1x1x8xf32>
    %173 = vector.shape_cast %172 : vector<1x1x1x8xf32> to vector<1x8xf32>
    %174 = vector.broadcast %173 : vector<1x8xf32> to vector<32x8xf32>
    %175 = arith.addf %171, %174 : vector<32x8xf32>
    %176 = vector.shape_cast %175 : vector<32x8xf32> to vector<2x16x8xf32>
    %c1_134 = arith.constant 1 : index
    %c0_135 = arith.constant 0 : index
    %c0_136 = arith.constant 0 : index
    %c0_137 = arith.constant 0 : index
    %177 = vector.load %arg4[%c1_134, %c0_135, %c0_136, %c0_137] : memref<2x2x16x8xf32, #tpu.memory_space<vmem>>, vector<1x1x16x8xf32>
    %178 = vector.shape_cast %177 : vector<1x1x16x8xf32> to vector<16x8xf32>
    %cst_138 = arith.constant dense<0.000000e+00> : vector<32x8xf32>
    %179 = tpu.matmul %160, %178, %cst_138 {dimension_numbers = #tpu.dot_dimension_numbers<[1], [0], [0], [1], [0, 0, 1, 1], [], []>} : vector<32x16xf32>, vector<16x8xf32>, vector<32x8xf32> -> vector<32x8xf32>
    %c1_139 = arith.constant 1 : index
    %c4_140 = arith.constant 4 : index
    %c0_141 = arith.constant 0 : index
    %c0_142 = arith.constant 0 : index
    %180 = vector.load %arg6[%c1_139, %c4_140, %c0_141, %c0_142] : memref<2x6x1x8xf32, #tpu.memory_space<vmem>>, vector<1x1x1x8xf32>
    %181 = vector.shape_cast %180 : vector<1x1x1x8xf32> to vector<1x8xf32>
    %182 = vector.broadcast %181 : vector<1x8xf32> to vector<32x8xf32>
    %183 = arith.addf %179, %182 : vector<32x8xf32>
    %184 = vector.shape_cast %183 : vector<32x8xf32> to vector<2x16x8xf32>
    %cst_143 = arith.constant dense<0.000000e+00> : vector<2x16x16xf32>
    %185 = tpu.matmul %168, %176, %cst_143 {dimension_numbers = #tpu.dot_dimension_numbers<[2], [2], [1], [1], [0, 0, 0, 1, 1, 1], [0], [0]>} : vector<2x16x8xf32>, vector<2x16x8xf32>, vector<2x16x16xf32> -> vector<2x16x16xf32>
    %cst_144 = arith.constant 0.353553385 : f32
    %186 = vector.broadcast %cst_144 : f32 to vector<2x16x16xf32>
    %187 = arith.mulf %185, %186 : vector<2x16x16xf32>
    %cst_145 = arith.constant dense<0xFF800000> : vector<2x16xf32>
    %188 = vector.multi_reduction <maximumf>, %187, %cst_145 [2] : vector<2x16x16xf32> to vector<2x16xf32>
    %189 = vector.shape_cast %188 : vector<2x16xf32> to vector<2x16x1xf32>
    %190 = vector.broadcast %189 : vector<2x16x1xf32> to vector<2x16x16xf32>
    %191 = arith.subf %187, %190 : vector<2x16x16xf32>
    %192 = math.exp %191 : vector<2x16x16xf32>
    %cst_146 = arith.constant dense<0.000000e+00> : vector<2x16xf32>
    %193 = vector.multi_reduction <add>, %192, %cst_146 [2] : vector<2x16x16xf32> to vector<2x16xf32>
    %194 = vector.shape_cast %193 : vector<2x16xf32> to vector<2x16x1xf32>
    %195 = tpu.reciprocal %194 {approx = true} : vector<2x16x1xf32> -> vector<2x16x1xf32>
    %196 = vector.broadcast %195 : vector<2x16x1xf32> to vector<2x16x16xf32>
    %197 = arith.mulf %192, %196 : vector<2x16x16xf32>
    %cst_147 = arith.constant dense<0.000000e+00> : vector<2x16x8xf32>
    %198 = tpu.matmul %197, %184, %cst_147 {dimension_numbers = #tpu.dot_dimension_numbers<[2], [1], [1], [2], [0, 0, 0, 1, 1, 2], [0], [0]>} : vector<2x16x16xf32>, vector<2x16x8xf32>, vector<2x16x8xf32> -> vector<2x16x8xf32>
    %199 = vector.shape_cast %198 : vector<2x16x8xf32> to vector<32x8xf32>
    %c1_148 = arith.constant 1 : index
    %c0_149 = arith.constant 0 : index
    %c0_150 = arith.constant 0 : index
    %c0_151 = arith.constant 0 : index
    %200 = vector.load %arg5[%c1_148, %c0_149, %c0_150, %c0_151] : memref<2x2x8x16xf32, #tpu.memory_space<vmem>>, vector<1x1x8x16xf32>
    %201 = vector.shape_cast %200 : vector<1x1x8x16xf32> to vector<8x16xf32>
    %cst_152 = arith.constant dense<0.000000e+00> : vector<32x16xf32>
    %202 = tpu.matmul %199, %201, %cst_152 {dimension_numbers = #tpu.dot_dimension_numbers<[1], [0], [0], [1], [0, 0, 1, 1], [], []>} : vector<32x8xf32>, vector<8x16xf32>, vector<32x16xf32> -> vector<32x16xf32>
    %c1_153 = arith.constant 1 : index
    %c1_154 = arith.constant 1 : index
    %c0_155 = arith.constant 0 : index
    %c0_156 = arith.constant 0 : index
    %203 = vector.load %arg2[%c1_153, %c1_154, %c0_155, %c0_156] : memref<2x2x16x8xf32, #tpu.memory_space<vmem>>, vector<1x1x16x8xf32>
    %204 = vector.shape_cast %203 : vector<1x1x16x8xf32> to vector<16x8xf32>
    %cst_157 = arith.constant dense<0.000000e+00> : vector<32x8xf32>
    %205 = tpu.matmul %160, %204, %cst_157 {dimension_numbers = #tpu.dot_dimension_numbers<[1], [0], [0], [1], [0, 0, 1, 1], [], []>} : vector<32x16xf32>, vector<16x8xf32>, vector<32x8xf32> -> vector<32x8xf32>
    %c1_158 = arith.constant 1 : index
    %c1_159 = arith.constant 1 : index
    %c0_160 = arith.constant 0 : index
    %c0_161 = arith.constant 0 : index
    %206 = vector.load %arg6[%c1_158, %c1_159, %c0_160, %c0_161] : memref<2x6x1x8xf32, #tpu.memory_space<vmem>>, vector<1x1x1x8xf32>
    %207 = vector.shape_cast %206 : vector<1x1x1x8xf32> to vector<1x8xf32>
    %208 = vector.broadcast %207 : vector<1x8xf32> to vector<32x8xf32>
    %209 = arith.addf %205, %208 : vector<32x8xf32>
    %210 = vector.shape_cast %209 : vector<32x8xf32> to vector<2x16x8xf32>
    %c1_162 = arith.constant 1 : index
    %c1_163 = arith.constant 1 : index
    %c0_164 = arith.constant 0 : index
    %c0_165 = arith.constant 0 : index
    %211 = vector.load %arg3[%c1_162, %c1_163, %c0_164, %c0_165] : memref<2x2x16x8xf32, #tpu.memory_space<vmem>>, vector<1x1x16x8xf32>
    %212 = vector.shape_cast %211 : vector<1x1x16x8xf32> to vector<16x8xf32>
    %cst_166 = arith.constant dense<0.000000e+00> : vector<32x8xf32>
    %213 = tpu.matmul %160, %212, %cst_166 {dimension_numbers = #tpu.dot_dimension_numbers<[1], [0], [0], [1], [0, 0, 1, 1], [], []>} : vector<32x16xf32>, vector<16x8xf32>, vector<32x8xf32> -> vector<32x8xf32>
    %c1_167 = arith.constant 1 : index
    %c3_168 = arith.constant 3 : index
    %c0_169 = arith.constant 0 : index
    %c0_170 = arith.constant 0 : index
    %214 = vector.load %arg6[%c1_167, %c3_168, %c0_169, %c0_170] : memref<2x6x1x8xf32, #tpu.memory_space<vmem>>, vector<1x1x1x8xf32>
    %215 = vector.shape_cast %214 : vector<1x1x1x8xf32> to vector<1x8xf32>
    %216 = vector.broadcast %215 : vector<1x8xf32> to vector<32x8xf32>
    %217 = arith.addf %213, %216 : vector<32x8xf32>
    %218 = vector.shape_cast %217 : vector<32x8xf32> to vector<2x16x8xf32>
    %c1_171 = arith.constant 1 : index
    %c1_172 = arith.constant 1 : index
    %c0_173 = arith.constant 0 : index
    %c0_174 = arith.constant 0 : index
    %219 = vector.load %arg4[%c1_171, %c1_172, %c0_173, %c0_174] : memref<2x2x16x8xf32, #tpu.memory_space<vmem>>, vector<1x1x16x8xf32>
    %220 = vector.shape_cast %219 : vector<1x1x16x8xf32> to vector<16x8xf32>
    %cst_175 = arith.constant dense<0.000000e+00> : vector<32x8xf32>
    %221 = tpu.matmul %160, %220, %cst_175 {dimension_numbers = #tpu.dot_dimension_numbers<[1], [0], [0], [1], [0, 0, 1, 1], [], []>} : vector<32x16xf32>, vector<16x8xf32>, vector<32x8xf32> -> vector<32x8xf32>
    %c1_176 = arith.constant 1 : index
    %c5_177 = arith.constant 5 : index
    %c0_178 = arith.constant 0 : index
    %c0_179 = arith.constant 0 : index
    %222 = vector.load %arg6[%c1_176, %c5_177, %c0_178, %c0_179] : memref<2x6x1x8xf32, #tpu.memory_space<vmem>>, vector<1x1x1x8xf32>
    %223 = vector.shape_cast %222 : vector<1x1x1x8xf32> to vector<1x8xf32>
    %224 = vector.broadcast %223 : vector<1x8xf32> to vector<32x8xf32>
    %225 = arith.addf %221, %224 : vector<32x8xf32>
    %226 = vector.shape_cast %225 : vector<32x8xf32> to vector<2x16x8xf32>
    %cst_180 = arith.constant dense<0.000000e+00> : vector<2x16x16xf32>
    %227 = tpu.matmul %210, %218, %cst_180 {dimension_numbers = #tpu.dot_dimension_numbers<[2], [2], [1], [1], [0, 0, 0, 1, 1, 1], [0], [0]>} : vector<2x16x8xf32>, vector<2x16x8xf32>, vector<2x16x16xf32> -> vector<2x16x16xf32>
    %cst_181 = arith.constant 0.353553385 : f32
    %228 = vector.broadcast %cst_181 : f32 to vector<2x16x16xf32>
    %229 = arith.mulf %227, %228 : vector<2x16x16xf32>
    %cst_182 = arith.constant dense<0xFF800000> : vector<2x16xf32>
    %230 = vector.multi_reduction <maximumf>, %229, %cst_182 [2] : vector<2x16x16xf32> to vector<2x16xf32>
    %231 = vector.shape_cast %230 : vector<2x16xf32> to vector<2x16x1xf32>
    %232 = vector.broadcast %231 : vector<2x16x1xf32> to vector<2x16x16xf32>
    %233 = arith.subf %229, %232 : vector<2x16x16xf32>
    %234 = math.exp %233 : vector<2x16x16xf32>
    %cst_183 = arith.constant dense<0.000000e+00> : vector<2x16xf32>
    %235 = vector.multi_reduction <add>, %234, %cst_183 [2] : vector<2x16x16xf32> to vector<2x16xf32>
    %236 = vector.shape_cast %235 : vector<2x16xf32> to vector<2x16x1xf32>
    %237 = tpu.reciprocal %236 {approx = true} : vector<2x16x1xf32> -> vector<2x16x1xf32>
    %238 = vector.broadcast %237 : vector<2x16x1xf32> to vector<2x16x16xf32>
    %239 = arith.mulf %234, %238 : vector<2x16x16xf32>
    %cst_184 = arith.constant dense<0.000000e+00> : vector<2x16x8xf32>
    %240 = tpu.matmul %239, %226, %cst_184 {dimension_numbers = #tpu.dot_dimension_numbers<[2], [1], [1], [2], [0, 0, 0, 1, 1, 2], [0], [0]>} : vector<2x16x16xf32>, vector<2x16x8xf32>, vector<2x16x8xf32> -> vector<2x16x8xf32>
    %241 = vector.shape_cast %240 : vector<2x16x8xf32> to vector<32x8xf32>
    %c1_185 = arith.constant 1 : index
    %c1_186 = arith.constant 1 : index
    %c0_187 = arith.constant 0 : index
    %c0_188 = arith.constant 0 : index
    %242 = vector.load %arg5[%c1_185, %c1_186, %c0_187, %c0_188] : memref<2x2x8x16xf32, #tpu.memory_space<vmem>>, vector<1x1x8x16xf32>
    %243 = vector.shape_cast %242 : vector<1x1x8x16xf32> to vector<8x16xf32>
    %cst_189 = arith.constant dense<0.000000e+00> : vector<32x16xf32>
    %244 = tpu.matmul %241, %243, %cst_189 {dimension_numbers = #tpu.dot_dimension_numbers<[1], [0], [0], [1], [0, 0, 1, 1], [], []>} : vector<32x8xf32>, vector<8x16xf32>, vector<32x16xf32> -> vector<32x16xf32>
    %245 = arith.addf %202, %244 : vector<32x16xf32>
    %246 = arith.addf %160, %245 : vector<32x16xf32>
    %c1_190 = arith.constant 1 : index
    %c0_191 = arith.constant 0 : index
    %c0_192 = arith.constant 0 : index
    %c0_193 = arith.constant 0 : index
    %247 = vector.load %arg7[%c1_190, %c0_191, %c0_192, %c0_193] : memref<2x6x1x16xf32, #tpu.memory_space<vmem>>, vector<1x1x1x16xf32>
    %248 = vector.shape_cast %247 : vector<1x1x1x16xf32> to vector<1x16xf32>
    %249 = vector.broadcast %248 : vector<1x16xf32> to vector<32x16xf32>
    %250 = arith.addf %246, %249 : vector<32x16xf32>
    %c1_194 = arith.constant 1 : index
    %c1_195 = arith.constant 1 : index
    %c0_196 = arith.constant 0 : index
    %c0_197 = arith.constant 0 : index
    %251 = vector.load %arg7[%c1_194, %c1_195, %c0_196, %c0_197] : memref<2x6x1x16xf32, #tpu.memory_space<vmem>>, vector<1x1x1x16xf32>
    %252 = vector.shape_cast %251 : vector<1x1x1x16xf32> to vector<1x16xf32>
    %c1_198 = arith.constant 1 : index
    %c2_199 = arith.constant 2 : index
    %c0_200 = arith.constant 0 : index
    %c0_201 = arith.constant 0 : index
    %253 = vector.load %arg7[%c1_198, %c2_199, %c0_200, %c0_201] : memref<2x6x1x16xf32, #tpu.memory_space<vmem>>, vector<1x1x1x16xf32>
    %254 = vector.shape_cast %253 : vector<1x1x1x16xf32> to vector<1x16xf32>
    %cst_202 = arith.constant dense<0.000000e+00> : vector<32xf32>
    %255 = vector.multi_reduction <add>, %250, %cst_202 [1] : vector<32x16xf32> to vector<32xf32>
    %256 = vector.shape_cast %255 : vector<32xf32> to vector<32x1xf32>
    %cst_203 = arith.constant 1.600000e+01 : f32
    %257 = vector.broadcast %cst_203 : f32 to vector<32x1xf32>
    %258 = arith.divf %256, %257 : vector<32x1xf32>
    %259 = vector.broadcast %258 : vector<32x1xf32> to vector<32x16xf32>
    %260 = arith.subf %250, %259 : vector<32x16xf32>
    %261 = arith.mulf %260, %260 : vector<32x16xf32>
    %cst_204 = arith.constant dense<0.000000e+00> : vector<32xf32>
    %262 = vector.multi_reduction <add>, %261, %cst_204 [1] : vector<32x16xf32> to vector<32xf32>
    %263 = vector.shape_cast %262 : vector<32xf32> to vector<32x1xf32>
    %cst_205 = arith.constant 1.600000e+01 : f32
    %264 = vector.broadcast %cst_205 : f32 to vector<32x1xf32>
    %265 = arith.divf %263, %264 : vector<32x1xf32>
    %266 = vector.broadcast %258 : vector<32x1xf32> to vector<32x16xf32>
    %267 = arith.subf %250, %266 : vector<32x16xf32>
    %cst_206 = arith.constant 9.99999974E-6 : f32
    %268 = vector.broadcast %cst_206 : f32 to vector<32x1xf32>
    %269 = arith.addf %265, %268 : vector<32x1xf32>
    %270 = math.rsqrt %269 : vector<32x1xf32>
    %271 = vector.broadcast %270 : vector<32x1xf32> to vector<32x16xf32>
    %272 = arith.mulf %267, %271 : vector<32x16xf32>
    %273 = vector.broadcast %252 : vector<1x16xf32> to vector<32x16xf32>
    %274 = arith.mulf %272, %273 : vector<32x16xf32>
    %275 = vector.broadcast %254 : vector<1x16xf32> to vector<32x16xf32>
    %276 = arith.addf %274, %275 : vector<32x16xf32>
    %c1_207 = arith.constant 1 : index
    %c0_208 = arith.constant 0 : index
    %c0_209 = arith.constant 0 : index
    %277 = vector.load %arg8[%c1_207, %c0_208, %c0_209] : memref<2x16x32xf32, #tpu.memory_space<vmem>>, vector<1x16x32xf32>
    %278 = vector.shape_cast %277 : vector<1x16x32xf32> to vector<16x32xf32>
    %cst_210 = arith.constant dense<0.000000e+00> : vector<32x32xf32>
    %279 = tpu.matmul %276, %278, %cst_210 {dimension_numbers = #tpu.dot_dimension_numbers<[1], [0], [0], [1], [0, 0, 1, 1], [], []>} : vector<32x16xf32>, vector<16x32xf32>, vector<32x32xf32> -> vector<32x32xf32>
    %c1_211 = arith.constant 1 : index
    %c0_212 = arith.constant 0 : index
    %c0_213 = arith.constant 0 : index
    %280 = vector.load %arg9[%c1_211, %c0_212, %c0_213] : memref<2x1x32xf32, #tpu.memory_space<vmem>>, vector<1x1x32xf32>
    %281 = vector.shape_cast %280 : vector<1x1x32xf32> to vector<1x32xf32>
    %282 = vector.broadcast %281 : vector<1x32xf32> to vector<32x32xf32>
    %283 = arith.addf %279, %282 : vector<32x32xf32>
    %cst_214 = arith.constant 0.000000e+00 : f32
    %284 = vector.broadcast %cst_214 : f32 to vector<32x32xf32>
    %285 = arith.maximumf %283, %284 : vector<32x32xf32>
    %c1_215 = arith.constant 1 : index
    %c0_216 = arith.constant 0 : index
    %c0_217 = arith.constant 0 : index
    %286 = vector.load %arg10[%c1_215, %c0_216, %c0_217] : memref<2x32x16xf32, #tpu.memory_space<vmem>>, vector<1x32x16xf32>
    %287 = vector.shape_cast %286 : vector<1x32x16xf32> to vector<32x16xf32>
    %cst_218 = arith.constant dense<0.000000e+00> : vector<32x16xf32>
    %288 = tpu.matmul %285, %287, %cst_218 {dimension_numbers = #tpu.dot_dimension_numbers<[1], [0], [0], [1], [0, 0, 1, 1], [], []>} : vector<32x32xf32>, vector<32x16xf32>, vector<32x16xf32> -> vector<32x16xf32>
    %289 = arith.addf %276, %288 : vector<32x16xf32>
    %c1_219 = arith.constant 1 : index
    %c3_220 = arith.constant 3 : index
    %c0_221 = arith.constant 0 : index
    %c0_222 = arith.constant 0 : index
    %290 = vector.load %arg7[%c1_219, %c3_220, %c0_221, %c0_222] : memref<2x6x1x16xf32, #tpu.memory_space<vmem>>, vector<1x1x1x16xf32>
    %291 = vector.shape_cast %290 : vector<1x1x1x16xf32> to vector<1x16xf32>
    %292 = vector.broadcast %291 : vector<1x16xf32> to vector<32x16xf32>
    %293 = arith.addf %289, %292 : vector<32x16xf32>
    %c1_223 = arith.constant 1 : index
    %c4_224 = arith.constant 4 : index
    %c0_225 = arith.constant 0 : index
    %c0_226 = arith.constant 0 : index
    %294 = vector.load %arg7[%c1_223, %c4_224, %c0_225, %c0_226] : memref<2x6x1x16xf32, #tpu.memory_space<vmem>>, vector<1x1x1x16xf32>
    %295 = vector.shape_cast %294 : vector<1x1x1x16xf32> to vector<1x16xf32>
    %c1_227 = arith.constant 1 : index
    %c5_228 = arith.constant 5 : index
    %c0_229 = arith.constant 0 : index
    %c0_230 = arith.constant 0 : index
    %296 = vector.load %arg7[%c1_227, %c5_228, %c0_229, %c0_230] : memref<2x6x1x16xf32, #tpu.memory_space<vmem>>, vector<1x1x1x16xf32>
    %297 = vector.shape_cast %296 : vector<1x1x1x16xf32> to vector<1x16xf32>
    %cst_231 = arith.constant dense<0.000000e+00> : vector<32xf32>
    %298 = vector.multi_reduction <add>, %293, %cst_231 [1] : vector<32x16xf32> to vector<32xf32>
    %299 = vector.shape_cast %298 : vector<32xf32> to vector<32x1xf32>
    %cst_232 = arith.constant 1.600000e+01 : f32
    %300 = vector.broadcast %cst_232 : f32 to vector<32x1xf32>
    %301 = arith.divf %299, %300 : vector<32x1xf32>
    %302 = vector.broadcast %301 : vector<32x1xf32> to vector<32x16xf32>
    %303 = arith.subf %293, %302 : vector<32x16xf32>
    %304 = arith.mulf %303, %303 : vector<32x16xf32>
    %cst_233 = arith.constant dense<0.000000e+00> : vector<32xf32>
    %305 = vector.multi_reduction <add>, %304, %cst_233 [1] : vector<32x16xf32> to vector<32xf32>
    %306 = vector.shape_cast %305 : vector<32xf32> to vector<32x1xf32>
    %cst_234 = arith.constant 1.600000e+01 : f32
    %307 = vector.broadcast %cst_234 : f32 to vector<32x1xf32>
    %308 = arith.divf %306, %307 : vector<32x1xf32>
    %309 = vector.broadcast %301 : vector<32x1xf32> to vector<32x16xf32>
    %310 = arith.subf %293, %309 : vector<32x16xf32>
    %cst_235 = arith.constant 9.99999974E-6 : f32
    %311 = vector.broadcast %cst_235 : f32 to vector<32x1xf32>
    %312 = arith.addf %308, %311 : vector<32x1xf32>
    %313 = math.rsqrt %312 : vector<32x1xf32>
    %314 = vector.broadcast %313 : vector<32x1xf32> to vector<32x16xf32>
    %315 = arith.mulf %310, %314 : vector<32x16xf32>
    %316 = vector.broadcast %295 : vector<1x16xf32> to vector<32x16xf32>
    %317 = arith.mulf %315, %316 : vector<32x16xf32>
    %318 = vector.broadcast %297 : vector<1x16xf32> to vector<32x16xf32>
    %319 = arith.addf %317, %318 : vector<32x16xf32>
    %c0_236 = arith.constant 0 : index
    %c0_237 = arith.constant 0 : index
    %320 = vector.load %arg11[%c0_236, %c0_237] : memref<16x8xf32, #tpu.memory_space<vmem>>, vector<16x8xf32>
    %cst_238 = arith.constant dense<0.000000e+00> : vector<32x8xf32>
    %321 = tpu.matmul %319, %320, %cst_238 {dimension_numbers = #tpu.dot_dimension_numbers<[1], [0], [0], [1], [0, 0, 1, 1], [], []>} : vector<32x16xf32>, vector<16x8xf32>, vector<32x8xf32> -> vector<32x8xf32>
    %c0_239 = arith.constant 0 : index
    %c0_240 = arith.constant 0 : index
    %322 = vector.load %arg12[%c0_239, %c0_240] : memref<1x8xf32, #tpu.memory_space<vmem>>, vector<1x8xf32>
    %323 = vector.broadcast %322 : vector<1x8xf32> to vector<32x8xf32>
    %324 = arith.addf %321, %323 : vector<32x8xf32>
    %cst_241 = arith.constant 0.000000e+00 : f32
    %325 = vector.broadcast %cst_241 : f32 to vector<32x8xf32>
    %326 = arith.cmpf oge, %324, %325 : vector<32x8xf32>
    %cst_242 = arith.constant 0.00999999977 : f32
    %327 = vector.broadcast %cst_242 : f32 to vector<32x8xf32>
    %328 = arith.mulf %327, %324 : vector<32x8xf32>
    %329 = arith.select %326, %324, %328 : vector<32x8xi1>, vector<32x8xf32>
    %330 = vector.shape_cast %329 : vector<32x8xf32> to vector<2x16x8xf32>
    %331 = vector.extract_strided_slice %330 {offsets = [0, 0, 0], sizes = [2, 1, 8], strides = [1, 1, 1]} : vector<2x16x8xf32> to vector<2x1x8xf32>
    %332 = vector.shape_cast %331 : vector<2x1x8xf32> to vector<2x8xf32>
    %c0_243 = arith.constant 0 : index
    %c0_244 = arith.constant 0 : index
    %c0_245 = arith.constant 0 : index
    %333 = vector.load %arg13[%c0_243, %c0_244, %c0_245] : memref<16x8x32xf32, #tpu.memory_space<vmem>>, vector<1x8x32xf32>
    %334 = vector.shape_cast %333 : vector<1x8x32xf32> to vector<8x32xf32>
    %cst_246 = arith.constant dense<0.000000e+00> : vector<2x32xf32>
    %335 = tpu.matmul %332, %334, %cst_246 {dimension_numbers = #tpu.dot_dimension_numbers<[1], [0], [0], [1], [0, 0, 1, 1], [], []>} : vector<2x8xf32>, vector<8x32xf32>, vector<2x32xf32> -> vector<2x32xf32>
    %336 = vector.extract_strided_slice %330 {offsets = [0, 1, 0], sizes = [2, 1, 8], strides = [1, 1, 1]} : vector<2x16x8xf32> to vector<2x1x8xf32>
    %337 = vector.shape_cast %336 : vector<2x1x8xf32> to vector<2x8xf32>
    %c1_247 = arith.constant 1 : index
    %c0_248 = arith.constant 0 : index
    %c0_249 = arith.constant 0 : index
    %338 = vector.load %arg13[%c1_247, %c0_248, %c0_249] : memref<16x8x32xf32, #tpu.memory_space<vmem>>, vector<1x8x32xf32>
    %339 = vector.shape_cast %338 : vector<1x8x32xf32> to vector<8x32xf32>
    %cst_250 = arith.constant dense<0.000000e+00> : vector<2x32xf32>
    %340 = tpu.matmul %337, %339, %cst_250 {dimension_numbers = #tpu.dot_dimension_numbers<[1], [0], [0], [1], [0, 0, 1, 1], [], []>} : vector<2x8xf32>, vector<8x32xf32>, vector<2x32xf32> -> vector<2x32xf32>
    %341 = arith.addf %335, %340 : vector<2x32xf32>
    %342 = vector.extract_strided_slice %330 {offsets = [0, 2, 0], sizes = [2, 1, 8], strides = [1, 1, 1]} : vector<2x16x8xf32> to vector<2x1x8xf32>
    %343 = vector.shape_cast %342 : vector<2x1x8xf32> to vector<2x8xf32>
    %c2_251 = arith.constant 2 : index
    %c0_252 = arith.constant 0 : index
    %c0_253 = arith.constant 0 : index
    %344 = vector.load %arg13[%c2_251, %c0_252, %c0_253] : memref<16x8x32xf32, #tpu.memory_space<vmem>>, vector<1x8x32xf32>
    %345 = vector.shape_cast %344 : vector<1x8x32xf32> to vector<8x32xf32>
    %cst_254 = arith.constant dense<0.000000e+00> : vector<2x32xf32>
    %346 = tpu.matmul %343, %345, %cst_254 {dimension_numbers = #tpu.dot_dimension_numbers<[1], [0], [0], [1], [0, 0, 1, 1], [], []>} : vector<2x8xf32>, vector<8x32xf32>, vector<2x32xf32> -> vector<2x32xf32>
    %347 = arith.addf %341, %346 : vector<2x32xf32>
    %348 = vector.extract_strided_slice %330 {offsets = [0, 3, 0], sizes = [2, 1, 8], strides = [1, 1, 1]} : vector<2x16x8xf32> to vector<2x1x8xf32>
    %349 = vector.shape_cast %348 : vector<2x1x8xf32> to vector<2x8xf32>
    %c3_255 = arith.constant 3 : index
    %c0_256 = arith.constant 0 : index
    %c0_257 = arith.constant 0 : index
    %350 = vector.load %arg13[%c3_255, %c0_256, %c0_257] : memref<16x8x32xf32, #tpu.memory_space<vmem>>, vector<1x8x32xf32>
    %351 = vector.shape_cast %350 : vector<1x8x32xf32> to vector<8x32xf32>
    %cst_258 = arith.constant dense<0.000000e+00> : vector<2x32xf32>
    %352 = tpu.matmul %349, %351, %cst_258 {dimension_numbers = #tpu.dot_dimension_numbers<[1], [0], [0], [1], [0, 0, 1, 1], [], []>} : vector<2x8xf32>, vector<8x32xf32>, vector<2x32xf32> -> vector<2x32xf32>
    %353 = arith.addf %347, %352 : vector<2x32xf32>
    %354 = vector.extract_strided_slice %330 {offsets = [0, 4, 0], sizes = [2, 1, 8], strides = [1, 1, 1]} : vector<2x16x8xf32> to vector<2x1x8xf32>
    %355 = vector.shape_cast %354 : vector<2x1x8xf32> to vector<2x8xf32>
    %c4_259 = arith.constant 4 : index
    %c0_260 = arith.constant 0 : index
    %c0_261 = arith.constant 0 : index
    %356 = vector.load %arg13[%c4_259, %c0_260, %c0_261] : memref<16x8x32xf32, #tpu.memory_space<vmem>>, vector<1x8x32xf32>
    %357 = vector.shape_cast %356 : vector<1x8x32xf32> to vector<8x32xf32>
    %cst_262 = arith.constant dense<0.000000e+00> : vector<2x32xf32>
    %358 = tpu.matmul %355, %357, %cst_262 {dimension_numbers = #tpu.dot_dimension_numbers<[1], [0], [0], [1], [0, 0, 1, 1], [], []>} : vector<2x8xf32>, vector<8x32xf32>, vector<2x32xf32> -> vector<2x32xf32>
    %359 = arith.addf %353, %358 : vector<2x32xf32>
    %360 = vector.extract_strided_slice %330 {offsets = [0, 5, 0], sizes = [2, 1, 8], strides = [1, 1, 1]} : vector<2x16x8xf32> to vector<2x1x8xf32>
    %361 = vector.shape_cast %360 : vector<2x1x8xf32> to vector<2x8xf32>
    %c5_263 = arith.constant 5 : index
    %c0_264 = arith.constant 0 : index
    %c0_265 = arith.constant 0 : index
    %362 = vector.load %arg13[%c5_263, %c0_264, %c0_265] : memref<16x8x32xf32, #tpu.memory_space<vmem>>, vector<1x8x32xf32>
    %363 = vector.shape_cast %362 : vector<1x8x32xf32> to vector<8x32xf32>
    %cst_266 = arith.constant dense<0.000000e+00> : vector<2x32xf32>
    %364 = tpu.matmul %361, %363, %cst_266 {dimension_numbers = #tpu.dot_dimension_numbers<[1], [0], [0], [1], [0, 0, 1, 1], [], []>} : vector<2x8xf32>, vector<8x32xf32>, vector<2x32xf32> -> vector<2x32xf32>
    %365 = arith.addf %359, %364 : vector<2x32xf32>
    %366 = vector.extract_strided_slice %330 {offsets = [0, 6, 0], sizes = [2, 1, 8], strides = [1, 1, 1]} : vector<2x16x8xf32> to vector<2x1x8xf32>
    %367 = vector.shape_cast %366 : vector<2x1x8xf32> to vector<2x8xf32>
    %c6 = arith.constant 6 : index
    %c0_267 = arith.constant 0 : index
    %c0_268 = arith.constant 0 : index
    %368 = vector.load %arg13[%c6, %c0_267, %c0_268] : memref<16x8x32xf32, #tpu.memory_space<vmem>>, vector<1x8x32xf32>
    %369 = vector.shape_cast %368 : vector<1x8x32xf32> to vector<8x32xf32>
    %cst_269 = arith.constant dense<0.000000e+00> : vector<2x32xf32>
    %370 = tpu.matmul %367, %369, %cst_269 {dimension_numbers = #tpu.dot_dimension_numbers<[1], [0], [0], [1], [0, 0, 1, 1], [], []>} : vector<2x8xf32>, vector<8x32xf32>, vector<2x32xf32> -> vector<2x32xf32>
    %371 = arith.addf %365, %370 : vector<2x32xf32>
    %372 = vector.extract_strided_slice %330 {offsets = [0, 7, 0], sizes = [2, 1, 8], strides = [1, 1, 1]} : vector<2x16x8xf32> to vector<2x1x8xf32>
    %373 = vector.shape_cast %372 : vector<2x1x8xf32> to vector<2x8xf32>
    %c7 = arith.constant 7 : index
    %c0_270 = arith.constant 0 : index
    %c0_271 = arith.constant 0 : index
    %374 = vector.load %arg13[%c7, %c0_270, %c0_271] : memref<16x8x32xf32, #tpu.memory_space<vmem>>, vector<1x8x32xf32>
    %375 = vector.shape_cast %374 : vector<1x8x32xf32> to vector<8x32xf32>
    %cst_272 = arith.constant dense<0.000000e+00> : vector<2x32xf32>
    %376 = tpu.matmul %373, %375, %cst_272 {dimension_numbers = #tpu.dot_dimension_numbers<[1], [0], [0], [1], [0, 0, 1, 1], [], []>} : vector<2x8xf32>, vector<8x32xf32>, vector<2x32xf32> -> vector<2x32xf32>
    %377 = arith.addf %371, %376 : vector<2x32xf32>
    %378 = vector.extract_strided_slice %330 {offsets = [0, 8, 0], sizes = [2, 1, 8], strides = [1, 1, 1]} : vector<2x16x8xf32> to vector<2x1x8xf32>
    %379 = vector.shape_cast %378 : vector<2x1x8xf32> to vector<2x8xf32>
    %c8 = arith.constant 8 : index
    %c0_273 = arith.constant 0 : index
    %c0_274 = arith.constant 0 : index
    %380 = vector.load %arg13[%c8, %c0_273, %c0_274] : memref<16x8x32xf32, #tpu.memory_space<vmem>>, vector<1x8x32xf32>
    %381 = vector.shape_cast %380 : vector<1x8x32xf32> to vector<8x32xf32>
    %cst_275 = arith.constant dense<0.000000e+00> : vector<2x32xf32>
    %382 = tpu.matmul %379, %381, %cst_275 {dimension_numbers = #tpu.dot_dimension_numbers<[1], [0], [0], [1], [0, 0, 1, 1], [], []>} : vector<2x8xf32>, vector<8x32xf32>, vector<2x32xf32> -> vector<2x32xf32>
    %383 = arith.addf %377, %382 : vector<2x32xf32>
    %384 = vector.extract_strided_slice %330 {offsets = [0, 9, 0], sizes = [2, 1, 8], strides = [1, 1, 1]} : vector<2x16x8xf32> to vector<2x1x8xf32>
    %385 = vector.shape_cast %384 : vector<2x1x8xf32> to vector<2x8xf32>
    %c9 = arith.constant 9 : index
    %c0_276 = arith.constant 0 : index
    %c0_277 = arith.constant 0 : index
    %386 = vector.load %arg13[%c9, %c0_276, %c0_277] : memref<16x8x32xf32, #tpu.memory_space<vmem>>, vector<1x8x32xf32>
    %387 = vector.shape_cast %386 : vector<1x8x32xf32> to vector<8x32xf32>
    %cst_278 = arith.constant dense<0.000000e+00> : vector<2x32xf32>
    %388 = tpu.matmul %385, %387, %cst_278 {dimension_numbers = #tpu.dot_dimension_numbers<[1], [0], [0], [1], [0, 0, 1, 1], [], []>} : vector<2x8xf32>, vector<8x32xf32>, vector<2x32xf32> -> vector<2x32xf32>
    %389 = arith.addf %383, %388 : vector<2x32xf32>
    %390 = vector.extract_strided_slice %330 {offsets = [0, 10, 0], sizes = [2, 1, 8], strides = [1, 1, 1]} : vector<2x16x8xf32> to vector<2x1x8xf32>
    %391 = vector.shape_cast %390 : vector<2x1x8xf32> to vector<2x8xf32>
    %c10 = arith.constant 10 : index
    %c0_279 = arith.constant 0 : index
    %c0_280 = arith.constant 0 : index
    %392 = vector.load %arg13[%c10, %c0_279, %c0_280] : memref<16x8x32xf32, #tpu.memory_space<vmem>>, vector<1x8x32xf32>
    %393 = vector.shape_cast %392 : vector<1x8x32xf32> to vector<8x32xf32>
    %cst_281 = arith.constant dense<0.000000e+00> : vector<2x32xf32>
    %394 = tpu.matmul %391, %393, %cst_281 {dimension_numbers = #tpu.dot_dimension_numbers<[1], [0], [0], [1], [0, 0, 1, 1], [], []>} : vector<2x8xf32>, vector<8x32xf32>, vector<2x32xf32> -> vector<2x32xf32>
    %395 = arith.addf %389, %394 : vector<2x32xf32>
    %396 = vector.extract_strided_slice %330 {offsets = [0, 11, 0], sizes = [2, 1, 8], strides = [1, 1, 1]} : vector<2x16x8xf32> to vector<2x1x8xf32>
    %397 = vector.shape_cast %396 : vector<2x1x8xf32> to vector<2x8xf32>
    %c11 = arith.constant 11 : index
    %c0_282 = arith.constant 0 : index
    %c0_283 = arith.constant 0 : index
    %398 = vector.load %arg13[%c11, %c0_282, %c0_283] : memref<16x8x32xf32, #tpu.memory_space<vmem>>, vector<1x8x32xf32>
    %399 = vector.shape_cast %398 : vector<1x8x32xf32> to vector<8x32xf32>
    %cst_284 = arith.constant dense<0.000000e+00> : vector<2x32xf32>
    %400 = tpu.matmul %397, %399, %cst_284 {dimension_numbers = #tpu.dot_dimension_numbers<[1], [0], [0], [1], [0, 0, 1, 1], [], []>} : vector<2x8xf32>, vector<8x32xf32>, vector<2x32xf32> -> vector<2x32xf32>
    %401 = arith.addf %395, %400 : vector<2x32xf32>
    %402 = vector.extract_strided_slice %330 {offsets = [0, 12, 0], sizes = [2, 1, 8], strides = [1, 1, 1]} : vector<2x16x8xf32> to vector<2x1x8xf32>
    %403 = vector.shape_cast %402 : vector<2x1x8xf32> to vector<2x8xf32>
    %c12 = arith.constant 12 : index
    %c0_285 = arith.constant 0 : index
    %c0_286 = arith.constant 0 : index
    %404 = vector.load %arg13[%c12, %c0_285, %c0_286] : memref<16x8x32xf32, #tpu.memory_space<vmem>>, vector<1x8x32xf32>
    %405 = vector.shape_cast %404 : vector<1x8x32xf32> to vector<8x32xf32>
    %cst_287 = arith.constant dense<0.000000e+00> : vector<2x32xf32>
    %406 = tpu.matmul %403, %405, %cst_287 {dimension_numbers = #tpu.dot_dimension_numbers<[1], [0], [0], [1], [0, 0, 1, 1], [], []>} : vector<2x8xf32>, vector<8x32xf32>, vector<2x32xf32> -> vector<2x32xf32>
    %407 = arith.addf %401, %406 : vector<2x32xf32>
    %408 = vector.extract_strided_slice %330 {offsets = [0, 13, 0], sizes = [2, 1, 8], strides = [1, 1, 1]} : vector<2x16x8xf32> to vector<2x1x8xf32>
    %409 = vector.shape_cast %408 : vector<2x1x8xf32> to vector<2x8xf32>
    %c13 = arith.constant 13 : index
    %c0_288 = arith.constant 0 : index
    %c0_289 = arith.constant 0 : index
    %410 = vector.load %arg13[%c13, %c0_288, %c0_289] : memref<16x8x32xf32, #tpu.memory_space<vmem>>, vector<1x8x32xf32>
    %411 = vector.shape_cast %410 : vector<1x8x32xf32> to vector<8x32xf32>
    %cst_290 = arith.constant dense<0.000000e+00> : vector<2x32xf32>
    %412 = tpu.matmul %409, %411, %cst_290 {dimension_numbers = #tpu.dot_dimension_numbers<[1], [0], [0], [1], [0, 0, 1, 1], [], []>} : vector<2x8xf32>, vector<8x32xf32>, vector<2x32xf32> -> vector<2x32xf32>
    %413 = arith.addf %407, %412 : vector<2x32xf32>
    %414 = vector.extract_strided_slice %330 {offsets = [0, 14, 0], sizes = [2, 1, 8], strides = [1, 1, 1]} : vector<2x16x8xf32> to vector<2x1x8xf32>
    %415 = vector.shape_cast %414 : vector<2x1x8xf32> to vector<2x8xf32>
    %c14 = arith.constant 14 : index
    %c0_291 = arith.constant 0 : index
    %c0_292 = arith.constant 0 : index
    %416 = vector.load %arg13[%c14, %c0_291, %c0_292] : memref<16x8x32xf32, #tpu.memory_space<vmem>>, vector<1x8x32xf32>
    %417 = vector.shape_cast %416 : vector<1x8x32xf32> to vector<8x32xf32>
    %cst_293 = arith.constant dense<0.000000e+00> : vector<2x32xf32>
    %418 = tpu.matmul %415, %417, %cst_293 {dimension_numbers = #tpu.dot_dimension_numbers<[1], [0], [0], [1], [0, 0, 1, 1], [], []>} : vector<2x8xf32>, vector<8x32xf32>, vector<2x32xf32> -> vector<2x32xf32>
    %419 = arith.addf %413, %418 : vector<2x32xf32>
    %420 = vector.extract_strided_slice %330 {offsets = [0, 15, 0], sizes = [2, 1, 8], strides = [1, 1, 1]} : vector<2x16x8xf32> to vector<2x1x8xf32>
    %421 = vector.shape_cast %420 : vector<2x1x8xf32> to vector<2x8xf32>
    %c15 = arith.constant 15 : index
    %c0_294 = arith.constant 0 : index
    %c0_295 = arith.constant 0 : index
    %422 = vector.load %arg13[%c15, %c0_294, %c0_295] : memref<16x8x32xf32, #tpu.memory_space<vmem>>, vector<1x8x32xf32>
    %423 = vector.shape_cast %422 : vector<1x8x32xf32> to vector<8x32xf32>
    %cst_296 = arith.constant dense<0.000000e+00> : vector<2x32xf32>
    %424 = tpu.matmul %421, %423, %cst_296 {dimension_numbers = #tpu.dot_dimension_numbers<[1], [0], [0], [1], [0, 0, 1, 1], [], []>} : vector<2x8xf32>, vector<8x32xf32>, vector<2x32xf32> -> vector<2x32xf32>
    %425 = arith.addf %419, %424 : vector<2x32xf32>
    %c0_297 = arith.constant 0 : index
    %c0_298 = arith.constant 0 : index
    %426 = vector.load %arg14[%c0_297, %c0_298] : memref<1x32xf32, #tpu.memory_space<vmem>>, vector<1x32xf32>
    %427 = vector.broadcast %426 : vector<1x32xf32> to vector<2x32xf32>
    %428 = arith.addf %425, %427 : vector<2x32xf32>
    %cst_299 = arith.constant 0.000000e+00 : f32
    %429 = vector.broadcast %cst_299 : f32 to vector<2x32xf32>
    %430 = arith.cmpf oge, %428, %429 : vector<2x32xf32>
    %cst_300 = arith.constant 0.00999999977 : f32
    %431 = vector.broadcast %cst_300 : f32 to vector<2x32xf32>
    %432 = arith.mulf %431, %428 : vector<2x32xf32>
    %433 = arith.select %430, %428, %432 : vector<2x32xi1>, vector<2x32xf32>
    %c0_301 = arith.constant 0 : index
    %c0_302 = arith.constant 0 : index
    %434 = vector.load %arg15[%c0_301, %c0_302] : memref<32x32xf32, #tpu.memory_space<vmem>>, vector<32x32xf32>
    %cst_303 = arith.constant dense<0.000000e+00> : vector<2x32xf32>
    %435 = tpu.matmul %433, %434, %cst_303 {dimension_numbers = #tpu.dot_dimension_numbers<[1], [0], [0], [1], [0, 0, 1, 1], [], []>} : vector<2x32xf32>, vector<32x32xf32>, vector<2x32xf32> -> vector<2x32xf32>
    %c0_304 = arith.constant 0 : index
    %c0_305 = arith.constant 0 : index
    %436 = vector.load %arg16[%c0_304, %c0_305] : memref<1x32xf32, #tpu.memory_space<vmem>>, vector<1x32xf32>
    %437 = vector.broadcast %436 : vector<1x32xf32> to vector<2x32xf32>
    %438 = arith.addf %435, %437 : vector<2x32xf32>
    %c0_306 = arith.constant 0 : index
    %c0_307 = arith.constant 0 : index
    %439 = vector.load %arg17[%c0_306, %c0_307] : memref<32x64xf32, #tpu.memory_space<vmem>>, vector<32x64xf32>
    %cst_308 = arith.constant dense<0.000000e+00> : vector<2x64xf32>
    %440 = tpu.matmul %438, %439, %cst_308 {dimension_numbers = #tpu.dot_dimension_numbers<[1], [0], [0], [1], [0, 0, 1, 1], [], []>} : vector<2x32xf32>, vector<32x64xf32>, vector<2x64xf32> -> vector<2x64xf32>
    %c0_309 = arith.constant 0 : index
    %c0_310 = arith.constant 0 : index
    %441 = vector.load %arg18[%c0_309, %c0_310] : memref<1x64xf32, #tpu.memory_space<vmem>>, vector<1x64xf32>
    %442 = vector.broadcast %441 : vector<1x64xf32> to vector<2x64xf32>
    %443 = arith.addf %440, %442 : vector<2x64xf32>
    %cst_311 = arith.constant 0.000000e+00 : f32
    %444 = vector.broadcast %cst_311 : f32 to vector<2x64xf32>
    %445 = arith.maximumf %443, %444 : vector<2x64xf32>
    %c0_312 = arith.constant 0 : index
    %c0_313 = arith.constant 0 : index
    %446 = vector.load %arg19[%c0_312, %c0_313] : memref<64x32xf32, #tpu.memory_space<vmem>>, vector<64x32xf32>
    %cst_314 = arith.constant dense<0.000000e+00> : vector<2x32xf32>
    %447 = tpu.matmul %445, %446, %cst_314 {dimension_numbers = #tpu.dot_dimension_numbers<[1], [0], [0], [1], [0, 0, 1, 1], [], []>} : vector<2x64xf32>, vector<64x32xf32>, vector<2x32xf32> -> vector<2x32xf32>
    %c0_315 = arith.constant 0 : index
    %c0_316 = arith.constant 0 : index
    %448 = vector.load %arg20[%c0_315, %c0_316] : memref<1x32xf32, #tpu.memory_space<vmem>>, vector<1x32xf32>
    %449 = vector.broadcast %448 : vector<1x32xf32> to vector<2x32xf32>
    %450 = arith.addf %447, %449 : vector<2x32xf32>
    %451 = vector.shape_cast %0 : vector<2x16x16xf32> to vector<32x16xf32>
    %c0_317 = arith.constant 0 : index
    %c0_318 = arith.constant 0 : index
    %c0_319 = arith.constant 0 : index
    %c0_320 = arith.constant 0 : index
    %452 = vector.load %arg21[%c0_317, %c0_318, %c0_319, %c0_320] : memref<2x2x16x8xf32, #tpu.memory_space<vmem>>, vector<1x1x16x8xf32>
    %453 = vector.shape_cast %452 : vector<1x1x16x8xf32> to vector<16x8xf32>
    %cst_321 = arith.constant dense<0.000000e+00> : vector<32x8xf32>
    %454 = tpu.matmul %451, %453, %cst_321 {dimension_numbers = #tpu.dot_dimension_numbers<[1], [0], [0], [1], [0, 0, 1, 1], [], []>} : vector<32x16xf32>, vector<16x8xf32>, vector<32x8xf32> -> vector<32x8xf32>
    %c0_322 = arith.constant 0 : index
    %c0_323 = arith.constant 0 : index
    %c0_324 = arith.constant 0 : index
    %c0_325 = arith.constant 0 : index
    %455 = vector.load %arg25[%c0_322, %c0_323, %c0_324, %c0_325] : memref<2x6x1x8xf32, #tpu.memory_space<vmem>>, vector<1x1x1x8xf32>
    %456 = vector.shape_cast %455 : vector<1x1x1x8xf32> to vector<1x8xf32>
    %457 = vector.broadcast %456 : vector<1x8xf32> to vector<32x8xf32>
    %458 = arith.addf %454, %457 : vector<32x8xf32>
    %459 = vector.shape_cast %458 : vector<32x8xf32> to vector<2x16x8xf32>
    %c0_326 = arith.constant 0 : index
    %c0_327 = arith.constant 0 : index
    %c0_328 = arith.constant 0 : index
    %c0_329 = arith.constant 0 : index
    %460 = vector.load %arg22[%c0_326, %c0_327, %c0_328, %c0_329] : memref<2x2x16x8xf32, #tpu.memory_space<vmem>>, vector<1x1x16x8xf32>
    %461 = vector.shape_cast %460 : vector<1x1x16x8xf32> to vector<16x8xf32>
    %cst_330 = arith.constant dense<0.000000e+00> : vector<32x8xf32>
    %462 = tpu.matmul %451, %461, %cst_330 {dimension_numbers = #tpu.dot_dimension_numbers<[1], [0], [0], [1], [0, 0, 1, 1], [], []>} : vector<32x16xf32>, vector<16x8xf32>, vector<32x8xf32> -> vector<32x8xf32>
    %c0_331 = arith.constant 0 : index
    %c2_332 = arith.constant 2 : index
    %c0_333 = arith.constant 0 : index
    %c0_334 = arith.constant 0 : index
    %463 = vector.load %arg25[%c0_331, %c2_332, %c0_333, %c0_334] : memref<2x6x1x8xf32, #tpu.memory_space<vmem>>, vector<1x1x1x8xf32>
    %464 = vector.shape_cast %463 : vector<1x1x1x8xf32> to vector<1x8xf32>
    %465 = vector.broadcast %464 : vector<1x8xf32> to vector<32x8xf32>
    %466 = arith.addf %462, %465 : vector<32x8xf32>
    %467 = vector.shape_cast %466 : vector<32x8xf32> to vector<2x16x8xf32>
    %c0_335 = arith.constant 0 : index
    %c0_336 = arith.constant 0 : index
    %c0_337 = arith.constant 0 : index
    %c0_338 = arith.constant 0 : index
    %468 = vector.load %arg23[%c0_335, %c0_336, %c0_337, %c0_338] : memref<2x2x16x8xf32, #tpu.memory_space<vmem>>, vector<1x1x16x8xf32>
    %469 = vector.shape_cast %468 : vector<1x1x16x8xf32> to vector<16x8xf32>
    %cst_339 = arith.constant dense<0.000000e+00> : vector<32x8xf32>
    %470 = tpu.matmul %451, %469, %cst_339 {dimension_numbers = #tpu.dot_dimension_numbers<[1], [0], [0], [1], [0, 0, 1, 1], [], []>} : vector<32x16xf32>, vector<16x8xf32>, vector<32x8xf32> -> vector<32x8xf32>
    %c0_340 = arith.constant 0 : index
    %c4_341 = arith.constant 4 : index
    %c0_342 = arith.constant 0 : index
    %c0_343 = arith.constant 0 : index
    %471 = vector.load %arg25[%c0_340, %c4_341, %c0_342, %c0_343] : memref<2x6x1x8xf32, #tpu.memory_space<vmem>>, vector<1x1x1x8xf32>
    %472 = vector.shape_cast %471 : vector<1x1x1x8xf32> to vector<1x8xf32>
    %473 = vector.broadcast %472 : vector<1x8xf32> to vector<32x8xf32>
    %474 = arith.addf %470, %473 : vector<32x8xf32>
    %475 = vector.shape_cast %474 : vector<32x8xf32> to vector<2x16x8xf32>
    %cst_344 = arith.constant dense<0.000000e+00> : vector<2x16x16xf32>
    %476 = tpu.matmul %459, %467, %cst_344 {dimension_numbers = #tpu.dot_dimension_numbers<[2], [2], [1], [1], [0, 0, 0, 1, 1, 1], [0], [0]>} : vector<2x16x8xf32>, vector<2x16x8xf32>, vector<2x16x16xf32> -> vector<2x16x16xf32>
    %cst_345 = arith.constant 0.353553385 : f32
    %477 = vector.broadcast %cst_345 : f32 to vector<2x16x16xf32>
    %478 = arith.mulf %476, %477 : vector<2x16x16xf32>
    %cst_346 = arith.constant dense<0xFF800000> : vector<2x16xf32>
    %479 = vector.multi_reduction <maximumf>, %478, %cst_346 [2] : vector<2x16x16xf32> to vector<2x16xf32>
    %480 = vector.shape_cast %479 : vector<2x16xf32> to vector<2x16x1xf32>
    %481 = vector.broadcast %480 : vector<2x16x1xf32> to vector<2x16x16xf32>
    %482 = arith.subf %478, %481 : vector<2x16x16xf32>
    %483 = math.exp %482 : vector<2x16x16xf32>
    %cst_347 = arith.constant dense<0.000000e+00> : vector<2x16xf32>
    %484 = vector.multi_reduction <add>, %483, %cst_347 [2] : vector<2x16x16xf32> to vector<2x16xf32>
    %485 = vector.shape_cast %484 : vector<2x16xf32> to vector<2x16x1xf32>
    %486 = tpu.reciprocal %485 {approx = true} : vector<2x16x1xf32> -> vector<2x16x1xf32>
    %487 = vector.broadcast %486 : vector<2x16x1xf32> to vector<2x16x16xf32>
    %488 = arith.mulf %483, %487 : vector<2x16x16xf32>
    %cst_348 = arith.constant dense<0.000000e+00> : vector<2x16x8xf32>
    %489 = tpu.matmul %488, %475, %cst_348 {dimension_numbers = #tpu.dot_dimension_numbers<[2], [1], [1], [2], [0, 0, 0, 1, 1, 2], [0], [0]>} : vector<2x16x16xf32>, vector<2x16x8xf32>, vector<2x16x8xf32> -> vector<2x16x8xf32>
    %490 = vector.shape_cast %489 : vector<2x16x8xf32> to vector<32x8xf32>
    %c0_349 = arith.constant 0 : index
    %c0_350 = arith.constant 0 : index
    %c0_351 = arith.constant 0 : index
    %c0_352 = arith.constant 0 : index
    %491 = vector.load %arg24[%c0_349, %c0_350, %c0_351, %c0_352] : memref<2x2x8x16xf32, #tpu.memory_space<vmem>>, vector<1x1x8x16xf32>
    %492 = vector.shape_cast %491 : vector<1x1x8x16xf32> to vector<8x16xf32>
    %cst_353 = arith.constant dense<0.000000e+00> : vector<32x16xf32>
    %493 = tpu.matmul %490, %492, %cst_353 {dimension_numbers = #tpu.dot_dimension_numbers<[1], [0], [0], [1], [0, 0, 1, 1], [], []>} : vector<32x8xf32>, vector<8x16xf32>, vector<32x16xf32> -> vector<32x16xf32>
    %c0_354 = arith.constant 0 : index
    %c1_355 = arith.constant 1 : index
    %c0_356 = arith.constant 0 : index
    %c0_357 = arith.constant 0 : index
    %494 = vector.load %arg21[%c0_354, %c1_355, %c0_356, %c0_357] : memref<2x2x16x8xf32, #tpu.memory_space<vmem>>, vector<1x1x16x8xf32>
    %495 = vector.shape_cast %494 : vector<1x1x16x8xf32> to vector<16x8xf32>
    %cst_358 = arith.constant dense<0.000000e+00> : vector<32x8xf32>
    %496 = tpu.matmul %451, %495, %cst_358 {dimension_numbers = #tpu.dot_dimension_numbers<[1], [0], [0], [1], [0, 0, 1, 1], [], []>} : vector<32x16xf32>, vector<16x8xf32>, vector<32x8xf32> -> vector<32x8xf32>
    %c0_359 = arith.constant 0 : index
    %c1_360 = arith.constant 1 : index
    %c0_361 = arith.constant 0 : index
    %c0_362 = arith.constant 0 : index
    %497 = vector.load %arg25[%c0_359, %c1_360, %c0_361, %c0_362] : memref<2x6x1x8xf32, #tpu.memory_space<vmem>>, vector<1x1x1x8xf32>
    %498 = vector.shape_cast %497 : vector<1x1x1x8xf32> to vector<1x8xf32>
    %499 = vector.broadcast %498 : vector<1x8xf32> to vector<32x8xf32>
    %500 = arith.addf %496, %499 : vector<32x8xf32>
    %501 = vector.shape_cast %500 : vector<32x8xf32> to vector<2x16x8xf32>
    %c0_363 = arith.constant 0 : index
    %c1_364 = arith.constant 1 : index
    %c0_365 = arith.constant 0 : index
    %c0_366 = arith.constant 0 : index
    %502 = vector.load %arg22[%c0_363, %c1_364, %c0_365, %c0_366] : memref<2x2x16x8xf32, #tpu.memory_space<vmem>>, vector<1x1x16x8xf32>
    %503 = vector.shape_cast %502 : vector<1x1x16x8xf32> to vector<16x8xf32>
    %cst_367 = arith.constant dense<0.000000e+00> : vector<32x8xf32>
    %504 = tpu.matmul %451, %503, %cst_367 {dimension_numbers = #tpu.dot_dimension_numbers<[1], [0], [0], [1], [0, 0, 1, 1], [], []>} : vector<32x16xf32>, vector<16x8xf32>, vector<32x8xf32> -> vector<32x8xf32>
    %c0_368 = arith.constant 0 : index
    %c3_369 = arith.constant 3 : index
    %c0_370 = arith.constant 0 : index
    %c0_371 = arith.constant 0 : index
    %505 = vector.load %arg25[%c0_368, %c3_369, %c0_370, %c0_371] : memref<2x6x1x8xf32, #tpu.memory_space<vmem>>, vector<1x1x1x8xf32>
    %506 = vector.shape_cast %505 : vector<1x1x1x8xf32> to vector<1x8xf32>
    %507 = vector.broadcast %506 : vector<1x8xf32> to vector<32x8xf32>
    %508 = arith.addf %504, %507 : vector<32x8xf32>
    %509 = vector.shape_cast %508 : vector<32x8xf32> to vector<2x16x8xf32>
    %c0_372 = arith.constant 0 : index
    %c1_373 = arith.constant 1 : index
    %c0_374 = arith.constant 0 : index
    %c0_375 = arith.constant 0 : index
    %510 = vector.load %arg23[%c0_372, %c1_373, %c0_374, %c0_375] : memref<2x2x16x8xf32, #tpu.memory_space<vmem>>, vector<1x1x16x8xf32>
    %511 = vector.shape_cast %510 : vector<1x1x16x8xf32> to vector<16x8xf32>
    %cst_376 = arith.constant dense<0.000000e+00> : vector<32x8xf32>
    %512 = tpu.matmul %451, %511, %cst_376 {dimension_numbers = #tpu.dot_dimension_numbers<[1], [0], [0], [1], [0, 0, 1, 1], [], []>} : vector<32x16xf32>, vector<16x8xf32>, vector<32x8xf32> -> vector<32x8xf32>
    %c0_377 = arith.constant 0 : index
    %c5_378 = arith.constant 5 : index
    %c0_379 = arith.constant 0 : index
    %c0_380 = arith.constant 0 : index
    %513 = vector.load %arg25[%c0_377, %c5_378, %c0_379, %c0_380] : memref<2x6x1x8xf32, #tpu.memory_space<vmem>>, vector<1x1x1x8xf32>
    %514 = vector.shape_cast %513 : vector<1x1x1x8xf32> to vector<1x8xf32>
    %515 = vector.broadcast %514 : vector<1x8xf32> to vector<32x8xf32>
    %516 = arith.addf %512, %515 : vector<32x8xf32>
    %517 = vector.shape_cast %516 : vector<32x8xf32> to vector<2x16x8xf32>
    %cst_381 = arith.constant dense<0.000000e+00> : vector<2x16x16xf32>
    %518 = tpu.matmul %501, %509, %cst_381 {dimension_numbers = #tpu.dot_dimension_numbers<[2], [2], [1], [1], [0, 0, 0, 1, 1, 1], [0], [0]>} : vector<2x16x8xf32>, vector<2x16x8xf32>, vector<2x16x16xf32> -> vector<2x16x16xf32>
    %cst_382 = arith.constant 0.353553385 : f32
    %519 = vector.broadcast %cst_382 : f32 to vector<2x16x16xf32>
    %520 = arith.mulf %518, %519 : vector<2x16x16xf32>
    %cst_383 = arith.constant dense<0xFF800000> : vector<2x16xf32>
    %521 = vector.multi_reduction <maximumf>, %520, %cst_383 [2] : vector<2x16x16xf32> to vector<2x16xf32>
    %522 = vector.shape_cast %521 : vector<2x16xf32> to vector<2x16x1xf32>
    %523 = vector.broadcast %522 : vector<2x16x1xf32> to vector<2x16x16xf32>
    %524 = arith.subf %520, %523 : vector<2x16x16xf32>
    %525 = math.exp %524 : vector<2x16x16xf32>
    %cst_384 = arith.constant dense<0.000000e+00> : vector<2x16xf32>
    %526 = vector.multi_reduction <add>, %525, %cst_384 [2] : vector<2x16x16xf32> to vector<2x16xf32>
    %527 = vector.shape_cast %526 : vector<2x16xf32> to vector<2x16x1xf32>
    %528 = tpu.reciprocal %527 {approx = true} : vector<2x16x1xf32> -> vector<2x16x1xf32>
    %529 = vector.broadcast %528 : vector<2x16x1xf32> to vector<2x16x16xf32>
    %530 = arith.mulf %525, %529 : vector<2x16x16xf32>
    %cst_385 = arith.constant dense<0.000000e+00> : vector<2x16x8xf32>
    %531 = tpu.matmul %530, %517, %cst_385 {dimension_numbers = #tpu.dot_dimension_numbers<[2], [1], [1], [2], [0, 0, 0, 1, 1, 2], [0], [0]>} : vector<2x16x16xf32>, vector<2x16x8xf32>, vector<2x16x8xf32> -> vector<2x16x8xf32>
    %532 = vector.shape_cast %531 : vector<2x16x8xf32> to vector<32x8xf32>
    %c0_386 = arith.constant 0 : index
    %c1_387 = arith.constant 1 : index
    %c0_388 = arith.constant 0 : index
    %c0_389 = arith.constant 0 : index
    %533 = vector.load %arg24[%c0_386, %c1_387, %c0_388, %c0_389] : memref<2x2x8x16xf32, #tpu.memory_space<vmem>>, vector<1x1x8x16xf32>
    %534 = vector.shape_cast %533 : vector<1x1x8x16xf32> to vector<8x16xf32>
    %cst_390 = arith.constant dense<0.000000e+00> : vector<32x16xf32>
    %535 = tpu.matmul %532, %534, %cst_390 {dimension_numbers = #tpu.dot_dimension_numbers<[1], [0], [0], [1], [0, 0, 1, 1], [], []>} : vector<32x8xf32>, vector<8x16xf32>, vector<32x16xf32> -> vector<32x16xf32>
    %536 = arith.addf %493, %535 : vector<32x16xf32>
    %537 = arith.addf %451, %536 : vector<32x16xf32>
    %c0_391 = arith.constant 0 : index
    %c0_392 = arith.constant 0 : index
    %c0_393 = arith.constant 0 : index
    %c0_394 = arith.constant 0 : index
    %538 = vector.load %arg26[%c0_391, %c0_392, %c0_393, %c0_394] : memref<2x6x1x16xf32, #tpu.memory_space<vmem>>, vector<1x1x1x16xf32>
    %539 = vector.shape_cast %538 : vector<1x1x1x16xf32> to vector<1x16xf32>
    %540 = vector.broadcast %539 : vector<1x16xf32> to vector<32x16xf32>
    %541 = arith.addf %537, %540 : vector<32x16xf32>
    %c0_395 = arith.constant 0 : index
    %c1_396 = arith.constant 1 : index
    %c0_397 = arith.constant 0 : index
    %c0_398 = arith.constant 0 : index
    %542 = vector.load %arg26[%c0_395, %c1_396, %c0_397, %c0_398] : memref<2x6x1x16xf32, #tpu.memory_space<vmem>>, vector<1x1x1x16xf32>
    %543 = vector.shape_cast %542 : vector<1x1x1x16xf32> to vector<1x16xf32>
    %c0_399 = arith.constant 0 : index
    %c2_400 = arith.constant 2 : index
    %c0_401 = arith.constant 0 : index
    %c0_402 = arith.constant 0 : index
    %544 = vector.load %arg26[%c0_399, %c2_400, %c0_401, %c0_402] : memref<2x6x1x16xf32, #tpu.memory_space<vmem>>, vector<1x1x1x16xf32>
    %545 = vector.shape_cast %544 : vector<1x1x1x16xf32> to vector<1x16xf32>
    %cst_403 = arith.constant dense<0.000000e+00> : vector<32xf32>
    %546 = vector.multi_reduction <add>, %541, %cst_403 [1] : vector<32x16xf32> to vector<32xf32>
    %547 = vector.shape_cast %546 : vector<32xf32> to vector<32x1xf32>
    %cst_404 = arith.constant 1.600000e+01 : f32
    %548 = vector.broadcast %cst_404 : f32 to vector<32x1xf32>
    %549 = arith.divf %547, %548 : vector<32x1xf32>
    %550 = vector.broadcast %549 : vector<32x1xf32> to vector<32x16xf32>
    %551 = arith.subf %541, %550 : vector<32x16xf32>
    %552 = arith.mulf %551, %551 : vector<32x16xf32>
    %cst_405 = arith.constant dense<0.000000e+00> : vector<32xf32>
    %553 = vector.multi_reduction <add>, %552, %cst_405 [1] : vector<32x16xf32> to vector<32xf32>
    %554 = vector.shape_cast %553 : vector<32xf32> to vector<32x1xf32>
    %cst_406 = arith.constant 1.600000e+01 : f32
    %555 = vector.broadcast %cst_406 : f32 to vector<32x1xf32>
    %556 = arith.divf %554, %555 : vector<32x1xf32>
    %557 = vector.broadcast %549 : vector<32x1xf32> to vector<32x16xf32>
    %558 = arith.subf %541, %557 : vector<32x16xf32>
    %cst_407 = arith.constant 9.99999974E-6 : f32
    %559 = vector.broadcast %cst_407 : f32 to vector<32x1xf32>
    %560 = arith.addf %556, %559 : vector<32x1xf32>
    %561 = math.rsqrt %560 : vector<32x1xf32>
    %562 = vector.broadcast %561 : vector<32x1xf32> to vector<32x16xf32>
    %563 = arith.mulf %558, %562 : vector<32x16xf32>
    %564 = vector.broadcast %543 : vector<1x16xf32> to vector<32x16xf32>
    %565 = arith.mulf %563, %564 : vector<32x16xf32>
    %566 = vector.broadcast %545 : vector<1x16xf32> to vector<32x16xf32>
    %567 = arith.addf %565, %566 : vector<32x16xf32>
    %c0_408 = arith.constant 0 : index
    %c0_409 = arith.constant 0 : index
    %c0_410 = arith.constant 0 : index
    %568 = vector.load %arg27[%c0_408, %c0_409, %c0_410] : memref<2x16x32xf32, #tpu.memory_space<vmem>>, vector<1x16x32xf32>
    %569 = vector.shape_cast %568 : vector<1x16x32xf32> to vector<16x32xf32>
    %cst_411 = arith.constant dense<0.000000e+00> : vector<32x32xf32>
    %570 = tpu.matmul %567, %569, %cst_411 {dimension_numbers = #tpu.dot_dimension_numbers<[1], [0], [0], [1], [0, 0, 1, 1], [], []>} : vector<32x16xf32>, vector<16x32xf32>, vector<32x32xf32> -> vector<32x32xf32>
    %c0_412 = arith.constant 0 : index
    %c0_413 = arith.constant 0 : index
    %c0_414 = arith.constant 0 : index
    %571 = vector.load %arg28[%c0_412, %c0_413, %c0_414] : memref<2x1x32xf32, #tpu.memory_space<vmem>>, vector<1x1x32xf32>
    %572 = vector.shape_cast %571 : vector<1x1x32xf32> to vector<1x32xf32>
    %573 = vector.broadcast %572 : vector<1x32xf32> to vector<32x32xf32>
    %574 = arith.addf %570, %573 : vector<32x32xf32>
    %cst_415 = arith.constant 0.000000e+00 : f32
    %575 = vector.broadcast %cst_415 : f32 to vector<32x32xf32>
    %576 = arith.maximumf %574, %575 : vector<32x32xf32>
    %c0_416 = arith.constant 0 : index
    %c0_417 = arith.constant 0 : index
    %c0_418 = arith.constant 0 : index
    %577 = vector.load %arg29[%c0_416, %c0_417, %c0_418] : memref<2x32x16xf32, #tpu.memory_space<vmem>>, vector<1x32x16xf32>
    %578 = vector.shape_cast %577 : vector<1x32x16xf32> to vector<32x16xf32>
    %cst_419 = arith.constant dense<0.000000e+00> : vector<32x16xf32>
    %579 = tpu.matmul %576, %578, %cst_419 {dimension_numbers = #tpu.dot_dimension_numbers<[1], [0], [0], [1], [0, 0, 1, 1], [], []>} : vector<32x32xf32>, vector<32x16xf32>, vector<32x16xf32> -> vector<32x16xf32>
    %580 = arith.addf %567, %579 : vector<32x16xf32>
    %c0_420 = arith.constant 0 : index
    %c3_421 = arith.constant 3 : index
    %c0_422 = arith.constant 0 : index
    %c0_423 = arith.constant 0 : index
    %581 = vector.load %arg26[%c0_420, %c3_421, %c0_422, %c0_423] : memref<2x6x1x16xf32, #tpu.memory_space<vmem>>, vector<1x1x1x16xf32>
    %582 = vector.shape_cast %581 : vector<1x1x1x16xf32> to vector<1x16xf32>
    %583 = vector.broadcast %582 : vector<1x16xf32> to vector<32x16xf32>
    %584 = arith.addf %580, %583 : vector<32x16xf32>
    %c0_424 = arith.constant 0 : index
    %c4_425 = arith.constant 4 : index
    %c0_426 = arith.constant 0 : index
    %c0_427 = arith.constant 0 : index
    %585 = vector.load %arg26[%c0_424, %c4_425, %c0_426, %c0_427] : memref<2x6x1x16xf32, #tpu.memory_space<vmem>>, vector<1x1x1x16xf32>
    %586 = vector.shape_cast %585 : vector<1x1x1x16xf32> to vector<1x16xf32>
    %c0_428 = arith.constant 0 : index
    %c5_429 = arith.constant 5 : index
    %c0_430 = arith.constant 0 : index
    %c0_431 = arith.constant 0 : index
    %587 = vector.load %arg26[%c0_428, %c5_429, %c0_430, %c0_431] : memref<2x6x1x16xf32, #tpu.memory_space<vmem>>, vector<1x1x1x16xf32>
    %588 = vector.shape_cast %587 : vector<1x1x1x16xf32> to vector<1x16xf32>
    %cst_432 = arith.constant dense<0.000000e+00> : vector<32xf32>
    %589 = vector.multi_reduction <add>, %584, %cst_432 [1] : vector<32x16xf32> to vector<32xf32>
    %590 = vector.shape_cast %589 : vector<32xf32> to vector<32x1xf32>
    %cst_433 = arith.constant 1.600000e+01 : f32
    %591 = vector.broadcast %cst_433 : f32 to vector<32x1xf32>
    %592 = arith.divf %590, %591 : vector<32x1xf32>
    %593 = vector.broadcast %592 : vector<32x1xf32> to vector<32x16xf32>
    %594 = arith.subf %584, %593 : vector<32x16xf32>
    %595 = arith.mulf %594, %594 : vector<32x16xf32>
    %cst_434 = arith.constant dense<0.000000e+00> : vector<32xf32>
    %596 = vector.multi_reduction <add>, %595, %cst_434 [1] : vector<32x16xf32> to vector<32xf32>
    %597 = vector.shape_cast %596 : vector<32xf32> to vector<32x1xf32>
    %cst_435 = arith.constant 1.600000e+01 : f32
    %598 = vector.broadcast %cst_435 : f32 to vector<32x1xf32>
    %599 = arith.divf %597, %598 : vector<32x1xf32>
    %600 = vector.broadcast %592 : vector<32x1xf32> to vector<32x16xf32>
    %601 = arith.subf %584, %600 : vector<32x16xf32>
    %cst_436 = arith.constant 9.99999974E-6 : f32
    %602 = vector.broadcast %cst_436 : f32 to vector<32x1xf32>
    %603 = arith.addf %599, %602 : vector<32x1xf32>
    %604 = math.rsqrt %603 : vector<32x1xf32>
    %605 = vector.broadcast %604 : vector<32x1xf32> to vector<32x16xf32>
    %606 = arith.mulf %601, %605 : vector<32x16xf32>
    %607 = vector.broadcast %586 : vector<1x16xf32> to vector<32x16xf32>
    %608 = arith.mulf %606, %607 : vector<32x16xf32>
    %609 = vector.broadcast %588 : vector<1x16xf32> to vector<32x16xf32>
    %610 = arith.addf %608, %609 : vector<32x16xf32>
    %c1_437 = arith.constant 1 : index
    %c0_438 = arith.constant 0 : index
    %c0_439 = arith.constant 0 : index
    %c0_440 = arith.constant 0 : index
    %611 = vector.load %arg21[%c1_437, %c0_438, %c0_439, %c0_440] : memref<2x2x16x8xf32, #tpu.memory_space<vmem>>, vector<1x1x16x8xf32>
    %612 = vector.shape_cast %611 : vector<1x1x16x8xf32> to vector<16x8xf32>
    %cst_441 = arith.constant dense<0.000000e+00> : vector<32x8xf32>
    %613 = tpu.matmul %610, %612, %cst_441 {dimension_numbers = #tpu.dot_dimension_numbers<[1], [0], [0], [1], [0, 0, 1, 1], [], []>} : vector<32x16xf32>, vector<16x8xf32>, vector<32x8xf32> -> vector<32x8xf32>
    %c1_442 = arith.constant 1 : index
    %c0_443 = arith.constant 0 : index
    %c0_444 = arith.constant 0 : index
    %c0_445 = arith.constant 0 : index
    %614 = vector.load %arg25[%c1_442, %c0_443, %c0_444, %c0_445] : memref<2x6x1x8xf32, #tpu.memory_space<vmem>>, vector<1x1x1x8xf32>
    %615 = vector.shape_cast %614 : vector<1x1x1x8xf32> to vector<1x8xf32>
    %616 = vector.broadcast %615 : vector<1x8xf32> to vector<32x8xf32>
    %617 = arith.addf %613, %616 : vector<32x8xf32>
    %618 = vector.shape_cast %617 : vector<32x8xf32> to vector<2x16x8xf32>
    %c1_446 = arith.constant 1 : index
    %c0_447 = arith.constant 0 : index
    %c0_448 = arith.constant 0 : index
    %c0_449 = arith.constant 0 : index
    %619 = vector.load %arg22[%c1_446, %c0_447, %c0_448, %c0_449] : memref<2x2x16x8xf32, #tpu.memory_space<vmem>>, vector<1x1x16x8xf32>
    %620 = vector.shape_cast %619 : vector<1x1x16x8xf32> to vector<16x8xf32>
    %cst_450 = arith.constant dense<0.000000e+00> : vector<32x8xf32>
    %621 = tpu.matmul %610, %620, %cst_450 {dimension_numbers = #tpu.dot_dimension_numbers<[1], [0], [0], [1], [0, 0, 1, 1], [], []>} : vector<32x16xf32>, vector<16x8xf32>, vector<32x8xf32> -> vector<32x8xf32>
    %c1_451 = arith.constant 1 : index
    %c2_452 = arith.constant 2 : index
    %c0_453 = arith.constant 0 : index
    %c0_454 = arith.constant 0 : index
    %622 = vector.load %arg25[%c1_451, %c2_452, %c0_453, %c0_454] : memref<2x6x1x8xf32, #tpu.memory_space<vmem>>, vector<1x1x1x8xf32>
    %623 = vector.shape_cast %622 : vector<1x1x1x8xf32> to vector<1x8xf32>
    %624 = vector.broadcast %623 : vector<1x8xf32> to vector<32x8xf32>
    %625 = arith.addf %621, %624 : vector<32x8xf32>
    %626 = vector.shape_cast %625 : vector<32x8xf32> to vector<2x16x8xf32>
    %c1_455 = arith.constant 1 : index
    %c0_456 = arith.constant 0 : index
    %c0_457 = arith.constant 0 : index
    %c0_458 = arith.constant 0 : index
    %627 = vector.load %arg23[%c1_455, %c0_456, %c0_457, %c0_458] : memref<2x2x16x8xf32, #tpu.memory_space<vmem>>, vector<1x1x16x8xf32>
    %628 = vector.shape_cast %627 : vector<1x1x16x8xf32> to vector<16x8xf32>
    %cst_459 = arith.constant dense<0.000000e+00> : vector<32x8xf32>
    %629 = tpu.matmul %610, %628, %cst_459 {dimension_numbers = #tpu.dot_dimension_numbers<[1], [0], [0], [1], [0, 0, 1, 1], [], []>} : vector<32x16xf32>, vector<16x8xf32>, vector<32x8xf32> -> vector<32x8xf32>
    %c1_460 = arith.constant 1 : index
    %c4_461 = arith.constant 4 : index
    %c0_462 = arith.constant 0 : index
    %c0_463 = arith.constant 0 : index
    %630 = vector.load %arg25[%c1_460, %c4_461, %c0_462, %c0_463] : memref<2x6x1x8xf32, #tpu.memory_space<vmem>>, vector<1x1x1x8xf32>
    %631 = vector.shape_cast %630 : vector<1x1x1x8xf32> to vector<1x8xf32>
    %632 = vector.broadcast %631 : vector<1x8xf32> to vector<32x8xf32>
    %633 = arith.addf %629, %632 : vector<32x8xf32>
    %634 = vector.shape_cast %633 : vector<32x8xf32> to vector<2x16x8xf32>
    %cst_464 = arith.constant dense<0.000000e+00> : vector<2x16x16xf32>
    %635 = tpu.matmul %618, %626, %cst_464 {dimension_numbers = #tpu.dot_dimension_numbers<[2], [2], [1], [1], [0, 0, 0, 1, 1, 1], [0], [0]>} : vector<2x16x8xf32>, vector<2x16x8xf32>, vector<2x16x16xf32> -> vector<2x16x16xf32>
    %cst_465 = arith.constant 0.353553385 : f32
    %636 = vector.broadcast %cst_465 : f32 to vector<2x16x16xf32>
    %637 = arith.mulf %635, %636 : vector<2x16x16xf32>
    %cst_466 = arith.constant dense<0xFF800000> : vector<2x16xf32>
    %638 = vector.multi_reduction <maximumf>, %637, %cst_466 [2] : vector<2x16x16xf32> to vector<2x16xf32>
    %639 = vector.shape_cast %638 : vector<2x16xf32> to vector<2x16x1xf32>
    %640 = vector.broadcast %639 : vector<2x16x1xf32> to vector<2x16x16xf32>
    %641 = arith.subf %637, %640 : vector<2x16x16xf32>
    %642 = math.exp %641 : vector<2x16x16xf32>
    %cst_467 = arith.constant dense<0.000000e+00> : vector<2x16xf32>
    %643 = vector.multi_reduction <add>, %642, %cst_467 [2] : vector<2x16x16xf32> to vector<2x16xf32>
    %644 = vector.shape_cast %643 : vector<2x16xf32> to vector<2x16x1xf32>
    %645 = tpu.reciprocal %644 {approx = true} : vector<2x16x1xf32> -> vector<2x16x1xf32>
    %646 = vector.broadcast %645 : vector<2x16x1xf32> to vector<2x16x16xf32>
    %647 = arith.mulf %642, %646 : vector<2x16x16xf32>
    %cst_468 = arith.constant dense<0.000000e+00> : vector<2x16x8xf32>
    %648 = tpu.matmul %647, %634, %cst_468 {dimension_numbers = #tpu.dot_dimension_numbers<[2], [1], [1], [2], [0, 0, 0, 1, 1, 2], [0], [0]>} : vector<2x16x16xf32>, vector<2x16x8xf32>, vector<2x16x8xf32> -> vector<2x16x8xf32>
    %649 = vector.shape_cast %648 : vector<2x16x8xf32> to vector<32x8xf32>
    %c1_469 = arith.constant 1 : index
    %c0_470 = arith.constant 0 : index
    %c0_471 = arith.constant 0 : index
    %c0_472 = arith.constant 0 : index
    %650 = vector.load %arg24[%c1_469, %c0_470, %c0_471, %c0_472] : memref<2x2x8x16xf32, #tpu.memory_space<vmem>>, vector<1x1x8x16xf32>
    %651 = vector.shape_cast %650 : vector<1x1x8x16xf32> to vector<8x16xf32>
    %cst_473 = arith.constant dense<0.000000e+00> : vector<32x16xf32>
    %652 = tpu.matmul %649, %651, %cst_473 {dimension_numbers = #tpu.dot_dimension_numbers<[1], [0], [0], [1], [0, 0, 1, 1], [], []>} : vector<32x8xf32>, vector<8x16xf32>, vector<32x16xf32> -> vector<32x16xf32>
    %c1_474 = arith.constant 1 : index
    %c1_475 = arith.constant 1 : index
    %c0_476 = arith.constant 0 : index
    %c0_477 = arith.constant 0 : index
    %653 = vector.load %arg21[%c1_474, %c1_475, %c0_476, %c0_477] : memref<2x2x16x8xf32, #tpu.memory_space<vmem>>, vector<1x1x16x8xf32>
    %654 = vector.shape_cast %653 : vector<1x1x16x8xf32> to vector<16x8xf32>
    %cst_478 = arith.constant dense<0.000000e+00> : vector<32x8xf32>
    %655 = tpu.matmul %610, %654, %cst_478 {dimension_numbers = #tpu.dot_dimension_numbers<[1], [0], [0], [1], [0, 0, 1, 1], [], []>} : vector<32x16xf32>, vector<16x8xf32>, vector<32x8xf32> -> vector<32x8xf32>
    %c1_479 = arith.constant 1 : index
    %c1_480 = arith.constant 1 : index
    %c0_481 = arith.constant 0 : index
    %c0_482 = arith.constant 0 : index
    %656 = vector.load %arg25[%c1_479, %c1_480, %c0_481, %c0_482] : memref<2x6x1x8xf32, #tpu.memory_space<vmem>>, vector<1x1x1x8xf32>
    %657 = vector.shape_cast %656 : vector<1x1x1x8xf32> to vector<1x8xf32>
    %658 = vector.broadcast %657 : vector<1x8xf32> to vector<32x8xf32>
    %659 = arith.addf %655, %658 : vector<32x8xf32>
    %660 = vector.shape_cast %659 : vector<32x8xf32> to vector<2x16x8xf32>
    %c1_483 = arith.constant 1 : index
    %c1_484 = arith.constant 1 : index
    %c0_485 = arith.constant 0 : index
    %c0_486 = arith.constant 0 : index
    %661 = vector.load %arg22[%c1_483, %c1_484, %c0_485, %c0_486] : memref<2x2x16x8xf32, #tpu.memory_space<vmem>>, vector<1x1x16x8xf32>
    %662 = vector.shape_cast %661 : vector<1x1x16x8xf32> to vector<16x8xf32>
    %cst_487 = arith.constant dense<0.000000e+00> : vector<32x8xf32>
    %663 = tpu.matmul %610, %662, %cst_487 {dimension_numbers = #tpu.dot_dimension_numbers<[1], [0], [0], [1], [0, 0, 1, 1], [], []>} : vector<32x16xf32>, vector<16x8xf32>, vector<32x8xf32> -> vector<32x8xf32>
    %c1_488 = arith.constant 1 : index
    %c3_489 = arith.constant 3 : index
    %c0_490 = arith.constant 0 : index
    %c0_491 = arith.constant 0 : index
    %664 = vector.load %arg25[%c1_488, %c3_489, %c0_490, %c0_491] : memref<2x6x1x8xf32, #tpu.memory_space<vmem>>, vector<1x1x1x8xf32>
    %665 = vector.shape_cast %664 : vector<1x1x1x8xf32> to vector<1x8xf32>
    %666 = vector.broadcast %665 : vector<1x8xf32> to vector<32x8xf32>
    %667 = arith.addf %663, %666 : vector<32x8xf32>
    %668 = vector.shape_cast %667 : vector<32x8xf32> to vector<2x16x8xf32>
    %c1_492 = arith.constant 1 : index
    %c1_493 = arith.constant 1 : index
    %c0_494 = arith.constant 0 : index
    %c0_495 = arith.constant 0 : index
    %669 = vector.load %arg23[%c1_492, %c1_493, %c0_494, %c0_495] : memref<2x2x16x8xf32, #tpu.memory_space<vmem>>, vector<1x1x16x8xf32>
    %670 = vector.shape_cast %669 : vector<1x1x16x8xf32> to vector<16x8xf32>
    %cst_496 = arith.constant dense<0.000000e+00> : vector<32x8xf32>
    %671 = tpu.matmul %610, %670, %cst_496 {dimension_numbers = #tpu.dot_dimension_numbers<[1], [0], [0], [1], [0, 0, 1, 1], [], []>} : vector<32x16xf32>, vector<16x8xf32>, vector<32x8xf32> -> vector<32x8xf32>
    %c1_497 = arith.constant 1 : index
    %c5_498 = arith.constant 5 : index
    %c0_499 = arith.constant 0 : index
    %c0_500 = arith.constant 0 : index
    %672 = vector.load %arg25[%c1_497, %c5_498, %c0_499, %c0_500] : memref<2x6x1x8xf32, #tpu.memory_space<vmem>>, vector<1x1x1x8xf32>
    %673 = vector.shape_cast %672 : vector<1x1x1x8xf32> to vector<1x8xf32>
    %674 = vector.broadcast %673 : vector<1x8xf32> to vector<32x8xf32>
    %675 = arith.addf %671, %674 : vector<32x8xf32>
    %676 = vector.shape_cast %675 : vector<32x8xf32> to vector<2x16x8xf32>
    %cst_501 = arith.constant dense<0.000000e+00> : vector<2x16x16xf32>
    %677 = tpu.matmul %660, %668, %cst_501 {dimension_numbers = #tpu.dot_dimension_numbers<[2], [2], [1], [1], [0, 0, 0, 1, 1, 1], [0], [0]>} : vector<2x16x8xf32>, vector<2x16x8xf32>, vector<2x16x16xf32> -> vector<2x16x16xf32>
    %cst_502 = arith.constant 0.353553385 : f32
    %678 = vector.broadcast %cst_502 : f32 to vector<2x16x16xf32>
    %679 = arith.mulf %677, %678 : vector<2x16x16xf32>
    %cst_503 = arith.constant dense<0xFF800000> : vector<2x16xf32>
    %680 = vector.multi_reduction <maximumf>, %679, %cst_503 [2] : vector<2x16x16xf32> to vector<2x16xf32>
    %681 = vector.shape_cast %680 : vector<2x16xf32> to vector<2x16x1xf32>
    %682 = vector.broadcast %681 : vector<2x16x1xf32> to vector<2x16x16xf32>
    %683 = arith.subf %679, %682 : vector<2x16x16xf32>
    %684 = math.exp %683 : vector<2x16x16xf32>
    %cst_504 = arith.constant dense<0.000000e+00> : vector<2x16xf32>
    %685 = vector.multi_reduction <add>, %684, %cst_504 [2] : vector<2x16x16xf32> to vector<2x16xf32>
    %686 = vector.shape_cast %685 : vector<2x16xf32> to vector<2x16x1xf32>
    %687 = tpu.reciprocal %686 {approx = true} : vector<2x16x1xf32> -> vector<2x16x1xf32>
    %688 = vector.broadcast %687 : vector<2x16x1xf32> to vector<2x16x16xf32>
    %689 = arith.mulf %684, %688 : vector<2x16x16xf32>
    %cst_505 = arith.constant dense<0.000000e+00> : vector<2x16x8xf32>
    %690 = tpu.matmul %689, %676, %cst_505 {dimension_numbers = #tpu.dot_dimension_numbers<[2], [1], [1], [2], [0, 0, 0, 1, 1, 2], [0], [0]>} : vector<2x16x16xf32>, vector<2x16x8xf32>, vector<2x16x8xf32> -> vector<2x16x8xf32>
    %691 = vector.shape_cast %690 : vector<2x16x8xf32> to vector<32x8xf32>
    %c1_506 = arith.constant 1 : index
    %c1_507 = arith.constant 1 : index
    %c0_508 = arith.constant 0 : index
    %c0_509 = arith.constant 0 : index
    %692 = vector.load %arg24[%c1_506, %c1_507, %c0_508, %c0_509] : memref<2x2x8x16xf32, #tpu.memory_space<vmem>>, vector<1x1x8x16xf32>
    %693 = vector.shape_cast %692 : vector<1x1x8x16xf32> to vector<8x16xf32>
    %cst_510 = arith.constant dense<0.000000e+00> : vector<32x16xf32>
    %694 = tpu.matmul %691, %693, %cst_510 {dimension_numbers = #tpu.dot_dimension_numbers<[1], [0], [0], [1], [0, 0, 1, 1], [], []>} : vector<32x8xf32>, vector<8x16xf32>, vector<32x16xf32> -> vector<32x16xf32>
    %695 = arith.addf %652, %694 : vector<32x16xf32>
    %696 = arith.addf %610, %695 : vector<32x16xf32>
    %c1_511 = arith.constant 1 : index
    %c0_512 = arith.constant 0 : index
    %c0_513 = arith.constant 0 : index
    %c0_514 = arith.constant 0 : index
    %697 = vector.load %arg26[%c1_511, %c0_512, %c0_513, %c0_514] : memref<2x6x1x16xf32, #tpu.memory_space<vmem>>, vector<1x1x1x16xf32>
    %698 = vector.shape_cast %697 : vector<1x1x1x16xf32> to vector<1x16xf32>
    %699 = vector.broadcast %698 : vector<1x16xf32> to vector<32x16xf32>
    %700 = arith.addf %696, %699 : vector<32x16xf32>
    %c1_515 = arith.constant 1 : index
    %c1_516 = arith.constant 1 : index
    %c0_517 = arith.constant 0 : index
    %c0_518 = arith.constant 0 : index
    %701 = vector.load %arg26[%c1_515, %c1_516, %c0_517, %c0_518] : memref<2x6x1x16xf32, #tpu.memory_space<vmem>>, vector<1x1x1x16xf32>
    %702 = vector.shape_cast %701 : vector<1x1x1x16xf32> to vector<1x16xf32>
    %c1_519 = arith.constant 1 : index
    %c2_520 = arith.constant 2 : index
    %c0_521 = arith.constant 0 : index
    %c0_522 = arith.constant 0 : index
    %703 = vector.load %arg26[%c1_519, %c2_520, %c0_521, %c0_522] : memref<2x6x1x16xf32, #tpu.memory_space<vmem>>, vector<1x1x1x16xf32>
    %704 = vector.shape_cast %703 : vector<1x1x1x16xf32> to vector<1x16xf32>
    %cst_523 = arith.constant dense<0.000000e+00> : vector<32xf32>
    %705 = vector.multi_reduction <add>, %700, %cst_523 [1] : vector<32x16xf32> to vector<32xf32>
    %706 = vector.shape_cast %705 : vector<32xf32> to vector<32x1xf32>
    %cst_524 = arith.constant 1.600000e+01 : f32
    %707 = vector.broadcast %cst_524 : f32 to vector<32x1xf32>
    %708 = arith.divf %706, %707 : vector<32x1xf32>
    %709 = vector.broadcast %708 : vector<32x1xf32> to vector<32x16xf32>
    %710 = arith.subf %700, %709 : vector<32x16xf32>
    %711 = arith.mulf %710, %710 : vector<32x16xf32>
    %cst_525 = arith.constant dense<0.000000e+00> : vector<32xf32>
    %712 = vector.multi_reduction <add>, %711, %cst_525 [1] : vector<32x16xf32> to vector<32xf32>
    %713 = vector.shape_cast %712 : vector<32xf32> to vector<32x1xf32>
    %cst_526 = arith.constant 1.600000e+01 : f32
    %714 = vector.broadcast %cst_526 : f32 to vector<32x1xf32>
    %715 = arith.divf %713, %714 : vector<32x1xf32>
    %716 = vector.broadcast %708 : vector<32x1xf32> to vector<32x16xf32>
    %717 = arith.subf %700, %716 : vector<32x16xf32>
    %cst_527 = arith.constant 9.99999974E-6 : f32
    %718 = vector.broadcast %cst_527 : f32 to vector<32x1xf32>
    %719 = arith.addf %715, %718 : vector<32x1xf32>
    %720 = math.rsqrt %719 : vector<32x1xf32>
    %721 = vector.broadcast %720 : vector<32x1xf32> to vector<32x16xf32>
    %722 = arith.mulf %717, %721 : vector<32x16xf32>
    %723 = vector.broadcast %702 : vector<1x16xf32> to vector<32x16xf32>
    %724 = arith.mulf %722, %723 : vector<32x16xf32>
    %725 = vector.broadcast %704 : vector<1x16xf32> to vector<32x16xf32>
    %726 = arith.addf %724, %725 : vector<32x16xf32>
    %c1_528 = arith.constant 1 : index
    %c0_529 = arith.constant 0 : index
    %c0_530 = arith.constant 0 : index
    %727 = vector.load %arg27[%c1_528, %c0_529, %c0_530] : memref<2x16x32xf32, #tpu.memory_space<vmem>>, vector<1x16x32xf32>
    %728 = vector.shape_cast %727 : vector<1x16x32xf32> to vector<16x32xf32>
    %cst_531 = arith.constant dense<0.000000e+00> : vector<32x32xf32>
    %729 = tpu.matmul %726, %728, %cst_531 {dimension_numbers = #tpu.dot_dimension_numbers<[1], [0], [0], [1], [0, 0, 1, 1], [], []>} : vector<32x16xf32>, vector<16x32xf32>, vector<32x32xf32> -> vector<32x32xf32>
    %c1_532 = arith.constant 1 : index
    %c0_533 = arith.constant 0 : index
    %c0_534 = arith.constant 0 : index
    %730 = vector.load %arg28[%c1_532, %c0_533, %c0_534] : memref<2x1x32xf32, #tpu.memory_space<vmem>>, vector<1x1x32xf32>
    %731 = vector.shape_cast %730 : vector<1x1x32xf32> to vector<1x32xf32>
    %732 = vector.broadcast %731 : vector<1x32xf32> to vector<32x32xf32>
    %733 = arith.addf %729, %732 : vector<32x32xf32>
    %cst_535 = arith.constant 0.000000e+00 : f32
    %734 = vector.broadcast %cst_535 : f32 to vector<32x32xf32>
    %735 = arith.maximumf %733, %734 : vector<32x32xf32>
    %c1_536 = arith.constant 1 : index
    %c0_537 = arith.constant 0 : index
    %c0_538 = arith.constant 0 : index
    %736 = vector.load %arg29[%c1_536, %c0_537, %c0_538] : memref<2x32x16xf32, #tpu.memory_space<vmem>>, vector<1x32x16xf32>
    %737 = vector.shape_cast %736 : vector<1x32x16xf32> to vector<32x16xf32>
    %cst_539 = arith.constant dense<0.000000e+00> : vector<32x16xf32>
    %738 = tpu.matmul %735, %737, %cst_539 {dimension_numbers = #tpu.dot_dimension_numbers<[1], [0], [0], [1], [0, 0, 1, 1], [], []>} : vector<32x32xf32>, vector<32x16xf32>, vector<32x16xf32> -> vector<32x16xf32>
    %739 = arith.addf %726, %738 : vector<32x16xf32>
    %c1_540 = arith.constant 1 : index
    %c3_541 = arith.constant 3 : index
    %c0_542 = arith.constant 0 : index
    %c0_543 = arith.constant 0 : index
    %740 = vector.load %arg26[%c1_540, %c3_541, %c0_542, %c0_543] : memref<2x6x1x16xf32, #tpu.memory_space<vmem>>, vector<1x1x1x16xf32>
    %741 = vector.shape_cast %740 : vector<1x1x1x16xf32> to vector<1x16xf32>
    %742 = vector.broadcast %741 : vector<1x16xf32> to vector<32x16xf32>
    %743 = arith.addf %739, %742 : vector<32x16xf32>
    %c1_544 = arith.constant 1 : index
    %c4_545 = arith.constant 4 : index
    %c0_546 = arith.constant 0 : index
    %c0_547 = arith.constant 0 : index
    %744 = vector.load %arg26[%c1_544, %c4_545, %c0_546, %c0_547] : memref<2x6x1x16xf32, #tpu.memory_space<vmem>>, vector<1x1x1x16xf32>
    %745 = vector.shape_cast %744 : vector<1x1x1x16xf32> to vector<1x16xf32>
    %c1_548 = arith.constant 1 : index
    %c5_549 = arith.constant 5 : index
    %c0_550 = arith.constant 0 : index
    %c0_551 = arith.constant 0 : index
    %746 = vector.load %arg26[%c1_548, %c5_549, %c0_550, %c0_551] : memref<2x6x1x16xf32, #tpu.memory_space<vmem>>, vector<1x1x1x16xf32>
    %747 = vector.shape_cast %746 : vector<1x1x1x16xf32> to vector<1x16xf32>
    %cst_552 = arith.constant dense<0.000000e+00> : vector<32xf32>
    %748 = vector.multi_reduction <add>, %743, %cst_552 [1] : vector<32x16xf32> to vector<32xf32>
    %749 = vector.shape_cast %748 : vector<32xf32> to vector<32x1xf32>
    %cst_553 = arith.constant 1.600000e+01 : f32
    %750 = vector.broadcast %cst_553 : f32 to vector<32x1xf32>
    %751 = arith.divf %749, %750 : vector<32x1xf32>
    %752 = vector.broadcast %751 : vector<32x1xf32> to vector<32x16xf32>
    %753 = arith.subf %743, %752 : vector<32x16xf32>
    %754 = arith.mulf %753, %753 : vector<32x16xf32>
    %cst_554 = arith.constant dense<0.000000e+00> : vector<32xf32>
    %755 = vector.multi_reduction <add>, %754, %cst_554 [1] : vector<32x16xf32> to vector<32xf32>
    %756 = vector.shape_cast %755 : vector<32xf32> to vector<32x1xf32>
    %cst_555 = arith.constant 1.600000e+01 : f32
    %757 = vector.broadcast %cst_555 : f32 to vector<32x1xf32>
    %758 = arith.divf %756, %757 : vector<32x1xf32>
    %759 = vector.broadcast %751 : vector<32x1xf32> to vector<32x16xf32>
    %760 = arith.subf %743, %759 : vector<32x16xf32>
    %cst_556 = arith.constant 9.99999974E-6 : f32
    %761 = vector.broadcast %cst_556 : f32 to vector<32x1xf32>
    %762 = arith.addf %758, %761 : vector<32x1xf32>
    %763 = math.rsqrt %762 : vector<32x1xf32>
    %764 = vector.broadcast %763 : vector<32x1xf32> to vector<32x16xf32>
    %765 = arith.mulf %760, %764 : vector<32x16xf32>
    %766 = vector.broadcast %745 : vector<1x16xf32> to vector<32x16xf32>
    %767 = arith.mulf %765, %766 : vector<32x16xf32>
    %768 = vector.broadcast %747 : vector<1x16xf32> to vector<32x16xf32>
    %769 = arith.addf %767, %768 : vector<32x16xf32>
    %c0_557 = arith.constant 0 : index
    %c0_558 = arith.constant 0 : index
    %770 = vector.load %arg30[%c0_557, %c0_558] : memref<16x8xf32, #tpu.memory_space<vmem>>, vector<16x8xf32>
    %cst_559 = arith.constant dense<0.000000e+00> : vector<32x8xf32>
    %771 = tpu.matmul %769, %770, %cst_559 {dimension_numbers = #tpu.dot_dimension_numbers<[1], [0], [0], [1], [0, 0, 1, 1], [], []>} : vector<32x16xf32>, vector<16x8xf32>, vector<32x8xf32> -> vector<32x8xf32>
    %c0_560 = arith.constant 0 : index
    %c0_561 = arith.constant 0 : index
    %772 = vector.load %arg31[%c0_560, %c0_561] : memref<1x8xf32, #tpu.memory_space<vmem>>, vector<1x8xf32>
    %773 = vector.broadcast %772 : vector<1x8xf32> to vector<32x8xf32>
    %774 = arith.addf %771, %773 : vector<32x8xf32>
    %cst_562 = arith.constant 0.000000e+00 : f32
    %775 = vector.broadcast %cst_562 : f32 to vector<32x8xf32>
    %776 = arith.cmpf oge, %774, %775 : vector<32x8xf32>
    %cst_563 = arith.constant 0.00999999977 : f32
    %777 = vector.broadcast %cst_563 : f32 to vector<32x8xf32>
    %778 = arith.mulf %777, %774 : vector<32x8xf32>
    %779 = arith.select %776, %774, %778 : vector<32x8xi1>, vector<32x8xf32>
    %780 = vector.shape_cast %779 : vector<32x8xf32> to vector<2x16x8xf32>
    %781 = vector.extract_strided_slice %780 {offsets = [0, 0, 0], sizes = [2, 1, 8], strides = [1, 1, 1]} : vector<2x16x8xf32> to vector<2x1x8xf32>
    %782 = vector.shape_cast %781 : vector<2x1x8xf32> to vector<2x8xf32>
    %c0_564 = arith.constant 0 : index
    %c0_565 = arith.constant 0 : index
    %c0_566 = arith.constant 0 : index
    %783 = vector.load %arg32[%c0_564, %c0_565, %c0_566] : memref<16x8x32xf32, #tpu.memory_space<vmem>>, vector<1x8x32xf32>
    %784 = vector.shape_cast %783 : vector<1x8x32xf32> to vector<8x32xf32>
    %cst_567 = arith.constant dense<0.000000e+00> : vector<2x32xf32>
    %785 = tpu.matmul %782, %784, %cst_567 {dimension_numbers = #tpu.dot_dimension_numbers<[1], [0], [0], [1], [0, 0, 1, 1], [], []>} : vector<2x8xf32>, vector<8x32xf32>, vector<2x32xf32> -> vector<2x32xf32>
    %786 = vector.extract_strided_slice %780 {offsets = [0, 1, 0], sizes = [2, 1, 8], strides = [1, 1, 1]} : vector<2x16x8xf32> to vector<2x1x8xf32>
    %787 = vector.shape_cast %786 : vector<2x1x8xf32> to vector<2x8xf32>
    %c1_568 = arith.constant 1 : index
    %c0_569 = arith.constant 0 : index
    %c0_570 = arith.constant 0 : index
    %788 = vector.load %arg32[%c1_568, %c0_569, %c0_570] : memref<16x8x32xf32, #tpu.memory_space<vmem>>, vector<1x8x32xf32>
    %789 = vector.shape_cast %788 : vector<1x8x32xf32> to vector<8x32xf32>
    %cst_571 = arith.constant dense<0.000000e+00> : vector<2x32xf32>
    %790 = tpu.matmul %787, %789, %cst_571 {dimension_numbers = #tpu.dot_dimension_numbers<[1], [0], [0], [1], [0, 0, 1, 1], [], []>} : vector<2x8xf32>, vector<8x32xf32>, vector<2x32xf32> -> vector<2x32xf32>
    %791 = arith.addf %785, %790 : vector<2x32xf32>
    %792 = vector.extract_strided_slice %780 {offsets = [0, 2, 0], sizes = [2, 1, 8], strides = [1, 1, 1]} : vector<2x16x8xf32> to vector<2x1x8xf32>
    %793 = vector.shape_cast %792 : vector<2x1x8xf32> to vector<2x8xf32>
    %c2_572 = arith.constant 2 : index
    %c0_573 = arith.constant 0 : index
    %c0_574 = arith.constant 0 : index
    %794 = vector.load %arg32[%c2_572, %c0_573, %c0_574] : memref<16x8x32xf32, #tpu.memory_space<vmem>>, vector<1x8x32xf32>
    %795 = vector.shape_cast %794 : vector<1x8x32xf32> to vector<8x32xf32>
    %cst_575 = arith.constant dense<0.000000e+00> : vector<2x32xf32>
    %796 = tpu.matmul %793, %795, %cst_575 {dimension_numbers = #tpu.dot_dimension_numbers<[1], [0], [0], [1], [0, 0, 1, 1], [], []>} : vector<2x8xf32>, vector<8x32xf32>, vector<2x32xf32> -> vector<2x32xf32>
    %797 = arith.addf %791, %796 : vector<2x32xf32>
    %798 = vector.extract_strided_slice %780 {offsets = [0, 3, 0], sizes = [2, 1, 8], strides = [1, 1, 1]} : vector<2x16x8xf32> to vector<2x1x8xf32>
    %799 = vector.shape_cast %798 : vector<2x1x8xf32> to vector<2x8xf32>
    %c3_576 = arith.constant 3 : index
    %c0_577 = arith.constant 0 : index
    %c0_578 = arith.constant 0 : index
    %800 = vector.load %arg32[%c3_576, %c0_577, %c0_578] : memref<16x8x32xf32, #tpu.memory_space<vmem>>, vector<1x8x32xf32>
    %801 = vector.shape_cast %800 : vector<1x8x32xf32> to vector<8x32xf32>
    %cst_579 = arith.constant dense<0.000000e+00> : vector<2x32xf32>
    %802 = tpu.matmul %799, %801, %cst_579 {dimension_numbers = #tpu.dot_dimension_numbers<[1], [0], [0], [1], [0, 0, 1, 1], [], []>} : vector<2x8xf32>, vector<8x32xf32>, vector<2x32xf32> -> vector<2x32xf32>
    %803 = arith.addf %797, %802 : vector<2x32xf32>
    %804 = vector.extract_strided_slice %780 {offsets = [0, 4, 0], sizes = [2, 1, 8], strides = [1, 1, 1]} : vector<2x16x8xf32> to vector<2x1x8xf32>
    %805 = vector.shape_cast %804 : vector<2x1x8xf32> to vector<2x8xf32>
    %c4_580 = arith.constant 4 : index
    %c0_581 = arith.constant 0 : index
    %c0_582 = arith.constant 0 : index
    %806 = vector.load %arg32[%c4_580, %c0_581, %c0_582] : memref<16x8x32xf32, #tpu.memory_space<vmem>>, vector<1x8x32xf32>
    %807 = vector.shape_cast %806 : vector<1x8x32xf32> to vector<8x32xf32>
    %cst_583 = arith.constant dense<0.000000e+00> : vector<2x32xf32>
    %808 = tpu.matmul %805, %807, %cst_583 {dimension_numbers = #tpu.dot_dimension_numbers<[1], [0], [0], [1], [0, 0, 1, 1], [], []>} : vector<2x8xf32>, vector<8x32xf32>, vector<2x32xf32> -> vector<2x32xf32>
    %809 = arith.addf %803, %808 : vector<2x32xf32>
    %810 = vector.extract_strided_slice %780 {offsets = [0, 5, 0], sizes = [2, 1, 8], strides = [1, 1, 1]} : vector<2x16x8xf32> to vector<2x1x8xf32>
    %811 = vector.shape_cast %810 : vector<2x1x8xf32> to vector<2x8xf32>
    %c5_584 = arith.constant 5 : index
    %c0_585 = arith.constant 0 : index
    %c0_586 = arith.constant 0 : index
    %812 = vector.load %arg32[%c5_584, %c0_585, %c0_586] : memref<16x8x32xf32, #tpu.memory_space<vmem>>, vector<1x8x32xf32>
    %813 = vector.shape_cast %812 : vector<1x8x32xf32> to vector<8x32xf32>
    %cst_587 = arith.constant dense<0.000000e+00> : vector<2x32xf32>
    %814 = tpu.matmul %811, %813, %cst_587 {dimension_numbers = #tpu.dot_dimension_numbers<[1], [0], [0], [1], [0, 0, 1, 1], [], []>} : vector<2x8xf32>, vector<8x32xf32>, vector<2x32xf32> -> vector<2x32xf32>
    %815 = arith.addf %809, %814 : vector<2x32xf32>
    %816 = vector.extract_strided_slice %780 {offsets = [0, 6, 0], sizes = [2, 1, 8], strides = [1, 1, 1]} : vector<2x16x8xf32> to vector<2x1x8xf32>
    %817 = vector.shape_cast %816 : vector<2x1x8xf32> to vector<2x8xf32>
    %c6_588 = arith.constant 6 : index
    %c0_589 = arith.constant 0 : index
    %c0_590 = arith.constant 0 : index
    %818 = vector.load %arg32[%c6_588, %c0_589, %c0_590] : memref<16x8x32xf32, #tpu.memory_space<vmem>>, vector<1x8x32xf32>
    %819 = vector.shape_cast %818 : vector<1x8x32xf32> to vector<8x32xf32>
    %cst_591 = arith.constant dense<0.000000e+00> : vector<2x32xf32>
    %820 = tpu.matmul %817, %819, %cst_591 {dimension_numbers = #tpu.dot_dimension_numbers<[1], [0], [0], [1], [0, 0, 1, 1], [], []>} : vector<2x8xf32>, vector<8x32xf32>, vector<2x32xf32> -> vector<2x32xf32>
    %821 = arith.addf %815, %820 : vector<2x32xf32>
    %822 = vector.extract_strided_slice %780 {offsets = [0, 7, 0], sizes = [2, 1, 8], strides = [1, 1, 1]} : vector<2x16x8xf32> to vector<2x1x8xf32>
    %823 = vector.shape_cast %822 : vector<2x1x8xf32> to vector<2x8xf32>
    %c7_592 = arith.constant 7 : index
    %c0_593 = arith.constant 0 : index
    %c0_594 = arith.constant 0 : index
    %824 = vector.load %arg32[%c7_592, %c0_593, %c0_594] : memref<16x8x32xf32, #tpu.memory_space<vmem>>, vector<1x8x32xf32>
    %825 = vector.shape_cast %824 : vector<1x8x32xf32> to vector<8x32xf32>
    %cst_595 = arith.constant dense<0.000000e+00> : vector<2x32xf32>
    %826 = tpu.matmul %823, %825, %cst_595 {dimension_numbers = #tpu.dot_dimension_numbers<[1], [0], [0], [1], [0, 0, 1, 1], [], []>} : vector<2x8xf32>, vector<8x32xf32>, vector<2x32xf32> -> vector<2x32xf32>
    %827 = arith.addf %821, %826 : vector<2x32xf32>
    %828 = vector.extract_strided_slice %780 {offsets = [0, 8, 0], sizes = [2, 1, 8], strides = [1, 1, 1]} : vector<2x16x8xf32> to vector<2x1x8xf32>
    %829 = vector.shape_cast %828 : vector<2x1x8xf32> to vector<2x8xf32>
    %c8_596 = arith.constant 8 : index
    %c0_597 = arith.constant 0 : index
    %c0_598 = arith.constant 0 : index
    %830 = vector.load %arg32[%c8_596, %c0_597, %c0_598] : memref<16x8x32xf32, #tpu.memory_space<vmem>>, vector<1x8x32xf32>
    %831 = vector.shape_cast %830 : vector<1x8x32xf32> to vector<8x32xf32>
    %cst_599 = arith.constant dense<0.000000e+00> : vector<2x32xf32>
    %832 = tpu.matmul %829, %831, %cst_599 {dimension_numbers = #tpu.dot_dimension_numbers<[1], [0], [0], [1], [0, 0, 1, 1], [], []>} : vector<2x8xf32>, vector<8x32xf32>, vector<2x32xf32> -> vector<2x32xf32>
    %833 = arith.addf %827, %832 : vector<2x32xf32>
    %834 = vector.extract_strided_slice %780 {offsets = [0, 9, 0], sizes = [2, 1, 8], strides = [1, 1, 1]} : vector<2x16x8xf32> to vector<2x1x8xf32>
    %835 = vector.shape_cast %834 : vector<2x1x8xf32> to vector<2x8xf32>
    %c9_600 = arith.constant 9 : index
    %c0_601 = arith.constant 0 : index
    %c0_602 = arith.constant 0 : index
    %836 = vector.load %arg32[%c9_600, %c0_601, %c0_602] : memref<16x8x32xf32, #tpu.memory_space<vmem>>, vector<1x8x32xf32>
    %837 = vector.shape_cast %836 : vector<1x8x32xf32> to vector<8x32xf32>
    %cst_603 = arith.constant dense<0.000000e+00> : vector<2x32xf32>
    %838 = tpu.matmul %835, %837, %cst_603 {dimension_numbers = #tpu.dot_dimension_numbers<[1], [0], [0], [1], [0, 0, 1, 1], [], []>} : vector<2x8xf32>, vector<8x32xf32>, vector<2x32xf32> -> vector<2x32xf32>
    %839 = arith.addf %833, %838 : vector<2x32xf32>
    %840 = vector.extract_strided_slice %780 {offsets = [0, 10, 0], sizes = [2, 1, 8], strides = [1, 1, 1]} : vector<2x16x8xf32> to vector<2x1x8xf32>
    %841 = vector.shape_cast %840 : vector<2x1x8xf32> to vector<2x8xf32>
    %c10_604 = arith.constant 10 : index
    %c0_605 = arith.constant 0 : index
    %c0_606 = arith.constant 0 : index
    %842 = vector.load %arg32[%c10_604, %c0_605, %c0_606] : memref<16x8x32xf32, #tpu.memory_space<vmem>>, vector<1x8x32xf32>
    %843 = vector.shape_cast %842 : vector<1x8x32xf32> to vector<8x32xf32>
    %cst_607 = arith.constant dense<0.000000e+00> : vector<2x32xf32>
    %844 = tpu.matmul %841, %843, %cst_607 {dimension_numbers = #tpu.dot_dimension_numbers<[1], [0], [0], [1], [0, 0, 1, 1], [], []>} : vector<2x8xf32>, vector<8x32xf32>, vector<2x32xf32> -> vector<2x32xf32>
    %845 = arith.addf %839, %844 : vector<2x32xf32>
    %846 = vector.extract_strided_slice %780 {offsets = [0, 11, 0], sizes = [2, 1, 8], strides = [1, 1, 1]} : vector<2x16x8xf32> to vector<2x1x8xf32>
    %847 = vector.shape_cast %846 : vector<2x1x8xf32> to vector<2x8xf32>
    %c11_608 = arith.constant 11 : index
    %c0_609 = arith.constant 0 : index
    %c0_610 = arith.constant 0 : index
    %848 = vector.load %arg32[%c11_608, %c0_609, %c0_610] : memref<16x8x32xf32, #tpu.memory_space<vmem>>, vector<1x8x32xf32>
    %849 = vector.shape_cast %848 : vector<1x8x32xf32> to vector<8x32xf32>
    %cst_611 = arith.constant dense<0.000000e+00> : vector<2x32xf32>
    %850 = tpu.matmul %847, %849, %cst_611 {dimension_numbers = #tpu.dot_dimension_numbers<[1], [0], [0], [1], [0, 0, 1, 1], [], []>} : vector<2x8xf32>, vector<8x32xf32>, vector<2x32xf32> -> vector<2x32xf32>
    %851 = arith.addf %845, %850 : vector<2x32xf32>
    %852 = vector.extract_strided_slice %780 {offsets = [0, 12, 0], sizes = [2, 1, 8], strides = [1, 1, 1]} : vector<2x16x8xf32> to vector<2x1x8xf32>
    %853 = vector.shape_cast %852 : vector<2x1x8xf32> to vector<2x8xf32>
    %c12_612 = arith.constant 12 : index
    %c0_613 = arith.constant 0 : index
    %c0_614 = arith.constant 0 : index
    %854 = vector.load %arg32[%c12_612, %c0_613, %c0_614] : memref<16x8x32xf32, #tpu.memory_space<vmem>>, vector<1x8x32xf32>
    %855 = vector.shape_cast %854 : vector<1x8x32xf32> to vector<8x32xf32>
    %cst_615 = arith.constant dense<0.000000e+00> : vector<2x32xf32>
    %856 = tpu.matmul %853, %855, %cst_615 {dimension_numbers = #tpu.dot_dimension_numbers<[1], [0], [0], [1], [0, 0, 1, 1], [], []>} : vector<2x8xf32>, vector<8x32xf32>, vector<2x32xf32> -> vector<2x32xf32>
    %857 = arith.addf %851, %856 : vector<2x32xf32>
    %858 = vector.extract_strided_slice %780 {offsets = [0, 13, 0], sizes = [2, 1, 8], strides = [1, 1, 1]} : vector<2x16x8xf32> to vector<2x1x8xf32>
    %859 = vector.shape_cast %858 : vector<2x1x8xf32> to vector<2x8xf32>
    %c13_616 = arith.constant 13 : index
    %c0_617 = arith.constant 0 : index
    %c0_618 = arith.constant 0 : index
    %860 = vector.load %arg32[%c13_616, %c0_617, %c0_618] : memref<16x8x32xf32, #tpu.memory_space<vmem>>, vector<1x8x32xf32>
    %861 = vector.shape_cast %860 : vector<1x8x32xf32> to vector<8x32xf32>
    %cst_619 = arith.constant dense<0.000000e+00> : vector<2x32xf32>
    %862 = tpu.matmul %859, %861, %cst_619 {dimension_numbers = #tpu.dot_dimension_numbers<[1], [0], [0], [1], [0, 0, 1, 1], [], []>} : vector<2x8xf32>, vector<8x32xf32>, vector<2x32xf32> -> vector<2x32xf32>
    %863 = arith.addf %857, %862 : vector<2x32xf32>
    %864 = vector.extract_strided_slice %780 {offsets = [0, 14, 0], sizes = [2, 1, 8], strides = [1, 1, 1]} : vector<2x16x8xf32> to vector<2x1x8xf32>
    %865 = vector.shape_cast %864 : vector<2x1x8xf32> to vector<2x8xf32>
    %c14_620 = arith.constant 14 : index
    %c0_621 = arith.constant 0 : index
    %c0_622 = arith.constant 0 : index
    %866 = vector.load %arg32[%c14_620, %c0_621, %c0_622] : memref<16x8x32xf32, #tpu.memory_space<vmem>>, vector<1x8x32xf32>
    %867 = vector.shape_cast %866 : vector<1x8x32xf32> to vector<8x32xf32>
    %cst_623 = arith.constant dense<0.000000e+00> : vector<2x32xf32>
    %868 = tpu.matmul %865, %867, %cst_623 {dimension_numbers = #tpu.dot_dimension_numbers<[1], [0], [0], [1], [0, 0, 1, 1], [], []>} : vector<2x8xf32>, vector<8x32xf32>, vector<2x32xf32> -> vector<2x32xf32>
    %869 = arith.addf %863, %868 : vector<2x32xf32>
    %870 = vector.extract_strided_slice %780 {offsets = [0, 15, 0], sizes = [2, 1, 8], strides = [1, 1, 1]} : vector<2x16x8xf32> to vector<2x1x8xf32>
    %871 = vector.shape_cast %870 : vector<2x1x8xf32> to vector<2x8xf32>
    %c15_624 = arith.constant 15 : index
    %c0_625 = arith.constant 0 : index
    %c0_626 = arith.constant 0 : index
    %872 = vector.load %arg32[%c15_624, %c0_625, %c0_626] : memref<16x8x32xf32, #tpu.memory_space<vmem>>, vector<1x8x32xf32>
    %873 = vector.shape_cast %872 : vector<1x8x32xf32> to vector<8x32xf32>
    %cst_627 = arith.constant dense<0.000000e+00> : vector<2x32xf32>
    %874 = tpu.matmul %871, %873, %cst_627 {dimension_numbers = #tpu.dot_dimension_numbers<[1], [0], [0], [1], [0, 0, 1, 1], [], []>} : vector<2x8xf32>, vector<8x32xf32>, vector<2x32xf32> -> vector<2x32xf32>
    %875 = arith.addf %869, %874 : vector<2x32xf32>
    %c0_628 = arith.constant 0 : index
    %c0_629 = arith.constant 0 : index
    %876 = vector.load %arg33[%c0_628, %c0_629] : memref<1x32xf32, #tpu.memory_space<vmem>>, vector<1x32xf32>
    %877 = vector.broadcast %876 : vector<1x32xf32> to vector<2x32xf32>
    %878 = arith.addf %875, %877 : vector<2x32xf32>
    %cst_630 = arith.constant 0.000000e+00 : f32
    %879 = vector.broadcast %cst_630 : f32 to vector<2x32xf32>
    %880 = arith.cmpf oge, %878, %879 : vector<2x32xf32>
    %cst_631 = arith.constant 0.00999999977 : f32
    %881 = vector.broadcast %cst_631 : f32 to vector<2x32xf32>
    %882 = arith.mulf %881, %878 : vector<2x32xf32>
    %883 = arith.select %880, %878, %882 : vector<2x32xi1>, vector<2x32xf32>
    %c0_632 = arith.constant 0 : index
    %c0_633 = arith.constant 0 : index
    %884 = vector.load %arg34[%c0_632, %c0_633] : memref<32x32xf32, #tpu.memory_space<vmem>>, vector<32x32xf32>
    %cst_634 = arith.constant dense<0.000000e+00> : vector<2x32xf32>
    %885 = tpu.matmul %883, %884, %cst_634 {dimension_numbers = #tpu.dot_dimension_numbers<[1], [0], [0], [1], [0, 0, 1, 1], [], []>} : vector<2x32xf32>, vector<32x32xf32>, vector<2x32xf32> -> vector<2x32xf32>
    %c0_635 = arith.constant 0 : index
    %c0_636 = arith.constant 0 : index
    %886 = vector.load %arg35[%c0_635, %c0_636] : memref<1x32xf32, #tpu.memory_space<vmem>>, vector<1x32xf32>
    %887 = vector.broadcast %886 : vector<1x32xf32> to vector<2x32xf32>
    %888 = arith.addf %885, %887 : vector<2x32xf32>
    %889 = tpu.concatenate %450, %888 in 1 : vector<2x32xf32>, vector<2x32xf32> -> vector<2x64xf32>
    %c0_637 = arith.constant 0 : index
    %c0_638 = arith.constant 0 : index
    %c0_639 = arith.constant 0 : index
    %890 = vector.load %arg36[%c0_637, %c0_638, %c0_639] : memref<1x2x64xf32, #tpu.memory_space<vmem>>, vector<1x2x64xf32>
    %891 = vector.shape_cast %890 : vector<1x2x64xf32> to vector<2x64xf32>
    %892 = vector.shape_cast %889 : vector<2x64xf32> to vector<1x2x64xf32>
    tpu.vector_store %arg36[%c0_637, %c0_638, %c0_639], %892 {strides = array<i32>} : memref<1x2x64xf32, #tpu.memory_space<vmem>>, vector<1x2x64xf32>,
    return
  }
  func.func @transform_0(%arg0: i32) -> (i32, i32, i32) {
    %c0_i32 = arith.constant 0 : i32
    %c0_i32_0 = arith.constant 0 : i32
    %c0_i32_1 = arith.constant 0 : i32
    return %arg0, %c0_i32, %c0_i32_0 : i32, i32, i32
  }
  func.func @transform_1(%arg0: i32) -> (i32, i32, i32, i32) {
    %c0_i32 = arith.constant 0 : i32
    %c0_i32_0 = arith.constant 0 : i32
    %c0_i32_1 = arith.constant 0 : i32
    %c0_i32_2 = arith.constant 0 : i32
    %c0_i32_3 = arith.constant 0 : i32
    return %c0_i32, %c0_i32_0, %c0_i32_1, %c0_i32_2 : i32, i32, i32, i32
  }
  func.func @transform_2(%arg0: i32) -> (i32, i32, i32, i32) {
    %c0_i32 = arith.constant 0 : i32
    %c0_i32_0 = arith.constant 0 : i32
    %c0_i32_1 = arith.constant 0 : i32
    %c0_i32_2 = arith.constant 0 : i32
    %c0_i32_3 = arith.constant 0 : i32
    return %c0_i32, %c0_i32_0, %c0_i32_1, %c0_i32_2 : i32, i32, i32, i32
  }
  func.func @transform_3(%arg0: i32) -> (i32, i32, i32, i32) {
    %c0_i32 = arith.constant 0 : i32
    %c0_i32_0 = arith.constant 0 : i32
    %c0_i32_1 = arith.constant 0 : i32
    %c0_i32_2 = arith.constant 0 : i32
    %c0_i32_3 = arith.constant 0 : i32
    return %c0_i32, %c0_i32_0, %c0_i32_1, %c0_i32_2 : i32, i32, i32, i32
  }
  func.func @transform_4(%arg0: i32) -> (i32, i32, i32, i32) {
    %c0_i32 = arith.constant 0 : i32
    %c0_i32_0 = arith.constant 0 : i32
    %c0_i32_1 = arith.constant 0 : i32
    %c0_i32_2 = arith.constant 0 : i32
    %c0_i32_3 = arith.constant 0 : i32
    return %c0_i32, %c0_i32_0, %c0_i32_1, %c0_i32_2 : i32, i32, i32, i32
  }
  func.func @transform_5(%arg0: i32) -> (i32, i32, i32, i32) {
    %c0_i32 = arith.constant 0 : i32
    %c0_i32_0 = arith.constant 0 : i32
    %c0_i32_1 = arith.constant 0 : i32
    %c0_i32_2 = arith.constant 0 : i32
    %c0_i32_3 = arith.constant 0 : i32
    return %c0_i32, %c0_i32_0, %c0_i32_1, %c0_i32_2 : i32, i32, i32, i32
  }
  func.func @transform_6(%arg0: i32) -> (i32, i32, i32, i32) {
    %c0_i32 = arith.constant 0 : i32
    %c0_i32_0 = arith.constant 0 : i32
    %c0_i32_1 = arith.constant 0 : i32
    %c0_i32_2 = arith.constant 0 : i32
    %c0_i32_3 = arith.constant 0 : i32
    return %c0_i32, %c0_i32_0, %c0_i32_1, %c0_i32_2 : i32, i32, i32, i32
  }
  func.func @transform_7(%arg0: i32) -> (i32, i32, i32) {
    %c0_i32 = arith.constant 0 : i32
    %c0_i32_0 = arith.constant 0 : i32
    %c0_i32_1 = arith.constant 0 : i32
    %c0_i32_2 = arith.constant 0 : i32
    return %c0_i32, %c0_i32_0, %c0_i32_1 : i32, i32, i32
  }
  func.func @transform_8(%arg0: i32) -> (i32, i32, i32) {
    %c0_i32 = arith.constant 0 : i32
    %c0_i32_0 = arith.constant 0 : i32
    %c0_i32_1 = arith.constant 0 : i32
    %c0_i32_2 = arith.constant 0 : i32
    return %c0_i32, %c0_i32_0, %c0_i32_1 : i32, i32, i32
  }
  func.func @transform_9(%arg0: i32) -> (i32, i32, i32) {
    %c0_i32 = arith.constant 0 : i32
    %c0_i32_0 = arith.constant 0 : i32
    %c0_i32_1 = arith.constant 0 : i32
    %c0_i32_2 = arith.constant 0 : i32
    return %c0_i32, %c0_i32_0, %c0_i32_1 : i32, i32, i32
  }
  func.func @transform_10(%arg0: i32) -> (i32, i32) {
    %c0_i32 = arith.constant 0 : i32
    %c0_i32_0 = arith.constant 0 : i32
    %c0_i32_1 = arith.constant 0 : i32
    return %c0_i32, %c0_i32_0 : i32, i32
  }
  func.func @transform_11(%arg0: i32) -> (i32, i32) {
    %c0_i32 = arith.constant 0 : i32
    %c0_i32_0 = arith.constant 0 : i32
    %c0_i32_1 = arith.constant 0 : i32
    return %c0_i32, %c0_i32_0 : i32, i32
  }
  func.func @transform_12(%arg0: i32) -> (i32, i32, i32) {
    %c0_i32 = arith.constant 0 : i32
    %c0_i32_0 = arith.constant 0 : i32
    %c0_i32_1 = arith.constant 0 : i32
    %c0_i32_2 = arith.constant 0 : i32
    return %c0_i32, %c0_i32_0, %c0_i32_1 : i32, i32, i32
  }
  func.func @transform_13(%arg0: i32) -> (i32, i32) {
    %c0_i32 = arith.constant 0 : i32
    %c0_i32_0 = arith.constant 0 : i32
    %c0_i32_1 = arith.constant 0 : i32
    return %c0_i32, %c0_i32_0 : i32, i32
  }
  func.func @transform_14(%arg0: i32) -> (i32, i32) {
    %c0_i32 = arith.constant 0 : i32
    %c0_i32_0 = arith.constant 0 : i32
    %c0_i32_1 = arith.constant 0 : i32
    return %c0_i32, %c0_i32_0 : i32, i32
  }
  func.func @transform_15(%arg0: i32) -> (i32, i32) {
    %c0_i32 = arith.constant 0 : i32
    %c0_i32_0 = arith.constant 0 : i32
    %c0_i32_1 = arith.constant 0 : i32
    return %c0_i32, %c0_i32_0 : i32, i32
  }
  func.func @transform_16(%arg0: i32) -> (i32, i32) {
    %c0_i32 = arith.constant 0 : i32
    %c0_i32_0 = arith.constant 0 : i32
    %c0_i32_1 = arith.constant 0 : i32
    return %c0_i32, %c0_i32_0 : i32, i32
  }
  func.func @transform_17(%arg0: i32) -> (i32, i32) {
    %c0_i32 = arith.constant 0 : i32
    %c0_i32_0 = arith.constant 0 : i32
    %c0_i32_1 = arith.constant 0 : i32
    return %c0_i32, %c0_i32_0 : i32, i32
  }
  func.func @transform_18(%arg0: i32) -> (i32, i32) {
    %c0_i32 = arith.constant 0 : i32
    %c0_i32_0 = arith.constant 0 : i32
    %c0_i32_1 = arith.constant 0 : i32
    return %c0_i32, %c0_i32_0 : i32, i32
  }
  func.func @transform_19(%arg0: i32) -> (i32, i32) {
    %c0_i32 = arith.constant 0 : i32
    %c0_i32_0 = arith.constant 0 : i32
    %c0_i32_1 = arith.constant 0 : i32
    return %c0_i32, %c0_i32_0 : i32, i32
  }
  func.func @transform_20(%arg0: i32) -> (i32, i32, i32, i32) {
    %c0_i32 = arith.constant 0 : i32
    %c0_i32_0 = arith.constant 0 : i32
    %c0_i32_1 = arith.constant 0 : i32
    %c0_i32_2 = arith.constant 0 : i32
    %c0_i32_3 = arith.constant 0 : i32
    return %c0_i32, %c0_i32_0, %c0_i32_1, %c0_i32_2 : i32, i32, i32, i32
  }
  func.func @transform_21(%arg0: i32) -> (i32, i32, i32, i32) {
    %c0_i32 = arith.constant 0 : i32
    %c0_i32_0 = arith.constant 0 : i32
    %c0_i32_1 = arith.constant 0 : i32
    %c0_i32_2 = arith.constant 0 : i32
    %c0_i32_3 = arith.constant 0 : i32
    return %c0_i32, %c0_i32_0, %c0_i32_1, %c0_i32_2 : i32, i32, i32, i32
  }
  func.func @transform_22(%arg0: i32) -> (i32, i32, i32, i32) {
    %c0_i32 = arith.constant 0 : i32
    %c0_i32_0 = arith.constant 0 : i32
    %c0_i32_1 = arith.constant 0 : i32
    %c0_i32_2 = arith.constant 0 : i32
    %c0_i32_3 = arith.constant 0 : i32
    return %c0_i32, %c0_i32_0, %c0_i32_1, %c0_i32_2 : i32, i32, i32, i32
  }
  func.func @transform_23(%arg0: i32) -> (i32, i32, i32, i32) {
    %c0_i32 = arith.constant 0 : i32
    %c0_i32_0 = arith.constant 0 : i32
    %c0_i32_1 = arith.constant 0 : i32
    %c0_i32_2 = arith.constant 0 : i32
    %c0_i32_3 = arith.constant 0 : i32
    return %c0_i32, %c0_i32_0, %c0_i32_1, %c0_i32_2 : i32, i32, i32, i32
  }
  func.func @transform_24(%arg0: i32) -> (i32, i32, i32, i32) {
    %c0_i32 = arith.constant 0 : i32
    %c0_i32_0 = arith.constant 0 : i32
    %c0_i32_1 = arith.constant 0 : i32
    %c0_i32_2 = arith.constant 0 : i32
    %c0_i32_3 = arith.constant 0 : i32
    return %c0_i32, %c0_i32_0, %c0_i32_1, %c0_i32_2 : i32, i32, i32, i32
  }
  func.func @transform_25(%arg0: i32) -> (i32, i32, i32, i32) {
    %c0_i32 = arith.constant 0 : i32
    %c0_i32_0 = arith.constant 0 : i32
    %c0_i32_1 = arith.constant 0 : i32
    %c0_i32_2 = arith.constant 0 : i32
    %c0_i32_3 = arith.constant 0 : i32
    return %c0_i32, %c0_i32_0, %c0_i32_1, %c0_i32_2 : i32, i32, i32, i32
  }
  func.func @transform_26(%arg0: i32) -> (i32, i32, i32) {
    %c0_i32 = arith.constant 0 : i32
    %c0_i32_0 = arith.constant 0 : i32
    %c0_i32_1 = arith.constant 0 : i32
    %c0_i32_2 = arith.constant 0 : i32
    return %c0_i32, %c0_i32_0, %c0_i32_1 : i32, i32, i32
  }
  func.func @transform_27(%arg0: i32) -> (i32, i32, i32) {
    %c0_i32 = arith.constant 0 : i32
    %c0_i32_0 = arith.constant 0 : i32
    %c0_i32_1 = arith.constant 0 : i32
    %c0_i32_2 = arith.constant 0 : i32
    return %c0_i32, %c0_i32_0, %c0_i32_1 : i32, i32, i32
  }
  func.func @transform_28(%arg0: i32) -> (i32, i32, i32) {
    %c0_i32 = arith.constant 0 : i32
    %c0_i32_0 = arith.constant 0 : i32
    %c0_i32_1 = arith.constant 0 : i32
    %c0_i32_2 = arith.constant 0 : i32
    return %c0_i32, %c0_i32_0, %c0_i32_1 : i32, i32, i32
  }
  func.func @transform_29(%arg0: i32) -> (i32, i32) {
    %c0_i32 = arith.constant 0 : i32
    %c0_i32_0 = arith.constant 0 : i32
    %c0_i32_1 = arith.constant 0 : i32
    return %c0_i32, %c0_i32_0 : i32, i32
  }
  func.func @transform_30(%arg0: i32) -> (i32, i32) {
    %c0_i32 = arith.constant 0 : i32
    %c0_i32_0 = arith.constant 0 : i32
    %c0_i32_1 = arith.constant 0 : i32
    return %c0_i32, %c0_i32_0 : i32, i32
  }
  func.func @transform_31(%arg0: i32) -> (i32, i32, i32) {
    %c0_i32 = arith.constant 0 : i32
    %c0_i32_0 = arith.constant 0 : i32
    %c0_i32_1 = arith.constant 0 : i32
    %c0_i32_2 = arith.constant 0 : i32
    return %c0_i32, %c0_i32_0, %c0_i32_1 : i32, i32, i32
  }
  func.func @transform_32(%arg0: i32) -> (i32, i32) {
    %c0_i32 = arith.constant 0 : i32
    %c0_i32_0 = arith.constant 0 : i32
    %c0_i32_1 = arith.constant 0 : i32
    return %c0_i32, %c0_i32_0 : i32, i32
  }
  func.func @transform_33(%arg0: i32) -> (i32, i32) {
    %c0_i32 = arith.constant 0 : i32
    %c0_i32_0 = arith.constant 0 : i32
    %c0_i32_1 = arith.constant 0 : i32
    return %c0_i32, %c0_i32_0 : i32, i32
  }
  func.func @transform_34(%arg0: i32) -> (i32, i32) {
    %c0_i32 = arith.constant 0 : i32
    %c0_i32_0 = arith.constant 0 : i32
    %c0_i32_1 = arith.constant 0 : i32
    return %c0_i32, %c0_i32_0 : i32, i32
  }
  func.func @transform_35(%arg0: i32) -> (i32, i32, i32) {
    %c0_i32 = arith.constant 0 : i32
    %c0_i32_0 = arith.constant 0 : i32
    %c0_i32_1 = arith.constant 0 : i32
    return %arg0, %c0_i32, %c0_i32_0 : i32, i32, i32
  }
}

</mosaic_0001>

<bundles_post_ra>
// kernel: byol_forward.1
= control target key start
LH: loop header
LB: loop body
LE: loop exit
PB: predicated region body
PF: predicated region fallthrough
CT: control target
= control target key end

     0   :  { %s7097_s6 = smov 1   ;;  %s7098_s10 = smov 2   ;;  %s8388_s0 = inlined_call_operand.smem [shape: u32[36], index: -1, kind: input, shape index: {}] }
   0x1   :  { %s7142_s5 = sld [smem:[%s8388_s0]]   ;;  %s7099_s14 = smov 3  }
   0x2   :  { %s7147_s9 = sld [smem:[%s8388_s0 + %s7097_s6]]   ;;  %s7100_s18 = smov 4  }
   0x3   :  { %s7152_s13 = sld [smem:[%s8388_s0 + %s7098_s10]]   ;;  %s7101_s22 = smov 5  }
   0x4   :  { %s7157_s17 = sld [smem:[%s8388_s0 + %s7099_s14]]   ;;  %s7102_s26 = smov 6  }
   0x5   :  { %s7162_s21 = sld [smem:[%s8388_s0 + %s7100_s18]]   ;;  %s7103_s30 = smov 7  }
   0x6   :  { %s7167_s25 = sld [smem:[%s8388_s0 + %s7101_s22]]   ;;  %s7104_s4 = smov 8  }
   0x7   :  { %s7172_s29 = sld [smem:[%s8388_s0 + %s7102_s26]]   ;;  %s7105_s10 = smov 9  }
   0x8   :  { %s7177_s3 = sld [smem:[%s8388_s0 + %s7103_s30]]   ;;  %s7106_s15 = smov 10  }
   0x9   :  { %s7182_s8 = sld [smem:[%s8388_s0 + %s7104_s4]]   ;;  %s7107_s20 = smov 11  }
   0xa   :  { %s7187_s14 = sld [smem:[%s8388_s0 + %s7105_s10]]   ;;  %s7108_s26 = smov 12  }
   0xb   :  { %s7192_s19 = sld [smem:[%s8388_s0 + %s7106_s15]]   ;;  %s7109_s1 = smov 13  }
   0xc   :  { %s7197_s24 = sld [smem:[%s8388_s0 + %s7107_s20]]   ;;  %s7110_s7 = smov 14  }
   0xd   :  { %s7202_s30 = sld [smem:[%s8388_s0 + %s7108_s26]]   ;;  %s7111_s15 = smov 15  }
   0xe   :  { %8408 = sst [smem:[#allocation2_spill]] %s7177_s3  ;;  %s7112_s22 = smov 16  }
   0xf   :  { %s7207_s6 = sld [smem:[%s8388_s0 + %s7109_s1]]   ;;  %s7113_s28 = smov 17  }
  0x10   :  { %s7212_s12 = sld [smem:[%s8388_s0 + %s7110_s7]]   ;;  %s7114_s7 = smov 18  }
  0x11   :  { %s7217_s20 = sld [smem:[%s8388_s0 + %s7111_s15]]   ;;  %s7115_s15 = smov 19  }
  0x12   :  { %s7222_s27 = sld [smem:[%s8388_s0 + %s7112_s22]]   ;;  %s7116_s22 = smov 20  }
  0x13   :  { %s7227_s4 = sld [smem:[%s8388_s0 + %s7113_s28]]   ;;  %s7117_s28 = smov 21  }
  0x15   :  { %8409 = sst [smem:[#allocation3_spill]] %s7207_s6 }
  0x16   :  { %s7232_s6 = sld [smem:[%s8388_s0 + %s7114_s7]]   ;;  %s7118_s7 = smov 22  }
  0x17   :  { %8410 = sst [smem:[#allocation4_spill]] %s7217_s20 }
  0x18   :  { %8411 = sst [smem:[#allocation5_spill]] %s7222_s27 }
  0x19   :  { %8412 = sst [smem:[#allocation6_spill]] %s7227_s4 }
  0x1a   :  { %s7237_s20 = sld [smem:[%s8388_s0 + %s7115_s15]]   ;;  %s7119_s15 = smov 23  }
  0x1b   :  { %s7242_s27 = sld [smem:[%s8388_s0 + %s7116_s22]]   ;;  %s7120_s22 = smov 24  }
  0x1c   :  { %8413 = sst [smem:[#allocation7_spill]] %s7232_s6 }
  0x1d   :  { %s7247_s4 = sld [smem:[%s8388_s0 + %s7117_s28]]   ;;  %s7121_s28 = smov 25  }
  0x1e   :  { %s7252_s6 = sld [smem:[%s8388_s0 + %s7118_s7]]   ;;  %s7122_s7 = smov 26  }
  0x20   :  { %8414 = sst [smem:[#allocation8_spill]] %s7237_s20 }
  0x21   :  { %8415 = sst [smem:[#allocation9_spill]] %s7242_s27 }
  0x22   :  { %s7257_s20 = sld [smem:[%s8388_s0 + %s7119_s15]]   ;;  %s7123_s15 = smov 27  }
  0x23   :  { %8416 = sst [smem:[#allocation10_spill]] %s7247_s4 }
  0x24   :  { %8417 = sst [smem:[#allocation11_spill]] %s7252_s6 }
  0x25   :  { %s7262_s27 = sld [smem:[%s8388_s0 + %s7120_s22]]   ;;  %s7124_s22 = smov 28  }
  0x26   :  { %s7267_s4 = sld [smem:[%s8388_s0 + %s7121_s28]]   ;;  %s7125_s28 = smov 29  }
  0x27   :  { %s7272_s6 = sld [smem:[%s8388_s0 + %s7122_s7]]   ;;  %s7126_s7 = smov 30  }
  0x28   :  { %8418 = sst [smem:[#allocation12_spill]] %s7257_s20 }
  0x29   :  { %s7277_s20 = sld [smem:[%s8388_s0 + %s7123_s15]]   ;;  %s7127_s15 = smov 31  }
  0x2b   :  { %8419 = sst [smem:[#allocation13_spill]] %s7262_s27 }
  0x2c   :  { %8420 = sst [smem:[#allocation14_spill]] %s7267_s4 }
  0x2d   :  { %8421 = sst [smem:[#allocation15_spill]] %s7272_s6 }
  0x2e   :  { %s7282_s27 = sld [smem:[%s8388_s0 + %s7124_s22]]   ;;  %s7128_s22 = smov 32  }
  0x2f   :  { %8422 = sst [smem:[#allocation16_spill]] %s7277_s20 }
  0x30   :  { %s7287_s4 = sld [smem:[%s8388_s0 + %s7125_s28]]   ;;  %s7129_s28 = smov 33  }
  0x31   :  { %s7292_s6 = sld [smem:[%s8388_s0 + %s7126_s7]]   ;;  %s7130_s7 = smov 34  }
  0x32   :  { %s7297_s20 = sld [smem:[%s8388_s0 + %s7127_s15]]   ;;  %s7131_s15 = smov 35  }
  0x34   :  { %8423 = sst [smem:[#allocation17_spill]] %s7282_s27 }
  0x35   :  { %s7302_s27 = sld [smem:[%s8388_s0 + %s7128_s22]]   ;;  %s7319_s22 = smov 0  }
  0x36   :  { %8424 = sst [smem:[#allocation18_spill]] %s7287_s4 }
  0x37   :  { %8425 = sst [smem:[#allocation19_spill]] %s7292_s6 }
  0x38   :  { %8426 = sst [smem:[#allocation20_spill]] %s7297_s20 }
  0x39   :  { %s7307_s4 = sld [smem:[%s8388_s0 + %s7129_s28]]  }
  0x3a   :  { %s7312_s6 = sld [smem:[%s8388_s0 + %s7130_s7]]  }
  0x3b   :  { %s7317_s20 = sld [smem:[%s8388_s0 + %s7131_s15]]  }
  0x3c LB: > { %s8427_s3 = sld [smem:[#allocation2_spill]]  ;;  %s7325_s23 = sadd.s32 4294967295, %s7095_s22   ;;  %s7095_s22 = sphi %s7319_s22, %s81_s22  }
  0x3d   : > { %p6348_p0 = scmp.ge.s32.totalorder %s7095_s22, 1  ;;  %p975_p1 = scmp.lt.s32.totalorder %s7095_s22, 3 }
  0x3f   : > { %p976_p2 = pnand %p6348_p0, %p975_p1 }
  0x40   : > { %s6349_s0 = sshll.u32 (!%p976_p2), %s7325_s23, 1  ;;  %s8428_s1 = sld [smem:[#allocation10_spill]] (!%p976_p2) }
  0x41   : > { %979 = sbr.rel (%p976_p2) target bundleno = 9134 (0x23ae), region = 160  ;;  %p1064_p3 = scmp.lt.s32.totalorder (!%p976_p2), %s6349_s0, 3 }
  0x42   : > { %s8429_s2 = sld [smem:[#allocation5_spill]] (!%p976_p2)  ;;  %p1070_p4 = scmp.lt.s32.totalorder (!%p976_p2), %s7325_s23, 1 }
  0x43   : > { %s8430_s7 = sld [smem:[#allocation3_spill]] (!%p976_p2) }
  0x44   : > { %s8431_s10 = sld [smem:[#allocation9_spill]] (!%p976_p2) }
  0x45   : > { %s8432_s11 = sld [smem:[#allocation7_spill]] (!%p976_p2) }
  0x46   : > { %v1127_v0 = vld [vmem:[%s7152_s13 + $0x8] sm:$0xff]  ;;  %v1126_v1 = vld [vmem:[%s7152_s13] sm:$0xff]  ;;  %s8447_s0 = smov (!%p1064_p3, %s6349_s0), 3  ;;  %vm1084_vm0 = vcmask 130048   ;;  %vm1198_vm1 = vcmask 64512   ;;  %v6387_v40 = vld [vmem:[%s7152_s13 + $0x18] sm:$0xff] }
  0x47   : > { %v1079_v2 = vld [vmem:[%s7147_s9 + $0x8] sm:$0xff]  ;;  %1147 = vmatpush.msra.mxu1 %v1127_v0  ;;  %v1078_v3 = vld [vmem:[%s7147_s9] sm:$0xff]  ;;  %s6785_s26 = sshll.u32 %s8447_s0, 4  ;;  %v6386_v41 = vld [vmem:[%s7152_s13 + $0x10] sm:$0xff]  ;;  %vm1927_vm15 = vcmask 261120   ;;  %s8433_s15 = sld [smem:[#allocation4_spill]] }
  0x48   : > { %1111 = vmatpush.msra.mxu0 %v1079_v2  ;;  %s7335_s28 = scalar_lea.vmem %s7142_s5, %s6785_s26  ;;  %v6831_v10 = vld [vmem:[%s7167_s25 + $0x2] ss:$0 sm:$0xff]  ;;  %v6832_v13 = vld [vmem:[%s7167_s25] ss:$0 sm:$0xff]  ;;  %v1163_v26 = vld [vmem:[%s7157_s17 + $0x8] sm:$0xff]  ;;  %s8434_s16 = sld [smem:[#allocation13_spill]] }
  0x49   : > { %1148 = vmatpush.msra.mxu1 %v1126_v1  ;;  %v7338_v4 = vld [vmem:[%s7335_s28] sm:$0xff]  ;;  %v7345_v5 = vld [vmem:[%s7335_s28 + $0x8] sm:$0xff]  ;;  %v7352_v6 = vld [vmem:[%s7335_s28 + $0x10] sm:$0xff]  ;;  %1183 = vmatpush.msra.mxu2 %v1163_v26  ;;  %s8435_s18 = sld [smem:[#allocation6_spill]]  ;;  %s8449_s23 = smov (!%p1070_p4, %s7325_s23), 1 }
  0x4a   : > { %1112 = vmatpush.msra.mxu0 %v1078_v3  ;;  %6358 = vmatmul.msk.f32.vlgmr.msra.gmra.mxu1 %vm1084_vm0, %v7338_v4  ;;  %v7359_v7 = vld [vmem:[%s7335_s28 + $0x18] sm:$0xff]  ;;  %v1162_v27 = vld [vmem:[%s7157_s17] sm:$0xff]  ;;  %v6379_v43 = vld [vmem:[%s7147_s9 + $0x10] sm:$0xff]  ;;  %s8436_s0 = sld [smem:[#allocation11_spill]] }
  0x4b   : > { %6353 = vmatmul.msk.f32.vlgmr.msra.gmra.mxu0 %vm1084_vm0, %v7338_v4  ;;  %1184 = vmatpush.msra.mxu2 %v1162_v27  ;;  %v6380_v42 = vld [vmem:[%s7147_s9 + $0x18] sm:$0xff]  ;;  %v6833_v52 = vld [vmem:[%s7167_s25 + $0x4] ss:$0 sm:$0xff]  ;;  %s8437_s26 = sld [smem:[#allocation12_spill]] }
  0x4c   : > { %6363 = vmatmul.msk.f32.vlgmr.msra.gmra.mxu2 %vm1084_vm0, %v7338_v4 }
  0x4d   : > { %1398 = vmatpush.msrb.mxu2 %v6380_v42 }
  0x4f   : > { %1399 = vmatpush.msrb.mxu2 %v6379_v43  ;;  %v1375_v43 = vld [vmem:[%s7162_s21] sm:$0xff] }
  0x52   : > { %6359 = vmatmul.msk.f32.gmra.mxu1 %vm1084_vm0, %v7345_v5 }
  0x53   : > { %6354 = vmatmul.msk.f32.gmra.mxu0 %vm1084_vm0, %v7345_v5 }
  0x54   : > { %6364 = vmatmul.msk.f32.gmra.mxu2 %vm1084_vm0, %v7345_v5 }
  0x5a   : > { %6360 = vmatmul.msk.f32.gmra.mxu1 %vm1084_vm0, %v7352_v6 }
  0x5b   : > { %6355 = vmatmul.msk.f32.gmra.mxu0 %vm1084_vm0, %v7352_v6 }
  0x5c   : > { %6365 = vmatmul.msk.f32.gmra.mxu2 %vm1084_vm0, %v7352_v6 }
  0x62   : > { %6361 = vmatmul.msk.f32.gmra.mxu1 %vm1084_vm0, %v7359_v7 }
  0x63   : > { %6356 = vmatmul.msk.f32.gmra.mxu0 %vm1084_vm0, %v7359_v7 }
  0x64   : > { %6366 = vmatmul.msk.f32.gmra.mxu2 %vm1084_vm0, %v7359_v7 }
  0x6c   : > { %6382 = vmatmul.msk.f32.vlgmr.msrb.gmra.mxu2 %vm1084_vm0, %v7338_v4 }
  0x74   : > { %6383 = vmatmul.msk.f32.gmra.mxu2 %vm1084_vm0, %v7345_v5 }
  0x7c   : > { %6384 = vmatmul.msk.f32.gmra.mxu2 %vm1084_vm0, %v7352_v6 }
  0x84   : > { %6385 = vmatmul.msk.f32.gmra.mxu2 %vm1084_vm0, %v7359_v7 }
  0xc7   : > { %v1150_v8 = vpop.f32.mrf.mxu1 }
  0xc8   : > { %v1114_v9 = vpop.f32.mrf.mxu0  ;;  %v1151_v14 = vadd.f32 %v6831_v10, %v1150_v8 }
  0xc9   : > { %v1115_v15 = vadd.f32 %v6832_v13, %v1114_v9 }
  0xcf   : > { %v1153_v11 = vpop.f32.mrf.mxu1  ;;  %v1186_v49 = vpop.f32.mrf.mxu2 }
  0xd0   : > { %v1154_v12 = vadd.f32 %v6831_v10, %v1153_v11  ;;  %v1117_v16 = vpop.f32.mrf.mxu0  ;;  %v1187_v56 = vadd.f32 %v6833_v52, %v1186_v49 }
  0xd1   : > { %v1118_v18 = vadd.f32 %v6832_v13, %v1117_v16 }
  0xd2   : > { %6367 = vmatpush.xpose.msk.msra.mxu3 %vm1198_vm1, %v1154_v12 }
  0xd6   : > { %6368 = vmatpush.xpose.msk.msra.mxu3 %vm1198_vm1, %v1151_v14  ;;  %v6834_v14 = vld [vmem:[%s7167_s25 + $0x3] ss:$0 sm:$0xff] }
  0xd7   : > { %v1156_v17 = vpop.f32.mrf.mxu1  ;;  %v1189_v54 = vpop.f32.mrf.mxu2 }
  0xd8   : > { %v1120_v21 = vpop.f32.mrf.mxu0  ;;  %v1157_v22 = vadd.f32 %v6831_v10, %v1156_v17  ;;  %v1190_v55 = vadd.f32 %v6833_v52, %v1189_v54 }
  0xd9   : > { %6369 = vmatmul.msk.f32.vlgmr.msra.gmra.mxu3 %vm1198_vm1, %v1115_v15  ;;  %v1121_v23 = vadd.f32 %v6832_v13, %v1120_v21 }
  0xda   : > { %1337 = vmatpush.msrb.mxu0 %v1190_v55 }
  0xdc   : > { %1338 = vmatpush.msrb.mxu0 %v1187_v56 }
  0xdf   : > { %v1159_v19 = vpop.f32.mrf.mxu1  ;;  %v1192_v9 = vpop.f32.mrf.mxu2 }
  0xe0   : > { %v1160_v20 = vadd.f32 %v6831_v10, %v1159_v19  ;;  %v1123_v24 = vpop.f32.mrf.mxu0  ;;  %v1193_v12 = vadd.f32 %v6833_v52, %v1192_v9 }
  0xe1   : > { %6370 = vmatmul.msk.f32.gmra.mxu3 %vm1198_vm1, %v1118_v18  ;;  %v1124_v25 = vadd.f32 %v6832_v13, %v1123_v24 }
  0xe2   : > { %6371 = vmatpush.xpose.msk.msrb.mxu3 %vm1198_vm1, %v1160_v20 }
  0xe6   : > { %6372 = vmatpush.xpose.msk.msrb.mxu3 %vm1198_vm1, %v1157_v22 }
  0xe7   : > { %v1195_v10 = vpop.f32.mrf.mxu2 }
  0xe8   : > { %v1196_v11 = vadd.f32 %v6833_v52, %v1195_v10 }
  0xe9   : > { %6373 = vmatmul.msk.f32.vlgmr.msrb.gmra.mxu3 %vm1198_vm1, %v1121_v23 }
  0xea   : > { %1435 = vmatpush.msra.mxu3 %v6387_v40  ;;  %1366 = vmatpush.msrb.mxu1 %v1196_v11 }
  0xec   : > { %1436 = vmatpush.msra.mxu3 %v6386_v41  ;;  %1367 = vmatpush.msrb.mxu1 %v1193_v12 }
  0xf1   : > { %6374 = vmatmul.msk.f32.gmra.mxu3 %vm1198_vm1, %v1124_v25 }
  0xf9   : > { %6389 = vmatmul.msk.f32.vlgmr.msra.gmra.mxu3 %vm1084_vm0, %v7338_v4 }
 0x101   : > { %6390 = vmatmul.msk.f32.gmra.mxu3 %vm1084_vm0, %v7345_v5 }
 0x109   : > { %6391 = vmatmul.msk.f32.gmra.mxu3 %vm1084_vm0, %v7352_v6 }
 0x111   : > { %6392 = vmatmul.msk.f32.gmra.mxu3 %vm1084_vm0, %v7359_v7 }
 0x15c   : > { %v1228_v28 = vpop.f32.mrf.mxu3 }
 0x15d   : > { %v1269_v29 = vmul.f32 0.35355338, %v1228_v28 }
 0x15f   : > { %v1273_v30 = vsel %vm1084_vm0, %v1269_v29, -inf }
 0x160   : > { %1274 = vmax.xlane.f32.xlu2 %v1273_v30 }
 0x164   : > { %v1231_v31 = vpop.f32.mrf.mxu3 }
 0x165   : > { %v1270_v32 = vmul.f32 0.35355338, %v1231_v31 }
 0x167   : > { %v1276_v33 = vsel %vm1084_vm0, %v1270_v32, -inf }
 0x168   : > { %1277 = vmax.xlane.f32.xlu2 %v1276_v33  ;;  %v6835_v33 = vld [vmem:[%s7167_s25 + $0x1] ss:$0 sm:$0xff] }
 0x16c   : > { %v1263_v34 = vpop.f32.mrf.mxu3 }
 0x16d   : > { %v1271_v35 = vmul.f32 0.35355338, %v1263_v34 }
 0x16f   : > { %v1279_v36 = vsel %vm1084_vm0, %v1271_v35, -inf }
 0x170   : > { %1280 = vmax.xlane.f32.xlu0 %v1279_v36 }
 0x174   : > { %v1266_v37 = vpop.f32.mrf.mxu3 }
 0x175   : > { %v1272_v38 = vmul.f32 0.35355338, %v1266_v37 }
 0x177   : > { %v1282_v39 = vsel %vm1084_vm0, %v1272_v38, -inf }
 0x178   : > { %1283 = vmax.xlane.f32.xlu0 %v1282_v39 }
 0x17c   : > { %v1438_v13 = vpop.f32.mrf.mxu3 }
 0x17d   : > { %v1439_v17 = vadd.f32 %v6834_v14, %v1438_v13 }
 0x184   : > { %v1441_v15 = vpop.f32.mrf.mxu3 }
 0x185   : > { %v1442_v16 = vadd.f32 %v6834_v14, %v1441_v15 }
 0x187   : > { %6400 = vmatpush.xpose.msk.msra.mxu1 %vm1198_vm1, %v1442_v16 }
 0x18b   : > { %6401 = vmatpush.xpose.msk.msra.mxu1 %vm1198_vm1, %v1439_v17 }
 0x18c   : > { %v1444_v21 = vpop.f32.mrf.mxu3 }
 0x18d   : > { %v1445_v28 = vadd.f32 %v6834_v14, %v1444_v21 }
 0x194   : > { %v1447_v23 = vpop.f32.mrf.mxu3 }
 0x195   : > { %v1448_v25 = vadd.f32 %v6834_v14, %v1447_v23  ;;  %v6836_v23 = vld [vmem:[%s7167_s25 + $0x5] ss:$0 sm:$0xff] }
 0x1d3   : > { %v1275_v44 = vpop.xlane.xlu2 %1274 }
 0x1d4   : > { %v1285_v45 = vsub.f32 %v1269_v29, %v1275_v44  ;;  %v1401_v29 = vpop.f32.mrf.mxu2 }
 0x1d5   : > { %v1402_v34 = vadd.f32 %v6835_v33, %v1401_v29 }
 0x1d6   : > { %v1289_v46 = vmul.f32 1.442695, %v1285_v45 }
 0x1d8   : > { %6891 = vpow2.f32 %v1289_v46 }
 0x1db   : > { %v1278_v57 = vpop.xlane.xlu2 %1277 }
 0x1dc   : > { %v1286_v61 = vsub.f32 %v1270_v32, %v1278_v57  ;;  %v1404_v36 = vpop.f32.mrf.mxu2 }
 0x1de   : > { %v6892_v47 = vpop.eup %6891  ;;  %v1291_v0 = vmul.f32 1.442695, %v1286_v61  ;;  %v6393_v61 = vld [vmem:[%s7157_s17 + $0x10] sm:$0xff] }
 0x1df   : > { %v1297_v48 = vsel %vm1084_vm0, %v6892_v47, 0.0 }
 0x1e0   : > { %1298 = vadd.xlane.f32.xlu0 %v1297_v48 }
 0x1e3   : > { %v1281_v50 = vpop.xlane.xlu0 %1280 }
 0x1e4   : > { %v1287_v51 = vsub.f32 %v1271_v35, %v1281_v50  ;;  %v1407_v39 = vpop.f32.mrf.mxu2 }
 0x1e5   : > { %v1408_v40 = vadd.f32 %v6835_v33, %v1407_v39 }
 0x1e6   : > { %v1293_v53 = vmul.f32 1.442695, %v1287_v51 }
 0x1e8   : > { %6893 = vpow2.f32 %v1293_v53 }
 0x1eb   : > { %v1284_v58 = vpop.xlane.xlu0 %1283 }
 0x1ec   : > { %v1288_v59 = vsub.f32 %v1272_v38, %v1284_v58  ;;  %v1405_v38 = vadd.f32 %v6835_v33, %v1404_v36  ;;  %v1410_v41 = vpop.f32.mrf.mxu2 }
 0x1ed   : > { %v1411_v42 = vadd.f32 %v6835_v33, %v1410_v41 }
 0x1ee   : > { %v6894_v60 = vpop.eup %6893  ;;  %v1295_v62 = vmul.f32 1.442695, %v1288_v59 }
 0x1ef   : > { %v1303_v63 = vsel %vm1084_vm0, %v6894_v60, 0.0 }
 0x1f0   : > { %6895 = vpow2.f32 %v1295_v62  ;;  %1304 = vadd.xlane.f32.xlu1 %v1303_v63 }
 0x1f1   : > { %6897 = vpow2.f32 %v1291_v0 }
 0x1f6   : > { %v6896_v1 = vpop.eup %6895 }
 0x1f7   : > { %v1306_v2 = vsel %vm1084_vm0, %v6896_v1, 0.0  ;;  %v6898_v3 = vpop.eup %6897 }
 0x1f8   : > { %1307 = vadd.xlane.f32.xlu1 %v1306_v2  ;;  %v1300_v8 = vsel %vm1084_vm0, %v6898_v3, 0.0 }
 0x200   : > { %1301 = vadd.xlane.f32.xlu1 %v1300_v8 }
 0x253   : > { %v1299_v18 = vpop.xlane.xlu0 %1298 }
 0x254   : > { %6899 = vrcp.f32 %v1299_v18 }
 0x25a   : > { %v6900_v19 = vpop.eup %6899 }
 0x25b   : > { %v1313_v20 = vmul.f32 %v6900_v19, %v6892_v47 }
 0x25d   : > { %6375 = vmatmul.msk.f32.vlgmr.msrb.gmra.mxu0 %vm1084_vm0, %v1313_v20 }
 0x263   : > { %v1305_v22 = vpop.xlane.xlu1 %1304 }
 0x264   : > { %6901 = vrcp.f32 %v1305_v22 }
 0x26a   : > { %v6902_v24 = vpop.eup %6901 }
 0x26b   : > { %v1308_v26 = vpop.xlane.xlu1 %1307  ;;  %v1315_v27 = vmul.f32 %v6902_v24, %v6894_v60  ;;  %v6394_v60 = vld [vmem:[%s7157_s17 + $0x18] sm:$0xff] }
 0x26c   : > { %6903 = vrcp.f32 %v1308_v26  ;;  %1472 = vmatpush.msra.mxu0 %v6394_v60 }
 0x26d   : > { %6377 = vmatmul.msk.f32.vlgmr.msrb.gmra.mxu1 %vm1084_vm0, %v1315_v27 }
 0x26e   : > { %6404 = vmatpush.xpose.msk.msrb.mxu1 %vm1198_vm1, %v1448_v25  ;;  %1473 = vmatpush.msra.mxu0 %v6393_v61 }
 0x272   : > { %v6904_v30 = vpop.eup %6903  ;;  %6405 = vmatpush.xpose.msk.msrb.mxu1 %vm1198_vm1, %v1445_v28 }
 0x273   : > { %v1302_v31 = vpop.xlane.xlu1 %1301  ;;  %v1316_v32 = vmul.f32 %v6904_v30, %v6896_v1 }
 0x274   : > { %6905 = vrcp.f32 %v1302_v31 }
 0x275   : > { %6378 = vmatmul.msk.f32.gmra.mxu1 %vm1084_vm0, %v1316_v32  ;;  %v6412_v32 = vld [vmem:[%s7162_s21 + $0x8] sm:$0xff] }
 0x276   : > { %1692 = vmatpush.msrb.mxu0 %v6412_v32 }
 0x27a   : > { %v6906_v35 = vpop.eup %6905 }
 0x27b   : > { %v1314_v37 = vmul.f32 %v6906_v35, %v6898_v3 }
 0x27d   : > { %6376 = vmatmul.msk.f32.gmra.mxu0 %vm1084_vm0, %v1314_v37  ;;  %6402 = vmatmul.msk.f32.vlgmr.msra.gmra.mxu1 %vm1198_vm1, %v1402_v34 }
 0x27e   : > { %1733 = vmatpush.msra.mxu1 %v1375_v43 }
 0x285   : > { %6403 = vmatmul.msk.f32.gmra.mxu1 %vm1198_vm1, %v1405_v38  ;;  %6396 = vmatmul.msk.f32.vlgmr.msra.gmra.mxu0 %vm1084_vm0, %v7338_v4 }
 0x28d   : > { %6406 = vmatmul.msk.f32.vlgmr.msrb.gmra.mxu1 %vm1198_vm1, %v1408_v40  ;;  %6397 = vmatmul.msk.f32.gmra.mxu0 %vm1084_vm0, %v7345_v5 }
 0x295   : > { %6407 = vmatmul.msk.f32.gmra.mxu1 %vm1198_vm1, %v1411_v42  ;;  %6398 = vmatmul.msk.f32.gmra.mxu0 %vm1084_vm0, %v7352_v6 }
 0x29d   : > { %6399 = vmatmul.msk.f32.gmra.mxu0 %vm1084_vm0, %v7359_v7 }
 0x2da   : > { %v1340_v44 = vpop.f32.mrf.mxu0 }
 0x2db   : > { %6417 = vmatmul.msk.f32.vlgmr.msra.gmra.mxu1 %vm1198_vm1, %v1340_v44 }
 0x2ea   : > { %v1369_v45 = vpop.f32.mrf.mxu1 }
 0x2f2   : > { %v1372_v46 = vpop.f32.mrf.mxu1 }
 0x2fa   : > { %v1343_v47 = vpop.f32.mrf.mxu0  ;;  %v1516_v48 = vpop.f32.mrf.mxu1 }
 0x2fb   : > { %v1557_v49 = vmul.f32 0.35355338, %v1516_v48  ;;  %6418 = vmatmul.msk.f32.gmra.mxu1 %vm1198_vm1, %v1343_v47 }
 0x2fd   : > { %v1561_v50 = vsel %vm1084_vm0, %v1557_v49, -inf }
 0x2fe   : > { %1562 = vmax.xlane.f32.xlu2 %v1561_v50 }
 0x302   : > { %v1519_v51 = vpop.f32.mrf.mxu1  ;;  %v1475_v22 = vpop.f32.mrf.mxu0 }
 0x303   : > { %v1558_v52 = vmul.f32 0.35355338, %v1519_v51  ;;  %6419 = vmatmul.msk.f32.gmra.mxu1 %vm1198_vm1, %v1369_v45  ;;  %v1476_v25 = vadd.f32 %v6836_v23, %v1475_v22  ;;  %v6837_v51 = vld [vmem:[%s7172_s29] ss:$0 sm:$0xff] }
 0x305   : > { %v1564_v53 = vsel %vm1084_vm0, %v1558_v52, -inf }
 0x306   : > { %1565 = vmax.xlane.f32.xlu0 %v1564_v53 }
 0x30a   : > { %v1551_v54 = vpop.f32.mrf.mxu1  ;;  %v1478_v24 = vpop.f32.mrf.mxu0 }
 0x30b   : > { %v1559_v55 = vmul.f32 0.35355338, %v1551_v54  ;;  %6420 = vmatmul.msk.f32.gmra.mxu1 %vm1198_vm1, %v1372_v46  ;;  %v1479_v26 = vadd.f32 %v6836_v23, %v1478_v24 }
 0x30d   : > { %v1567_v56 = vsel %vm1084_vm0, %v1559_v55, -inf  ;;  %1625 = vmatpush.msra.mxu2 %v1479_v26 }
 0x30e   : > { %1568 = vmax.xlane.f32.xlu1 %v1567_v56 }
 0x30f   : > { %1626 = vmatpush.msra.mxu2 %v1476_v25 }
 0x312   : > { %v1554_v57 = vpop.f32.mrf.mxu1  ;;  %v1481_v27 = vpop.f32.mrf.mxu0 }
 0x313   : > { %v1560_v58 = vmul.f32 0.35355338, %v1554_v57  ;;  %v1482_v29 = vadd.f32 %v6836_v23, %v1481_v27 }
 0x315   : > { %v1570_v59 = vsel %vm1084_vm0, %v1560_v58, -inf }
 0x316   : > { %1571 = vmax.xlane.f32.xlu2 %v1570_v59 }
 0x31a   : > { %v1484_v28 = vpop.f32.mrf.mxu0 }
 0x31b   : > { %v1485_v30 = vadd.f32 %v6836_v23, %v1484_v28 }
 0x31d   : > { %1654 = vmatpush.msrb.mxu3 %v1485_v30 }
 0x31f   : > { %1655 = vmatpush.msrb.mxu3 %v1482_v29 }
 0x358   : > { %v1735_v48 = vpop.f32.mrf.mxu1 }
 0x371   : > { %v1563_v62 = vpop.xlane.xlu2 %1562 }
 0x372   : > { %v1573_v63 = vsub.f32 %v1557_v49, %v1563_v62 }
 0x374   : > { %v1577_v0 = vmul.f32 1.442695, %v1573_v63 }
 0x376   : > { %6907 = vpow2.f32 %v1577_v0 }
 0x378   : > { %v1738_v53 = vpop.f32.mrf.mxu1 }
 0x379   : > { %v1566_v1 = vpop.xlane.xlu0 %1565 }
 0x37a   : > { %v1574_v2 = vsub.f32 %v1558_v52, %v1566_v1 }
 0x37c   : > { %v6908_v3 = vpop.eup %6907  ;;  %v1579_v8 = vmul.f32 1.442695, %v1574_v2 }
 0x37d   : > { %v1585_v9 = vsel %vm1084_vm0, %v6908_v3, 0.0 }
 0x37e   : > { %6909 = vpow2.f32 %v1579_v8  ;;  %1586 = vadd.xlane.f32.xlu0 %v1585_v9 }
 0x380   : > { %v1741_v60 = vpop.f32.mrf.mxu1 }
 0x381   : > { %v1569_v10 = vpop.xlane.xlu1 %1568 }
 0x382   : > { %v1575_v11 = vsub.f32 %v1559_v55, %v1569_v10 }
 0x384   : > { %v6910_v12 = vpop.eup %6909  ;;  %v1581_v13 = vmul.f32 1.442695, %v1575_v11  ;;  %v7132_v11 = vmov 16.0  }
 0x385   : > { %v1588_v14 = vsel %vm1084_vm0, %v6910_v12, 0.0 }
 0x386   : > { %6911 = vpow2.f32 %v1581_v13  ;;  %1589 = vadd.xlane.f32.xlu1 %v1588_v14 }
 0x388   : > { %v1744_v2 = vpop.f32.mrf.mxu1 }
 0x389   : > { %v1572_v15 = vpop.xlane.xlu2 %1571 }
 0x38a   : > { %v1576_v16 = vsub.f32 %v1560_v58, %v1572_v15 }
 0x38c   : > { %v6912_v17 = vpop.eup %6911  ;;  %v1583_v18 = vmul.f32 1.442695, %v1576_v16 }
 0x38d   : > { %v1591_v19 = vsel %vm1084_vm0, %v6912_v17, 0.0 }
 0x38e   : > { %6913 = vpow2.f32 %v1583_v18  ;;  %1592 = vadd.xlane.f32.xlu2 %v1591_v19 }
 0x394   : > { %v6914_v20 = vpop.eup %6913 }
 0x395   : > { %v1594_v21 = vsel %vm1084_vm0, %v6914_v20, 0.0 }
 0x396   : > { %1595 = vadd.xlane.f32.xlu0 %v1594_v21 }
 0x3f1   : > { %v1587_v31 = vpop.xlane.xlu0 %1586 }
 0x3f2   : > { %6915 = vrcp.f32 %v1587_v31 }
 0x3f8   : > { %v6916_v33 = vpop.eup %6915 }
 0x3f9   : > { %v1601_v34 = vmul.f32 %v6916_v33, %v6908_v3  ;;  %v1590_v35 = vpop.xlane.xlu1 %1589 }
 0x3fa   : > { %6917 = vrcp.f32 %v1590_v35 }
 0x3fb   : > { %6408 = vmatmul.msk.f32.vlgmr.msra.gmra.mxu2 %vm1084_vm0, %v1601_v34 }
 0x400   : > { %v6918_v36 = vpop.eup %6917 }
 0x401   : > { %v1593_v37 = vpop.xlane.xlu2 %1592  ;;  %v1602_v38 = vmul.f32 %v6918_v36, %v6910_v12  ;;  %v1873_v36 = vld [vmem:[%s8427_s3 + $0x8] sm:$0xff] }
 0x402   : > { %6919 = vrcp.f32 %v1593_v37  ;;  %1904 = vmatpush.msrb.mxu2 %v1873_v36  ;;  %v1872_v37 = vld [vmem:[%s8427_s3] sm:$0xff] }
 0x403   : > { %6409 = vmatmul.msk.f32.gmra.mxu2 %vm1084_vm0, %v1602_v38 }
 0x404   : > { %1905 = vmatpush.msrb.mxu2 %v1872_v37 }
 0x408   : > { %v6920_v39 = vpop.eup %6919 }
 0x409   : > { %v1603_v40 = vmul.f32 %v6920_v39, %v6912_v17  ;;  %v1596_v41 = vpop.xlane.xlu0 %1595 }
 0x40a   : > { %6921 = vrcp.f32 %v1596_v41 }
 0x40b   : > { %6410 = vmatmul.msk.f32.vlgmr.msrb.gmra.mxu3 %vm1084_vm0, %v1603_v40  ;;  %6923 = vrcp.f32 %v7132_v11 }
 0x410   : > { %v6922_v42 = vpop.eup %6921 }
 0x411   : > { %v1604_v43 = vmul.f32 %v6922_v42, %v6914_v20  ;;  %v6924_v12 = vpop.eup %6923 }
 0x412   : > { %v1776_v13 = vmul.f32 16.0, %v6924_v12  ;;  %vm1780_vm2 = vweird.f32 %v6924_v12 }
 0x413   : > { %6411 = vmatmul.msk.f32.gmra.mxu3 %vm1084_vm0, %v1604_v43 }
 0x414   : > { %v1777_v14 = vsub.f32 1.0, %v1776_v13 }
 0x416   : > { %v1778_v15 = vmul.f32 %v6924_v12, %v1777_v14 }
 0x47e   : > { %v1628_v44 = vpop.f32.mrf.mxu2 }
 0x47f   : > { %6413 = vmatmul.msk.f32.vlgmr.msrb.gmra.mxu0 %vm1198_vm1, %v1628_v44 }
 0x486   : > { %v1631_v45 = vpop.f32.mrf.mxu2 }
 0x487   : > { %6414 = vmatmul.msk.f32.gmra.mxu0 %vm1198_vm1, %v1631_v45 }
 0x48e   : > { %v1657_v46 = vpop.f32.mrf.mxu3 }
 0x48f   : > { %6415 = vmatmul.msk.f32.gmra.mxu0 %vm1198_vm1, %v1657_v46 }
 0x496   : > { %v1660_v47 = vpop.f32.mrf.mxu3 }
 0x497   : > { %6416 = vmatmul.msk.f32.gmra.mxu0 %vm1198_vm1, %v1660_v47 }
 0x4fc   : > { %v1694_v49 = vpop.f32.mrf.mxu0 }
 0x4fd   : > { %v1736_v50 = vadd.f32 %v1735_v48, %v1694_v49 }
 0x4ff   : > { %v1747_v52 = vadd.f32 %v1736_v50, %v7338_v4 }
 0x501   : > { %v1755_v54 = vadd.f32 %v6837_v51, %v1747_v52 }
 0x503   : > { %v1763_v55 = vsel %vm1084_vm0, %v1755_v54, 0.0 }
 0x504   : > { %1764 = vadd.xlane.f32.xlu1 %v1763_v55  ;;  %v1697_v56 = vpop.f32.mrf.mxu0  ;;  %v6838_v55 = vld [vmem:[%s7172_s29 + $0x1] ss:$0 sm:$0xff] }
 0x505   : > { %v1739_v57 = vadd.f32 %v1738_v53, %v1697_v56  ;;  %v1926_v56 = vld [vmem:[%s7187_s14 + $0x18] sm:$0xff] }
 0x506   : > { %1952 = vmatpush.msra.mxu3 %v1926_v56 }
 0x507   : > { %v1748_v58 = vadd.f32 %v1739_v57, %v7345_v5 }
 0x509   : > { %v1756_v59 = vadd.f32 %v6837_v51, %v1748_v58 }
 0x50b   : > { %v1766_v61 = vsel %vm1084_vm0, %v1756_v59, 0.0 }
 0x50c   : > { %1767 = vadd.xlane.f32.xlu2 %v1766_v61  ;;  %v1700_v62 = vpop.f32.mrf.mxu0 }
 0x50d   : > { %v1742_v63 = vadd.f32 %v1741_v60, %v1700_v62  ;;  %v6839_v60 = vld [vmem:[%s7172_s29 + $0x2] ss:$0 sm:$0xff] }
 0x50f   : > { %v1749_v0 = vadd.f32 %v1742_v63, %v7352_v6  ;;  %v1779_v6 = vadd.f32 %v6924_v12, %v1778_v15 }
 0x511   : > { %v1757_v1 = vadd.f32 %v6837_v51, %v1749_v0  ;;  %v7470_v16 = vsel %vm1780_vm2, %v6924_v12, %v1779_v6 }
 0x513   : > { %v1769_v4 = vsel %vm1084_vm0, %v1757_v1, 0.0 }
 0x514   : > { %1770 = vadd.xlane.f32.xlu0 %v1769_v4  ;;  %v1703_v3 = vpop.f32.mrf.mxu0 }
 0x515   : > { %v1745_v8 = vadd.f32 %v1744_v2, %v1703_v3 }
 0x517   : > { %v1750_v9 = vadd.f32 %v1745_v8, %v7359_v7 }
 0x519   : > { %v1758_v10 = vadd.f32 %v6837_v51, %v1750_v9 }
 0x51b   : > { %v1772_v5 = vsel %vm1084_vm0, %v1758_v10, 0.0 }
 0x51c   : > { %1773 = vadd.xlane.f32.xlu1 %v1772_v5 }
 0x577   : > { %v1765_v17 = vpop.xlane.xlu1 %1764 }
 0x578   : > { %v1782_v18 = vmul.f32 %v7470_v16, %v1765_v17 }
 0x57a   : > { %v1786_v19 = vsub.f32 %v1755_v54, %v1782_v18 }
 0x57c   : > { %v1790_v20 = vmul.f32 %v1786_v19, %v1786_v19 }
 0x57e   : > { %v1794_v7 = vsel %vm1084_vm0, %v1790_v20, 0.0 }
 0x57f   : > { %1795 = vadd.xlane.f32.xlu2 %v1794_v7  ;;  %v1768_v21 = vpop.xlane.xlu2 %1767 }
 0x580   : > { %v1783_v22 = vmul.f32 %v7470_v16, %v1768_v21 }
 0x582   : > { %v7475_v23 = vsub.f32 %v1756_v59, %v1783_v22 }
 0x584   : > { %v1791_v24 = vmul.f32 %v7475_v23, %v7475_v23 }
 0x586   : > { %v1797_v25 = vsel %vm1084_vm0, %v1791_v24, 0.0 }
 0x587   : > { %1798 = vadd.xlane.f32.xlu0 %v1797_v25  ;;  %v1771_v26 = vpop.xlane.xlu0 %1770 }
 0x588   : > { %v1784_v27 = vmul.f32 %v7470_v16, %v1771_v26 }
 0x58a   : > { %v7481_v28 = vsub.f32 %v1757_v1, %v1784_v27 }
 0x58c   : > { %v1792_v29 = vmul.f32 %v7481_v28, %v7481_v28 }
 0x58e   : > { %v1800_v30 = vsel %vm1084_vm0, %v1792_v29, 0.0 }
 0x58f   : > { %v1774_v31 = vpop.xlane.xlu1 %1773  ;;  %1801 = vadd.xlane.f32.xlu1 %v1800_v30 }
 0x590   : > { %v1785_v32 = vmul.f32 %v7470_v16, %v1774_v31  ;;  %v1924_v31 = vld [vmem:[%s7187_s14 + $0x8] sm:$0xff] }
 0x592   : > { %v7487_v33 = vsub.f32 %v1758_v10, %v1785_v32  ;;  %v1923_v32 = vld [vmem:[%s7187_s14] sm:$0xff] }
 0x594   : > { %v1793_v34 = vmul.f32 %v7487_v33, %v7487_v33 }
 0x596   : > { %v1803_v35 = vsel %vm1084_vm0, %v1793_v34, 0.0  ;;  %v6840_v34 = vld [vmem:[%s7182_s8] ss:$0 sm:$0xff] }
 0x597   : > { %1804 = vadd.xlane.f32.xlu2 %v1803_v35 }
 0x5f2   : > { %v1796_v38 = vpop.xlane.xlu2 %1795 }
 0x5f3   : > { %v1806_v39 = vmul.f32 %v1796_v38, %v7470_v16 }
 0x5f5   : > { %v1810_v40 = vadd.f32 1e-05, %v1806_v39 }
 0x5f7   : > { %6925 = vrsqrt.f32 %v1810_v40  ;;  %vm1820_vm4 = vweird.f32 %v1810_v40 }
 0x5fa   : > { %v1799_v41 = vpop.xlane.xlu0 %1798 }
 0x5fb   : > { %v1807_v42 = vmul.f32 %v1799_v41, %v7470_v16 }
 0x5fd   : > { %v6926_v43 = vpop.eup %6925  ;;  %v1811_v44 = vadd.f32 1e-05, %v1807_v42 }
 0x5fe   : > { %v1815_v45 = vmul.f32 %v6926_v43, %v1810_v40  ;;  %vm1821_vm3 = vweird.f32 %v6926_v43 }
 0x5ff   : > { %6927 = vrsqrt.f32 %v1811_v44  ;;  %vm1822_vm5 = vmor %vm1820_vm4, %vm1821_vm3  ;;  %vm1830_vm7 = vweird.f32 %v1811_v44 }
 0x600   : > { %v1816_v46 = vmul.f32 %v6926_v43, %v1815_v45 }
 0x602   : > { %v1817_v47 = vmul.f32 0.5, %v1816_v46  ;;  %v1802_v48 = vpop.xlane.xlu1 %1801  ;;  %v6841_v46 = vld [vmem:[%s7172_s29 + $0x3] ss:$0 sm:$0xff] }
 0x603   : > { %v1808_v49 = vmul.f32 %v1802_v48, %v7470_v16 }
 0x604   : > { %v1818_v50 = vsub.f32 1.5, %v1817_v47 }
 0x605   : > { %v6928_v51 = vpop.eup %6927  ;;  %v1812_v52 = vadd.f32 1e-05, %v1808_v49 }
 0x606   : > { %v1819_v53 = vmul.f32 %v6926_v43, %v1818_v50  ;;  %v1825_v54 = vmul.f32 %v6928_v51, %v1811_v44  ;;  %vm1831_vm6 = vweird.f32 %v6928_v51 }
 0x607   : > { %6929 = vrsqrt.f32 %v1812_v52  ;;  %vm1832_vm8 = vmor %vm1830_vm7, %vm1831_vm6  ;;  %vm1840_vm10 = vweird.f32 %v1812_v52 }
 0x608   : > { %v1823_v57 = vsel %vm1822_vm5, %v6926_v43, %v1819_v53  ;;  %v1826_v58 = vmul.f32 %v6928_v51, %v1825_v54 }
 0x609   : > { %v1854_v59 = vmul.f32 %v1823_v57, %v1786_v19 }
 0x60a   : > { %v1827_v61 = vmul.f32 0.5, %v1826_v58  ;;  %v1805_v62 = vpop.xlane.xlu2 %1804 }
 0x60b   : > { %v1861_v63 = vmul.f32 %v6838_v55, %v1854_v59  ;;  %v1809_v0 = vmul.f32 %v1805_v62, %v7470_v16 }
 0x60c   : > { %v1828_v1 = vsub.f32 1.5, %v1827_v61 }
 0x60d   : > { %v6930_v4 = vpop.eup %6929  ;;  %v1813_v2 = vadd.f32 1e-05, %v1809_v0  ;;  %v7501_v3 = vadd.f32 %v6839_v60, %v1861_v63 }
 0x60e   : > { %v1829_v8 = vmul.f32 %v6928_v51, %v1828_v1  ;;  %v1835_v9 = vmul.f32 %v6930_v4, %v1812_v52  ;;  %vm1841_vm9 = vweird.f32 %v6930_v4 }
 0x60f   : > { %6931 = vrsqrt.f32 %v1813_v2  ;;  %6423 = vmatmul.msk.f32.vlgmr.msrb.gmra.mxu2 %vm1084_vm0, %v7501_v3  ;;  %vm1842_vm11 = vmor %vm1840_vm10, %vm1841_vm9  ;;  %vm1850_vm13 = vweird.f32 %v1813_v2 }
 0x610   : > { %v1833_v10 = vsel %vm1832_vm8, %v6928_v51, %v1829_v8  ;;  %v1836_v5 = vmul.f32 %v6930_v4, %v1835_v9 }
 0x611   : > { %v1855_v11 = vmul.f32 %v1833_v10, %v7475_v23 }
 0x612   : > { %v1837_v12 = vmul.f32 0.5, %v1836_v5 }
 0x613   : > { %v1862_v13 = vmul.f32 %v6838_v55, %v1855_v11 }
 0x614   : > { %v1838_v14 = vsub.f32 1.5, %v1837_v12 }
 0x615   : > { %v6932_v15 = vpop.eup %6931  ;;  %v1869_v6 = vadd.f32 %v6839_v60, %v1862_v13 }
 0x616   : > { %v1839_v17 = vmul.f32 %v6930_v4, %v1838_v14  ;;  %v1845_v18 = vmul.f32 %v6932_v15, %v1813_v2  ;;  %vm1851_vm12 = vweird.f32 %v6932_v15 }
 0x617   : > { %6424 = vmatmul.msk.f32.gmra.mxu2 %vm1084_vm0, %v1869_v6  ;;  %vm1852_vm14 = vmor %vm1850_vm13, %vm1851_vm12 }
 0x618   : > { %v1843_v19 = vsel %vm1842_vm11, %v6930_v4, %v1839_v17  ;;  %v1846_v20 = vmul.f32 %v6932_v15, %v1845_v18 }
 0x619   : > { %v1856_v7 = vmul.f32 %v1843_v19, %v7481_v28  ;;  %v1925_v28 = vld [vmem:[%s7187_s14 + $0x10] sm:$0xff] }
 0x61a   : > { %v1847_v21 = vmul.f32 0.5, %v1846_v20  ;;  %1953 = vmatpush.msra.mxu3 %v1925_v28 }
 0x61b   : > { %v1863_v22 = vmul.f32 %v6838_v55, %v1856_v7  ;;  %v6442_v7 = vld [vmem:[%s7152_s13 + $0x28] sm:$0xff] }
 0x61c   : > { %v1848_v23 = vsub.f32 1.5, %v1847_v21  ;;  %1954 = vmatpush.msra.mxu3 %v1924_v31  ;;  %v6435_v21 = vld [vmem:[%s7147_s9 + $0x28] sm:$0xff]  ;;  %2159 = vmatpush.msrb.mxu1 %v6442_v7 }
 0x61d   : > { %v1870_v24 = vadd.f32 %v6839_v60, %v1863_v22  ;;  %v6449_v22 = vld [vmem:[%s7157_s17 + $0x28] sm:$0xff]  ;;  %2122 = vmatpush.msra.mxu0 %v6435_v21 }
 0x61e   : > { %v1849_v25 = vmul.f32 %v6932_v15, %v1848_v23  ;;  %1955 = vmatpush.msra.mxu3 %v1923_v32  ;;  %2196 = vmatpush.msra.mxu2 %v6449_v22  ;;  %v6434_v23 = vld [vmem:[%s7147_s9 + $0x20] sm:$0xff]  ;;  %v6845_v21 = vld [vmem:[%s7167_s25 + $0x8] ss:$0 sm:$0xff] }
 0x61f   : > { %6425 = vmatmul.msk.f32.gmra.mxu2 %vm1084_vm0, %v1870_v24  ;;  %2123 = vmatpush.msra.mxu0 %v6434_v23 }
 0x620   : > { %v1853_v26 = vsel %vm1852_vm14, %v6932_v15, %v1849_v25  ;;  %v6448_v25 = vld [vmem:[%s7157_s17 + $0x20] sm:$0xff] }
 0x621   : > { %v1857_v27 = vmul.f32 %v1853_v26, %v7487_v33  ;;  %2197 = vmatpush.msra.mxu2 %v6448_v25  ;;  %v6844_v25 = vld [vmem:[%s7167_s25 + $0x6] ss:$0 sm:$0xff] }
 0x623   : > { %v1864_v29 = vmul.f32 %v6838_v55, %v1857_v27 }
 0x625   : > { %v1871_v30 = vadd.f32 %v6839_v60, %v1864_v29 }
 0x627   : > { %6426 = vmatmul.msk.f32.gmra.mxu2 %vm1084_vm0, %v1871_v30 }
 0x692   : > { %v1907_v35 = vpop.f32.mrf.mxu2 }
 0x693   : > { %v1908_v36 = vadd.f32 %v6840_v34, %v1907_v35 }
 0x695   : > { %v1919_v37 = vmax.f32 %v1908_v36, 0.0 }
 0x697   : > { %6427 = vmatmul.msk.f32.vlgmr.msra.gmra.mxu3 %vm1927_vm15, %v1919_v37 }
 0x69a   : > { %v1910_v38 = vpop.f32.mrf.mxu2 }
 0x69b   : > { %v1911_v33 = vadd.f32 %v6840_v34, %v1910_v38 }
 0x69d   : > { %v1920_v39 = vmax.f32 %v1911_v33, 0.0 }
 0x69f   : > { %6428 = vmatmul.msk.f32.gmra.mxu3 %vm1927_vm15, %v1920_v39 }
 0x6a2   : > { %v1913_v40 = vpop.f32.mrf.mxu2 }
 0x6a3   : > { %v1914_v41 = vadd.f32 %v6840_v34, %v1913_v40 }
 0x6a5   : > { %v1921_v42 = vmax.f32 %v1914_v41, 0.0 }
 0x6a7   : > { %6429 = vmatmul.msk.f32.gmra.mxu3 %vm1927_vm15, %v1921_v42 }
 0x6aa   : > { %v1916_v43 = vpop.f32.mrf.mxu2 }
 0x6ab   : > { %v1917_v44 = vadd.f32 %v6840_v34, %v1916_v43  ;;  %v6842_v43 = vld [vmem:[%s7172_s29 + $0x4] ss:$0 sm:$0xff] }
 0x6ad   : > { %v1922_v45 = vmax.f32 %v1917_v44, 0.0 }
 0x6af   : > { %6430 = vmatmul.msk.f32.gmra.mxu3 %vm1927_vm15, %v1922_v45 }
 0x71a   : > { %v1957_v47 = vpop.f32.mrf.mxu3 }
 0x71b   : > { %v1969_v48 = vadd.f32 %v1957_v47, %v7501_v3  ;;  %v6468_v47 = vld [vmem:[%s7147_s9 + $0x30] sm:$0xff] }
 0x71d   : > { %v1978_v49 = vadd.f32 %v6841_v46, %v1969_v48  ;;  %v6843_v48 = vld [vmem:[%s7172_s29 + $0x5] ss:$0 sm:$0xff] }
 0x71f   : > { %v1986_v50 = vsel %vm1084_vm0, %v1978_v49, 0.0 }
 0x720   : > { %1987 = vadd.xlane.f32.xlu0 %v1986_v50 }
 0x722   : > { %v1960_v51 = vpop.f32.mrf.mxu3 }
 0x723   : > { %v1970_v52 = vadd.f32 %v1960_v51, %v1869_v6 }
 0x725   : > { %v1979_v53 = vadd.f32 %v6841_v46, %v1970_v52 }
 0x727   : > { %v1989_v54 = vsel %vm1084_vm0, %v1979_v53, 0.0 }
 0x728   : > { %1990 = vadd.xlane.f32.xlu1 %v1989_v54 }
 0x72a   : > { %v1963_v55 = vpop.f32.mrf.mxu3 }
 0x72b   : > { %v1971_v56 = vadd.f32 %v1963_v55, %v1870_v24  ;;  %v6441_v24 = vld [vmem:[%s7152_s13 + $0x20] sm:$0xff] }
 0x72c   : > { %2160 = vmatpush.msrb.mxu1 %v6441_v24 }
 0x72d   : > { %v1980_v57 = vadd.f32 %v6841_v46, %v1971_v56 }
 0x72f   : > { %v1992_v58 = vsel %vm1084_vm0, %v1980_v57, 0.0 }
 0x730   : > { %1993 = vadd.xlane.f32.xlu2 %v1992_v58 }
 0x732   : > { %v1966_v59 = vpop.f32.mrf.mxu3 }
 0x733   : > { %v1972_v60 = vadd.f32 %v1966_v59, %v1871_v30 }
 0x735   : > { %v1981_v61 = vadd.f32 %v6841_v46, %v1972_v60  ;;  %v6469_v46 = vld [vmem:[%s7147_s9 + $0x38] sm:$0xff] }
 0x736   : > { %2411 = vmatpush.msrb.mxu2 %v6469_v46 }
 0x737   : > { %v1995_v62 = vsel %vm1084_vm0, %v1981_v61, 0.0 }
 0x738   : > { %1996 = vadd.xlane.f32.xlu0 %v1995_v62  ;;  %2412 = vmatpush.msrb.mxu2 %v6468_v47 }
 0x793   : > { %v1988_v63 = vpop.xlane.xlu0 %1987 }
 0x794   : > { %v1998_v0 = vmul.f32 %v1988_v63, %v7470_v16 }
 0x796   : > { %v7526_v1 = vsub.f32 %v1978_v49, %v1998_v0 }
 0x798   : > { %v2006_v4 = vmul.f32 %v7526_v1, %v7526_v1 }
 0x79a   : > { %v2010_v2 = vsel %vm1084_vm0, %v2006_v4, 0.0 }
 0x79b   : > { %v1991_v3 = vpop.xlane.xlu1 %1990  ;;  %2011 = vadd.xlane.f32.xlu1 %v2010_v2 }
 0x79c   : > { %v1999_v8 = vmul.f32 %v1991_v3, %v7470_v16 }
 0x79e   : > { %v7532_v9 = vsub.f32 %v1979_v53, %v1999_v8 }
 0x7a0   : > { %v2007_v10 = vmul.f32 %v7532_v9, %v7532_v9 }
 0x7a2   : > { %v2013_v5 = vsel %vm1084_vm0, %v2007_v10, 0.0 }
 0x7a3   : > { %2014 = vadd.xlane.f32.xlu2 %v2013_v5  ;;  %v1994_v11 = vpop.xlane.xlu2 %1993 }
 0x7a4   : > { %v2000_v12 = vmul.f32 %v1994_v11, %v7470_v16 }
 0x7a6   : > { %v7538_v13 = vsub.f32 %v1980_v57, %v2000_v12 }
 0x7a8   : > { %v2008_v14 = vmul.f32 %v7538_v13, %v7538_v13 }
 0x7aa   : > { %v2016_v15 = vsel %vm1084_vm0, %v2008_v14, 0.0 }
 0x7ab   : > { %2017 = vadd.xlane.f32.xlu0 %v2016_v15  ;;  %v1997_v6 = vpop.xlane.xlu0 %1996 }
 0x7ac   : > { %v2001_v17 = vmul.f32 %v1997_v6, %v7470_v16 }
 0x7ae   : > { %v7544_v18 = vsub.f32 %v1981_v61, %v2001_v17 }
 0x7b0   : > { %v2009_v19 = vmul.f32 %v7544_v18, %v7544_v18 }
 0x7b2   : > { %v2019_v20 = vsel %vm1084_vm0, %v2009_v19, 0.0 }
 0x7b3   : > { %2020 = vadd.xlane.f32.xlu1 %v2019_v20 }
 0x80e   : > { %v2012_v26 = vpop.xlane.xlu1 %2011 }
 0x80f   : > { %v2022_v27 = vmul.f32 %v2012_v26, %v7470_v16 }
 0x811   : > { %v2026_v29 = vadd.f32 1e-05, %v2022_v27  ;;  %v6846_v27 = vld [vmem:[%s7167_s25 + $0xa] ss:$0 sm:$0xff] }
 0x813   : > { %6933 = vrsqrt.f32 %v2026_v29  ;;  %vm2036_vm3 = vweird.f32 %v2026_v29 }
 0x816   : > { %v2015_v30 = vpop.xlane.xlu2 %2014 }
 0x817   : > { %v2023_v28 = vmul.f32 %v2015_v30, %v7470_v16 }
 0x819   : > { %v6934_v31 = vpop.eup %6933  ;;  %v2027_v32 = vadd.f32 1e-05, %v2023_v28 }
 0x81a   : > { %v2031_v34 = vmul.f32 %v6934_v31, %v2026_v29  ;;  %vm2037_vm2 = vweird.f32 %v6934_v31 }
 0x81b   : > { %6935 = vrsqrt.f32 %v2027_v32  ;;  %vm2038_vm4 = vmor %vm2036_vm3, %vm2037_vm2  ;;  %vm2046_vm6 = vweird.f32 %v2027_v32 }
 0x81c   : > { %v2032_v35 = vmul.f32 %v6934_v31, %v2031_v34 }
 0x81e   : > { %v2033_v36 = vmul.f32 0.5, %v2032_v35  ;;  %v2018_v37 = vpop.xlane.xlu0 %2017 }
 0x81f   : > { %v2024_v38 = vmul.f32 %v2018_v37, %v7470_v16 }
 0x820   : > { %v2034_v33 = vsub.f32 1.5, %v2033_v36 }
 0x821   : > { %v6936_v39 = vpop.eup %6935  ;;  %v2028_v40 = vadd.f32 1e-05, %v2024_v38 }
 0x822   : > { %v2035_v41 = vmul.f32 %v6934_v31, %v2034_v33  ;;  %v2041_v42 = vmul.f32 %v6936_v39, %v2027_v32  ;;  %vm2047_vm5 = vweird.f32 %v6936_v39 }
 0x823   : > { %6937 = vrsqrt.f32 %v2028_v40  ;;  %vm2048_vm7 = vmor %vm2046_vm6, %vm2047_vm5  ;;  %vm2056_vm9 = vweird.f32 %v2028_v40 }
 0x824   : > { %v2039_v44 = vsel %vm2038_vm4, %v6934_v31, %v2035_v41  ;;  %v2042_v45 = vmul.f32 %v6936_v39, %v2041_v42 }
 0x825   : > { %v2070_v49 = vmul.f32 %v2039_v44, %v7526_v1  ;;  %v6475_v44 = vld [vmem:[%s7152_s13 + $0x30] sm:$0xff] }
 0x826   : > { %v2043_v50 = vmul.f32 0.5, %v2042_v45  ;;  %v2021_v51 = vpop.xlane.xlu1 %2020 }
 0x827   : > { %v2077_v52 = vmul.f32 %v6842_v43, %v2070_v49  ;;  %v2025_v53 = vmul.f32 %v2021_v51, %v7470_v16 }
 0x828   : > { %v2044_v54 = vsub.f32 1.5, %v2043_v50 }
 0x829   : > { %v6938_v55 = vpop.eup %6937  ;;  %v7564_v56 = vadd.f32 %v6843_v48, %v2077_v52  ;;  %v2029_v57 = vadd.f32 1e-05, %v2025_v53 }
 0x82a   : > { %v2045_v58 = vmul.f32 %v6936_v39, %v2044_v54  ;;  %v2051_v59 = vmul.f32 %v6938_v55, %v2028_v40  ;;  %vm2057_vm8 = vweird.f32 %v6938_v55  ;;  %v6476_v40 = vld [vmem:[%s7152_s13 + $0x38] sm:$0xff] }
 0x82b   : > { %6939 = vrsqrt.f32 %v2029_v57  ;;  %6437 = vmatmul.msk.f32.vlgmr.msra.gmra.mxu0 %vm1084_vm0, %v7564_v56  ;;  %6444 = vmatmul.msk.f32.vlgmr.msrb.gmra.mxu1 %vm1084_vm0, %v7564_v56  ;;  %vm2058_vm10 = vmor %vm2056_vm9, %vm2057_vm8  ;;  %vm2066_vm12 = vweird.f32 %v2029_v57 }
 0x82c   : > { %v2049_v60 = vsel %vm2048_vm7, %v6936_v39, %v2045_v58  ;;  %v2052_v61 = vmul.f32 %v6938_v55, %v2051_v59  ;;  %6451 = vmatmul.msk.f32.vlgmr.msra.gmra.mxu2 %vm1084_vm0, %v7564_v56 }
 0x82d   : > { %v2071_v62 = vmul.f32 %v2049_v60, %v7532_v9  ;;  %v6848_v60 = vld [vmem:[%s7167_s25 + $0x9] ss:$0 sm:$0xff] }
 0x82e   : > { %v2053_v63 = vmul.f32 0.5, %v2052_v61 }
 0x82f   : > { %v2078_v0 = vmul.f32 %v6842_v43, %v2071_v62 }
 0x830   : > { %v2054_v1 = vsub.f32 1.5, %v2053_v63 }
 0x831   : > { %v6940_v4 = vpop.eup %6939  ;;  %v7573_v2 = vadd.f32 %v6843_v48, %v2078_v0 }
 0x832   : > { %v2055_v3 = vmul.f32 %v6938_v55, %v2054_v1  ;;  %v2061_v8 = vmul.f32 %v6940_v4, %v2029_v57  ;;  %vm2067_vm11 = vweird.f32 %v6940_v4 }
 0x833   : > { %6438 = vmatmul.msk.f32.gmra.mxu0 %vm1084_vm0, %v7573_v2  ;;  %6445 = vmatmul.msk.f32.gmra.mxu1 %vm1084_vm0, %v7573_v2  ;;  %vm2068_vm13 = vmor %vm2066_vm12, %vm2067_vm11 }
 0x834   : > { %v2059_v10 = vsel %vm2058_vm10, %v6938_v55, %v2055_v3  ;;  %v2062_v5 = vmul.f32 %v6940_v4, %v2061_v8  ;;  %6452 = vmatmul.msk.f32.gmra.mxu2 %vm1084_vm0, %v7573_v2 }
 0x835   : > { %v2072_v9 = vmul.f32 %v2059_v10, %v7538_v13 }
 0x836   : > { %v2063_v11 = vmul.f32 0.5, %v2062_v5 }
 0x837   : > { %v2079_v12 = vmul.f32 %v6842_v43, %v2072_v9 }
 0x838   : > { %v2064_v14 = vsub.f32 1.5, %v2063_v11 }
 0x839   : > { %v7582_v15 = vadd.f32 %v6843_v48, %v2079_v12 }
 0x83a   : > { %v2065_v6 = vmul.f32 %v6940_v4, %v2064_v14 }
 0x83b   : > { %6439 = vmatmul.msk.f32.gmra.mxu0 %vm1084_vm0, %v7582_v15  ;;  %6446 = vmatmul.msk.f32.gmra.mxu1 %vm1084_vm0, %v7582_v15 }
 0x83c   : > { %v2069_v17 = vsel %vm2068_vm13, %v6940_v4, %v2065_v6  ;;  %6453 = vmatmul.msk.f32.gmra.mxu2 %vm1084_vm0, %v7582_v15 }
 0x83d   : > { %v2073_v13 = vmul.f32 %v2069_v17, %v7544_v18 }
 0x83f   : > { %v2080_v19 = vmul.f32 %v6842_v43, %v2073_v13 }
 0x841   : > { %v7591_v20 = vadd.f32 %v6843_v48, %v2080_v19 }
 0x843   : > { %6440 = vmatmul.msk.f32.gmra.mxu0 %vm1084_vm0, %v7591_v20  ;;  %6447 = vmatmul.msk.f32.gmra.mxu1 %vm1084_vm0, %v7591_v20 }
 0x844   : > { %6454 = vmatmul.msk.f32.gmra.mxu2 %vm1084_vm0, %v7591_v20 }
 0x84c   : > { %6471 = vmatmul.msk.f32.vlgmr.msrb.gmra.mxu2 %vm1084_vm0, %v7564_v56 }
 0x854   : > { %6472 = vmatmul.msk.f32.gmra.mxu2 %vm1084_vm0, %v7573_v2 }
 0x85c   : > { %6473 = vmatmul.msk.f32.gmra.mxu2 %vm1084_vm0, %v7582_v15 }
 0x864   : > { %6474 = vmatmul.msk.f32.gmra.mxu2 %vm1084_vm0, %v7591_v20 }
 0x8a8   : > { %v2162_v18 = vpop.f32.mrf.mxu1  ;;  %v2125_v7 = vpop.f32.mrf.mxu0 }
 0x8a9   : > { %v2163_v26 = vadd.f32 %v6845_v21, %v2162_v18  ;;  %v2126_v30 = vadd.f32 %v6844_v25, %v2125_v7 }
 0x8af   : > { %v2199_v22 = vpop.f32.mrf.mxu2 }
 0x8b0   : > { %v2165_v23 = vpop.f32.mrf.mxu1  ;;  %v2128_v32 = vpop.f32.mrf.mxu0  ;;  %v2200_v34 = vadd.f32 %v6846_v27, %v2199_v22 }
 0x8b1   : > { %v2166_v24 = vadd.f32 %v6845_v21, %v2165_v23  ;;  %v2129_v36 = vadd.f32 %v6844_v25, %v2128_v32 }
 0x8b3   : > { %6455 = vmatpush.xpose.msk.msrb.mxu3 %vm1198_vm1, %v2166_v24 }
 0x8b7   : > { %v2202_v29 = vpop.f32.mrf.mxu2  ;;  %6456 = vmatpush.xpose.msk.msrb.mxu3 %vm1198_vm1, %v2163_v26 }
 0x8b8   : > { %v2203_v28 = vadd.f32 %v6846_v27, %v2202_v29  ;;  %v2168_v31 = vpop.f32.mrf.mxu1  ;;  %v2131_v33 = vpop.f32.mrf.mxu0 }
 0x8b9   : > { %v2169_v39 = vadd.f32 %v6845_v21, %v2168_v31  ;;  %v2132_v42 = vadd.f32 %v6844_v25, %v2131_v33 }
 0x8ba   : > { %2349 = vmatpush.msrb.mxu0 %v2203_v28  ;;  %6457 = vmatmul.msk.f32.vlgmr.msrb.gmra.mxu3 %vm1198_vm1, %v2126_v30 }
 0x8bc   : > { %2350 = vmatpush.msrb.mxu0 %v2200_v34 }
 0x8bf   : > { %v2205_v35 = vpop.f32.mrf.mxu2 }
 0x8c0   : > { %v2171_v37 = vpop.f32.mrf.mxu1  ;;  %v2206_v45 = vadd.f32 %v6846_v27, %v2205_v35  ;;  %v2134_v46 = vpop.f32.mrf.mxu0 }
 0x8c1   : > { %v2172_v38 = vadd.f32 %v6845_v21, %v2171_v37  ;;  %v2135_v47 = vadd.f32 %v6844_v25, %v2134_v46 }
 0x8c2   : > { %6458 = vmatmul.msk.f32.gmra.mxu3 %vm1198_vm1, %v2129_v36 }
 0x8c3   : > { %6459 = vmatpush.xpose.msk.msra.mxu3 %vm1198_vm1, %v2172_v38  ;;  %v6847_v38 = vld [vmem:[%s7167_s25 + $0x7] ss:$0 sm:$0xff] }
 0x8c7   : > { %v2208_v41 = vpop.f32.mrf.mxu2  ;;  %6460 = vmatpush.xpose.msk.msra.mxu3 %vm1198_vm1, %v2169_v39 }
 0x8c8   : > { %v2209_v43 = vadd.f32 %v6846_v27, %v2208_v41 }
 0x8ca   : > { %2378 = vmatpush.msra.mxu1 %v2209_v43  ;;  %6461 = vmatmul.msk.f32.vlgmr.msra.gmra.mxu3 %vm1198_vm1, %v2132_v42 }
 0x8cb   : > { %2448 = vmatpush.msrb.mxu3 %v6476_v40 }
 0x8cc   : > { %2379 = vmatpush.msra.mxu1 %v2206_v45 }
 0x8cd   : > { %2449 = vmatpush.msrb.mxu3 %v6475_v44 }
 0x8cf   : > { %v2414_v34 = vpop.f32.mrf.mxu2 }
 0x8d0   : > { %v2415_v40 = vadd.f32 %v6847_v38, %v2414_v34 }
 0x8d2   : > { %6462 = vmatmul.msk.f32.gmra.mxu3 %vm1198_vm1, %v2135_v47 }
 0x8d7   : > { %v2417_v42 = vpop.f32.mrf.mxu2 }
 0x8d8   : > { %v2418_v43 = vadd.f32 %v6847_v38, %v2417_v42 }
 0x8da   : > { %6478 = vmatmul.msk.f32.vlgmr.msrb.gmra.mxu3 %vm1084_vm0, %v7564_v56 }
 0x8df   : > { %v2420_v44 = vpop.f32.mrf.mxu2 }
 0x8e0   : > { %v2421_v45 = vadd.f32 %v6847_v38, %v2420_v44 }
 0x8e2   : > { %6479 = vmatmul.msk.f32.gmra.mxu3 %vm1084_vm0, %v7573_v2 }
 0x8e7   : > { %v2423_v46 = vpop.f32.mrf.mxu2 }
 0x8e8   : > { %v2424_v47 = vadd.f32 %v6847_v38, %v2423_v46 }
 0x8ea   : > { %6480 = vmatmul.msk.f32.gmra.mxu3 %vm1084_vm0, %v7582_v15 }
 0x8f2   : > { %6481 = vmatmul.msk.f32.gmra.mxu3 %vm1084_vm0, %v7591_v20 }
 0x93d   : > { %v2240_v48 = vpop.f32.mrf.mxu3 }
 0x93e   : > { %v2281_v57 = vmul.f32 0.35355338, %v2240_v48  ;;  %v6483_v48 = vld [vmem:[%s7157_s17 + $0x38] sm:$0xff] }
 0x93f   : > { %2485 = vmatpush.msra.mxu0 %v6483_v48 }
 0x940   : > { %v2285_v59 = vsel %vm1084_vm0, %v2281_v57, -inf }
 0x945   : > { %v2243_v49 = vpop.f32.mrf.mxu3 }
 0x946   : > { %v2282_v11 = vmul.f32 0.35355338, %v2243_v49  ;;  %v6467_v49 = vld [vmem:[%s7162_s21 + $0x10] sm:$0xff] }
 0x948   : > { %v2288_v13 = vsel %vm1084_vm0, %v2282_v11, -inf }
 0x94d   : > { %v2275_v50 = vpop.f32.mrf.mxu3 }
 0x94e   : > { %v2283_v51 = vmul.f32 0.35355338, %v2275_v50  ;;  %v6482_v50 = vld [vmem:[%s7157_s17 + $0x30] sm:$0xff] }
 0x94f   : > { %2486 = vmatpush.msra.mxu0 %v6482_v50 }
 0x950   : > { %v2291_v52 = vsel %vm1084_vm0, %v2283_v51, -inf }
 0x951   : > { %2292 = vmax.xlane.f32.xlu2 %v2291_v52 }
 0x955   : > { %v2278_v53 = vpop.f32.mrf.mxu3 }
 0x956   : > { %v2284_v54 = vmul.f32 0.35355338, %v2278_v53 }
 0x958   : > { %v2294_v55 = vsel %vm1084_vm0, %v2284_v54, -inf }
 0x959   : > { %2295 = vmax.xlane.f32.xlu0 %v2294_v55 }
 0x95d   : > { %v2451_v58 = vpop.f32.mrf.mxu3 }
 0x95e   : > { %v2452_v63 = vadd.f32 %v6848_v60, %v2451_v58 }
 0x961   : > { %2286 = vmax.xlane.f32.xlu0 %v2285_v59 }
 0x965   : > { %v2454_v61 = vpop.f32.mrf.mxu3 }
 0x966   : > { %v2455_v62 = vadd.f32 %v6848_v60, %v2454_v61 }
 0x968   : > { %6489 = vmatpush.xpose.msk.msrb.mxu1 %vm1198_vm1, %v2455_v62 }
 0x96c   : > { %6490 = vmatpush.xpose.msk.msrb.mxu1 %vm1198_vm1, %v2452_v63 }
 0x96d   : > { %v2457_v21 = vpop.f32.mrf.mxu3 }
 0x96e   : > { %v2458_v31 = vadd.f32 %v6848_v60, %v2457_v21 }
 0x975   : > { %v2460_v23 = vpop.f32.mrf.mxu3 }
 0x976   : > { %v2461_v29 = vadd.f32 %v6848_v60, %v2460_v23 }
 0x9c4   : > { %v2293_v0 = vpop.xlane.xlu2 %2292 }
 0x9c5   : > { %v2299_v1 = vsub.f32 %v2283_v51, %v2293_v0 }
 0x9c7   : > { %v2305_v4 = vmul.f32 1.442695, %v2299_v1 }
 0x9c9   : > { %6941 = vpow2.f32 %v2305_v4 }
 0x9cc   : > { %v2296_v3 = vpop.xlane.xlu0 %2295 }
 0x9cd   : > { %v2300_v8 = vsub.f32 %v2284_v54, %v2296_v3 }
 0x9cf   : > { %v6942_v10 = vpop.eup %6941  ;;  %v2307_v5 = vmul.f32 1.442695, %v2300_v8 }
 0x9d0   : > { %v2315_v9 = vsel %vm1084_vm0, %v6942_v10, 0.0 }
 0x9d1   : > { %6943 = vpow2.f32 %v2307_v5  ;;  %2316 = vadd.xlane.f32.xlu1 %v2315_v9 }
 0x9d4   : > { %v2287_v12 = vpop.xlane.xlu0 %2286 }
 0x9d5   : > { %v2297_v14 = vsub.f32 %v2281_v57, %v2287_v12 }
 0x9d7   : > { %v6944_v6 = vpop.eup %6943  ;;  %v2301_v17 = vmul.f32 1.442695, %v2297_v14 }
 0x9d8   : > { %v2318_v19 = vsel %vm1084_vm0, %v6944_v6, 0.0 }
 0x9d9   : > { %6945 = vpow2.f32 %v2301_v17  ;;  %2289 = vmax.xlane.f32.xlu1 %v2288_v13  ;;  %2319 = vadd.xlane.f32.xlu2 %v2318_v19 }
 0x9df   : > { %v6946_v18 = vpop.eup %6945 }
 0x9e0   : > { %v2309_v7 = vsel %vm1084_vm0, %v6946_v18, 0.0 }
 0x9e1   : > { %2310 = vadd.xlane.f32.xlu2 %v2309_v7  ;;  %v6849_v7 = vld [vmem:[%s7167_s25 + $0xb] ss:$0 sm:$0xff] }
 0xa44   : > { %v2317_v22 = vpop.xlane.xlu1 %2316 }
 0xa45   : > { %6947 = vrcp.f32 %v2317_v22 }
 0xa4b   : > { %v6948_v24 = vpop.eup %6947 }
 0xa4c   : > { %v2327_v25 = vmul.f32 %v6948_v24, %v6942_v10  ;;  %v2290_v26 = vpop.xlane.xlu1 %2289  ;;  %v2320_v27 = vpop.xlane.xlu2 %2319 }
 0xa4d   : > { %v2298_v30 = vsub.f32 %v2282_v11, %v2290_v26  ;;  %6949 = vrcp.f32 %v2320_v27 }
 0xa4e   : > { %6465 = vmatmul.msk.f32.vlgmr.msra.gmra.mxu1 %vm1084_vm0, %v2327_v25 }
 0xa4f   : > { %v2303_v28 = vmul.f32 1.442695, %v2298_v30  ;;  %6493 = vmatpush.xpose.msk.msra.mxu1 %vm1198_vm1, %v2461_v29 }
 0xa51   : > { %6951 = vpow2.f32 %v2303_v28 }
 0xa53   : > { %v6950_v32 = vpop.eup %6949  ;;  %6494 = vmatpush.xpose.msk.msra.mxu1 %vm1198_vm1, %v2458_v31 }
 0xa54   : > { %v2311_v35 = vpop.xlane.xlu2 %2310  ;;  %v2328_v36 = vmul.f32 %v6950_v32, %v6944_v6 }
 0xa55   : > { %6953 = vrcp.f32 %v2311_v35 }
 0xa56   : > { %6466 = vmatmul.msk.f32.gmra.mxu1 %vm1084_vm0, %v2328_v36 }
 0xa57   : > { %v6952_v37 = vpop.eup %6951 }
 0xa58   : > { %v2312_v33 = vsel %vm1084_vm0, %v6952_v37, 0.0 }
 0xa59   : > { %2313 = vadd.xlane.f32.xlu0 %v2312_v33 }
 0xa5b   : > { %v6954_v39 = vpop.eup %6953 }
 0xa5c   : > { %v2325_v41 = vmul.f32 %v6954_v39, %v6946_v18 }
 0xa5e   : > { %6463 = vmatmul.msk.f32.vlgmr.msrb.gmra.mxu0 %vm1084_vm0, %v2325_v41  ;;  %6491 = vmatmul.msk.f32.vlgmr.msrb.gmra.mxu1 %vm1198_vm1, %v2415_v40  ;;  %v6501_v41 = vld [vmem:[%s7162_s21 + $0x18] sm:$0xff] }
 0xa5f   : > { %2746 = vmatpush.msrb.mxu1 %v6467_v49  ;;  %2705 = vmatpush.msrb.mxu0 %v6501_v41 }
 0xa66   : > { %6492 = vmatmul.msk.f32.gmra.mxu1 %vm1198_vm1, %v2418_v43 }
 0xa6e   : > { %6495 = vmatmul.msk.f32.vlgmr.msra.gmra.mxu1 %vm1198_vm1, %v2421_v45 }
 0xa76   : > { %6496 = vmatmul.msk.f32.gmra.mxu1 %vm1198_vm1, %v2424_v47 }
 0xacb   : > { %v2381_v51 = vpop.f32.mrf.mxu1 }
 0xacc   : > { %v2314_v52 = vpop.xlane.xlu0 %2313 }
 0xacd   : > { %6955 = vrcp.f32 %v2314_v52 }
 0xad3   : > { %v6956_v53 = vpop.eup %6955  ;;  %v2384_v54 = vpop.f32.mrf.mxu1 }
 0xad4   : > { %v2326_v55 = vmul.f32 %v6956_v53, %v6952_v37 }
 0xad6   : > { %6464 = vmatmul.msk.f32.gmra.mxu0 %vm1084_vm0, %v2326_v55 }
 0xadb   : > { %v2352_v57 = vpop.f32.mrf.mxu0  ;;  %v2529_v58 = vpop.f32.mrf.mxu1 }
 0xadc   : > { %v2570_v59 = vmul.f32 0.35355338, %v2529_v58  ;;  %6506 = vmatmul.msk.f32.vlgmr.msrb.gmra.mxu1 %vm1198_vm1, %v2352_v57 }
 0xade   : > { %6485 = vmatmul.msk.f32.vlgmr.msra.gmra.mxu0 %vm1084_vm0, %v7564_v56  ;;  %v2574_v60 = vsel %vm1084_vm0, %v2570_v59, -inf }
 0xadf   : > { %2575 = vmax.xlane.f32.xlu1 %v2574_v60 }
 0xae3   : > { %v2532_v61 = vpop.f32.mrf.mxu1 }
 0xae4   : > { %v2571_v62 = vmul.f32 0.35355338, %v2532_v61  ;;  %v6850_v61 = vld [vmem:[%s7172_s29 + $0x6] ss:$0 sm:$0xff] }
 0xae6   : > { %6486 = vmatmul.msk.f32.gmra.mxu0 %vm1084_vm0, %v7573_v2  ;;  %v2577_v63 = vsel %vm1084_vm0, %v2571_v62, -inf }
 0xae7   : > { %2578 = vmax.xlane.f32.xlu2 %v2577_v63 }
 0xaeb   : > { %v2564_v0 = vpop.f32.mrf.mxu1 }
 0xaec   : > { %v2572_v1 = vmul.f32 0.35355338, %v2564_v0 }
 0xaee   : > { %6487 = vmatmul.msk.f32.gmra.mxu0 %vm1084_vm0, %v7582_v15  ;;  %v2580_v4 = vsel %vm1084_vm0, %v2572_v1, -inf }
 0xaef   : > { %2581 = vmax.xlane.f32.xlu0 %v2580_v4 }
 0xaf3   : > { %v2567_v3 = vpop.f32.mrf.mxu1 }
 0xaf4   : > { %v2573_v8 = vmul.f32 0.35355338, %v2567_v3 }
 0xaf6   : > { %6488 = vmatmul.msk.f32.gmra.mxu0 %vm1084_vm0, %v7591_v20  ;;  %v2583_v10 = vsel %vm1084_vm0, %v2573_v8, -inf }
 0xaf7   : > { %2584 = vmax.xlane.f32.xlu1 %v2583_v10 }
 0xb52   : > { %v2576_v5 = vpop.xlane.xlu1 %2575 }
 0xb53   : > { %v2586_v9 = vsub.f32 %v2570_v59, %v2576_v5  ;;  %v2355_v11 = vpop.f32.mrf.mxu0 }
 0xb54   : > { %6507 = vmatmul.msk.f32.gmra.mxu1 %vm1198_vm1, %v2355_v11 }
 0xb55   : > { %v2590_v12 = vmul.f32 1.442695, %v2586_v9 }
 0xb57   : > { %6957 = vpow2.f32 %v2590_v12 }
 0xb59   : > { %v2748_v58 = vpop.f32.mrf.mxu1 }
 0xb5a   : > { %v2579_v14 = vpop.xlane.xlu2 %2578 }
 0xb5b   : > { %v2587_v6 = vsub.f32 %v2571_v62, %v2579_v14  ;;  %v2488_v17 = vpop.f32.mrf.mxu0 }
 0xb5c   : > { %6508 = vmatmul.msk.f32.gmra.mxu1 %vm1198_vm1, %v2381_v51  ;;  %v2489_v27 = vadd.f32 %v6849_v7, %v2488_v17 }
 0xb5d   : > { %v6958_v13 = vpop.eup %6957  ;;  %v2592_v19 = vmul.f32 1.442695, %v2587_v6 }
 0xb5e   : > { %v2598_v18 = vsel %vm1084_vm0, %v6958_v13, 0.0 }
 0xb5f   : > { %6959 = vpow2.f32 %v2592_v19  ;;  %2599 = vadd.xlane.f32.xlu2 %v2598_v18 }
 0xb62   : > { %v2582_v21 = vpop.xlane.xlu0 %2581 }
 0xb63   : > { %v2588_v22 = vsub.f32 %v2572_v1, %v2582_v21  ;;  %v2491_v23 = vpop.f32.mrf.mxu0 }
 0xb64   : > { %v2492_v24 = vadd.f32 %v6849_v7, %v2491_v23  ;;  %6509 = vmatmul.msk.f32.gmra.mxu1 %vm1198_vm1, %v2384_v54 }
 0xb65   : > { %v6960_v25 = vpop.eup %6959  ;;  %v2594_v26 = vmul.f32 1.442695, %v2588_v22 }
 0xb66   : > { %2638 = vmatpush.msra.mxu2 %v2492_v24  ;;  %v2601_v29 = vsel %vm1084_vm0, %v6960_v25, 0.0 }
 0xb67   : > { %6961 = vpow2.f32 %v2594_v26  ;;  %2602 = vadd.xlane.f32.xlu0 %v2601_v29 }
 0xb68   : > { %2639 = vmatpush.msra.mxu2 %v2489_v27 }
 0xb6a   : > { %v2585_v30 = vpop.xlane.xlu1 %2584 }
 0xb6b   : > { %v2589_v28 = vsub.f32 %v2573_v8, %v2585_v30  ;;  %v2494_v31 = vpop.f32.mrf.mxu0 }
 0xb6c   : > { %v2495_v33 = vadd.f32 %v6849_v7, %v2494_v31 }
 0xb6d   : > { %v6962_v32 = vpop.eup %6961  ;;  %v2596_v34 = vmul.f32 1.442695, %v2589_v28 }
 0xb6e   : > { %v2604_v35 = vsel %vm1084_vm0, %v6962_v32, 0.0 }
 0xb6f   : > { %6963 = vpow2.f32 %v2596_v34  ;;  %2605 = vadd.xlane.f32.xlu1 %v2604_v35 }
 0xb73   : > { %v2497_v36 = vpop.f32.mrf.mxu0 }
 0xb74   : > { %v2498_v37 = vadd.f32 %v6849_v7, %v2497_v36 }
 0xb75   : > { %v6964_v38 = vpop.eup %6963 }
 0xb76   : > { %2667 = vmatpush.msra.mxu3 %v2498_v37  ;;  %v2607_v39 = vsel %vm1084_vm0, %v6964_v38, 0.0 }
 0xb77   : > { %2608 = vadd.xlane.f32.xlu2 %v2607_v39  ;;  %v6514_v39 = vld [vmem:[%s8427_s3 + $0x18] sm:$0xff] }
 0xb78   : > { %2668 = vmatpush.msra.mxu3 %v2495_v33  ;;  %2913 = vmatpush.msrb.mxu2 %v6514_v39 }
 0xbd1   : > { %v2751_v63 = vpop.f32.mrf.mxu1 }
 0xbd2   : > { %v2600_v40 = vpop.xlane.xlu2 %2599 }
 0xbd3   : > { %6965 = vrcp.f32 %v2600_v40  ;;  %v6513_v40 = vld [vmem:[%s8427_s3 + $0x10] sm:$0xff] }
 0xbd4   : > { %2914 = vmatpush.msrb.mxu2 %v6513_v40 }
 0xbd9   : > { %v6966_v42 = vpop.eup %6965  ;;  %v2754_v5 = vpop.f32.mrf.mxu1 }
 0xbda   : > { %v2614_v43 = vmul.f32 %v6966_v42, %v6958_v13  ;;  %v2603_v44 = vpop.xlane.xlu0 %2602 }
 0xbdb   : > { %6967 = vrcp.f32 %v2603_v44 }
 0xbdc   : > { %6497 = vmatmul.msk.f32.vlgmr.msra.gmra.mxu2 %vm1084_vm0, %v2614_v43 }
 0xbe1   : > { %v6968_v45 = vpop.eup %6967  ;;  %v2757_v17 = vpop.f32.mrf.mxu1 }
 0xbe2   : > { %v2606_v46 = vpop.xlane.xlu1 %2605  ;;  %v2615_v47 = vmul.f32 %v6968_v45, %v6960_v25 }
 0xbe3   : > { %6969 = vrcp.f32 %v2606_v46 }
 0xbe4   : > { %6498 = vmatmul.msk.f32.gmra.mxu2 %vm1084_vm0, %v2615_v47 }
 0xbe9   : > { %v6970_v48 = vpop.eup %6969 }
 0xbea   : > { %v2616_v49 = vmul.f32 %v6970_v48, %v6962_v32  ;;  %v2609_v50 = vpop.xlane.xlu2 %2608 }
 0xbeb   : > { %6971 = vrcp.f32 %v2609_v50 }
 0xbec   : > { %6499 = vmatmul.msk.f32.vlgmr.msra.gmra.mxu3 %vm1084_vm0, %v2616_v49 }
 0xbf1   : > { %v6972_v51 = vpop.eup %6971 }
 0xbf2   : > { %v2617_v52 = vmul.f32 %v6972_v51, %v6964_v38 }
 0xbf4   : > { %6500 = vmatmul.msk.f32.gmra.mxu3 %vm1084_vm0, %v2617_v52 }
 0xc5f   : > { %v2641_v53 = vpop.f32.mrf.mxu2 }
 0xc60   : > { %6502 = vmatmul.msk.f32.vlgmr.msrb.gmra.mxu0 %vm1198_vm1, %v2641_v53 }
 0xc67   : > { %v2644_v54 = vpop.f32.mrf.mxu2 }
 0xc68   : > { %6503 = vmatmul.msk.f32.gmra.mxu0 %vm1198_vm1, %v2644_v54 }
 0xc6f   : > { %v2670_v55 = vpop.f32.mrf.mxu3 }
 0xc70   : > { %6504 = vmatmul.msk.f32.gmra.mxu0 %vm1198_vm1, %v2670_v55 }
 0xc77   : > { %v2673_v57 = vpop.f32.mrf.mxu3 }
 0xc78   : > { %6505 = vmatmul.msk.f32.gmra.mxu0 %vm1198_vm1, %v2673_v57 }
 0xcdd   : > { %v2707_v59 = vpop.f32.mrf.mxu0 }
 0xcde   : > { %v2749_v60 = vadd.f32 %v2748_v58, %v2707_v59  ;;  %v6851_v59 = vld [vmem:[%s7172_s29 + $0x7] ss:$0 sm:$0xff] }
 0xce0   : > { %v2760_v62 = vadd.f32 %v2749_v60, %v7564_v56  ;;  %v6523_v60 = vld [vmem:[%s7187_s14 + $0x38] sm:$0xff] }
 0xce1   : > { %2961 = vmatpush.msrb.mxu3 %v6523_v60 }
 0xce2   : > { %v2769_v0 = vadd.f32 %v6850_v61, %v2760_v62 }
 0xce4   : > { %v2777_v1 = vsel %vm1084_vm0, %v2769_v0, 0.0 }
 0xce5   : > { %2778 = vadd.xlane.f32.xlu0 %v2777_v1  ;;  %v2710_v4 = vpop.f32.mrf.mxu0 }
 0xce6   : > { %v2752_v3 = vadd.f32 %v2751_v63, %v2710_v4  ;;  %v6852_v63 = vld [vmem:[%s7172_s29 + $0x8] ss:$0 sm:$0xff] }
 0xce8   : > { %v2761_v8 = vadd.f32 %v2752_v3, %v7573_v2 }
 0xcea   : > { %v2770_v10 = vadd.f32 %v6850_v61, %v2761_v8 }
 0xcec   : > { %v2780_v9 = vsel %vm1084_vm0, %v2770_v10, 0.0 }
 0xced   : > { %2781 = vadd.xlane.f32.xlu1 %v2780_v9  ;;  %v2713_v11 = vpop.f32.mrf.mxu0 }
 0xcee   : > { %v2755_v12 = vadd.f32 %v2754_v5, %v2713_v11 }
 0xcf0   : > { %v2762_v14 = vadd.f32 %v2755_v12, %v7582_v15 }
 0xcf2   : > { %v2771_v6 = vadd.f32 %v6850_v61, %v2762_v14 }
 0xcf4   : > { %v2783_v56 = vsel %vm1084_vm0, %v2771_v6, 0.0 }
 0xcf5   : > { %2784 = vadd.xlane.f32.xlu2 %v2783_v56  ;;  %v2716_v13 = vpop.f32.mrf.mxu0 }
 0xcf6   : > { %v2758_v19 = vadd.f32 %v2757_v17, %v2716_v13 }
 0xcf8   : > { %v2763_v18 = vadd.f32 %v2758_v19, %v7591_v20 }
 0xcfa   : > { %v2772_v7 = vadd.f32 %v6850_v61, %v2763_v18 }
 0xcfc   : > { %v2786_v2 = vsel %vm1084_vm0, %v2772_v7, 0.0 }
 0xcfd   : > { %2787 = vadd.xlane.f32.xlu0 %v2786_v2 }
 0xd58   : > { %v2779_v21 = vpop.xlane.xlu0 %2778 }
 0xd59   : > { %v2789_v22 = vmul.f32 %v2779_v21, %v7470_v16 }
 0xd5b   : > { %v2793_v23 = vsub.f32 %v2769_v0, %v2789_v22 }
 0xd5d   : > { %v2797_v24 = vmul.f32 %v2793_v23, %v2793_v23 }
 0xd5f   : > { %v2801_v15 = vsel %vm1084_vm0, %v2797_v24, 0.0 }
 0xd60   : > { %v2782_v25 = vpop.xlane.xlu1 %2781  ;;  %2802 = vadd.xlane.f32.xlu1 %v2801_v15 }
 0xd61   : > { %v2790_v26 = vmul.f32 %v2782_v25, %v7470_v16 }
 0xd63   : > { %v7695_v27 = vsub.f32 %v2770_v10, %v2790_v26 }
 0xd65   : > { %v2798_v20 = vmul.f32 %v7695_v27, %v7695_v27 }
 0xd67   : > { %v2804_v29 = vsel %vm1084_vm0, %v2798_v20, 0.0 }
 0xd68   : > { %2805 = vadd.xlane.f32.xlu2 %v2804_v29  ;;  %v2785_v30 = vpop.xlane.xlu2 %2784 }
 0xd69   : > { %v2791_v28 = vmul.f32 %v2785_v30, %v7470_v16 }
 0xd6b   : > { %v7701_v31 = vsub.f32 %v2771_v6, %v2791_v28 }
 0xd6d   : > { %v2799_v32 = vmul.f32 %v7701_v31, %v7701_v31 }
 0xd6f   : > { %v2807_v34 = vsel %vm1084_vm0, %v2799_v32, 0.0 }
 0xd70   : > { %2808 = vadd.xlane.f32.xlu0 %v2807_v34  ;;  %v2788_v35 = vpop.xlane.xlu0 %2787 }
 0xd71   : > { %v2792_v36 = vmul.f32 %v2788_v35, %v7470_v16  ;;  %v6521_v35 = vld [vmem:[%s7187_s14 + $0x28] sm:$0xff] }
 0xd73   : > { %v7707_v37 = vsub.f32 %v2772_v7, %v2792_v36  ;;  %v6520_v36 = vld [vmem:[%s7187_s14 + $0x20] sm:$0xff] }
 0xd75   : > { %v2800_v38 = vmul.f32 %v7707_v37, %v7707_v37 }
 0xd77   : > { %v2810_v33 = vsel %vm1084_vm0, %v2800_v38, 0.0  ;;  %v6853_v38 = vld [vmem:[%s7182_s8 + $0x1] ss:$0 sm:$0xff] }
 0xd78   : > { %2811 = vadd.xlane.f32.xlu1 %v2810_v33 }
 0xdd3   : > { %v2803_v41 = vpop.xlane.xlu1 %2802 }
 0xdd4   : > { %v2813_v42 = vmul.f32 %v2803_v41, %v7470_v16 }
 0xdd6   : > { %v2817_v43 = vadd.f32 1e-05, %v2813_v42 }
 0xdd8   : > { %6973 = vrsqrt.f32 %v2817_v43  ;;  %vm2827_vm2 = vweird.f32 %v2817_v43 }
 0xddb   : > { %v2806_v44 = vpop.xlane.xlu2 %2805 }
 0xddc   : > { %v2814_v45 = vmul.f32 %v2806_v44, %v7470_v16 }
 0xdde   : > { %v6974_v46 = vpop.eup %6973  ;;  %v2818_v47 = vadd.f32 1e-05, %v2814_v45 }
 0xddf   : > { %v2822_v48 = vmul.f32 %v6974_v46, %v2817_v43  ;;  %vm2828_vm14 = vweird.f32 %v6974_v46 }
 0xde0   : > { %6975 = vrsqrt.f32 %v2818_v47  ;;  %vm2829_vm3 = vmor %vm2827_vm2, %vm2828_vm14  ;;  %vm2837_vm5 = vweird.f32 %v2818_v47 }
 0xde1   : > { %v2823_v49 = vmul.f32 %v6974_v46, %v2822_v48 }
 0xde3   : > { %v2824_v50 = vmul.f32 0.5, %v2823_v49  ;;  %v2809_v51 = vpop.xlane.xlu0 %2808  ;;  %v6854_v49 = vld [vmem:[%s7172_s29 + $0x9] ss:$0 sm:$0xff] }
 0xde4   : > { %v2815_v52 = vmul.f32 %v2809_v51, %v7470_v16 }
 0xde5   : > { %v2825_v53 = vsub.f32 1.5, %v2824_v50 }
 0xde6   : > { %v6976_v54 = vpop.eup %6975  ;;  %v2819_v55 = vadd.f32 1e-05, %v2815_v52 }
 0xde7   : > { %v2826_v57 = vmul.f32 %v6974_v46, %v2825_v53  ;;  %v2832_v58 = vmul.f32 %v6976_v54, %v2818_v47  ;;  %vm2838_vm4 = vweird.f32 %v6976_v54 }
 0xde8   : > { %6977 = vrsqrt.f32 %v2819_v55  ;;  %vm2839_vm6 = vmor %vm2837_vm5, %vm2838_vm4  ;;  %vm2847_vm8 = vweird.f32 %v2819_v55 }
 0xde9   : > { %v2830_v61 = vsel %vm2829_vm3, %v6974_v46, %v2826_v57  ;;  %v2833_v62 = vmul.f32 %v6976_v54, %v2832_v58 }
 0xdea   : > { %v2861_v0 = vmul.f32 %v2830_v61, %v2793_v23 }
 0xdeb   : > { %v2834_v1 = vmul.f32 0.5, %v2833_v62  ;;  %v2812_v4 = vpop.xlane.xlu1 %2811 }
 0xdec   : > { %v2868_v3 = vmul.f32 %v6851_v59, %v2861_v0  ;;  %v2816_v8 = vmul.f32 %v2812_v4, %v7470_v16 }
 0xded   : > { %v2835_v10 = vsub.f32 1.5, %v2834_v1 }
 0xdee   : > { %v6978_v5 = vpop.eup %6977  ;;  %v7721_v9 = vadd.f32 %v6852_v63, %v2868_v3  ;;  %v2820_v11 = vadd.f32 1e-05, %v2816_v8 }
 0xdef   : > { %v2836_v12 = vmul.f32 %v6976_v54, %v2835_v10  ;;  %v2842_v14 = vmul.f32 %v6978_v5, %v2819_v55  ;;  %vm2848_vm7 = vweird.f32 %v6978_v5 }
 0xdf0   : > { %6979 = vrsqrt.f32 %v2820_v11  ;;  %6516 = vmatmul.msk.f32.vlgmr.msrb.gmra.mxu2 %vm1084_vm0, %v7721_v9  ;;  %vm2849_vm9 = vmor %vm2847_vm8, %vm2848_vm7  ;;  %vm2857_vm11 = vweird.f32 %v2820_v11 }
 0xdf1   : > { %v2840_v6 = vsel %vm2839_vm6, %v6976_v54, %v2836_v12  ;;  %v2843_v56 = vmul.f32 %v6978_v5, %v2842_v14 }
 0xdf2   : > { %v2862_v17 = vmul.f32 %v2840_v6, %v7695_v27 }
 0xdf3   : > { %v2844_v13 = vmul.f32 0.5, %v2843_v56 }
 0xdf4   : > { %v2869_v19 = vmul.f32 %v6851_v59, %v2862_v17 }
 0xdf5   : > { %v2845_v18 = vsub.f32 1.5, %v2844_v13 }
 0xdf6   : > { %v6980_v7 = vpop.eup %6979  ;;  %v2876_v2 = vadd.f32 %v6852_v63, %v2869_v19 }
 0xdf7   : > { %v2846_v21 = vmul.f32 %v6978_v5, %v2845_v18  ;;  %v2852_v22 = vmul.f32 %v6980_v7, %v2820_v11  ;;  %vm2858_vm10 = vweird.f32 %v6980_v7 }
 0xdf8   : > { %6517 = vmatmul.msk.f32.gmra.mxu2 %vm1084_vm0, %v2876_v2  ;;  %vm2859_vm12 = vmor %vm2857_vm11, %vm2858_vm10 }
 0xdf9   : > { %v2850_v23 = vsel %vm2849_vm9, %v6978_v5, %v2846_v21  ;;  %v2853_v24 = vmul.f32 %v6980_v7, %v2852_v22 }
 0xdfa   : > { %v2863_v15 = vmul.f32 %v2850_v23, %v7701_v31  ;;  %v6522_v31 = vld [vmem:[%s7187_s14 + $0x30] sm:$0xff] }
 0xdfb   : > { %v2854_v25 = vmul.f32 0.5, %v2853_v24  ;;  %2962 = vmatpush.msrb.mxu3 %v6522_v31 }
 0xdfc   : > { %v2870_v26 = vmul.f32 %v6851_v59, %v2863_v15  ;;  %v3098_v15 = vld [vmem:[%s7192_s19 + $0x8] sm:$0xff] }
 0xdfd   : > { %v2855_v27 = vsub.f32 1.5, %v2854_v25  ;;  %2963 = vmatpush.msrb.mxu3 %v6521_v35  ;;  %3129 = vmatpush.msra.mxu0 %v3098_v15  ;;  %v3097_v25 = vld [vmem:[%s7192_s19] sm:$0xff] }
 0xdfe   : > { %v2877_v20 = vadd.f32 %v6852_v63, %v2870_v26  ;;  %v6558_v15 = vld [vmem:[%s7202_s30 + $0x60] sm:$0xff] }
 0xdff   : > { %v2856_v29 = vmul.f32 %v6980_v7, %v2855_v27  ;;  %2964 = vmatpush.msrb.mxu3 %v6520_v36  ;;  %3130 = vmatpush.msra.mxu0 %v3097_v25 }
 0xe00   : > { %6518 = vmatmul.msk.f32.gmra.mxu2 %vm1084_vm0, %v2877_v20 }
 0xe01   : > { %v2860_v30 = vsel %vm2859_vm12, %v6980_v7, %v2856_v29  ;;  %3512 = vmatpush.msrb.mxu0 %v6558_v15 }
 0xe02   : > { %v2864_v28 = vmul.f32 %v2860_v30, %v7707_v37 }
 0xe04   : > { %v2871_v32 = vmul.f32 %v6851_v59, %v2864_v28 }
 0xe06   : > { %v2878_v34 = vadd.f32 %v6852_v63, %v2871_v32 }
 0xe08   : > { %6519 = vmatmul.msk.f32.gmra.mxu2 %vm1084_vm0, %v2878_v34 }
 0xe73   : > { %v2916_v33 = vpop.f32.mrf.mxu2 }
 0xe74   : > { %v2917_v39 = vadd.f32 %v6853_v38, %v2916_v33 }
 0xe76   : > { %v2928_v40 = vmax.f32 %v2917_v39, 0.0 }
 0xe78   : > { %6524 = vmatmul.msk.f32.vlgmr.msrb.gmra.mxu3 %vm1927_vm15, %v2928_v40 }
 0xe7b   : > { %v2919_v41 = vpop.f32.mrf.mxu2 }
 0xe7c   : > { %v2920_v42 = vadd.f32 %v6853_v38, %v2919_v41 }
 0xe7e   : > { %v2929_v37 = vmax.f32 %v2920_v42, 0.0 }
 0xe80   : > { %6525 = vmatmul.msk.f32.gmra.mxu3 %vm1927_vm15, %v2929_v37  ;;  %v6855_v37 = vld [vmem:[%s7172_s29 + $0xa] ss:$0 sm:$0xff] }
 0xe83   : > { %v2922_v43 = vpop.f32.mrf.mxu2 }
 0xe84   : > { %v2923_v44 = vadd.f32 %v6853_v38, %v2922_v43 }
 0xe86   : > { %v2930_v45 = vmax.f32 %v2923_v44, 0.0 }
 0xe88   : > { %6526 = vmatmul.msk.f32.gmra.mxu3 %vm1927_vm15, %v2930_v45  ;;  %v6856_v45 = vld [vmem:[%s7172_s29 + $0xb] ss:$0 sm:$0xff] }
 0xe8b   : > { %v2925_v46 = vpop.f32.mrf.mxu2 }
 0xe8c   : > { %v2926_v47 = vadd.f32 %v6853_v38, %v2925_v46 }
 0xe8e   : > { %v2931_v48 = vmax.f32 %v2926_v47, 0.0 }
 0xe90   : > { %6527 = vmatmul.msk.f32.gmra.mxu3 %vm1927_vm15, %v2931_v48 }
 0xefb   : > { %v2966_v50 = vpop.f32.mrf.mxu3 }
 0xefc   : > { %v2978_v51 = vadd.f32 %v2966_v50, %v7721_v9 }
 0xefe   : > { %v2987_v52 = vadd.f32 %v6854_v49, %v2978_v51 }
 0xf00   : > { %v2995_v53 = vsel %vm1084_vm0, %v2987_v52, 0.0 }
 0xf01   : > { %2996 = vadd.xlane.f32.xlu2 %v2995_v53 }
 0xf03   : > { %v2969_v54 = vpop.f32.mrf.mxu3 }
 0xf04   : > { %v2979_v55 = vadd.f32 %v2969_v54, %v2876_v2 }
 0xf06   : > { %v2988_v57 = vadd.f32 %v6854_v49, %v2979_v55 }
 0xf08   : > { %v2998_v58 = vsel %vm1084_vm0, %v2988_v57, 0.0 }
 0xf09   : > { %2999 = vadd.xlane.f32.xlu0 %v2998_v58 }
 0xf0b   : > { %v2972_v59 = vpop.f32.mrf.mxu3 }
 0xf0c   : > { %v2980_v60 = vadd.f32 %v2972_v59, %v2877_v20 }
 0xf0e   : > { %v2989_v61 = vadd.f32 %v6854_v49, %v2980_v60 }
 0xf10   : > { %v3001_v62 = vsel %vm1084_vm0, %v2989_v61, 0.0 }
 0xf11   : > { %3002 = vadd.xlane.f32.xlu1 %v3001_v62 }
 0xf13   : > { %v2975_v63 = vpop.f32.mrf.mxu3 }
 0xf14   : > { %v2981_v0 = vadd.f32 %v2975_v63, %v2878_v34 }
 0xf16   : > { %v2990_v1 = vadd.f32 %v6854_v49, %v2981_v0 }
 0xf18   : > { %v3004_v4 = vsel %vm1084_vm0, %v2990_v1, 0.0 }
 0xf19   : > { %3005 = vadd.xlane.f32.xlu2 %v3004_v4 }
 0xf74   : > { %v2997_v3 = vpop.xlane.xlu2 %2996 }
 0xf75   : > { %v3007_v8 = vmul.f32 %v2997_v3, %v7470_v16 }
 0xf77   : > { %v3011_v10 = vsub.f32 %v2987_v52, %v3007_v8 }
 0xf79   : > { %v3015_v5 = vmul.f32 %v3011_v10, %v3011_v10 }
 0xf7b   : > { %v3019_v9 = vsel %vm1084_vm0, %v3015_v5, 0.0 }
 0xf7c   : > { %3020 = vadd.xlane.f32.xlu0 %v3019_v9  ;;  %v3000_v11 = vpop.xlane.xlu0 %2999 }
 0xf7d   : > { %v3008_v12 = vmul.f32 %v3000_v11, %v7470_v16 }
 0xf7f   : > { %v7748_v14 = vsub.f32 %v2988_v57, %v3008_v12 }
 0xf81   : > { %v3016_v6 = vmul.f32 %v7748_v14, %v7748_v14 }
 0xf83   : > { %v3022_v56 = vsel %vm1084_vm0, %v3016_v6, 0.0 }
 0xf84   : > { %v3003_v17 = vpop.xlane.xlu1 %3002  ;;  %3023 = vadd.xlane.f32.xlu1 %v3022_v56 }
 0xf85   : > { %v3009_v13 = vmul.f32 %v3003_v17, %v7470_v16 }
 0xf87   : > { %v7754_v19 = vsub.f32 %v2989_v61, %v3009_v13 }
 0xf89   : > { %v3017_v18 = vmul.f32 %v7754_v19, %v7754_v19 }
 0xf8b   : > { %v3025_v7 = vsel %vm1084_vm0, %v3017_v18, 0.0  ;;  %v3156_v18 = vld [vmem:[%s7202_s30] sm:$0xff] }
 0xf8c   : > { %3026 = vadd.xlane.f32.xlu2 %v3025_v7  ;;  %v3006_v2 = vpop.xlane.xlu2 %3005  ;;  %v6538_v7 = vld [vmem:[%s7202_s30 + $0x10] sm:$0xff]  ;;  %3205 = vmatpush.msra.mxu2 %v3156_v18 }
 0xf8d   : > { %v3010_v21 = vmul.f32 %v3006_v2, %v7470_v16  ;;  %v6535_v2 = vld [vmem:[%s7202_s30 + $0x8] sm:$0xff]  ;;  %3232 = vmatpush.msra.mxu3 %v6538_v7 }
 0xf8e   : > { %3181 = vmatpush.msra.mxu1 %v6535_v2 }
 0xf8f   : > { %v7760_v22 = vsub.f32 %v2990_v1, %v3010_v21  ;;  %v6540_v21 = vld [vmem:[%s7202_s30 + $0x18] sm:$0xff] }
 0xf90   : > { %3260 = vmatpush.msrb.mxu1 %v6540_v21 }
 0xf91   : > { %v3018_v23 = vmul.f32 %v7760_v22, %v7760_v22 }
 0xf93   : > { %v3028_v24 = vsel %vm1084_vm0, %v3018_v23, 0.0  ;;  %v6542_v23 = vld [vmem:[%s7202_s30 + $0x20] sm:$0xff] }
 0xf94   : > { %3029 = vadd.xlane.f32.xlu0 %v3028_v24  ;;  %v6544_v24 = vld [vmem:[%s7202_s30 + $0x28] sm:$0xff]  ;;  %3288 = vmatpush.msrb.mxu2 %v6542_v23 }
 0xf95   : > { %3316 = vmatpush.msrb.mxu3 %v6544_v24 }
 0xfef   : > { %v3021_v26 = vpop.xlane.xlu0 %3020 }
 0xff0   : > { %v3031_v27 = vmul.f32 %v3021_v26, %v7470_v16 }
 0xff2   : > { %v3035_v20 = vadd.f32 1e-05, %v3031_v27 }
 0xff4   : > { %6981 = vrsqrt.f32 %v3035_v20  ;;  %vm3045_vm14 = vweird.f32 %v3035_v20 }
 0xff7   : > { %v3024_v29 = vpop.xlane.xlu1 %3023 }
 0xff8   : > { %v3032_v30 = vmul.f32 %v3024_v29, %v7470_v16 }
 0xffa   : > { %v6982_v28 = vpop.eup %6981  ;;  %v3036_v32 = vadd.f32 1e-05, %v3032_v30 }
 0xffb   : > { %v3040_v34 = vmul.f32 %v6982_v28, %v3035_v20  ;;  %vm3046_vm13 = vweird.f32 %v6982_v28 }
 0xffc   : > { %6983 = vrsqrt.f32 %v3036_v32  ;;  %vm3047_vm2 = vmor %vm3045_vm14, %vm3046_vm13  ;;  %vm3055_vm4 = vweird.f32 %v3036_v32  ;;  %vm3162_vm14 = vcmask 1041409  }
 0xffd   : > { %v3041_v31 = vmul.f32 %v6982_v28, %v3040_v34 }
 0xfff   : > { %v3042_v35 = vmul.f32 0.5, %v3041_v31  ;;  %v3027_v36 = vpop.xlane.xlu2 %3026 }
0x1000   : > { %v3033_v38 = vmul.f32 %v3027_v36, %v7470_v16  ;;  %v6546_v36 = vld [vmem:[%s7202_s30 + $0x30] sm:$0xff] }
0x1001   : > { %v3043_v33 = vsub.f32 1.5, %v3042_v35 }
0x1002   : > { %v6984_v39 = vpop.eup %6983  ;;  %v3037_v40 = vadd.f32 1e-05, %v3033_v38 }
0x1003   : > { %v3044_v41 = vmul.f32 %v6982_v28, %v3043_v33  ;;  %v3050_v42 = vmul.f32 %v6984_v39, %v3036_v32  ;;  %vm3056_vm3 = vweird.f32 %v6984_v39 }
0x1004   : > { %6985 = vrsqrt.f32 %v3037_v40  ;;  %vm3057_vm5 = vmor %vm3055_vm4, %vm3056_vm3  ;;  %vm3065_vm7 = vweird.f32 %v3037_v40 }
0x1005   : > { %v3048_v43 = vsel %vm3047_vm2, %v6982_v28, %v3044_v41  ;;  %v3051_v44 = vmul.f32 %v6984_v39, %v3050_v42  ;;  %v6548_v42 = vld [vmem:[%s7202_s30 + $0x38] sm:$0xff] }
0x1006   : > { %v3079_v46 = vmul.f32 %v3048_v43, %v3011_v10 }
0x1007   : > { %v3052_v47 = vmul.f32 0.5, %v3051_v44  ;;  %v3030_v48 = vpop.xlane.xlu0 %3029 }
0x1008   : > { %v3086_v49 = vmul.f32 %v6855_v37, %v3079_v46  ;;  %v3034_v50 = vmul.f32 %v3030_v48, %v7470_v16 }
0x1009   : > { %v3053_v51 = vsub.f32 1.5, %v3052_v47 }
0x100a   : > { %v6986_v52 = vpop.eup %6985  ;;  %v3093_v53 = vadd.f32 %v6856_v45, %v3086_v49  ;;  %v3038_v54 = vadd.f32 1e-05, %v3034_v50 }
0x100b   : > { %v3054_v55 = vmul.f32 %v6984_v39, %v3053_v51  ;;  %v3060_v57 = vmul.f32 %v6986_v52, %v3037_v40  ;;  %vm3066_vm6 = vweird.f32 %v6986_v52 }
0x100c   : > { %6987 = vrsqrt.f32 %v3038_v54  ;;  %6531 = vmatmul.msk.f32.vlgmr.msra.gmra.mxu0 %vm1084_vm0, %v3093_v53  ;;  %vm3067_vm8 = vmor %vm3065_vm7, %vm3066_vm6  ;;  %vm3075_vm10 = vweird.f32 %v3038_v54 }
0x100d   : > { %v3058_v58 = vsel %vm3057_vm5, %v6984_v39, %v3054_v55  ;;  %v3061_v59 = vmul.f32 %v6986_v52, %v3060_v57  ;;  %v6552_v55 = vld [vmem:[%s7202_s30 + $0x48] sm:$0xff]  ;;  %vm3685_vm5 = vcmask 523264  }
0x100e   : > { %v3080_v60 = vmul.f32 %v3058_v58, %v7748_v14 }
0x100f   : > { %v3062_v61 = vmul.f32 0.5, %v3061_v59 }
0x1010   : > { %v3087_v62 = vmul.f32 %v6855_v37, %v3080_v60 }
0x1011   : > { %v3063_v63 = vsub.f32 1.5, %v3062_v61  ;;  %v6554_v61 = vld [vmem:[%s7202_s30 + $0x50] sm:$0xff] }
0x1012   : > { %v6988_v0 = vpop.eup %6987  ;;  %v3094_v1 = vadd.f32 %v6856_v45, %v3087_v62 }
0x1013   : > { %v3064_v4 = vmul.f32 %v6986_v52, %v3063_v63  ;;  %v3070_v3 = vmul.f32 %v6988_v0, %v3038_v54  ;;  %vm3076_vm9 = vweird.f32 %v6988_v0 }
0x1014   : > { %6532 = vmatmul.msk.f32.gmra.mxu0 %vm1084_vm0, %v3094_v1  ;;  %vm3077_vm11 = vmor %vm3075_vm10, %vm3076_vm9  ;;  %v6556_v1 = vld [vmem:[%s7202_s30 + $0x58] sm:$0xff] }
0x1015   : > { %v3068_v8 = vsel %vm3067_vm8, %v6986_v52, %v3064_v4  ;;  %v3071_v10 = vmul.f32 %v6988_v0, %v3070_v3 }
0x1016   : > { %v3081_v5 = vmul.f32 %v3068_v8, %v7754_v19 }
0x1017   : > { %v3072_v9 = vmul.f32 0.5, %v3071_v10 }
0x1018   : > { %v3088_v11 = vmul.f32 %v6855_v37, %v3081_v5  ;;  %v6560_v5 = vld [vmem:[%s7202_s30 + $0x68] sm:$0xff] }
0x1019   : > { %v3073_v12 = vsub.f32 1.5, %v3072_v9 }
0x101a   : > { %v3095_v14 = vadd.f32 %v6856_v45, %v3088_v11 }
0x101b   : > { %v3074_v6 = vmul.f32 %v6988_v0, %v3073_v12  ;;  %v6562_v12 = vld [vmem:[%s7202_s30 + $0x70] sm:$0xff] }
0x101c   : > { %6533 = vmatmul.msk.f32.gmra.mxu0 %vm1084_vm0, %v3095_v14  ;;  %v6564_v14 = vld [vmem:[%s7202_s30 + $0x78] sm:$0xff] }
0x101d   : > { %v3078_v56 = vsel %vm3077_vm11, %v6988_v0, %v3074_v6 }
0x101e   : > { %v3082_v17 = vmul.f32 %v3078_v56, %v7760_v22  ;;  %v6857_v22 = vld [vmem:[%s7197_s24] ss:$0 sm:$0xff] }
0x1020   : > { %v3089_v13 = vmul.f32 %v6855_v37, %v3082_v17  ;;  %v6550_v37 = vld [vmem:[%s7202_s30 + $0x40] sm:$0xff] }
0x1022   : > { %v3096_v19 = vadd.f32 %v6856_v45, %v3089_v13 }
0x1024   : > { %6534 = vmatmul.msk.f32.gmra.mxu0 %vm1084_vm0, %v3096_v19 }
0x1089   : > { %v3132_v25 = vpop.f32.mrf.mxu0 }
0x108a   : > { %v3133_v27 = vadd.f32 %v6857_v22, %v3132_v25 }
0x108c   : > { %v3148_v20 = vmul.f32 0.01, %v3133_v27  ;;  %vm3144_vm12 = vcmp.ge.f32.partialorder %v3133_v27, 0.0 }
0x108e   : > { %v7788_v30 = vsel %vm3144_vm12, %v3133_v27, %v3148_v20 }
0x108f   : > { %v3161_v31 = vrot.slane %v7788_v30, 1  ;;  %v3212_v39 = vrot.slane %v7788_v30, 2  ;;  %v3240_v50 = vrot.slane %v7788_v30, 3  ;;  %v3268_v54 = vrot.slane %v7788_v30, 4 }
0x1090   : > { %v3296_v58 = vrot.slane %v7788_v30, 5  ;;  %v3324_v3 = vrot.slane %v7788_v30, 6  ;;  %v3352_v11 = vrot.slane %v7788_v30, 7 }
0x1091   : > { %v3135_v26 = vpop.f32.mrf.mxu0 }
0x1092   : > { %v3136_v32 = vadd.f32 %v6857_v22, %v3135_v26 }
0x1094   : > { %v3149_v41 = vmul.f32 0.01, %v3136_v32  ;;  %vm3145_vm2 = vcmp.ge.f32.partialorder %v3136_v32, 0.0 }
0x1096   : > { %v7802_v48 = vsel %vm3145_vm2, %v3136_v32, %v3149_v41 }
0x1097   : > { %v3492_v59 = vrot.slane %v7802_v48, 4  ;;  %v3409_v17 = vrot.slane %v7802_v48, 1  ;;  %v3436_v7 = vrot.slane %v7802_v48, 2  ;;  %v3464_v2 = vrot.slane %v7802_v48, 3 }
0x1098   : > { %v3520_v15 = vrot.slane %v7802_v48, 5  ;;  %v3548_v27 = vrot.slane %v7802_v48, 6  ;;  %v3576_v20 = vrot.slane %v7802_v48, 7 }
0x1099   : > { %v3138_v29 = vpop.f32.mrf.mxu0 }
0x109a   : > { %v3139_v28 = vadd.f32 %v6857_v22, %v3138_v29 }
0x109c   : > { %vm3146_vm13 = vcmp.ge.f32.partialorder %v3139_v28, 0.0  ;;  %v3150_v34 = vmul.f32 0.01, %v3139_v28 }
0x109e   : > { %v3154_v35 = vsel %vm3146_vm13, %v3139_v28, %v3150_v34 }
0x109f   : > { %v3163_v38 = vsel %vm3162_vm14, %v3154_v35, %v3161_v31  ;;  %v3186_v33 = vrot.slane %v3154_v35, 7  ;;  %v3213_v40 = vrot.slane %v3154_v35, 1  ;;  %v3241_v47 = vrot.slane %v3154_v35, 2 }
0x10a0   : > { %6536 = vmatmul.msk.f32.vlgmr.msra.gmra.mxu1 %vm1198_vm1, %v3163_v38  ;;  %v3269_v51 = vrot.slane %v3154_v35, 3  ;;  %v3297_v52 = vrot.slane %v3154_v35, 4  ;;  %v3325_v4 = vrot.slane %v3154_v35, 5  ;;  %v3353_v8 = vrot.slane %v3154_v35, 6  ;;  %v3613_v38 = vld [vmem:[%s7212_s12 + $0x18] sm:$0xff] }
0x10a1   : > { %v3141_v43 = vpop.f32.mrf.mxu0  ;;  %v3187_v44 = vsel %vm3162_vm14, %v3186_v33, %v7788_v30  ;;  %v3214_v45 = vsel %vm3162_vm14, %v3213_v40, %v3212_v39  ;;  %3344 = vmatpush.msra.mxu1 %v6546_v36  ;;  %v3242_v57 = vsel %vm3162_vm14, %v3241_v47, %v3240_v50  ;;  %3633 = vmatpush.msra.mxu0 %v3613_v38  ;;  %v3612_v33 = vld [vmem:[%s7212_s12 + $0x10] sm:$0xff]  ;;  %v3744_v47 = vld [vmem:[%s8428_s1] sm:$0xff] }
0x10a2   : > { %v3142_v46 = vadd.f32 %v6857_v22, %v3141_v43  ;;  %6537 = vmatmul.msk.f32.vlgmr.msra.gmra.mxu2 %vm1198_vm1, %v3187_v44  ;;  %6539 = vmatmul.msk.f32.vlgmr.msra.gmra.mxu3 %vm1198_vm1, %v3214_v45  ;;  %v3270_v62 = vsel %vm3162_vm14, %v3269_v51, %v3268_v54  ;;  %v3298_v63 = vsel %vm3162_vm14, %v3297_v52, %v3296_v58  ;;  %v3610_v43 = vld [vmem:[%s7212_s12] sm:$0xff]  ;;  %v3745_v45 = vld [vmem:[%s8428_s1 + $0x8] sm:$0xff]  ;;  %v3644_v52 = vld [vmem:[%s8429_s2 + $0x18] sm:$0xff] }
0x10a3   : > { %3372 = vmatpush.msra.mxu2 %v6548_v42  ;;  %3401 = vmatpush.msra.mxu3 %v6550_v37  ;;  %v3326_v9 = vsel %vm3162_vm14, %v3325_v4, %v3324_v3  ;;  %v3354_v6 = vsel %vm3162_vm14, %v3353_v8, %v3352_v11  ;;  %v3611_v42 = vld [vmem:[%s7212_s12 + $0x8] sm:$0xff]  ;;  %v6858_v8 = vld [vmem:[%s8430_s7] ss:$0 sm:$0xff]  ;;  %s8439_s7 = sld [smem:[#allocation15_spill]] }
0x10a4   : > { %vm3147_vm3 = vcmp.ge.f32.partialorder %v3142_v46, 0.0  ;;  %v3151_v49 = vmul.f32 0.01, %v3142_v46  ;;  %3634 = vmatpush.msra.mxu0 %v3612_v33 }
0x10a6   : > { %v3155_v53 = vsel %vm3147_vm3, %v3142_v46, %v3151_v49  ;;  %3635 = vmatpush.msra.mxu0 %v3611_v42 }
0x10a7   : > { %v3493_v60 = vrot.slane %v3155_v53, 3  ;;  %v3382_v10 = vrot.slane %v3155_v53, 7  ;;  %v3437_v13 = vrot.slane %v3155_v53, 1  ;;  %v3465_v19 = vrot.slane %v3155_v53, 2 }
0x10a8   : > { %6541 = vmatmul.msk.f32.vlgmr.msrb.gmra.mxu1 %vm1198_vm1, %v3242_v57  ;;  %v3410_v18 = vsel %vm3162_vm14, %v3155_v53, %v3409_v17  ;;  %v3521_v24 = vrot.slane %v3155_v53, 4  ;;  %v3549_v25 = vrot.slane %v3155_v53, 5  ;;  %v3577_v22 = vrot.slane %v3155_v53, 6  ;;  %3636 = vmatpush.msra.mxu0 %v3610_v43  ;;  %v3643_v53 = vld [vmem:[%s8429_s2 + $0x10] sm:$0xff]  ;;  %v7875_v17 = vld [vmem:[%s7335_s28 + $0x18] sm:$0xff] }
0x10a9   : > { %v3494_v0 = vsel %vm3162_vm14, %v3493_v60, %v3492_v59  ;;  %3428 = vmatpush.msrb.mxu1 %v6552_v55  ;;  %v3383_v56 = vsel %vm3162_vm14, %v3382_v10, %v7802_v48  ;;  %v3438_v21 = vsel %vm3162_vm14, %v3437_v13, %v3436_v7  ;;  %v3466_v23 = vsel %vm3162_vm14, %v3465_v19, %v3464_v2  ;;  %v3642_v13 = vld [vmem:[%s8429_s2 + $0x8] sm:$0xff]  ;;  %v3641_v19 = vld [vmem:[%s8429_s2] sm:$0xff]  ;;  %v3680_v2 = vld [vmem:[%s8432_s11 + $0x38] sm:$0xff]  ;;  %s6352_s2 = sshll.u32 %s8449_s23, 1 }
0x10aa   : > { %6543 = vmatmul.msk.f32.vlgmr.msrb.gmra.mxu2 %vm1198_vm1, %v3270_v62  ;;  %6545 = vmatmul.msk.f32.vlgmr.msrb.gmra.mxu3 %vm1198_vm1, %v3298_v63  ;;  %v3522_v26 = vsel %vm3162_vm14, %v3521_v24, %v3520_v15  ;;  %v3550_v29 = vsel %vm3162_vm14, %v3549_v25, %v3548_v27  ;;  %v3578_v30 = vsel %vm3162_vm14, %v3577_v22, %v3576_v20  ;;  %v3709_v7 = vld [vmem:[%s8431_s10] sm:$0xff]  ;;  %v3676_v15 = vld [vmem:[%s8432_s11 + $0x18] sm:$0xff]  ;;  %v3675_v25 = vld [vmem:[%s8432_s11 + $0x10] sm:$0xff]  ;;  %s1073_s3 = scalar_lea.vmem %s7317_s20, %s6352_s2 }
0x10ab   : > { %6559 = vmatmul.msk.f32.vlgmr.msrb.gmra.mxu0 %vm1198_vm1, %v3494_v0  ;;  %3456 = vmatpush.msrb.mxu2 %v6554_v61  ;;  %v3677_v24 = vld [vmem:[%s8432_s11 + $0x20] sm:$0xff]  ;;  %v3674_v22 = vld [vmem:[%s8432_s11 + $0x8] sm:$0xff] }
0x10ac   : > { %3484 = vmatpush.msrb.mxu3 %v6556_v1  ;;  %3765 = vmatpush.msrb.mxu0 %v3745_v45  ;;  %v6859_v27 = vld [vmem:[%s8433_s15] ss:$0 sm:$0xff]  ;;  %s8440_s15 = sld [smem:[#allocation17_spill]] }
0x10ae   : > { %3766 = vmatpush.msrb.mxu0 %v3744_v47 }
0x10b0   : > { %6547 = vmatmul.msk.f32.vlgmr.msra.gmra.mxu1 %vm1198_vm1, %v3326_v9 }
0x10b1   : > { %3540 = vmatpush.msra.mxu1 %v6560_v5 }
0x10b2   : > { %6549 = vmatmul.msk.f32.vlgmr.msra.gmra.mxu2 %vm1198_vm1, %v3354_v6  ;;  %6551 = vmatmul.msk.f32.vlgmr.msra.gmra.mxu3 %vm1198_vm1, %v3383_v56  ;;  %v7865_v6 = vld [vmem:[%s7335_s28 + $0x8] sm:$0xff]  ;;  %v7870_v56 = vld [vmem:[%s7335_s28 + $0x10] sm:$0xff] }
0x10b3   : > { %3568 = vmatpush.msra.mxu2 %v6562_v12  ;;  %3596 = vmatpush.msra.mxu3 %v6564_v14  ;;  %v7860_v14 = vld [vmem:[%s7335_s28] sm:$0xff]  ;;  %s8438_s28 = sld [smem:[#allocation14_spill]] }
0x10b8   : > { %6553 = vmatmul.msk.f32.vlgmr.msrb.gmra.mxu1 %vm1198_vm1, %v3410_v18  ;;  %v3710_v18 = vld [vmem:[%s8431_s10 + $0x8] sm:$0xff] }
0x10b9   : > { %3664 = vmatpush.msrb.mxu1 %v3644_v52 }
0x10ba   : > { %6555 = vmatmul.msk.f32.vlgmr.msrb.gmra.mxu2 %vm1198_vm1, %v3438_v21  ;;  %6557 = vmatmul.msk.f32.vlgmr.msrb.gmra.mxu3 %vm1198_vm1, %v3466_v23  ;;  %v3679_v21 = vld [vmem:[%s8432_s11 + $0x30] sm:$0xff]  ;;  %v3678_v23 = vld [vmem:[%s8432_s11 + $0x28] sm:$0xff] }
0x10bb   : > { %3665 = vmatpush.msrb.mxu1 %v3643_v53  ;;  %3729 = vmatpush.msrb.mxu3 %v3710_v18  ;;  %v3781_v53 = vld [vmem:[%s8436_s0 + $0x8] sm:$0xff] }
0x10bc   : > { %3697 = vmatpush.msrb.mxu2 %v3680_v2 }
0x10bd   : > { %3666 = vmatpush.msrb.mxu1 %v3642_v13  ;;  %3730 = vmatpush.msrb.mxu3 %v3709_v7 }
0x10be   : > { %3698 = vmatpush.msrb.mxu2 %v3679_v21 }
0x10bf   : > { %3667 = vmatpush.msrb.mxu1 %v3641_v19 }
0x10c0   : > { %6561 = vmatmul.msk.f32.vlgmr.msra.gmra.mxu1 %vm1198_vm1, %v3522_v26  ;;  %3699 = vmatpush.msrb.mxu2 %v3678_v23  ;;  %v3673_v26 = vld [vmem:[%s8432_s11] sm:$0xff] }
0x10c1   : > { %3801 = vmatpush.msra.mxu1 %v3781_v53 }
0x10c2   : > { %6563 = vmatmul.msk.f32.vlgmr.msra.gmra.mxu2 %vm1198_vm1, %v3550_v29  ;;  %6565 = vmatmul.msk.f32.vlgmr.msra.gmra.mxu3 %vm1198_vm1, %v3578_v30 }
0x10c3   : > { %3700 = vmatpush.msrb.mxu2 %v3677_v24 }
0x10c5   : > { %3701 = vmatpush.msrb.mxu2 %v3676_v15 }
0x10c7   : > { %3702 = vmatpush.msrb.mxu2 %v3675_v25 }
0x10c9   : > { %3703 = vmatpush.msrb.mxu2 %v3674_v22 }
0x10ca   : > { %6569 = vmatmul.msk.f32.vlgmr.msrb.gmra.mxu3 %vm1084_vm0, %v7860_v14 }
0x10cb   : > { %3704 = vmatpush.msrb.mxu2 %v3673_v26 }
0x10d2   : > { %6570 = vmatmul.msk.f32.gmra.mxu3 %vm1084_vm0, %v7865_v6 }
0x10da   : > { %6571 = vmatmul.msk.f32.gmra.mxu3 %vm1084_vm0, %v7870_v56 }
0x10e2   : > { %6572 = vmatmul.msk.f32.gmra.mxu3 %vm1084_vm0, %v7875_v17 }
0x111d   : > { %v3183_v28 = vpop.f32.mrf.mxu1 }
0x1125   : > { %v3207_v32 = vpop.f32.mrf.mxu2  ;;  %v3234_v34 = vpop.f32.mrf.mxu3 }
0x1126   : > { %v3208_v31 = vadd.f32 %v3207_v32, %v3183_v28  ;;  %v3262_v35 = vpop.f32.mrf.mxu1  ;;  %v6860_v28 = vld [vmem:[%s8434_s16 + $0x2] ss:$0 sm:$0xff] }
0x1128   : > { %v3237_v36 = vadd.f32 %v3234_v34, %v3208_v31  ;;  %v3514_v62 = vpop.f32.mrf.mxu0 }
0x112a   : > { %v3265_v39 = vadd.f32 %v3262_v35, %v3237_v36  ;;  %v6861_v36 = vld [vmem:[%s8435_s18] ss:$0 sm:$0xff]  ;;  %s8441_s18 = sld [smem:[#allocation16_spill]] }
0x112d   : > { %v3290_v40 = vpop.f32.mrf.mxu2  ;;  %v3318_v41 = vpop.f32.mrf.mxu3 }
0x112e   : > { %v3293_v37 = vadd.f32 %v3290_v40, %v3265_v39  ;;  %v3346_v44 = vpop.f32.mrf.mxu1 }
0x1130   : > { %v3321_v46 = vadd.f32 %v3318_v41, %v3293_v37  ;;  %v6862_v37 = vld [vmem:[%s8434_s16] ss:$0 sm:$0xff] }
0x1132   : > { %v3349_v48 = vadd.f32 %v3346_v44, %v3321_v46 }
0x1135   : > { %v3374_v49 = vpop.f32.mrf.mxu2  ;;  %v3403_v50 = vpop.f32.mrf.mxu3 }
0x1136   : > { %v3377_v51 = vadd.f32 %v3374_v49, %v3349_v48  ;;  %v3430_v55 = vpop.f32.mrf.mxu1 }
0x1138   : > { %v3406_v54 = vadd.f32 %v3403_v50, %v3377_v51 }
0x113a   : > { %v3433_v57 = vadd.f32 %v3430_v55, %v3406_v54  ;;  %v3780_v54 = vld [vmem:[%s8436_s0] sm:$0xff]  ;;  %v6603_v55 = vld [vmem:[%s8428_s1 + $0x18] sm:$0xff] }
0x113b   : > { %3802 = vmatpush.msra.mxu1 %v3780_v54 }
0x113d   : > { %v3458_v58 = vpop.f32.mrf.mxu2  ;;  %v3486_v59 = vpop.f32.mrf.mxu3 }
0x113e   : > { %v3461_v60 = vadd.f32 %v3458_v58, %v3433_v57  ;;  %v3542_v0 = vpop.f32.mrf.mxu1  ;;  %v6602_v57 = vld [vmem:[%s8428_s1 + $0x10] sm:$0xff] }
0x1140   : > { %v3489_v61 = vadd.f32 %v3486_v59, %v3461_v60 }
0x1142   : > { %v3517_v63 = vadd.f32 %v3514_v62, %v3489_v61 }
0x1144   : > { %v3545_v1 = vadd.f32 %v3542_v0, %v3517_v63 }
0x1145   : > { %v3570_v4 = vpop.f32.mrf.mxu2  ;;  %v3598_v10 = vpop.f32.mrf.mxu3 }
0x1146   : > { %v3573_v3 = vadd.f32 %v3570_v4, %v3545_v1 }
0x1148   : > { %v3601_v5 = vadd.f32 %v3598_v10, %v3573_v3  ;;  %v6596_v3 = vld [vmem:[%s8431_s10 + $0x18] sm:$0xff] }
0x114a   : > { %v3606_v9 = vadd.f32 %v6858_v8, %v3601_v5  ;;  %v6595_v8 = vld [vmem:[%s8431_s10 + $0x10] sm:$0xff] }
0x114c   : > { %vm3607_vm4 = vcmp.ge.f32.partialorder %v3606_v9, 0.0  ;;  %v3608_v11 = vmul.f32 0.01, %v3606_v9 }
0x114d   : > { %v3732_v39 = vpop.f32.mrf.mxu3 }
0x114e   : > { %v3609_v12 = vsel %vm3607_vm4, %v3606_v9, %v3608_v11  ;;  %v3733_v44 = vadd.f32 %v6862_v37, %v3732_v39 }
0x114f   : > { %6566 = vmatmul.msk.f32.vlgmr.msra.gmra.mxu0 %vm1927_vm15, %v3609_v12  ;;  %v6864_v12 = vld [vmem:[%s8434_s16 + $0x4] ss:$0 sm:$0xff] }
0x1155   : > { %v3735_v45 = vpop.f32.mrf.mxu3 }
0x1156   : > { %v3736_v46 = vadd.f32 %v6862_v37, %v3735_v45 }
0x1157   : > { %6574 = vmatmul.msk.f32.vlgmr.msrb.gmra.mxu0 %vm1084_vm0, %v7860_v14 }
0x115d   : > { %v3738_v47 = vpop.f32.mrf.mxu3 }
0x115e   : > { %v3739_v48 = vadd.f32 %v6862_v37, %v3738_v47 }
0x115f   : > { %6575 = vmatmul.msk.f32.gmra.mxu0 %vm1084_vm0, %v7865_v6 }
0x1165   : > { %v3741_v49 = vpop.f32.mrf.mxu3 }
0x1166   : > { %v3742_v50 = vadd.f32 %v6862_v37, %v3741_v49 }
0x1167   : > { %6576 = vmatmul.msk.f32.gmra.mxu0 %vm1084_vm0, %v7870_v56 }
0x116f   : > { %6577 = vmatmul.msk.f32.gmra.mxu0 %vm1084_vm0, %v7875_v17 }
0x11cc   : > { %v3638_v20 = vpop.f32.mrf.mxu0 }
0x11cd   : > { %v3639_v29 = vadd.f32 %v6859_v27, %v3638_v20 }
0x11cf   : > { %6567 = vmatmul.msk.f32.vlgmr.msrb.gmra.mxu1 %vm1927_vm15, %v3639_v29 }
0x11d0   : > { %4015 = vmatpush.msrb.mxu1 %v6596_v3 }
0x11d2   : > { %4016 = vmatpush.msrb.mxu1 %v6595_v8 }
0x11d4   : > { %v3768_v30 = vpop.f32.mrf.mxu0 }
0x11d5   : > { %v3769_v31 = vadd.f32 %v6860_v28, %v3768_v30 }
0x11d7   : > { %6579 = vmatmul.msk.f32.vlgmr.msra.gmra.mxu1 %vm1084_vm0, %v7860_v14 }
0x11dc   : > { %v3771_v32 = vpop.f32.mrf.mxu0 }
0x11dd   : > { %v3772_v34 = vadd.f32 %v6860_v28, %v3771_v32 }
0x11df   : > { %6583 = vmatpush.xpose.msk.msra.mxu2 %vm1198_vm1, %v3772_v34  ;;  %6580 = vmatmul.msk.f32.gmra.mxu1 %vm1084_vm0, %v7865_v6 }
0x11e3   : > { %6584 = vmatpush.xpose.msk.msra.mxu2 %vm1198_vm1, %v3769_v31 }
0x11e4   : > { %v3774_v35 = vpop.f32.mrf.mxu0 }
0x11e5   : > { %v3775_v43 = vadd.f32 %v6860_v28, %v3774_v35 }
0x11e7   : > { %6581 = vmatmul.msk.f32.gmra.mxu1 %vm1084_vm0, %v7870_v56 }
0x11ec   : > { %v3777_v38 = vpop.f32.mrf.mxu0 }
0x11ed   : > { %v3778_v41 = vadd.f32 %v6860_v28, %v3777_v38  ;;  %v6865_v38 = vld [vmem:[%s8434_s16 + $0x3] ss:$0 sm:$0xff] }
0x11ef   : > { %6582 = vmatmul.msk.f32.gmra.mxu1 %vm1084_vm0, %v7875_v17 }
0x11f7   : > { %6598 = vmatmul.msk.f32.vlgmr.msrb.gmra.mxu1 %vm1084_vm0, %v7860_v14 }
0x11ff   : > { %6599 = vmatmul.msk.f32.gmra.mxu1 %vm1084_vm0, %v7865_v6 }
0x1207   : > { %6600 = vmatmul.msk.f32.gmra.mxu1 %vm1084_vm0, %v7870_v56 }
0x120f   : > { %6601 = vmatmul.msk.f32.gmra.mxu1 %vm1084_vm0, %v7875_v17 }
0x124c   : > { %v3669_v33 = vpop.f32.mrf.mxu1 }
0x124d   : > { %v3670_v40 = vadd.f32 %v6861_v36, %v3669_v33 }
0x124f   : > { %v3672_v42 = vmax.f32 %v3670_v40, 0.0 }
0x1251   : > { %6568 = vmatmul.msk.f32.vlgmr.msrb.gmra.mxu2 %vm3685_vm5, %v3672_v42 }
0x1252   : > { %6587 = vmatpush.xpose.msk.msrb.mxu2 %vm1198_vm1, %v3778_v41 }
0x1254   : > { %v3804_v10 = vpop.f32.mrf.mxu1 }
0x1255   : > { %v3805_v19 = vadd.f32 %v6864_v12, %v3804_v10  ;;  %v3992_v10 = vld [vmem:[%s8437_s26] sm:$0xff] }
0x1256   : > { %6588 = vmatpush.xpose.msk.msrb.mxu2 %vm1198_vm1, %v3775_v43 }
0x1259   : > { %6585 = vmatmul.msk.f32.vlgmr.msra.gmra.mxu2 %vm1198_vm1, %v3733_v44 }
0x125a   : > { %4052 = vmatpush.msra.mxu2 %v6603_v55 }
0x125c   : > { %4053 = vmatpush.msra.mxu2 %v6602_v57  ;;  %v3807_v13 = vpop.f32.mrf.mxu1  ;;  %v6866_v57 = vld [vmem:[%s8434_s16 + $0x1] ss:$0 sm:$0xff] }
0x125d   : > { %v3808_v18 = vadd.f32 %v6864_v12, %v3807_v13 }
0x125f   : > { %3954 = vmatpush.msra.mxu3 %v3808_v18  ;;  %v6609_v18 = vld [vmem:[%s8436_s0 + $0x10] sm:$0xff] }
0x1261   : > { %6586 = vmatmul.msk.f32.gmra.mxu2 %vm1198_vm1, %v3736_v46  ;;  %3955 = vmatpush.msra.mxu3 %v3805_v19  ;;  %v6610_v19 = vld [vmem:[%s8436_s0 + $0x18] sm:$0xff] }
0x1263   : > { %4089 = vmatpush.msrb.mxu3 %v6610_v19 }
0x1264   : > { %v3810_v15 = vpop.f32.mrf.mxu1 }
0x1265   : > { %v3811_v32 = vadd.f32 %v6864_v12, %v3810_v15  ;;  %4090 = vmatpush.msrb.mxu3 %v6609_v18 }
0x1269   : > { %6589 = vmatmul.msk.f32.vlgmr.msrb.gmra.mxu2 %vm1198_vm1, %v3739_v48 }
0x126c   : > { %v3813_v28 = vpop.f32.mrf.mxu1 }
0x126d   : > { %v3814_v34 = vadd.f32 %v6864_v12, %v3813_v28 }
0x126f   : > { %3983 = vmatpush.msra.mxu0 %v3814_v34 }
0x1271   : > { %6590 = vmatmul.msk.f32.gmra.mxu2 %vm1198_vm1, %v3742_v50  ;;  %3984 = vmatpush.msra.mxu0 %v3811_v32 }
0x1279   : > { %6605 = vmatmul.msk.f32.vlgmr.msra.gmra.mxu2 %vm1084_vm0, %v7860_v14 }
0x1281   : > { %6606 = vmatmul.msk.f32.gmra.mxu2 %vm1084_vm0, %v7865_v6 }
0x1289   : > { %6607 = vmatmul.msk.f32.gmra.mxu2 %vm1084_vm0, %v7870_v56 }
0x1291   : > { %6608 = vmatmul.msk.f32.gmra.mxu2 %vm1084_vm0, %v7875_v17 }
0x12d4   : > { %v7912_v51 = vpop.f32.mrf.mxu2 }
0x12dc   : > { %v3845_v52 = vpop.f32.mrf.mxu2 }
0x12dd   : > { %v3886_v1 = vmul.f32 0.35355338, %v3845_v52  ;;  %v4018_v52 = vpop.f32.mrf.mxu1 }
0x12df   : > { %v3890_v4 = vsel %vm1084_vm0, %v3886_v1, -inf }
0x12e4   : > { %v3848_v58 = vpop.f32.mrf.mxu2 }
0x12e5   : > { %v3887_v25 = vmul.f32 0.35355338, %v3848_v58 }
0x12e7   : > { %v3893_v29 = vsel %vm1084_vm0, %v3887_v25, -inf }
0x12ec   : > { %v3880_v59 = vpop.f32.mrf.mxu2 }
0x12ed   : > { %v3888_v60 = vmul.f32 0.35355338, %v3880_v59 }
0x12ef   : > { %v3896_v61 = vsel %vm1084_vm0, %v3888_v60, -inf }
0x12f0   : > { %3897 = vmax.xlane.f32.xlu1 %v3896_v61 }
0x12f4   : > { %v3883_v62 = vpop.f32.mrf.mxu2 }
0x12f5   : > { %v3889_v63 = vmul.f32 0.35355338, %v3883_v62  ;;  %v4021_v62 = vpop.f32.mrf.mxu1 }
0x12f7   : > { %v3899_v0 = vsel %vm1084_vm0, %v3889_v63, -inf }
0x12f8   : > { %3900 = vmax.xlane.f32.xlu2 %v3899_v0  ;;  %v4022_v0 = vadd.f32 %v6866_v57, %v4021_v62 }
0x12fc   : > { %v4055_v36 = vpop.f32.mrf.mxu2 }
0x12fd   : > { %v4056_v40 = vadd.f32 %v6865_v38, %v4055_v36 }
0x1300   : > { %3891 = vmax.xlane.f32.xlu2 %v3890_v4 }
0x1304   : > { %v4058_v33 = vpop.f32.mrf.mxu2 }
0x1305   : > { %v4059_v39 = vadd.f32 %v6865_v38, %v4058_v33 }
0x1307   : > { %6616 = vmatpush.xpose.msk.msrb.mxu0 %vm1198_vm1, %v4059_v39 }
0x130b   : > { %6617 = vmatpush.xpose.msk.msrb.mxu0 %vm1198_vm1, %v4056_v40 }
0x130c   : > { %v4061_v41 = vpop.f32.mrf.mxu2 }
0x130d   : > { %v4062_v50 = vadd.f32 %v6865_v38, %v4061_v41 }
0x1314   : > { %v4064_v37 = vpop.f32.mrf.mxu2 }
0x1315   : > { %v4065_v44 = vadd.f32 %v6865_v38, %v4064_v37 }
0x1363   : > { %v3898_v5 = vpop.xlane.xlu1 %3897 }
0x1364   : > { %v3904_v9 = vsub.f32 %v3888_v60, %v3898_v5  ;;  %v4019_v60 = vadd.f32 %v6866_v57, %v4018_v52 }
0x1366   : > { %v3910_v11 = vmul.f32 1.442695, %v3904_v9 }
0x1368   : > { %6989 = vpow2.f32 %v3910_v11 }
0x136b   : > { %v3901_v7 = vpop.xlane.xlu2 %3900 }
0x136c   : > { %v3905_v2 = vsub.f32 %v3889_v63, %v3901_v7 }
0x136e   : > { %v6990_v21 = vpop.eup %6989  ;;  %v3912_v23 = vmul.f32 1.442695, %v3905_v2 }
0x136f   : > { %v3920_v24 = vsel %vm1084_vm0, %v6990_v21, 0.0 }
0x1370   : > { %6991 = vpow2.f32 %v3912_v23  ;;  %3921 = vadd.xlane.f32.xlu0 %v3920_v24 }
0x1373   : > { %v3892_v22 = vpop.xlane.xlu2 %3891 }
0x1374   : > { %v3902_v26 = vsub.f32 %v3886_v1, %v3892_v22  ;;  %v4024_v1 = vpop.f32.mrf.mxu1 }
0x1375   : > { %v4025_v4 = vadd.f32 %v6866_v57, %v4024_v1 }
0x1376   : > { %v6992_v27 = vpop.eup %6991  ;;  %v3906_v20 = vmul.f32 1.442695, %v3902_v26 }
0x1377   : > { %v3923_v30 = vsel %vm1084_vm0, %v6992_v27, 0.0 }
0x1378   : > { %6993 = vpow2.f32 %v3906_v20  ;;  %3894 = vmax.xlane.f32.xlu0 %v3893_v29  ;;  %3924 = vadd.xlane.f32.xlu1 %v3923_v30 }
0x137c   : > { %v4027_v3 = vpop.f32.mrf.mxu1 }
0x137d   : > { %v4028_v8 = vadd.f32 %v6866_v57, %v4027_v3 }
0x137e   : > { %v6994_v31 = vpop.eup %6993 }
0x137f   : > { %v3914_v35 = vsel %vm1084_vm0, %v6994_v31, 0.0 }
0x1380   : > { %3915 = vadd.xlane.f32.xlu1 %v3914_v35 }
0x13e3   : > { %v3922_v42 = vpop.xlane.xlu0 %3921 }
0x13e4   : > { %6995 = vrcp.f32 %v3922_v42 }
0x13ea   : > { %v6996_v43 = vpop.eup %6995 }
0x13eb   : > { %v3932_v45 = vmul.f32 %v6996_v43, %v6990_v21  ;;  %v3895_v46 = vpop.xlane.xlu0 %3894  ;;  %v3925_v47 = vpop.xlane.xlu1 %3924 }
0x13ec   : > { %v3903_v48 = vsub.f32 %v3887_v25, %v3895_v46  ;;  %6997 = vrcp.f32 %v3925_v47 }
0x13ed   : > { %6593 = vmatmul.msk.f32.vlgmr.msra.gmra.mxu0 %vm1084_vm0, %v3932_v45  ;;  %v6867_v45 = vld [vmem:[%s8434_s16 + $0x5] ss:$0 sm:$0xff] }
0x13ee   : > { %v3908_v49 = vmul.f32 1.442695, %v3903_v48  ;;  %6620 = vmatpush.xpose.msk.msra.mxu0 %vm1198_vm1, %v4065_v44 }
0x13f0   : > { %6999 = vpow2.f32 %v3908_v49 }
0x13f2   : > { %v6998_v53 = vpop.eup %6997  ;;  %6621 = vmatpush.xpose.msk.msra.mxu0 %vm1198_vm1, %v4062_v50 }
0x13f3   : > { %v3916_v54 = vpop.xlane.xlu1 %3915  ;;  %v3933_v55 = vmul.f32 %v6998_v53, %v6992_v27 }
0x13f4   : > { %7001 = vrcp.f32 %v3916_v54 }
0x13f5   : > { %6594 = vmatmul.msk.f32.gmra.mxu0 %vm1084_vm0, %v3933_v55 }
0x13f6   : > { %v7000_v58 = vpop.eup %6999 }
0x13f7   : > { %v3917_v59 = vsel %vm1084_vm0, %v7000_v58, 0.0 }
0x13f8   : > { %3918 = vadd.xlane.f32.xlu2 %v3917_v59 }
0x13fa   : > { %v7002_v61 = vpop.eup %7001 }
0x13fb   : > { %v3930_v63 = vmul.f32 %v7002_v61, %v6994_v31 }
0x13fd   : > { %6591 = vmatmul.msk.f32.vlgmr.msra.gmra.mxu3 %vm1084_vm0, %v3930_v63  ;;  %6618 = vmatmul.msk.f32.vlgmr.msrb.gmra.mxu0 %vm1198_vm1, %v4019_v60 }
0x13fe   : > { %4350 = vmatpush.msrb.mxu0 %v3992_v10 }
0x1405   : > { %6619 = vmatmul.msk.f32.gmra.mxu0 %vm1198_vm1, %v4022_v0 }
0x140d   : > { %6622 = vmatmul.msk.f32.vlgmr.msra.gmra.mxu0 %vm1198_vm1, %v4025_v4 }
0x1415   : > { %6623 = vmatmul.msk.f32.gmra.mxu0 %vm1198_vm1, %v4028_v8 }
0x146a   : > { %v3986_v5 = vpop.f32.mrf.mxu0 }
0x146b   : > { %v3919_v9 = vpop.xlane.xlu2 %3918 }
0x146c   : > { %7003 = vrcp.f32 %v3919_v9 }
0x1472   : > { %v7004_v11 = vpop.eup %7003  ;;  %v3989_v12 = vpop.f32.mrf.mxu0 }
0x1473   : > { %v3931_v13 = vmul.f32 %v7004_v11, %v7000_v58 }
0x1475   : > { %6592 = vmatmul.msk.f32.gmra.mxu3 %vm1084_vm0, %v3931_v13  ;;  %v6628_v13 = vld [vmem:[%s8437_s26 + $0x8] sm:$0xff] }
0x1476   : > { %4309 = vmatpush.msra.mxu3 %v6628_v13 }
0x147a   : > { %v4133_v7 = vpop.f32.mrf.mxu0 }
0x147b   : > { %v4174_v2 = vmul.f32 0.35355338, %v4133_v7 }
0x147d   : > { %v4178_v21 = vsel %vm1084_vm0, %v4174_v2, -inf  ;;  %6612 = vmatmul.msk.f32.vlgmr.msrb.gmra.mxu3 %vm1084_vm0, %v7860_v14 }
0x147e   : > { %4179 = vmax.xlane.f32.xlu0 %v4178_v21 }
0x1480   : > { %v3957_v23 = vpop.f32.mrf.mxu3 }
0x1481   : > { %6633 = vmatmul.msk.f32.vlgmr.msrb.gmra.mxu0 %vm1198_vm1, %v3957_v23 }
0x1482   : > { %v4136_v24 = vpop.f32.mrf.mxu0 }
0x1483   : > { %v4175_v15 = vmul.f32 0.35355338, %v4136_v24 }
0x1485   : > { %v4181_v25 = vsel %vm1084_vm0, %v4175_v15, -inf  ;;  %6613 = vmatmul.msk.f32.gmra.mxu3 %vm1084_vm0, %v7865_v6 }
0x1486   : > { %4182 = vmax.xlane.f32.xlu1 %v4181_v25 }
0x148a   : > { %v4168_v22 = vpop.f32.mrf.mxu0 }
0x148b   : > { %v4176_v26 = vmul.f32 0.35355338, %v4168_v22 }
0x148d   : > { %v4184_v27 = vsel %vm1084_vm0, %v4176_v26, -inf  ;;  %6614 = vmatmul.msk.f32.gmra.mxu3 %vm1084_vm0, %v7870_v56 }
0x148e   : > { %4185 = vmax.xlane.f32.xlu2 %v4184_v27 }
0x1492   : > { %v4171_v20 = vpop.f32.mrf.mxu0 }
0x1493   : > { %v4177_v29 = vmul.f32 0.35355338, %v4171_v20 }
0x1495   : > { %v4187_v30 = vsel %vm1084_vm0, %v4177_v29, -inf  ;;  %6615 = vmatmul.msk.f32.gmra.mxu3 %vm1084_vm0, %v7875_v17 }
0x1496   : > { %4188 = vmax.xlane.f32.xlu0 %v4187_v30 }
0x14f1   : > { %v4180_v28 = vpop.xlane.xlu0 %4179 }
0x14f2   : > { %v4190_v32 = vsub.f32 %v4174_v2, %v4180_v28 }
0x14f4   : > { %v4194_v34 = vmul.f32 1.442695, %v4190_v32 }
0x14f6   : > { %7005 = vpow2.f32 %v4194_v34 }
0x14f8   : > { %v3960_v31 = vpop.f32.mrf.mxu3 }
0x14f9   : > { %v4183_v35 = vpop.xlane.xlu1 %4182  ;;  %6634 = vmatmul.msk.f32.gmra.mxu0 %vm1198_vm1, %v3960_v31 }
0x14fa   : > { %v4191_v36 = vsub.f32 %v4175_v15, %v4183_v35  ;;  %v6868_v15 = vld [vmem:[%s8438_s28] ss:$0 sm:$0xff] }
0x14fc   : > { %v7006_v38 = vpop.eup %7005  ;;  %v4196_v33 = vmul.f32 1.442695, %v4191_v36 }
0x14fd   : > { %v4202_v39 = vsel %vm1084_vm0, %v7006_v38, 0.0 }
0x14fe   : > { %7007 = vpow2.f32 %v4196_v33  ;;  %4203 = vadd.xlane.f32.xlu1 %v4202_v39  ;;  %v4352_v21 = vpop.f32.mrf.mxu0 }
0x1500   : > { %v4092_v40 = vpop.f32.mrf.mxu3 }
0x1501   : > { %6635 = vmatmul.msk.f32.gmra.mxu0 %vm1198_vm1, %v3986_v5  ;;  %v4186_v41 = vpop.xlane.xlu2 %4185  ;;  %v4093_v48 = vadd.f32 %v6867_v45, %v4092_v40 }
0x1502   : > { %v4192_v42 = vsub.f32 %v4176_v26, %v4186_v41 }
0x1504   : > { %v7008_v37 = vpop.eup %7007  ;;  %v4198_v43 = vmul.f32 1.442695, %v4192_v42 }
0x1505   : > { %v4205_v44 = vsel %vm1084_vm0, %v7008_v37, 0.0 }
0x1506   : > { %7009 = vpow2.f32 %v4198_v43  ;;  %4206 = vadd.xlane.f32.xlu2 %v4205_v44 }
0x1508   : > { %v4095_v46 = vpop.f32.mrf.mxu3 }
0x1509   : > { %v4189_v47 = vpop.xlane.xlu0 %4188  ;;  %6636 = vmatmul.msk.f32.gmra.mxu0 %vm1198_vm1, %v3989_v12  ;;  %v4096_v49 = vadd.f32 %v6867_v45, %v4095_v46 }
0x150a   : > { %v4193_v50 = vsub.f32 %v4177_v29, %v4189_v47 }
0x150b   : > { %4242 = vmatpush.msra.mxu1 %v4096_v49 }
0x150c   : > { %v7010_v52 = vpop.eup %7009  ;;  %v4200_v53 = vmul.f32 1.442695, %v4193_v50 }
0x150d   : > { %v4208_v54 = vsel %vm1084_vm0, %v7010_v52, 0.0  ;;  %4243 = vmatpush.msra.mxu1 %v4093_v48 }
0x150e   : > { %7011 = vpow2.f32 %v4200_v53  ;;  %4209 = vadd.xlane.f32.xlu0 %v4208_v54 }
0x1510   : > { %v4098_v58 = vpop.f32.mrf.mxu3 }
0x1511   : > { %v4099_v60 = vadd.f32 %v6867_v45, %v4098_v58 }
0x1514   : > { %v7012_v55 = vpop.eup %7011 }
0x1515   : > { %v4211_v57 = vsel %vm1084_vm0, %v7012_v55, 0.0 }
0x1516   : > { %4212 = vadd.xlane.f32.xlu1 %v4211_v57 }
0x1518   : > { %v4101_v59 = vpop.f32.mrf.mxu3 }
0x1519   : > { %v4102_v61 = vadd.f32 %v6867_v45, %v4101_v59 }
0x151b   : > { %4271 = vmatpush.msrb.mxu2 %v4102_v61 }
0x151d   : > { %4272 = vmatpush.msrb.mxu2 %v4099_v60 }
0x1571   : > { %v4204_v62 = vpop.xlane.xlu1 %4203 }
0x1572   : > { %7013 = vrcp.f32 %v4204_v62  ;;  %v4483_v62 = vld [vmem:[%s8439_s7 + $0x8] sm:$0xff] }
0x1573   : > { %4514 = vmatpush.msrb.mxu1 %v4483_v62 }
0x1576   : > { %v4355_v27 = vpop.f32.mrf.mxu0 }
0x1578   : > { %v7014_v63 = vpop.eup %7013 }
0x1579   : > { %v4218_v0 = vmul.f32 %v7014_v63, %v7006_v38  ;;  %v4207_v1 = vpop.xlane.xlu2 %4206  ;;  %v4482_v63 = vld [vmem:[%s8439_s7] sm:$0xff] }
0x157a   : > { %7015 = vrcp.f32 %v4207_v1  ;;  %4515 = vmatpush.msrb.mxu1 %v4482_v63 }
0x157b   : > { %6624 = vmatmul.msk.f32.vlgmr.msra.gmra.mxu1 %vm1084_vm0, %v4218_v0 }
0x157e   : > { %v4358_v34 = vpop.f32.mrf.mxu0 }
0x1580   : > { %v7016_v4 = vpop.eup %7015 }
0x1581   : > { %v4210_v3 = vpop.xlane.xlu0 %4209  ;;  %v4219_v8 = vmul.f32 %v7016_v4, %v7008_v37 }
0x1582   : > { %7017 = vrcp.f32 %v4210_v3 }
0x1583   : > { %6625 = vmatmul.msk.f32.gmra.mxu1 %vm1084_vm0, %v4219_v8 }
0x1586   : > { %v4361_v33 = vpop.f32.mrf.mxu0 }
0x1588   : > { %v7018_v10 = vpop.eup %7017 }
0x1589   : > { %v4220_v5 = vmul.f32 %v7018_v10, %v7010_v52  ;;  %v4213_v9 = vpop.xlane.xlu1 %4212 }
0x158a   : > { %7019 = vrcp.f32 %v4213_v9 }
0x158b   : > { %6626 = vmatmul.msk.f32.vlgmr.msrb.gmra.mxu2 %vm1084_vm0, %v4220_v5 }
0x1590   : > { %v7020_v11 = vpop.eup %7019 }
0x1591   : > { %v4221_v12 = vmul.f32 %v7020_v11, %v7012_v55 }
0x1593   : > { %6627 = vmatmul.msk.f32.gmra.mxu2 %vm1084_vm0, %v4221_v12 }
0x15f8   : > { %v4245_v19 = vpop.f32.mrf.mxu1 }
0x15f9   : > { %6629 = vmatmul.msk.f32.vlgmr.msra.gmra.mxu3 %vm1198_vm1, %v4245_v19 }
0x1600   : > { %v4248_v18 = vpop.f32.mrf.mxu1 }
0x1601   : > { %6630 = vmatmul.msk.f32.gmra.mxu3 %vm1198_vm1, %v4248_v18 }
0x160e   : > { %v4274_v7 = vpop.f32.mrf.mxu2 }
0x160f   : > { %6631 = vmatmul.msk.f32.gmra.mxu3 %vm1198_vm1, %v4274_v7 }
0x1616   : > { %v4277_v2 = vpop.f32.mrf.mxu2 }
0x1617   : > { %6632 = vmatmul.msk.f32.gmra.mxu3 %vm1198_vm1, %v4277_v2  ;;  %v6869_v2 = vld [vmem:[%s8438_s28 + $0x1] ss:$0 sm:$0xff] }
0x167c   : > { %v4311_v23 = vpop.f32.mrf.mxu3 }
0x167d   : > { %v4353_v24 = vadd.f32 %v4352_v21, %v4311_v23 }
0x167f   : > { %v4364_v25 = vadd.f32 %v7860_v14, %v4353_v24 }
0x1681   : > { %v4372_v22 = vadd.f32 %v6868_v15, %v4364_v25 }
0x1683   : > { %v4380_v26 = vsel %vm1084_vm0, %v4372_v22, 0.0 }
0x1684   : > { %4381 = vadd.xlane.f32.xlu2 %v4380_v26  ;;  %v4314_v20 = vpop.f32.mrf.mxu3 }
0x1685   : > { %v4356_v29 = vadd.f32 %v4355_v27, %v4314_v20 }
0x1687   : > { %v4365_v30 = vadd.f32 %v7865_v6, %v4356_v29 }
0x1689   : > { %v4373_v28 = vadd.f32 %v6868_v15, %v4365_v30 }
0x168b   : > { %v4383_v32 = vsel %vm1084_vm0, %v4373_v28, 0.0 }
0x168c   : > { %4384 = vadd.xlane.f32.xlu0 %v4383_v32 }
0x1692   : > { %v4317_v31 = vpop.f32.mrf.mxu3 }
0x1693   : > { %v4359_v35 = vadd.f32 %v4358_v34, %v4317_v31 }
0x1695   : > { %v4366_v36 = vadd.f32 %v7870_v56, %v4359_v35 }
0x1697   : > { %v4374_v38 = vadd.f32 %v6868_v15, %v4366_v36 }
0x1699   : > { %v4386_v14 = vsel %vm1084_vm0, %v4374_v38, 0.0 }
0x169a   : > { %4387 = vadd.xlane.f32.xlu1 %v4386_v14  ;;  %v4320_v39 = vpop.f32.mrf.mxu3 }
0x169b   : > { %v4362_v40 = vadd.f32 %v4361_v33, %v4320_v39 }
0x169d   : > { %v4367_v41 = vadd.f32 %v7875_v17, %v4362_v40 }
0x169f   : > { %v4375_v42 = vadd.f32 %v6868_v15, %v4367_v41  ;;  %v6870_v15 = vld [vmem:[%s8438_s28 + $0x2] ss:$0 sm:$0xff] }
0x16a1   : > { %v4389_v6 = vsel %vm1084_vm0, %v4375_v42, 0.0 }
0x16a2   : > { %4390 = vadd.xlane.f32.xlu2 %v4389_v6 }
0x16f7   : > { %v4382_v37 = vpop.xlane.xlu2 %4381 }
0x16f8   : > { %v4392_v43 = vmul.f32 %v4382_v37, %v7470_v16 }
0x16fa   : > { %v4396_v44 = vsub.f32 %v4372_v22, %v4392_v43 }
0x16fc   : > { %v4400_v45 = vmul.f32 %v4396_v44, %v4396_v44 }
0x16fe   : > { %v4404_v56 = vsel %vm1084_vm0, %v4400_v45, 0.0 }
0x16ff   : > { %v4385_v46 = vpop.xlane.xlu0 %4384  ;;  %4405 = vadd.xlane.f32.xlu0 %v4404_v56 }
0x1700   : > { %v4393_v47 = vmul.f32 %v4385_v46, %v7470_v16 }
0x1702   : > { %v4397_v48 = vsub.f32 %v4373_v28, %v4393_v47  ;;  %v4536_v28 = vld [vmem:[%s8440_s15 + $0x18] sm:$0xff] }
0x1703   : > { %4561 = vmatpush.msra.mxu2 %v4536_v28 }
0x1704   : > { %v4401_v49 = vmul.f32 %v4397_v48, %v4397_v48 }
0x1706   : > { %v4407_v17 = vsel %vm1084_vm0, %v4401_v49, 0.0 }
0x1707   : > { %4408 = vadd.xlane.f32.xlu1 %v4407_v17 }
0x170d   : > { %v4388_v50 = vpop.xlane.xlu1 %4387 }
0x170e   : > { %v4394_v52 = vmul.f32 %v4388_v50, %v7470_v16 }
0x1710   : > { %v8014_v53 = vsub.f32 %v4374_v38, %v4394_v52 }
0x1712   : > { %v4402_v54 = vmul.f32 %v8014_v53, %v8014_v53 }
0x1714   : > { %v4410_v55 = vsel %vm1084_vm0, %v4402_v54, 0.0 }
0x1715   : > { %4411 = vadd.xlane.f32.xlu2 %v4410_v55  ;;  %v4391_v57 = vpop.xlane.xlu2 %4390 }
0x1716   : > { %v4395_v58 = vmul.f32 %v4391_v57, %v7470_v16 }
0x1718   : > { %v8020_v59 = vsub.f32 %v4375_v42, %v4395_v58  ;;  %v4534_v58 = vld [vmem:[%s8440_s15 + $0x8] sm:$0xff] }
0x171a   : > { %v4403_v60 = vmul.f32 %v8020_v59, %v8020_v59 }
0x171c   : > { %v4413_v61 = vsel %vm1084_vm0, %v4403_v60, 0.0  ;;  %v4533_v60 = vld [vmem:[%s8440_s15] sm:$0xff] }
0x171d   : > { %4414 = vadd.xlane.f32.xlu0 %v4413_v61  ;;  %v6871_v61 = vld [vmem:[%s8441_s18] ss:$0 sm:$0xff] }
0x1772   : > { %v4406_v0 = vpop.xlane.xlu0 %4405 }
0x1773   : > { %v4416_v1 = vmul.f32 %v4406_v0, %v7470_v16 }
0x1775   : > { %v4420_v4 = vadd.f32 1e-05, %v4416_v1 }
0x1777   : > { %7021 = vrsqrt.f32 %v4420_v4  ;;  %vm4430_vm7 = vweird.f32 %v4420_v4 }
0x177a   : > { %v4409_v3 = vpop.xlane.xlu1 %4408 }
0x177b   : > { %v4417_v8 = vmul.f32 %v4409_v3, %v7470_v16 }
0x177d   : > { %v7022_v10 = vpop.eup %7021  ;;  %v4421_v5 = vadd.f32 1e-05, %v4417_v8 }
0x177e   : > { %v4425_v9 = vmul.f32 %v7022_v10, %v4420_v4  ;;  %vm4431_vm6 = vweird.f32 %v7022_v10 }
0x177f   : > { %7023 = vrsqrt.f32 %v4421_v5  ;;  %vm4432_vm8 = vmor %vm4430_vm7, %vm4431_vm6  ;;  %vm4440_vm10 = vweird.f32 %v4421_v5 }
0x1780   : > { %v4426_v11 = vmul.f32 %v7022_v10, %v4425_v9 }
0x1782   : > { %v4427_v12 = vmul.f32 0.5, %v4426_v11 }
0x1784   : > { %v4428_v13 = vsub.f32 1.5, %v4427_v12  ;;  %v6872_v12 = vld [vmem:[%s8438_s28 + $0x3] ss:$0 sm:$0xff] }
0x1785   : > { %v7024_v19 = vpop.eup %7023 }
0x1786   : > { %v4429_v18 = vmul.f32 %v7022_v10, %v4428_v13  ;;  %v4435_v7 = vmul.f32 %v7024_v19, %v4421_v5  ;;  %vm4441_vm9 = vweird.f32 %v7024_v19 }
0x1787   : > { %vm4442_vm11 = vmor %vm4440_vm10, %vm4441_vm9 }
0x1788   : > { %v4433_v21 = vsel %vm4432_vm8, %v7022_v10, %v4429_v18  ;;  %v4436_v23 = vmul.f32 %v7024_v19, %v4435_v7  ;;  %v4412_v24 = vpop.xlane.xlu2 %4411 }
0x1789   : > { %v4464_v25 = vmul.f32 %v4433_v21, %v4396_v44  ;;  %v4418_v22 = vmul.f32 %v4412_v24, %v7470_v16 }
0x178a   : > { %v4437_v26 = vmul.f32 0.5, %v4436_v23 }
0x178b   : > { %v4471_v27 = vmul.f32 %v6869_v2, %v4464_v25  ;;  %v4422_v20 = vadd.f32 1e-05, %v4418_v22 }
0x178c   : > { %v4438_v29 = vsub.f32 1.5, %v4437_v26 }
0x178d   : > { %v8032_v30 = vadd.f32 %v6870_v15, %v4471_v27  ;;  %7025 = vrsqrt.f32 %v4422_v20  ;;  %vm4450_vm13 = vweird.f32 %v4422_v20 }
0x178e   : > { %v4439_v32 = vmul.f32 %v7024_v19, %v4438_v29 }
0x178f   : > { %6639 = vmatmul.msk.f32.vlgmr.msrb.gmra.mxu1 %vm1084_vm0, %v8032_v30 }
0x1790   : > { %v4443_v34 = vsel %vm4442_vm11, %v7024_v19, %v4439_v32  ;;  %v4415_v31 = vpop.xlane.xlu0 %4414 }
0x1791   : > { %v4465_v35 = vmul.f32 %v4443_v34, %v4397_v48  ;;  %v4419_v36 = vmul.f32 %v4415_v31, %v7470_v16 }
0x1793   : > { %v7026_v38 = vpop.eup %7025  ;;  %v4423_v14 = vadd.f32 1e-05, %v4419_v36  ;;  %v4472_v33 = vmul.f32 %v6869_v2, %v4465_v35 }
0x1794   : > { %v4445_v39 = vmul.f32 %v7026_v38, %v4422_v20  ;;  %vm4451_vm12 = vweird.f32 %v7026_v38 }
0x1795   : > { %7027 = vrsqrt.f32 %v4423_v14  ;;  %v4479_v40 = vadd.f32 %v6870_v15, %v4472_v33  ;;  %vm4452_vm2 = vmor %vm4450_vm13, %vm4451_vm12  ;;  %vm4460_vm4 = vweird.f32 %v4423_v14 }
0x1796   : > { %v4446_v41 = vmul.f32 %v7026_v38, %v4445_v39 }
0x1797   : > { %6640 = vmatmul.msk.f32.gmra.mxu1 %vm1084_vm0, %v4479_v40 }
0x1798   : > { %v4447_v42 = vmul.f32 0.5, %v4446_v41 }
0x179a   : > { %v4448_v6 = vsub.f32 1.5, %v4447_v42 }
0x179b   : > { %v7028_v37 = vpop.eup %7027 }
0x179c   : > { %v4449_v43 = vmul.f32 %v7026_v38, %v4448_v6  ;;  %v4455_v44 = vmul.f32 %v7028_v37, %v4423_v14  ;;  %vm4461_vm3 = vweird.f32 %v7028_v37 }
0x179d   : > { %vm4462_vm5 = vmor %vm4460_vm4, %vm4461_vm3 }
0x179e   : > { %v4453_v45 = vsel %vm4452_vm2, %v7026_v38, %v4449_v43  ;;  %v4456_v56 = vmul.f32 %v7028_v37, %v4455_v44 }
0x179f   : > { %v4466_v46 = vmul.f32 %v4453_v45, %v8014_v53  ;;  %v4535_v53 = vld [vmem:[%s8440_s15 + $0x10] sm:$0xff] }
0x17a0   : > { %v4457_v47 = vmul.f32 0.5, %v4456_v56  ;;  %4562 = vmatpush.msra.mxu2 %v4535_v53 }
0x17a1   : > { %v4473_v48 = vmul.f32 %v6869_v2, %v4466_v46 }
0x17a2   : > { %v4458_v49 = vsub.f32 1.5, %v4457_v47  ;;  %4563 = vmatpush.msra.mxu2 %v4534_v58  ;;  %v6651_v47 = vld [vmem:[%s8431_s10 + $0x28] sm:$0xff] }
0x17a3   : > { %v4480_v17 = vadd.f32 %v6870_v15, %v4473_v48  ;;  %v6658_v48 = vld [vmem:[%s8428_s1 + $0x28] sm:$0xff]  ;;  %4731 = vmatpush.msrb.mxu3 %v6651_v47 }
0x17a4   : > { %v4459_v50 = vmul.f32 %v7028_v37, %v4458_v49  ;;  %4564 = vmatpush.msra.mxu2 %v4533_v60  ;;  %v6665_v49 = vld [vmem:[%s8436_s0 + $0x28] sm:$0xff]  ;;  %4768 = vmatpush.msra.mxu0 %v6658_v48 }
0x17a5   : > { %6641 = vmatmul.msk.f32.gmra.mxu1 %vm1084_vm0, %v4480_v17 }
0x17a6   : > { %v4463_v52 = vsel %vm4462_vm5, %v7028_v37, %v4459_v50  ;;  %4805 = vmatpush.msra.mxu1 %v6665_v49  ;;  %v6657_v50 = vld [vmem:[%s8428_s1 + $0x20] sm:$0xff]  ;;  %v6875_v49 = vld [vmem:[%s8434_s16 + $0x8] ss:$0 sm:$0xff] }
0x17a7   : > { %v4467_v54 = vmul.f32 %v4463_v52, %v8020_v59  ;;  %v6664_v52 = vld [vmem:[%s8436_s0 + $0x20] sm:$0xff]  ;;  %4769 = vmatpush.msra.mxu0 %v6657_v50 }
0x17a8   : > { %4806 = vmatpush.msra.mxu1 %v6664_v52 }
0x17a9   : > { %v4474_v55 = vmul.f32 %v6869_v2, %v4467_v54 }
0x17ab   : > { %v4481_v57 = vadd.f32 %v6870_v15, %v4474_v55 }
0x17ad   : > { %6642 = vmatmul.msk.f32.gmra.mxu1 %vm1084_vm0, %v4481_v57 }
0x180c   : > { %v4517_v62 = vpop.f32.mrf.mxu1 }
0x180d   : > { %v4518_v63 = vadd.f32 %v6871_v61, %v4517_v62 }
0x180f   : > { %v4529_v0 = vmax.f32 %v4518_v63, 0.0 }
0x1811   : > { %6643 = vmatmul.msk.f32.vlgmr.msra.gmra.mxu2 %vm1927_vm15, %v4529_v0 }
0x1814   : > { %v4520_v1 = vpop.f32.mrf.mxu1 }
0x1815   : > { %v4521_v4 = vadd.f32 %v6871_v61, %v4520_v1 }
0x1817   : > { %v4530_v59 = vmax.f32 %v4521_v4, 0.0 }
0x1819   : > { %6644 = vmatmul.msk.f32.gmra.mxu2 %vm1927_vm15, %v4530_v59 }
0x1822   : > { %v4523_v3 = vpop.f32.mrf.mxu1 }
0x1823   : > { %v4524_v8 = vadd.f32 %v6871_v61, %v4523_v3 }
0x1825   : > { %v4531_v10 = vmax.f32 %v4524_v8, 0.0  ;;  %v8086_v8 = vld [vmem:[%s8438_s28 + $0x4] ss:$0 sm:$0xff] }
0x1827   : > { %6645 = vmatmul.msk.f32.gmra.mxu2 %vm1927_vm15, %v4531_v10 }
0x182a   : > { %v4526_v5 = vpop.f32.mrf.mxu1 }
0x182b   : > { %v4527_v9 = vadd.f32 %v6871_v61, %v4526_v5 }
0x182d   : > { %v4532_v11 = vmax.f32 %v4527_v9, 0.0 }
0x182f   : > { %6646 = vmatmul.msk.f32.gmra.mxu2 %vm1927_vm15, %v4532_v11  ;;  %v6874_v11 = vld [vmem:[%s8438_s28 + $0x5] ss:$0 sm:$0xff] }
0x1894   : > { %v4566_v13 = vpop.f32.mrf.mxu2 }
0x1895   : > { %v4578_v19 = vadd.f32 %v4566_v13, %v8032_v30 }
0x1897   : > { %v4587_v18 = vadd.f32 %v6872_v12, %v4578_v19 }
0x1899   : > { %v4595_v7 = vsel %vm1084_vm0, %v4587_v18, 0.0 }
0x189a   : > { %4596 = vadd.xlane.f32.xlu1 %v4595_v7 }
0x189c   : > { %v4569_v2 = vpop.f32.mrf.mxu2 }
0x189d   : > { %v4579_v21 = vadd.f32 %v4569_v2, %v4479_v40 }
0x189f   : > { %v4588_v23 = vadd.f32 %v6872_v12, %v4579_v21 }
0x18a1   : > { %v4598_v24 = vsel %vm1084_vm0, %v4588_v23, 0.0 }
0x18a2   : > { %4599 = vadd.xlane.f32.xlu2 %v4598_v24  ;;  %v6685_v24 = vld [vmem:[%s8431_s10 + $0x38] sm:$0xff] }
0x18a3   : > { %5020 = vmatpush.msrb.mxu1 %v6685_v24 }
0x18aa   : > { %v4572_v15 = vpop.f32.mrf.mxu2 }
0x18ab   : > { %v4580_v25 = vadd.f32 %v4572_v15, %v4480_v17  ;;  %v6650_v17 = vld [vmem:[%s8431_s10 + $0x20] sm:$0xff] }
0x18ac   : > { %4732 = vmatpush.msrb.mxu3 %v6650_v17  ;;  %v6876_v17 = vld [vmem:[%s8434_s16 + $0xa] ss:$0 sm:$0xff] }
0x18ad   : > { %v4589_v22 = vadd.f32 %v6872_v12, %v4580_v25 }
0x18af   : > { %v4601_v26 = vsel %vm1084_vm0, %v4589_v22, 0.0 }
0x18b0   : > { %4602 = vadd.xlane.f32.xlu0 %v4601_v26 }
0x18b2   : > { %v4575_v27 = vpop.f32.mrf.mxu2 }
0x18b3   : > { %v4581_v20 = vadd.f32 %v4575_v27, %v4481_v57 }
0x18b5   : > { %v4590_v29 = vadd.f32 %v6872_v12, %v4581_v20 }
0x18b7   : > { %v4604_v30 = vsel %vm1084_vm0, %v4590_v29, 0.0 }
0x18b8   : > { %4605 = vadd.xlane.f32.xlu1 %v4604_v30 }
0x190d   : > { %v4597_v28 = vpop.xlane.xlu1 %4596 }
0x190e   : > { %v4607_v32 = vmul.f32 %v4597_v28, %v7470_v16 }
0x1910   : > { %v4611_v34 = vsub.f32 %v4587_v18, %v4607_v32 }
0x1912   : > { %v4615_v31 = vmul.f32 %v4611_v34, %v4611_v34 }
0x1914   : > { %v4619_v35 = vsel %vm1084_vm0, %v4615_v31, 0.0 }
0x1915   : > { %4620 = vadd.xlane.f32.xlu2 %v4619_v35  ;;  %v4600_v36 = vpop.xlane.xlu2 %4599 }
0x1916   : > { %v4608_v38 = vmul.f32 %v4600_v36, %v7470_v16 }
0x1918   : > { %v8060_v14 = vsub.f32 %v4588_v23, %v4608_v38 }
0x191a   : > { %v4616_v33 = vmul.f32 %v8060_v14, %v8060_v14 }
0x191c   : > { %v4622_v39 = vsel %vm1084_vm0, %v4616_v33, 0.0 }
0x191d   : > { %4623 = vadd.xlane.f32.xlu0 %v4622_v39 }
0x1923   : > { %v4603_v40 = vpop.xlane.xlu0 %4602 }
0x1924   : > { %v4609_v41 = vmul.f32 %v4603_v40, %v7470_v16 }
0x1926   : > { %v8066_v42 = vsub.f32 %v4589_v22, %v4609_v41  ;;  %v6684_v22 = vld [vmem:[%s8431_s10 + $0x30] sm:$0xff] }
0x1927   : > { %5021 = vmatpush.msrb.mxu1 %v6684_v22 }
0x1928   : > { %v4617_v6 = vmul.f32 %v8066_v42, %v8066_v42 }
0x192a   : > { %v4625_v37 = vsel %vm1084_vm0, %v4617_v6, 0.0 }
0x192b   : > { %4626 = vadd.xlane.f32.xlu1 %v4625_v37  ;;  %v4606_v43 = vpop.xlane.xlu1 %4605 }
0x192c   : > { %v4610_v44 = vmul.f32 %v4606_v43, %v7470_v16 }
0x192e   : > { %v8072_v45 = vsub.f32 %v4590_v29, %v4610_v44 }
0x1930   : > { %v4618_v56 = vmul.f32 %v8072_v45, %v8072_v45 }
0x1932   : > { %v4628_v46 = vsel %vm1084_vm0, %v4618_v56, 0.0 }
0x1933   : > { %4629 = vadd.xlane.f32.xlu2 %v4628_v46 }
0x1988   : > { %v4621_v54 = vpop.xlane.xlu2 %4620 }
0x1989   : > { %v4631_v55 = vmul.f32 %v4621_v54, %v7470_v16 }
0x198b   : > { %v4635_v57 = vadd.f32 1e-05, %v4631_v55 }
0x198d   : > { %7029 = vrsqrt.f32 %v4635_v57  ;;  %vm4645_vm7 = vweird.f32 %v4635_v57 }
0x1990   : > { %v4624_v53 = vpop.xlane.xlu0 %4623 }
0x1991   : > { %v4632_v58 = vmul.f32 %v4624_v53, %v7470_v16 }
0x1993   : > { %v7030_v60 = vpop.eup %7029  ;;  %v4636_v61 = vadd.f32 1e-05, %v4632_v58  ;;  %v6877_v58 = vld [vmem:[%s8434_s16 + $0x6] ss:$0 sm:$0xff] }
0x1994   : > { %v4640_v62 = vmul.f32 %v7030_v60, %v4635_v57  ;;  %vm4646_vm6 = vweird.f32 %v7030_v60 }
0x1995   : > { %7031 = vrsqrt.f32 %v4636_v61  ;;  %vm4647_vm8 = vmor %vm4645_vm7, %vm4646_vm6  ;;  %vm4655_vm10 = vweird.f32 %v4636_v61 }
0x1996   : > { %v4641_v63 = vmul.f32 %v7030_v60, %v4640_v62 }
0x1998   : > { %v4642_v0 = vmul.f32 0.5, %v4641_v63 }
0x199a   : > { %v4643_v1 = vsub.f32 1.5, %v4642_v0 }
0x199b   : > { %v7032_v4 = vpop.eup %7031 }
0x199c   : > { %v4644_v59 = vmul.f32 %v7030_v60, %v4643_v1  ;;  %v4650_v3 = vmul.f32 %v7032_v4, %v4636_v61  ;;  %vm4656_vm9 = vweird.f32 %v7032_v4 }
0x199d   : > { %vm4657_vm11 = vmor %vm4655_vm10, %vm4656_vm9 }
0x199e   : > { %v4648_v10 = vsel %vm4647_vm8, %v7030_v60, %v4644_v59  ;;  %v4651_v5 = vmul.f32 %v7032_v4, %v4650_v3  ;;  %v4627_v9 = vpop.xlane.xlu1 %4626 }
0x199f   : > { %v4679_v12 = vmul.f32 %v4648_v10, %v4611_v34  ;;  %v4633_v13 = vmul.f32 %v4627_v9, %v7470_v16 }
0x19a0   : > { %v4652_v19 = vmul.f32 0.5, %v4651_v5 }
0x19a1   : > { %v4686_v18 = vmul.f32 %v8086_v8, %v4679_v12  ;;  %v4637_v7 = vadd.f32 1e-05, %v4633_v13  ;;  %v6691_v13 = vld [vmem:[%s8428_s1 + $0x30] sm:$0xff] }
0x19a2   : > { %v4653_v2 = vsub.f32 1.5, %v4652_v19 }
0x19a3   : > { %v8091_v21 = vadd.f32 %v6874_v11, %v4686_v18  ;;  %7033 = vrsqrt.f32 %v4637_v7  ;;  %vm4665_vm13 = vweird.f32 %v4637_v7 }
0x19a4   : > { %v4654_v23 = vmul.f32 %v7032_v4, %v4653_v2 }
0x19a5   : > { %6653 = vmatmul.msk.f32.vlgmr.msrb.gmra.mxu3 %vm1084_vm0, %v8091_v21  ;;  %6660 = vmatmul.msk.f32.vlgmr.msra.gmra.mxu0 %vm1084_vm0, %v8091_v21 }
0x19a6   : > { %v4658_v15 = vsel %vm4657_vm11, %v7032_v4, %v4654_v23  ;;  %6667 = vmatmul.msk.f32.vlgmr.msra.gmra.mxu1 %vm1084_vm0, %v8091_v21  ;;  %v4630_v25 = vpop.xlane.xlu2 %4629 }
0x19a7   : > { %v4680_v26 = vmul.f32 %v4658_v15, %v8060_v14  ;;  %v4634_v27 = vmul.f32 %v4630_v25, %v7470_v16 }
0x19a9   : > { %v7034_v20 = vpop.eup %7033  ;;  %v4687_v29 = vmul.f32 %v8086_v8, %v4680_v26  ;;  %v4638_v30 = vadd.f32 1e-05, %v4634_v27 }
0x19aa   : > { %v4660_v28 = vmul.f32 %v7034_v20, %v4637_v7  ;;  %vm4666_vm12 = vweird.f32 %v7034_v20 }
0x19ab   : > { %v8104_v32 = vadd.f32 %v6874_v11, %v4687_v29  ;;  %7035 = vrsqrt.f32 %v4638_v30  ;;  %vm4667_vm2 = vmor %vm4665_vm13, %vm4666_vm12  ;;  %vm4675_vm4 = vweird.f32 %v4638_v30 }
0x19ac   : > { %v4661_v34 = vmul.f32 %v7034_v20, %v4660_v28 }
0x19ad   : > { %6654 = vmatmul.msk.f32.gmra.mxu3 %vm1084_vm0, %v8104_v32  ;;  %6661 = vmatmul.msk.f32.gmra.mxu0 %vm1084_vm0, %v8104_v32 }
0x19ae   : > { %v4662_v31 = vmul.f32 0.5, %v4661_v34  ;;  %6668 = vmatmul.msk.f32.gmra.mxu1 %vm1084_vm0, %v8104_v32 }
0x19b0   : > { %v4663_v35 = vsub.f32 1.5, %v4662_v31 }
0x19b1   : > { %v7036_v36 = vpop.eup %7035 }
0x19b2   : > { %v4664_v38 = vmul.f32 %v7034_v20, %v4663_v35  ;;  %v4670_v14 = vmul.f32 %v7036_v36, %v4638_v30  ;;  %vm4676_vm3 = vweird.f32 %v7036_v36  ;;  %v6879_v30 = vld [vmem:[%s8434_s16 + $0x9] ss:$0 sm:$0xff] }
0x19b3   : > { %vm4677_vm5 = vmor %vm4675_vm4, %vm4676_vm3 }
0x19b4   : > { %v4668_v33 = vsel %vm4667_vm2, %v7034_v20, %v4664_v38  ;;  %v4671_v39 = vmul.f32 %v7036_v36, %v4670_v14 }
0x19b5   : > { %v4681_v40 = vmul.f32 %v4668_v33, %v8066_v42 }
0x19b6   : > { %v4672_v41 = vmul.f32 0.5, %v4671_v39 }
0x19b7   : > { %v4688_v6 = vmul.f32 %v8086_v8, %v4681_v40 }
0x19b8   : > { %v4673_v37 = vsub.f32 1.5, %v4672_v41 }
0x19b9   : > { %v8114_v43 = vadd.f32 %v6874_v11, %v4688_v6 }
0x19ba   : > { %v4674_v44 = vmul.f32 %v7036_v36, %v4673_v37 }
0x19bb   : > { %6655 = vmatmul.msk.f32.gmra.mxu3 %vm1084_vm0, %v8114_v43  ;;  %6662 = vmatmul.msk.f32.gmra.mxu0 %vm1084_vm0, %v8114_v43 }
0x19bc   : > { %v4678_v56 = vsel %vm4677_vm5, %v7036_v36, %v4674_v44  ;;  %6669 = vmatmul.msk.f32.gmra.mxu1 %vm1084_vm0, %v8114_v43 }
0x19bd   : > { %v4682_v42 = vmul.f32 %v4678_v56, %v8072_v45 }
0x19bf   : > { %v4689_v46 = vmul.f32 %v8086_v8, %v4682_v42 }
0x19c1   : > { %v8124_v47 = vadd.f32 %v6874_v11, %v4689_v46  ;;  %v6692_v11 = vld [vmem:[%s8428_s1 + $0x38] sm:$0xff]  ;;  %s8444_s1 = sld [smem:[#allocation19_spill]] }
0x19c3   : > { %6656 = vmatmul.msk.f32.gmra.mxu3 %vm1084_vm0, %v8124_v47  ;;  %6663 = vmatmul.msk.f32.gmra.mxu0 %vm1084_vm0, %v8124_v47 }
0x19c4   : > { %6670 = vmatmul.msk.f32.gmra.mxu1 %vm1084_vm0, %v8124_v47 }
0x19cc   : > { %6687 = vmatmul.msk.f32.vlgmr.msrb.gmra.mxu1 %vm1084_vm0, %v8091_v21 }
0x19d4   : > { %6688 = vmatmul.msk.f32.gmra.mxu1 %vm1084_vm0, %v8104_v32 }
0x19dc   : > { %6689 = vmatmul.msk.f32.gmra.mxu1 %vm1084_vm0, %v8114_v43 }
0x19e4   : > { %6690 = vmatmul.msk.f32.gmra.mxu1 %vm1084_vm0, %v8124_v47 }
0x1a22   : > { %v4771_v45 = vpop.f32.mrf.mxu0 }
0x1a23   : > { %v4808_v48 = vpop.f32.mrf.mxu1  ;;  %v4772_v60 = vadd.f32 %v6875_v49, %v4771_v45 }
0x1a24   : > { %v4809_v53 = vadd.f32 %v6876_v17, %v4808_v48 }
0x1a28   : > { %v4734_v57 = vpop.f32.mrf.mxu3 }
0x1a29   : > { %v4735_v61 = vadd.f32 %v6877_v58, %v4734_v57 }
0x1a2a   : > { %v4774_v50 = vpop.f32.mrf.mxu0 }
0x1a2b   : > { %v4775_v52 = vadd.f32 %v6875_v49, %v4774_v50  ;;  %v4811_v54 = vpop.f32.mrf.mxu1 }
0x1a2c   : > { %v4812_v55 = vadd.f32 %v6876_v17, %v4811_v54 }
0x1a2d   : > { %6671 = vmatpush.xpose.msk.msrb.mxu2 %vm1198_vm1, %v4775_v52 }
0x1a2e   : > { %4958 = vmatpush.msra.mxu3 %v4812_v55 }
0x1a30   : > { %4959 = vmatpush.msra.mxu3 %v4809_v53  ;;  %v4737_v62 = vpop.f32.mrf.mxu3 }
0x1a31   : > { %6672 = vmatpush.xpose.msk.msrb.mxu2 %vm1198_vm1, %v4772_v60  ;;  %v4738_v1 = vadd.f32 %v6877_v58, %v4737_v62 }
0x1a34   : > { %6673 = vmatmul.msk.f32.vlgmr.msrb.gmra.mxu2 %vm1198_vm1, %v4735_v61 }
0x1a38   : > { %v4777_v63 = vpop.f32.mrf.mxu0 }
0x1a39   : > { %v4814_v0 = vpop.f32.mrf.mxu1  ;;  %v4778_v9 = vadd.f32 %v6875_v49, %v4777_v63 }
0x1a3a   : > { %v4815_v5 = vadd.f32 %v6876_v17, %v4814_v0 }
0x1a3c   : > { %6674 = vmatmul.msk.f32.gmra.mxu2 %vm1198_vm1, %v4738_v1 }
0x1a3e   : > { %v4740_v10 = vpop.f32.mrf.mxu3 }
0x1a3f   : > { %v4741_v12 = vadd.f32 %v6877_v58, %v4740_v10 }
0x1a40   : > { %v4780_v4 = vpop.f32.mrf.mxu0 }
0x1a41   : > { %v4781_v59 = vadd.f32 %v6875_v49, %v4780_v4  ;;  %v4817_v3 = vpop.f32.mrf.mxu1 }
0x1a42   : > { %v4818_v8 = vadd.f32 %v6876_v17, %v4817_v3  ;;  %v6878_v3 = vld [vmem:[%s8434_s16 + $0x7] ss:$0 sm:$0xff] }
0x1a43   : > { %6675 = vmatpush.xpose.msk.msra.mxu2 %vm1198_vm1, %v4781_v59 }
0x1a44   : > { %4987 = vmatpush.msrb.mxu0 %v4818_v8 }
0x1a46   : > { %4988 = vmatpush.msrb.mxu0 %v4815_v5  ;;  %v4743_v19 = vpop.f32.mrf.mxu3 }
0x1a47   : > { %6676 = vmatpush.xpose.msk.msra.mxu2 %vm1198_vm1, %v4778_v9  ;;  %v4744_v18 = vadd.f32 %v6877_v58, %v4743_v19 }
0x1a49   : > { %v5023_v0 = vpop.f32.mrf.mxu1 }
0x1a4a   : > { %6677 = vmatmul.msk.f32.vlgmr.msra.gmra.mxu2 %vm1198_vm1, %v4741_v12  ;;  %v5024_v5 = vadd.f32 %v6878_v3, %v5023_v0 }
0x1a4b   : > { %5057 = vmatpush.msrb.mxu2 %v6692_v11 }
0x1a4d   : > { %5058 = vmatpush.msrb.mxu2 %v6691_v13 }
0x1a51   : > { %v5026_v11 = vpop.f32.mrf.mxu1 }
0x1a52   : > { %6678 = vmatmul.msk.f32.gmra.mxu2 %vm1198_vm1, %v4744_v18  ;;  %v5027_v12 = vadd.f32 %v6878_v3, %v5026_v11 }
0x1a59   : > { %v5029_v13 = vpop.f32.mrf.mxu1 }
0x1a5a   : > { %6694 = vmatmul.msk.f32.vlgmr.msrb.gmra.mxu2 %vm1084_vm0, %v8091_v21  ;;  %v5030_v19 = vadd.f32 %v6878_v3, %v5029_v13 }
0x1a61   : > { %v5032_v18 = vpop.f32.mrf.mxu1 }
0x1a62   : > { %6695 = vmatmul.msk.f32.gmra.mxu2 %vm1084_vm0, %v8104_v32 }
0x1a6a   : > { %6696 = vmatmul.msk.f32.gmra.mxu2 %vm1084_vm0, %v8114_v43 }
0x1a72   : > { %6697 = vmatmul.msk.f32.gmra.mxu2 %vm1084_vm0, %v8124_v47 }
0x1ab7   : > { %v4849_v7 = vpop.f32.mrf.mxu2 }
0x1ab8   : > { %v4890_v27 = vmul.f32 0.35355338, %v4849_v7  ;;  %v5033_v7 = vadd.f32 %v6878_v3, %v5032_v18 }
0x1aba   : > { %v4894_v29 = vsel %vm1084_vm0, %v4890_v27, -inf }
0x1abf   : > { %v4852_v2 = vpop.f32.mrf.mxu2 }
0x1ac0   : > { %v4891_v6 = vmul.f32 0.35355338, %v4852_v2  ;;  %v6699_v2 = vld [vmem:[%s8436_s0 + $0x38] sm:$0xff] }
0x1ac1   : > { %5094 = vmatpush.msrb.mxu3 %v6699_v2 }
0x1ac2   : > { %v4897_v46 = vsel %vm1084_vm0, %v4891_v6, -inf }
0x1acd   : > { %v4884_v23 = vpop.f32.mrf.mxu2 }
0x1ace   : > { %v4892_v24 = vmul.f32 0.35355338, %v4884_v23  ;;  %v6698_v23 = vld [vmem:[%s8436_s0 + $0x30] sm:$0xff]  ;;  %s8442_s0 = sld [smem:[#allocation18_spill]] }
0x1acf   : > { %5095 = vmatpush.msrb.mxu3 %v6698_v23 }
0x1ad0   : > { %v4900_v15 = vsel %vm1084_vm0, %v4892_v24, -inf }
0x1ad1   : > { %4901 = vmax.xlane.f32.xlu0 %v4900_v15 }
0x1ad5   : > { %v4887_v25 = vpop.f32.mrf.mxu2 }
0x1ad6   : > { %v4893_v22 = vmul.f32 0.35355338, %v4887_v25 }
0x1ad8   : > { %v4903_v26 = vsel %vm1084_vm0, %v4893_v22, -inf }
0x1ad9   : > { %4904 = vmax.xlane.f32.xlu1 %v4903_v26 }
0x1add   : > { %v5060_v20 = vpop.f32.mrf.mxu2 }
0x1ade   : > { %v5061_v31 = vadd.f32 %v6879_v30, %v5060_v20 }
0x1ae1   : > { %4895 = vmax.xlane.f32.xlu1 %v4894_v29 }
0x1ae5   : > { %v5063_v28 = vpop.f32.mrf.mxu2 }
0x1ae6   : > { %v5064_v34 = vadd.f32 %v6879_v30, %v5063_v28 }
0x1ae8   : > { %6705 = vmatpush.xpose.msk.msra.mxu0 %vm1198_vm1, %v5064_v34 }
0x1aec   : > { %6706 = vmatpush.xpose.msk.msra.mxu0 %vm1198_vm1, %v5061_v31 }
0x1aed   : > { %v5066_v17 = vpop.f32.mrf.mxu2 }
0x1aee   : > { %v5067_v62 = vadd.f32 %v6879_v30, %v5066_v17 }
0x1af5   : > { %v5069_v52 = vpop.f32.mrf.mxu2 }
0x1af6   : > { %v5070_v58 = vadd.f32 %v6879_v30, %v5069_v52 }
0x1b44   : > { %v4902_v35 = vpop.xlane.xlu0 %4901 }
0x1b45   : > { %v4908_v36 = vsub.f32 %v4892_v24, %v4902_v35  ;;  %v6683_v24 = vld [vmem:[%s8437_s26 + $0x10] sm:$0xff] }
0x1b47   : > { %v4914_v38 = vmul.f32 1.442695, %v4908_v36 }
0x1b49   : > { %7037 = vpow2.f32 %v4914_v38 }
0x1b4c   : > { %v4905_v14 = vpop.xlane.xlu1 %4904 }
0x1b4d   : > { %v4909_v33 = vsub.f32 %v4893_v22, %v4905_v14 }
0x1b4f   : > { %v7038_v39 = vpop.eup %7037  ;;  %v4916_v40 = vmul.f32 1.442695, %v4909_v33 }
0x1b50   : > { %v4924_v41 = vsel %vm1084_vm0, %v7038_v39, 0.0 }
0x1b51   : > { %7039 = vpow2.f32 %v4916_v40  ;;  %4925 = vadd.xlane.f32.xlu2 %v4924_v41 }
0x1b54   : > { %v4896_v37 = vpop.xlane.xlu1 %4895 }
0x1b55   : > { %v4906_v44 = vsub.f32 %v4890_v27, %v4896_v37 }
0x1b57   : > { %v7040_v56 = vpop.eup %7039  ;;  %v4910_v42 = vmul.f32 1.442695, %v4906_v44 }
0x1b58   : > { %v4927_v45 = vsel %vm1084_vm0, %v7040_v56, 0.0 }
0x1b59   : > { %7041 = vpow2.f32 %v4910_v42  ;;  %4898 = vmax.xlane.f32.xlu2 %v4897_v46  ;;  %4928 = vadd.xlane.f32.xlu0 %v4927_v45 }
0x1b5f   : > { %v7042_v48 = vpop.eup %7041 }
0x1b60   : > { %v4918_v49 = vsel %vm1084_vm0, %v7042_v48, 0.0 }
0x1b61   : > { %4919 = vadd.xlane.f32.xlu0 %v4918_v49 }
0x1bc4   : > { %v4926_v50 = vpop.xlane.xlu2 %4925 }
0x1bc5   : > { %7043 = vrcp.f32 %v4926_v50 }
0x1bcb   : > { %v7044_v54 = vpop.eup %7043 }
0x1bcc   : > { %v4936_v55 = vmul.f32 %v7044_v54, %v7038_v39  ;;  %v4899_v57 = vpop.xlane.xlu2 %4898  ;;  %v4929_v53 = vpop.xlane.xlu0 %4928 }
0x1bcd   : > { %v4907_v60 = vsub.f32 %v4891_v6, %v4899_v57  ;;  %7045 = vrcp.f32 %v4929_v53  ;;  %v6880_v57 = vld [vmem:[%s8434_s16 + $0xb] ss:$0 sm:$0xff] }
0x1bce   : > { %6681 = vmatmul.msk.f32.vlgmr.msrb.gmra.mxu0 %vm1084_vm0, %v4936_v55 }
0x1bcf   : > { %v4912_v61 = vmul.f32 1.442695, %v4907_v60  ;;  %6709 = vmatpush.xpose.msk.msrb.mxu0 %vm1198_vm1, %v5070_v58 }
0x1bd1   : > { %7047 = vpow2.f32 %v4912_v61 }
0x1bd3   : > { %v7046_v63 = vpop.eup %7045  ;;  %6710 = vmatpush.xpose.msk.msrb.mxu0 %vm1198_vm1, %v5067_v62 }
0x1bd4   : > { %v4920_v1 = vpop.xlane.xlu0 %4919  ;;  %v4937_v4 = vmul.f32 %v7046_v63, %v7040_v56 }
0x1bd5   : > { %7049 = vrcp.f32 %v4920_v1 }
0x1bd6   : > { %6682 = vmatmul.msk.f32.gmra.mxu0 %vm1084_vm0, %v4937_v4 }
0x1bd7   : > { %v7048_v59 = vpop.eup %7047 }
0x1bd8   : > { %v4921_v8 = vsel %vm1084_vm0, %v7048_v59, 0.0 }
0x1bd9   : > { %4922 = vadd.xlane.f32.xlu1 %v4921_v8 }
0x1bdb   : > { %v7050_v10 = vpop.eup %7049 }
0x1bdc   : > { %v4934_v9 = vmul.f32 %v7050_v10, %v7042_v48 }
0x1bde   : > { %6679 = vmatmul.msk.f32.vlgmr.msra.gmra.mxu3 %vm1084_vm0, %v4934_v9  ;;  %6707 = vmatmul.msk.f32.vlgmr.msra.gmra.mxu0 %vm1198_vm1, %v5024_v5 }
0x1bdf   : > { %5355 = vmatpush.msra.mxu0 %v6683_v24 }
0x1be6   : > { %6708 = vmatmul.msk.f32.gmra.mxu0 %vm1198_vm1, %v5027_v12 }
0x1bee   : > { %6711 = vmatmul.msk.f32.vlgmr.msrb.gmra.mxu0 %vm1198_vm1, %v5030_v19 }
0x1bf6   : > { %6712 = vmatmul.msk.f32.gmra.mxu0 %vm1198_vm1, %v5033_v7 }
0x1c4b   : > { %v4990_v15 = vpop.f32.mrf.mxu0 }
0x1c4c   : > { %v4923_v25 = vpop.xlane.xlu1 %4922 }
0x1c4d   : > { %7051 = vrcp.f32 %v4923_v25 }
0x1c53   : > { %v7052_v22 = vpop.eup %7051  ;;  %v4993_v26 = vpop.f32.mrf.mxu0 }
0x1c54   : > { %v4935_v27 = vmul.f32 %v7052_v22, %v7048_v59  ;;  %v6717_v22 = vld [vmem:[%s8437_s26 + $0x18] sm:$0xff] }
0x1c55   : > { %5314 = vmatpush.msra.mxu3 %v6717_v22 }
0x1c56   : > { %6680 = vmatmul.msk.f32.gmra.mxu3 %vm1084_vm0, %v4935_v27 }
0x1c5b   : > { %v5138_v20 = vpop.f32.mrf.mxu0 }
0x1c5c   : > { %v5179_v29 = vmul.f32 0.35355338, %v5138_v20 }
0x1c5e   : > { %6701 = vmatmul.msk.f32.vlgmr.msrb.gmra.mxu3 %vm1084_vm0, %v8091_v21  ;;  %v5183_v30 = vsel %vm1084_vm0, %v5179_v29, -inf }
0x1c5f   : > { %5184 = vmax.xlane.f32.xlu2 %v5183_v30 }
0x1c61   : > { %v4961_v28 = vpop.f32.mrf.mxu3 }
0x1c62   : > { %6722 = vmatmul.msk.f32.vlgmr.msra.gmra.mxu0 %vm1198_vm1, %v4961_v28 }
0x1c63   : > { %v5141_v34 = vpop.f32.mrf.mxu0 }
0x1c64   : > { %v5180_v31 = vmul.f32 0.35355338, %v5141_v34 }
0x1c66   : > { %6702 = vmatmul.msk.f32.gmra.mxu3 %vm1084_vm0, %v8104_v32  ;;  %v5186_v35 = vsel %vm1084_vm0, %v5180_v31, -inf }
0x1c67   : > { %5187 = vmax.xlane.f32.xlu0 %v5186_v35 }
0x1c6b   : > { %v5173_v36 = vpop.f32.mrf.mxu0 }
0x1c6c   : > { %v5181_v38 = vmul.f32 0.35355338, %v5173_v36 }
0x1c6e   : > { %6703 = vmatmul.msk.f32.gmra.mxu3 %vm1084_vm0, %v8114_v43  ;;  %v5189_v14 = vsel %vm1084_vm0, %v5181_v38, -inf }
0x1c6f   : > { %5190 = vmax.xlane.f32.xlu1 %v5189_v14 }
0x1c73   : > { %v5176_v33 = vpop.f32.mrf.mxu0 }
0x1c74   : > { %v5182_v39 = vmul.f32 0.35355338, %v5176_v33 }
0x1c76   : > { %6704 = vmatmul.msk.f32.gmra.mxu3 %vm1084_vm0, %v8124_v47  ;;  %v5192_v40 = vsel %vm1084_vm0, %v5182_v39, -inf }
0x1c77   : > { %5193 = vmax.xlane.f32.xlu2 %v5192_v40 }
0x1cd2   : > { %v5185_v41 = vpop.xlane.xlu2 %5184 }
0x1cd3   : > { %v5195_v6 = vsub.f32 %v5179_v29, %v5185_v41 }
0x1cd5   : > { %v5199_v37 = vmul.f32 1.442695, %v5195_v6 }
0x1cd7   : > { %7053 = vpow2.f32 %v5199_v37 }
0x1cd9   : > { %v4964_v44 = vpop.f32.mrf.mxu3 }
0x1cda   : > { %v5188_v56 = vpop.xlane.xlu0 %5187  ;;  %6723 = vmatmul.msk.f32.gmra.mxu0 %vm1198_vm1, %v4964_v44 }
0x1cdb   : > { %v5196_v42 = vsub.f32 %v5180_v31, %v5188_v56  ;;  %v6881_v31 = vld [vmem:[%s8438_s28 + $0x6] ss:$0 sm:$0xff] }
0x1cdd   : > { %v7054_v46 = vpop.eup %7053  ;;  %v5201_v45 = vmul.f32 1.442695, %v5196_v42 }
0x1cde   : > { %v5207_v48 = vsel %vm1084_vm0, %v7054_v46, 0.0 }
0x1cdf   : > { %7055 = vpow2.f32 %v5201_v45  ;;  %5208 = vadd.xlane.f32.xlu0 %v5207_v48  ;;  %v5357_v30 = vpop.f32.mrf.mxu0 }
0x1ce1   : > { %v5097_v49 = vpop.f32.mrf.mxu3 }
0x1ce2   : > { %6724 = vmatmul.msk.f32.gmra.mxu0 %vm1198_vm1, %v4990_v15  ;;  %v5191_v17 = vpop.xlane.xlu1 %5190  ;;  %v5098_v62 = vadd.f32 %v6880_v57, %v5097_v49 }
0x1ce3   : > { %v5197_v50 = vsub.f32 %v5181_v38, %v5191_v17 }
0x1ce5   : > { %v7056_v52 = vpop.eup %7055  ;;  %v5203_v54 = vmul.f32 1.442695, %v5197_v50 }
0x1ce6   : > { %v5210_v55 = vsel %vm1084_vm0, %v7056_v52, 0.0 }
0x1ce7   : > { %7057 = vpow2.f32 %v5203_v54  ;;  %5211 = vadd.xlane.f32.xlu1 %v5210_v55 }
0x1ce9   : > { %v5100_v53 = vpop.f32.mrf.mxu3 }
0x1cea   : > { %v5101_v58 = vadd.f32 %v6880_v57, %v5100_v53  ;;  %v5194_v60 = vpop.xlane.xlu2 %5193  ;;  %6725 = vmatmul.msk.f32.gmra.mxu0 %vm1198_vm1, %v4993_v26 }
0x1ceb   : > { %v5198_v61 = vsub.f32 %v5182_v39, %v5194_v60 }
0x1cec   : > { %5247 = vmatpush.msra.mxu1 %v5101_v58 }
0x1ced   : > { %v7058_v63 = vpop.eup %7057  ;;  %v5205_v0 = vmul.f32 1.442695, %v5198_v61 }
0x1cee   : > { %5248 = vmatpush.msra.mxu1 %v5098_v62  ;;  %v5213_v1 = vsel %vm1084_vm0, %v7058_v63, 0.0 }
0x1cef   : > { %7059 = vpow2.f32 %v5205_v0  ;;  %5214 = vadd.xlane.f32.xlu2 %v5213_v1 }
0x1cf1   : > { %v5103_v4 = vpop.f32.mrf.mxu3 }
0x1cf2   : > { %v5104_v5 = vadd.f32 %v6880_v57, %v5103_v4 }
0x1cf5   : > { %v7060_v59 = vpop.eup %7059 }
0x1cf6   : > { %v5216_v3 = vsel %vm1084_vm0, %v7060_v59, 0.0 }
0x1cf7   : > { %5217 = vadd.xlane.f32.xlu0 %v5216_v3 }
0x1cf9   : > { %v5106_v8 = vpop.f32.mrf.mxu3 }
0x1cfa   : > { %v5107_v10 = vadd.f32 %v6880_v57, %v5106_v8 }
0x1cfc   : > { %5276 = vmatpush.msra.mxu2 %v5107_v10 }
0x1cfe   : > { %5277 = vmatpush.msra.mxu2 %v5104_v5 }
0x1d52   : > { %v5209_v9 = vpop.xlane.xlu0 %5208 }
0x1d53   : > { %7061 = vrcp.f32 %v5209_v9  ;;  %v6730_v9 = vld [vmem:[%s8439_s7 + $0x18] sm:$0xff] }
0x1d54   : > { %5522 = vmatpush.msrb.mxu1 %v6730_v9 }
0x1d57   : > { %v5360_v14 = vpop.f32.mrf.mxu0 }
0x1d59   : > { %v7062_v11 = vpop.eup %7061 }
0x1d5a   : > { %v5223_v12 = vmul.f32 %v7062_v11, %v7054_v46  ;;  %v5212_v13 = vpop.xlane.xlu1 %5211  ;;  %v6729_v11 = vld [vmem:[%s8439_s7 + $0x10] sm:$0xff] }
0x1d5b   : > { %7063 = vrcp.f32 %v5212_v13  ;;  %5523 = vmatpush.msrb.mxu1 %v6729_v11 }
0x1d5c   : > { %6713 = vmatmul.msk.f32.vlgmr.msra.gmra.mxu1 %vm1084_vm0, %v5223_v12 }
0x1d5f   : > { %v5363_v37 = vpop.f32.mrf.mxu0 }
0x1d61   : > { %v7064_v19 = vpop.eup %7063 }
0x1d62   : > { %v5215_v18 = vpop.xlane.xlu2 %5214  ;;  %v5224_v7 = vmul.f32 %v7064_v19, %v7056_v52 }
0x1d63   : > { %7065 = vrcp.f32 %v5215_v18 }
0x1d64   : > { %6714 = vmatmul.msk.f32.gmra.mxu1 %vm1084_vm0, %v5224_v7 }
0x1d67   : > { %v5366_v45 = vpop.f32.mrf.mxu0 }
0x1d69   : > { %v7066_v2 = vpop.eup %7065 }
0x1d6a   : > { %v5225_v23 = vmul.f32 %v7066_v2, %v7058_v63  ;;  %v5218_v24 = vpop.xlane.xlu0 %5217 }
0x1d6b   : > { %7067 = vrcp.f32 %v5218_v24 }
0x1d6c   : > { %6715 = vmatmul.msk.f32.vlgmr.msra.gmra.mxu2 %vm1084_vm0, %v5225_v23 }
0x1d71   : > { %v7068_v15 = vpop.eup %7067 }
0x1d72   : > { %v5226_v25 = vmul.f32 %v7068_v15, %v7060_v59 }
0x1d74   : > { %6716 = vmatmul.msk.f32.gmra.mxu2 %vm1084_vm0, %v5226_v25 }
0x1dd9   : > { %v5250_v26 = vpop.f32.mrf.mxu1 }
0x1dda   : > { %6718 = vmatmul.msk.f32.vlgmr.msra.gmra.mxu3 %vm1198_vm1, %v5250_v26 }
0x1de1   : > { %v5253_v27 = vpop.f32.mrf.mxu1 }
0x1de2   : > { %6719 = vmatmul.msk.f32.gmra.mxu3 %vm1198_vm1, %v5253_v27 }
0x1def   : > { %v5279_v20 = vpop.f32.mrf.mxu2 }
0x1df0   : > { %6720 = vmatmul.msk.f32.gmra.mxu3 %vm1198_vm1, %v5279_v20 }
0x1df7   : > { %v5282_v29 = vpop.f32.mrf.mxu2 }
0x1df8   : > { %6721 = vmatmul.msk.f32.gmra.mxu3 %vm1198_vm1, %v5282_v29  ;;  %v6882_v29 = vld [vmem:[%s8438_s28 + $0x7] ss:$0 sm:$0xff] }
0x1e5d   : > { %v5316_v28 = vpop.f32.mrf.mxu3 }
0x1e5e   : > { %v5358_v34 = vadd.f32 %v5357_v30, %v5316_v28 }
0x1e60   : > { %v5369_v35 = vadd.f32 %v5358_v34, %v8091_v21 }
0x1e62   : > { %v5378_v36 = vadd.f32 %v6881_v31, %v5369_v35 }
0x1e64   : > { %v5386_v38 = vsel %vm1084_vm0, %v5378_v36, 0.0 }
0x1e65   : > { %5387 = vadd.xlane.f32.xlu1 %v5386_v38  ;;  %v5319_v33 = vpop.f32.mrf.mxu3 }
0x1e66   : > { %v5361_v39 = vadd.f32 %v5360_v14, %v5319_v33 }
0x1e68   : > { %v5370_v40 = vadd.f32 %v5361_v39, %v8104_v32 }
0x1e6a   : > { %v5379_v41 = vadd.f32 %v6881_v31, %v5370_v40 }
0x1e6c   : > { %v5389_v6 = vsel %vm1084_vm0, %v5379_v41, 0.0 }
0x1e6d   : > { %5390 = vadd.xlane.f32.xlu2 %v5389_v6 }
0x1e73   : > { %v5322_v44 = vpop.f32.mrf.mxu3 }
0x1e74   : > { %v5364_v56 = vadd.f32 %v5363_v37, %v5322_v44 }
0x1e76   : > { %v5371_v42 = vadd.f32 %v5364_v56, %v8114_v43 }
0x1e78   : > { %v5380_v46 = vadd.f32 %v6881_v31, %v5371_v42 }
0x1e7a   : > { %v5392_v21 = vsel %vm1084_vm0, %v5380_v46, 0.0 }
0x1e7b   : > { %5393 = vadd.xlane.f32.xlu0 %v5392_v21  ;;  %v5325_v48 = vpop.f32.mrf.mxu3 }
0x1e7c   : > { %v5367_v49 = vadd.f32 %v5366_v45, %v5325_v48 }
0x1e7e   : > { %v5372_v17 = vadd.f32 %v5367_v49, %v8124_v47 }
0x1e80   : > { %v5381_v50 = vadd.f32 %v6881_v31, %v5372_v17  ;;  %v6883_v31 = vld [vmem:[%s8438_s28 + $0x8] ss:$0 sm:$0xff] }
0x1e82   : > { %v5395_v32 = vsel %vm1084_vm0, %v5381_v50, 0.0 }
0x1e83   : > { %5396 = vadd.xlane.f32.xlu1 %v5395_v32 }
0x1ed8   : > { %v5388_v52 = vpop.xlane.xlu1 %5387 }
0x1ed9   : > { %v5398_v54 = vmul.f32 %v5388_v52, %v7470_v16 }
0x1edb   : > { %v5402_v55 = vsub.f32 %v5378_v36, %v5398_v54 }
0x1edd   : > { %v5406_v57 = vmul.f32 %v5402_v55, %v5402_v55 }
0x1edf   : > { %v5410_v43 = vsel %vm1084_vm0, %v5406_v57, 0.0 }
0x1ee0   : > { %v5391_v53 = vpop.xlane.xlu2 %5390  ;;  %5411 = vadd.xlane.f32.xlu2 %v5410_v43 }
0x1ee1   : > { %v5399_v58 = vmul.f32 %v5391_v53, %v7470_v16 }
0x1ee3   : > { %v5403_v60 = vsub.f32 %v5379_v41, %v5399_v58  ;;  %v6739_v41 = vld [vmem:[%s8440_s15 + $0x38] sm:$0xff] }
0x1ee4   : > { %5570 = vmatpush.msrb.mxu2 %v6739_v41 }
0x1ee5   : > { %v5407_v61 = vmul.f32 %v5403_v60, %v5403_v60 }
0x1ee7   : > { %v5413_v47 = vsel %vm1084_vm0, %v5407_v61, 0.0 }
0x1ee8   : > { %5414 = vadd.xlane.f32.xlu0 %v5413_v47 }
0x1eee   : > { %v5394_v62 = vpop.xlane.xlu0 %5393 }
0x1eef   : > { %v5400_v63 = vmul.f32 %v5394_v62, %v7470_v16 }
0x1ef1   : > { %v8230_v0 = vsub.f32 %v5380_v46, %v5400_v63 }
0x1ef3   : > { %v5408_v1 = vmul.f32 %v8230_v0, %v8230_v0 }
0x1ef5   : > { %v5416_v4 = vsel %vm1084_vm0, %v5408_v1, 0.0 }
0x1ef6   : > { %5417 = vadd.xlane.f32.xlu1 %v5416_v4  ;;  %v5397_v59 = vpop.xlane.xlu1 %5396 }
0x1ef7   : > { %v5401_v3 = vmul.f32 %v5397_v59, %v7470_v16 }
0x1ef9   : > { %v8236_v8 = vsub.f32 %v5381_v50, %v5401_v3  ;;  %v6737_v3 = vld [vmem:[%s8440_s15 + $0x28] sm:$0xff] }
0x1efb   : > { %v5409_v10 = vmul.f32 %v8236_v8, %v8236_v8 }
0x1efd   : > { %v5419_v5 = vsel %vm1084_vm0, %v5409_v10, 0.0  ;;  %v6736_v10 = vld [vmem:[%s8440_s15 + $0x20] sm:$0xff] }
0x1efe   : > { %5420 = vadd.xlane.f32.xlu2 %v5419_v5  ;;  %v6884_v5 = vld [vmem:[%s8441_s18 + $0x1] ss:$0 sm:$0xff] }
0x1f53   : > { %v5412_v12 = vpop.xlane.xlu2 %5411 }
0x1f54   : > { %v5422_v13 = vmul.f32 %v5412_v12, %v7470_v16 }
0x1f56   : > { %v5426_v19 = vadd.f32 1e-05, %v5422_v13 }
0x1f58   : > { %7069 = vrsqrt.f32 %v5426_v19  ;;  %vm5436_vm7 = vweird.f32 %v5426_v19 }
0x1f5b   : > { %v5415_v18 = vpop.xlane.xlu0 %5414 }
0x1f5c   : > { %v5423_v7 = vmul.f32 %v5415_v18, %v7470_v16 }
0x1f5e   : > { %v7070_v2 = vpop.eup %7069  ;;  %v5427_v23 = vadd.f32 1e-05, %v5423_v7 }
0x1f5f   : > { %v5431_v24 = vmul.f32 %v7070_v2, %v5426_v19  ;;  %vm5437_vm6 = vweird.f32 %v7070_v2 }
0x1f60   : > { %7071 = vrsqrt.f32 %v5427_v23  ;;  %vm5438_vm8 = vmor %vm5436_vm7, %vm5437_vm6  ;;  %vm5446_vm10 = vweird.f32 %v5427_v23 }
0x1f61   : > { %v5432_v15 = vmul.f32 %v7070_v2, %v5431_v24 }
0x1f63   : > { %v5433_v25 = vmul.f32 0.5, %v5432_v15 }
0x1f65   : > { %v5434_v22 = vsub.f32 1.5, %v5433_v25  ;;  %v6885_v25 = vld [vmem:[%s8438_s28 + $0x9] ss:$0 sm:$0xff] }
0x1f66   : > { %v7072_v26 = vpop.eup %7071 }
0x1f67   : > { %v5435_v27 = vmul.f32 %v7070_v2, %v5434_v22  ;;  %v5441_v20 = vmul.f32 %v7072_v26, %v5427_v23  ;;  %vm5447_vm9 = vweird.f32 %v7072_v26 }
0x1f68   : > { %vm5448_vm11 = vmor %vm5446_vm10, %vm5447_vm9 }
0x1f69   : > { %v5439_v30 = vsel %vm5438_vm8, %v7070_v2, %v5435_v27  ;;  %v5442_v28 = vmul.f32 %v7072_v26, %v5441_v20  ;;  %v5418_v34 = vpop.xlane.xlu1 %5417 }
0x1f6a   : > { %v5470_v35 = vmul.f32 %v5439_v30, %v5402_v55  ;;  %v5424_v36 = vmul.f32 %v5418_v34, %v7470_v16 }
0x1f6b   : > { %v5443_v38 = vmul.f32 0.5, %v5442_v28 }
0x1f6c   : > { %v5477_v14 = vmul.f32 %v6882_v29, %v5470_v35  ;;  %v5428_v33 = vadd.f32 1e-05, %v5424_v36 }
0x1f6d   : > { %v5444_v39 = vsub.f32 1.5, %v5443_v38 }
0x1f6e   : > { %v8248_v40 = vadd.f32 %v6883_v31, %v5477_v14  ;;  %7073 = vrsqrt.f32 %v5428_v33  ;;  %vm5456_vm13 = vweird.f32 %v5428_v33 }
0x1f6f   : > { %v5445_v6 = vmul.f32 %v7072_v26, %v5444_v39 }
0x1f70   : > { %6732 = vmatmul.msk.f32.vlgmr.msrb.gmra.mxu1 %vm1084_vm0, %v8248_v40 }
0x1f71   : > { %v5449_v37 = vsel %vm5448_vm11, %v7072_v26, %v5445_v6  ;;  %v5421_v44 = vpop.xlane.xlu2 %5420 }
0x1f72   : > { %v5471_v56 = vmul.f32 %v5449_v37, %v5403_v60  ;;  %v5425_v42 = vmul.f32 %v5421_v44, %v7470_v16 }
0x1f74   : > { %v7074_v46 = vpop.eup %7073  ;;  %v5429_v21 = vadd.f32 1e-05, %v5425_v42  ;;  %v5478_v45 = vmul.f32 %v6882_v29, %v5471_v56 }
0x1f75   : > { %v5451_v48 = vmul.f32 %v7074_v46, %v5428_v33  ;;  %vm5457_vm12 = vweird.f32 %v7074_v46 }
0x1f76   : > { %7075 = vrsqrt.f32 %v5429_v21  ;;  %v5485_v49 = vadd.f32 %v6883_v31, %v5478_v45  ;;  %vm5458_vm2 = vmor %vm5456_vm13, %vm5457_vm12  ;;  %vm5466_vm4 = vweird.f32 %v5429_v21 }
0x1f77   : > { %v5452_v17 = vmul.f32 %v7074_v46, %v5451_v48 }
0x1f78   : > { %6733 = vmatmul.msk.f32.gmra.mxu1 %vm1084_vm0, %v5485_v49 }
0x1f79   : > { %v5453_v50 = vmul.f32 0.5, %v5452_v17 }
0x1f7b   : > { %v5454_v32 = vsub.f32 1.5, %v5453_v50 }
0x1f7c   : > { %v7076_v52 = vpop.eup %7075 }
0x1f7d   : > { %v5455_v54 = vmul.f32 %v7074_v46, %v5454_v32  ;;  %v5461_v55 = vmul.f32 %v7076_v52, %v5429_v21  ;;  %vm5467_vm3 = vweird.f32 %v7076_v52 }
0x1f7e   : > { %vm5468_vm5 = vmor %vm5466_vm4, %vm5467_vm3 }
0x1f7f   : > { %v5459_v57 = vsel %vm5458_vm2, %v7074_v46, %v5455_v54  ;;  %v5462_v43 = vmul.f32 %v7076_v52, %v5461_v55 }
0x1f80   : > { %v5472_v53 = vmul.f32 %v5459_v57, %v8230_v0  ;;  %v6738_v0 = vld [vmem:[%s8440_s15 + $0x30] sm:$0xff] }
0x1f81   : > { %v5463_v58 = vmul.f32 0.5, %v5462_v43  ;;  %5571 = vmatpush.msrb.mxu2 %v6738_v0 }
0x1f82   : > { %v5479_v60 = vmul.f32 %v6882_v29, %v5472_v53 }
0x1f83   : > { %v5464_v61 = vsub.f32 1.5, %v5463_v58  ;;  %5572 = vmatpush.msrb.mxu2 %v6737_v3  ;;  %v5707_v58 = vld [vmem:[%s8442_s0 + $0x8] sm:$0xff] }
0x1f84   : > { %v5486_v47 = vadd.f32 %v6883_v31, %v5479_v60  ;;  %5738 = vmatpush.msrb.mxu3 %v5707_v58  ;;  %v5706_v60 = vld [vmem:[%s8442_s0] sm:$0xff]  ;;  %s8443_s0 = sld [smem:[#allocation20_spill]] }
0x1f85   : > { %v5465_v62 = vmul.f32 %v7076_v52, %v5464_v61  ;;  %5573 = vmatpush.msrb.mxu2 %v6736_v10 }
0x1f86   : > { %6734 = vmatmul.msk.f32.gmra.mxu1 %vm1084_vm0, %v5486_v47  ;;  %5739 = vmatpush.msrb.mxu3 %v5706_v60 }
0x1f87   : > { %v5469_v63 = vsel %vm5468_vm5, %v7076_v52, %v5465_v62 }
0x1f88   : > { %v5473_v1 = vmul.f32 %v5469_v63, %v8236_v8 }
0x1f8a   : > { %v5480_v4 = vmul.f32 %v6882_v29, %v5473_v1  ;;  %v6764_v58 = vld [vmem:[%s8443_s0 + $0x38] sm:$0xff] }
0x1f8b   : > { %v6772_v60 = vld [vmem:[%s8443_s0 + $0x58] sm:$0xff] }
0x1f8c   : > { %v5487_v59 = vadd.f32 %v6883_v31, %v5480_v4  ;;  %6092 = vmatpush.msra.mxu3 %v6772_v60 }
0x1f8e   : > { %6735 = vmatmul.msk.f32.gmra.mxu1 %vm1084_vm0, %v5487_v59 }
0x1fed   : > { %v5525_v9 = vpop.f32.mrf.mxu1 }
0x1fee   : > { %v5526_v11 = vadd.f32 %v6884_v5, %v5525_v9 }
0x1ff0   : > { %v5537_v12 = vmax.f32 %v5526_v11, 0.0 }
0x1ff2   : > { %6740 = vmatmul.msk.f32.vlgmr.msrb.gmra.mxu2 %vm1927_vm15, %v5537_v12 }
0x1ff5   : > { %v5528_v13 = vpop.f32.mrf.mxu1 }
0x1ff6   : > { %v5529_v19 = vadd.f32 %v6884_v5, %v5528_v13  ;;  %v6886_v13 = vld [vmem:[%s8438_s28 + $0xa] ss:$0 sm:$0xff] }
0x1ff8   : > { %v5538_v8 = vmax.f32 %v5529_v19, 0.0 }
0x1ffa   : > { %6741 = vmatmul.msk.f32.gmra.mxu2 %vm1927_vm15, %v5538_v8 }
0x2003   : > { %v5531_v18 = vpop.f32.mrf.mxu1 }
0x2004   : > { %v5532_v7 = vadd.f32 %v6884_v5, %v5531_v18 }
0x2006   : > { %v5539_v2 = vmax.f32 %v5532_v7, 0.0  ;;  %v6887_v7 = vld [vmem:[%s8438_s28 + $0xb] ss:$0 sm:$0xff] }
0x2008   : > { %6742 = vmatmul.msk.f32.gmra.mxu2 %vm1927_vm15, %v5539_v2 }
0x200b   : > { %v5534_v23 = vpop.f32.mrf.mxu1 }
0x200c   : > { %v5535_v24 = vadd.f32 %v6884_v5, %v5534_v23 }
0x200e   : > { %v5540_v15 = vmax.f32 %v5535_v24, 0.0 }
0x2010   : > { %6743 = vmatmul.msk.f32.gmra.mxu2 %vm1927_vm15, %v5540_v15 }
0x2075   : > { %v5575_v22 = vpop.f32.mrf.mxu2 }
0x2076   : > { %v5587_v26 = vadd.f32 %v5575_v22, %v8248_v40 }
0x2078   : > { %v5596_v27 = vadd.f32 %v6885_v25, %v5587_v26 }
0x207a   : > { %v5604_v20 = vsel %vm1084_vm0, %v5596_v27, 0.0 }
0x207b   : > { %5605 = vadd.xlane.f32.xlu0 %v5604_v20 }
0x207d   : > { %v5578_v29 = vpop.f32.mrf.mxu2 }
0x207e   : > { %v5588_v30 = vadd.f32 %v5578_v29, %v5485_v49 }
0x2080   : > { %v5597_v28 = vadd.f32 %v6885_v25, %v5588_v30 }
0x2082   : > { %v5607_v34 = vsel %vm1084_vm0, %v5597_v28, 0.0 }
0x2083   : > { %5608 = vadd.xlane.f32.xlu1 %v5607_v34 }
0x208b   : > { %v5581_v31 = vpop.f32.mrf.mxu2 }
0x208c   : > { %v5589_v35 = vadd.f32 %v5581_v31, %v5486_v47 }
0x208e   : > { %v5598_v36 = vadd.f32 %v6885_v25, %v5589_v35 }
0x2090   : > { %v5610_v38 = vsel %vm1084_vm0, %v5598_v36, 0.0 }
0x2091   : > { %5611 = vadd.xlane.f32.xlu2 %v5610_v38 }
0x2093   : > { %v5584_v14 = vpop.f32.mrf.mxu2 }
0x2094   : > { %v5590_v33 = vadd.f32 %v5584_v14, %v5487_v59 }
0x2096   : > { %v5599_v39 = vadd.f32 %v6885_v25, %v5590_v33 }
0x2098   : > { %v5613_v40 = vsel %vm1084_vm0, %v5599_v39, 0.0 }
0x2099   : > { %5614 = vadd.xlane.f32.xlu0 %v5613_v40 }
0x20ee   : > { %v5606_v41 = vpop.xlane.xlu0 %5605 }
0x20ef   : > { %v5616_v6 = vmul.f32 %v5606_v41, %v7470_v16 }
0x20f1   : > { %v5620_v37 = vsub.f32 %v5596_v27, %v5616_v6 }
0x20f3   : > { %v5624_v44 = vmul.f32 %v5620_v37, %v5620_v37 }
0x20f5   : > { %v5628_v56 = vsel %vm1084_vm0, %v5624_v44, 0.0 }
0x20f6   : > { %5629 = vadd.xlane.f32.xlu1 %v5628_v56  ;;  %v5609_v42 = vpop.xlane.xlu1 %5608 }
0x20f7   : > { %v5617_v46 = vmul.f32 %v5609_v42, %v7470_v16 }
0x20f9   : > { %v5621_v21 = vsub.f32 %v5597_v28, %v5617_v46 }
0x20fb   : > { %v5625_v45 = vmul.f32 %v5621_v21, %v5621_v21 }
0x20fd   : > { %v5631_v48 = vsel %vm1084_vm0, %v5625_v45, 0.0 }
0x20fe   : > { %5632 = vadd.xlane.f32.xlu2 %v5631_v48 }
0x2104   : > { %v5612_v49 = vpop.xlane.xlu2 %5611 }
0x2105   : > { %v5618_v17 = vmul.f32 %v5612_v49, %v7470_v16 }
0x2107   : > { %v8278_v50 = vsub.f32 %v5598_v36, %v5618_v17 }
0x2109   : > { %v5626_v32 = vmul.f32 %v8278_v50, %v8278_v50 }
0x210b   : > { %v5634_v52 = vsel %vm1084_vm0, %v5626_v32, 0.0  ;;  %v6751_v32 = vld [vmem:[%s8443_s0 + $0x8] sm:$0xff] }
0x210c   : > { %5635 = vadd.xlane.f32.xlu0 %v5634_v52  ;;  %v5615_v54 = vpop.xlane.xlu0 %5614  ;;  %v5765_v52 = vld [vmem:[%s8443_s0] sm:$0xff]  ;;  %5789 = vmatpush.msrb.mxu0 %v6751_v32 }
0x210d   : > { %v5619_v55 = vmul.f32 %v5615_v54, %v7470_v16  ;;  %v6758_v54 = vld [vmem:[%s8443_s0 + $0x20] sm:$0xff]  ;;  %5813 = vmatpush.msra.mxu1 %v5765_v52 }
0x210e   : > { %5896 = vmatpush.msra.mxu2 %v6758_v54 }
0x210f   : > { %v8284_v57 = vsub.f32 %v5599_v39, %v5619_v55  ;;  %v6754_v55 = vld [vmem:[%s8443_s0 + $0x10] sm:$0xff] }
0x2110   : > { %5840 = vmatpush.msra.mxu0 %v6754_v55  ;;  %5980 = vmatpush.msrb.mxu2 %v6764_v58 }
0x2111   : > { %v5627_v43 = vmul.f32 %v8284_v57, %v8284_v57 }
0x2113   : > { %v5637_v53 = vsel %vm1084_vm0, %v5627_v43, 0.0 }
0x2114   : > { %5638 = vadd.xlane.f32.xlu1 %v5637_v53  ;;  %v6756_v53 = vld [vmem:[%s8443_s0 + $0x18] sm:$0xff] }
0x2115   : > { %5868 = vmatpush.msrb.mxu1 %v6756_v53 }
0x2169   : > { %v5630_v61 = vpop.xlane.xlu1 %5629 }
0x216a   : > { %v5640_v47 = vmul.f32 %v5630_v61, %v7470_v16  ;;  %v6780_v61 = vld [vmem:[%s8443_s0 + $0x78] sm:$0xff] }
0x216c   : > { %v5644_v62 = vadd.f32 1e-05, %v5640_v47 }
0x216e   : > { %7077 = vrsqrt.f32 %v5644_v62  ;;  %vm5654_vm7 = vweird.f32 %v5644_v62 }
0x2171   : > { %v5633_v63 = vpop.xlane.xlu2 %5632 }
0x2172   : > { %v5641_v1 = vmul.f32 %v5633_v63, %v7470_v16 }
0x2174   : > { %v7078_v4 = vpop.eup %7077  ;;  %v5645_v59 = vadd.f32 1e-05, %v5641_v1 }
0x2175   : > { %v5649_v0 = vmul.f32 %v7078_v4, %v5644_v62  ;;  %vm5655_vm6 = vweird.f32 %v7078_v4 }
0x2176   : > { %7079 = vrsqrt.f32 %v5645_v59  ;;  %vm5656_vm8 = vmor %vm5654_vm7, %vm5655_vm6  ;;  %vm5664_vm10 = vweird.f32 %v5645_v59 }
0x2177   : > { %v5650_v3 = vmul.f32 %v7078_v4, %v5649_v0 }
0x2179   : > { %v5651_v10 = vmul.f32 0.5, %v5650_v3 }
0x217b   : > { %v5652_v5 = vsub.f32 1.5, %v5651_v10 }
0x217c   : > { %v7080_v9 = vpop.eup %7079 }
0x217d   : > { %v5653_v11 = vmul.f32 %v7078_v4, %v5652_v5  ;;  %v5659_v12 = vmul.f32 %v7080_v9, %v5645_v59  ;;  %vm5665_vm9 = vweird.f32 %v7080_v9 }
0x217e   : > { %vm5666_vm11 = vmor %vm5664_vm10, %vm5665_vm9 }
0x217f   : > { %v5657_v19 = vsel %vm5656_vm8, %v7078_v4, %v5653_v11  ;;  %v5660_v8 = vmul.f32 %v7080_v9, %v5659_v12  ;;  %v5636_v18 = vpop.xlane.xlu0 %5635 }
0x2180   : > { %v5688_v2 = vmul.f32 %v5657_v19, %v5620_v37  ;;  %v5642_v23 = vmul.f32 %v5636_v18, %v7470_v16  ;;  %v6762_v18 = vld [vmem:[%s8443_s0 + $0x30] sm:$0xff] }
0x2181   : > { %v5661_v24 = vmul.f32 0.5, %v5660_v8 }
0x2182   : > { %v5695_v15 = vmul.f32 %v6886_v13, %v5688_v2  ;;  %v5646_v25 = vadd.f32 1e-05, %v5642_v23 }
0x2183   : > { %v5662_v22 = vsub.f32 1.5, %v5661_v24 }
0x2184   : > { %v5702_v26 = vadd.f32 %v6887_v7, %v5695_v15  ;;  %7081 = vrsqrt.f32 %v5646_v25  ;;  %vm5674_vm13 = vweird.f32 %v5646_v25 }
0x2185   : > { %v5663_v27 = vmul.f32 %v7080_v9, %v5662_v22 }
0x2186   : > { %6747 = vmatmul.msk.f32.vlgmr.msrb.gmra.mxu3 %vm1084_vm0, %v5702_v26 }
0x2187   : > { %v5667_v20 = vsel %vm5666_vm11, %v7080_v9, %v5663_v27  ;;  %v5639_v29 = vpop.xlane.xlu1 %5638  ;;  %6204 = vmatpush.msrb.mxu3 %v6780_v61  ;;  %v6760_v9 = vld [vmem:[%s8443_s0 + $0x28] sm:$0xff] }
0x2188   : > { %v5689_v30 = vmul.f32 %v5667_v20, %v5621_v21  ;;  %v5643_v28 = vmul.f32 %v5639_v29, %v7470_v16 }
0x218a   : > { %v7082_v34 = vpop.eup %7081  ;;  %v5647_v31 = vadd.f32 1e-05, %v5643_v28  ;;  %v5696_v35 = vmul.f32 %v6886_v13, %v5689_v30 }
0x218b   : > { %v5669_v36 = vmul.f32 %v7082_v34, %v5646_v25  ;;  %vm5675_vm12 = vweird.f32 %v7082_v34 }
0x218c   : > { %7083 = vrsqrt.f32 %v5647_v31  ;;  %v5703_v38 = vadd.f32 %v6887_v7, %v5696_v35  ;;  %vm5676_vm2 = vmor %vm5674_vm13, %vm5675_vm12  ;;  %vm5684_vm4 = vweird.f32 %v5647_v31 }
0x218d   : > { %v5670_v14 = vmul.f32 %v7082_v34, %v5669_v36 }
0x218e   : > { %6748 = vmatmul.msk.f32.gmra.mxu3 %vm1084_vm0, %v5703_v38 }
0x218f   : > { %v5671_v33 = vmul.f32 0.5, %v5670_v14  ;;  %v6768_v14 = vld [vmem:[%s8443_s0 + $0x48] sm:$0xff] }
0x2191   : > { %v5672_v39 = vsub.f32 1.5, %v5671_v33 }
0x2192   : > { %v7084_v40 = vpop.eup %7083 }
0x2193   : > { %v5673_v41 = vmul.f32 %v7082_v34, %v5672_v39  ;;  %v5679_v6 = vmul.f32 %v7084_v40, %v5647_v31  ;;  %vm5685_vm3 = vweird.f32 %v7084_v40 }
0x2194   : > { %vm5686_vm5 = vmor %vm5684_vm4, %vm5685_vm3 }
0x2195   : > { %v5677_v37 = vsel %vm5676_vm2, %v7082_v34, %v5673_v41  ;;  %v5680_v44 = vmul.f32 %v7084_v40, %v5679_v6  ;;  %v6766_v34 = vld [vmem:[%s8443_s0 + $0x40] sm:$0xff]  ;;  %v6778_v41 = vld [vmem:[%s8443_s0 + $0x70] sm:$0xff] }
0x2196   : > { %v5690_v16 = vmul.f32 %v5677_v37, %v8278_v50 }
0x2197   : > { %v5681_v56 = vmul.f32 0.5, %v5680_v44 }
0x2198   : > { %v5697_v42 = vmul.f32 %v6886_v13, %v5690_v16 }
0x2199   : > { %v5682_v46 = vsub.f32 1.5, %v5681_v56 }
0x219a   : > { %v5704_v21 = vadd.f32 %v6887_v7, %v5697_v42  ;;  %v6774_v42 = vld [vmem:[%s8443_s0 + $0x60] sm:$0xff] }
0x219b   : > { %v5683_v45 = vmul.f32 %v7084_v40, %v5682_v46 }
0x219c   : > { %6749 = vmatmul.msk.f32.gmra.mxu3 %vm1084_vm0, %v5704_v21 }
0x219d   : > { %v5687_v48 = vsel %vm5686_vm5, %v7084_v40, %v5683_v45 }
0x219e   : > { %v5691_v49 = vmul.f32 %v5687_v48, %v8284_v57  ;;  %v6888_v57 = vld [vmem:[%s8444_s1] ss:$0 sm:$0xff]  ;;  %s8445_s1 = sld [smem:[#allocation8_spill]] }
0x21a0   : > { %v5698_v17 = vmul.f32 %v6886_v13, %v5691_v49  ;;  %v6776_v49 = vld [vmem:[%s8443_s0 + $0x68] sm:$0xff] }
0x21a2   : > { %v5705_v50 = vadd.f32 %v6887_v7, %v5698_v17  ;;  %v6770_v7 = vld [vmem:[%s8443_s0 + $0x50] sm:$0xff]  ;;  %s7133_s0 = smov 32  }
0x21a4   : > { %6750 = vmatmul.msk.f32.gmra.mxu3 %vm1084_vm0, %v5705_v50 }
0x2209   : > { %v5741_v43 = vpop.f32.mrf.mxu3 }
0x220a   : > { %v5742_v62 = vadd.f32 %v6888_v57, %v5741_v43 }
0x220c   : > { %v5757_v63 = vmul.f32 0.01, %v5742_v62  ;;  %vm5753_vm0 = vcmp.ge.f32.partialorder %v5742_v62, 0.0 }
0x220e   : > { %v8312_v4 = vsel %vm5753_vm0, %v5742_v62, %v5757_v63 }
0x220f   : > { %v5770_v10 = vrot.slane %v8312_v4, 1  ;;  %v5876_v13 = vrot.slane %v8312_v4, 4  ;;  %v5820_v27 = vrot.slane %v8312_v4, 2  ;;  %v5848_v28 = vrot.slane %v8312_v4, 3 }
0x2210   : > { %v5960_v35 = vrot.slane %v8312_v4, 7  ;;  %v5904_v37 = vrot.slane %v8312_v4, 5  ;;  %v5932_v21 = vrot.slane %v8312_v4, 6 }
0x2211   : > { %v5744_v47 = vpop.f32.mrf.mxu3 }
0x2212   : > { %v5745_v0 = vadd.f32 %v6888_v57, %v5744_v47 }
0x2214   : > { %v5758_v8 = vmul.f32 0.01, %v5745_v0  ;;  %vm5754_vm7 = vcmp.ge.f32.partialorder %v5745_v0, 0.0 }
0x2216   : > { %v8326_v22 = vsel %vm5754_vm7, %v5745_v0, %v5758_v8  ;;  %v6218_v8 = vld [vmem:[%s7307_s4] sm:$0xff] }
0x2217   : > { %v6072_v36 = vrot.slane %v8326_v22, 3  ;;  %v6044_v45 = vrot.slane %v8326_v22, 2  ;;  %v6184_v48 = vrot.slane %v8326_v22, 7  ;;  %v6017_v43 = vrot.slane %v8326_v22, 1 }
0x2218   : > { %v6156_v53 = vrot.slane %v8326_v22, 6  ;;  %v6100_v61 = vrot.slane %v8326_v22, 4  ;;  %v6128_v63 = vrot.slane %v8326_v22, 5 }
0x221f   : > { %v5747_v1 = vpop.f32.mrf.mxu3 }
0x2220   : > { %v5748_v59 = vadd.f32 %v6888_v57, %v5747_v1 }
0x2222   : > { %vm5755_vm6 = vcmp.ge.f32.partialorder %v5748_v59, 0.0  ;;  %v5759_v3 = vmul.f32 0.01, %v5748_v59 }
0x2224   : > { %v5763_v5 = vsel %vm5755_vm6, %v5748_v59, %v5759_v3 }
0x2225   : > { %v5771_v11 = vsel %vm3162_vm14, %v5763_v5, %v5770_v10  ;;  %v5794_v12 = vrot.slane %v5763_v5, 7  ;;  %v5877_v19 = vrot.slane %v5763_v5, 3  ;;  %v5821_v25 = vrot.slane %v5763_v5, 1 }
0x2226   : > { %6752 = vmatmul.msk.f32.vlgmr.msrb.gmra.mxu0 %vm1198_vm1, %v5771_v11  ;;  %v5849_v20 = vrot.slane %v5763_v5, 2  ;;  %v5961_v29 = vrot.slane %v5763_v5, 6  ;;  %v5905_v6 = vrot.slane %v5763_v5, 4  ;;  %v5933_v44 = vrot.slane %v5763_v5, 5  ;;  %v6221_v5 = vld [vmem:[%s7307_s4 + $0x18] sm:$0xff] }
0x2227   : > { %v5750_v2 = vpop.f32.mrf.mxu3  ;;  %v5795_v23 = vsel %vm3162_vm14, %v5794_v12, %v8312_v4  ;;  %v5878_v24 = vsel %vm3162_vm14, %v5877_v19, %v5876_v13  ;;  %5924 = vmatpush.msrb.mxu0 %v6760_v9  ;;  %v5822_v31 = vsel %vm3162_vm14, %v5821_v25, %v5820_v27  ;;  %v6220_v12 = vld [vmem:[%s7307_s4 + $0x10] sm:$0xff]  ;;  %v6219_v19 = vld [vmem:[%s7307_s4 + $0x8] sm:$0xff] }
0x2228   : > { %v5751_v15 = vadd.f32 %v6888_v57, %v5750_v2  ;;  %6753 = vmatmul.msk.f32.vlgmr.msra.gmra.mxu1 %vm1198_vm1, %v5795_v23  ;;  %6759 = vmatmul.msk.f32.vlgmr.msra.gmra.mxu2 %vm1198_vm1, %v5878_v24  ;;  %v5850_v33 = vsel %vm3162_vm14, %v5849_v20, %v5848_v28  ;;  %v5962_v39 = vsel %vm3162_vm14, %v5961_v29, %v5960_v35 }
0x2229   : > { %5952 = vmatpush.msra.mxu1 %v6762_v18  ;;  %6064 = vmatpush.msra.mxu2 %v6770_v7  ;;  %v5906_v46 = vsel %vm3162_vm14, %v5905_v6, %v5904_v37  ;;  %v5934_v17 = vsel %vm3162_vm14, %v5933_v44, %v5932_v21 }
0x222a   : > { %vm5756_vm8 = vcmp.ge.f32.partialorder %v5751_v15, 0.0  ;;  %v5760_v26 = vmul.f32 0.01, %v5751_v15 }
0x222c   : > { %v5764_v30 = vsel %vm5756_vm8, %v5751_v15, %v5760_v26 }
0x222d   : > { %v6073_v38 = vrot.slane %v5764_v30, 2  ;;  %v6045_v16 = vrot.slane %v5764_v30, 1  ;;  %v6185_v56 = vrot.slane %v5764_v30, 6  ;;  %v5990_v52 = vrot.slane %v5764_v30, 7 }
0x222e   : > { %6755 = vmatmul.msk.f32.vlgmr.msra.gmra.mxu0 %vm1198_vm1, %v5822_v31  ;;  %v6157_v54 = vrot.slane %v5764_v30, 5  ;;  %v6018_v58 = vsel %vm3162_vm14, %v5764_v30, %v6017_v43  ;;  %v6101_v57 = vrot.slane %v5764_v30, 3  ;;  %v6129_v47 = vrot.slane %v5764_v30, 4 }
0x222f   : > { %v6074_v40 = vsel %vm3162_vm14, %v6073_v38, %v6072_v36  ;;  %6009 = vmatpush.msra.mxu0 %v6766_v34  ;;  %v6046_v50 = vsel %vm3162_vm14, %v6045_v16, %v6044_v45  ;;  %v6186_v32 = vsel %vm3162_vm14, %v6185_v56, %v6184_v48  ;;  %v5991_v55 = vsel %vm3162_vm14, %v5990_v52, %v8326_v22  ;;  %v6890_v16 = vld [vmem:[%s7312_s6] ss:$0 sm:$0xff] }
0x2230   : > { %6757 = vmatmul.msk.f32.vlgmr.msrb.gmra.mxu1 %vm1198_vm1, %v5850_v33  ;;  %6765 = vmatmul.msk.f32.vlgmr.msrb.gmra.mxu2 %vm1198_vm1, %v5962_v39  ;;  %v6158_v60 = vsel %vm3162_vm14, %v6157_v54, %v6156_v53  ;;  %v6102_v62 = vsel %vm3162_vm14, %v6101_v57, %v6100_v61  ;;  %v6130_v1 = vsel %vm3162_vm14, %v6129_v47, %v6128_v63  ;;  %v6889_v39 = vld [vmem:[%s7302_s27] ss:$0 sm:$0xff]  ;;  %vm6254_vm14 = vcmask 517120  }
0x2231   : > { %6773 = vmatmul.msk.f32.vlgmr.msra.gmra.mxu3 %vm1198_vm1, %v6074_v40  ;;  %6036 = vmatpush.msrb.mxu1 %v6768_v14 }
0x2232   : > { %6176 = vmatpush.msrb.mxu2 %v6778_v41 }
0x2236   : > { %6761 = vmatmul.msk.f32.vlgmr.msrb.gmra.mxu0 %vm1198_vm1, %v5906_v46  ;;  %v6863_v46 = vld [vmem:[%s8445_s1] ss:$0 sm:$0xff] }
0x2237   : > { %6120 = vmatpush.msrb.mxu0 %v6774_v42  ;;  %v3707_v21 = vadd.f32 %v6863_v46, %v7912_v51 }
0x2238   : > { %6763 = vmatmul.msk.f32.vlgmr.msra.gmra.mxu1 %vm1198_vm1, %v5934_v17  ;;  %6771 = vmatmul.msk.f32.vlgmr.msra.gmra.mxu2 %vm1198_vm1, %v6046_v50 }
0x2239   : > { %6781 = vmatmul.msk.f32.vlgmr.msrb.gmra.mxu3 %vm1198_vm1, %v6186_v32  ;;  %6148 = vmatpush.msra.mxu1 %v6776_v49 }
0x223e   : > { %6767 = vmatmul.msk.f32.vlgmr.msra.gmra.mxu0 %vm1198_vm1, %v5991_v55 }
0x223f   : > { %6241 = vmatpush.msra.mxu0 %v6221_v5 }
0x2240   : > { %6769 = vmatmul.msk.f32.vlgmr.msrb.gmra.mxu1 %vm1198_vm1, %v6018_v58  ;;  %6779 = vmatmul.msk.f32.vlgmr.msrb.gmra.mxu2 %vm1198_vm1, %v6158_v60 }
0x2241   : > { %6242 = vmatpush.msra.mxu0 %v6220_v12 }
0x2243   : > { %6243 = vmatpush.msra.mxu0 %v6219_v19 }
0x2245   : > { %6244 = vmatpush.msra.mxu0 %v6218_v8 }
0x2246   : > { %6775 = vmatmul.msk.f32.vlgmr.msrb.gmra.mxu0 %vm1198_vm1, %v6102_v62 }
0x2248   : > { %6777 = vmatmul.msk.f32.vlgmr.msra.gmra.mxu1 %vm1198_vm1, %v6130_v1 }
0x22a3   : > { %v5791_v4 = vpop.f32.mrf.mxu0 }
0x22a5   : > { %v5815_v59 = vpop.f32.mrf.mxu1 }
0x22a6   : > { %v5816_v0 = vadd.f32 %v5815_v59, %v5791_v4 }
0x22ab   : > { %v5842_v3 = vpop.f32.mrf.mxu0  ;;  %v5898_v10 = vpop.f32.mrf.mxu2 }
0x22ac   : > { %v5845_v9 = vadd.f32 %v5842_v3, %v5816_v0 }
0x22ad   : > { %v5870_v11 = vpop.f32.mrf.mxu1 }
0x22ae   : > { %v5873_v13 = vadd.f32 %v5870_v11, %v5845_v9 }
0x22b0   : > { %v5901_v18 = vadd.f32 %v5898_v10, %v5873_v13 }
0x22b3   : > { %v5926_v7 = vpop.f32.mrf.mxu0  ;;  %v5982_v2 = vpop.f32.mrf.mxu2 }
0x22b4   : > { %v5929_v23 = vadd.f32 %v5926_v7, %v5901_v18  ;;  %v6094_v30 = vpop.f32.mrf.mxu3 }
0x22b5   : > { %v5954_v24 = vpop.f32.mrf.mxu1 }
0x22b6   : > { %v5957_v15 = vadd.f32 %v5954_v24, %v5929_v23 }
0x22b8   : > { %v5985_v25 = vadd.f32 %v5982_v2, %v5957_v15 }
0x22bb   : > { %v6011_v22 = vpop.f32.mrf.mxu0  ;;  %v6066_v27 = vpop.f32.mrf.mxu2 }
0x22bc   : > { %v6014_v26 = vadd.f32 %v6011_v22, %v5985_v25  ;;  %v6206_v40 = vpop.f32.mrf.mxu3 }
0x22bd   : > { %v6038_v20 = vpop.f32.mrf.mxu1 }
0x22be   : > { %v6041_v29 = vadd.f32 %v6038_v20, %v6014_v26 }
0x22c0   : > { %v6069_v28 = vadd.f32 %v6066_v27, %v6041_v29 }
0x22c2   : > { %v6097_v34 = vadd.f32 %v6094_v30, %v6069_v28 }
0x22c3   : > { %v6122_v31 = vpop.f32.mrf.mxu0  ;;  %v6178_v14 = vpop.f32.mrf.mxu2 }
0x22c4   : > { %v6125_v35 = vadd.f32 %v6122_v31, %v6097_v34 }
0x22c5   : > { %v6150_v36 = vpop.f32.mrf.mxu1 }
0x22c6   : > { %v6153_v38 = vadd.f32 %v6150_v36, %v6125_v35 }
0x22c8   : > { %v6181_v33 = vadd.f32 %v6178_v14, %v6153_v38 }
0x22ca   : > { %v6209_v41 = vadd.f32 %v6206_v40, %v6181_v33 }
0x22cc   : > { %v6214_v6 = vadd.f32 %v6889_v39, %v6209_v41 }
0x22ce   : > { %v6216_v37 = vmul.f32 0.01, %v6214_v6  ;;  %vm6215_vm1 = vcmp.ge.f32.partialorder %v6214_v6, 0.0 }
0x22d0   : > { %v6217_v44 = vsel %vm6215_vm1, %v6214_v6, %v6216_v37 }
0x22d1   : > { %6782 = vmatmul.msk.f32.vlgmr.msra.gmra.mxu0 %vm1927_vm15, %v6217_v44 }
0x234e   : > { %v6246_v56 = vpop.f32.mrf.mxu0 }
0x234f   : > { %v6247_v42 = vadd.f32 %v6890_v16, %v6246_v56 }
0x2351   : > { %6250 = vrot.lane.b32.xlu2 %v6247_v42, %s7133_s0 }
0x23ab   : > { %v6251_v45 = vpop.permute.xlu2 %6250 }
0x23ac   : > { %v6253_v48 = vsel %vm1927_vm15, %v3707_v21, %v6251_v45 }
0x23ad   : > { %6255 = vst.msk [vmem:[%s1073_s3] sm:$0x3] %vm6254_vm14, %v6253_v48 }
0x23ae PF: > { %s81_s22 = sadd.s32 1, %s7095_s22  }
0x23af   : > { %p78_p5 = scmp.ge.s32.totalorder %s81_s22, 4  }
0x23b1   :  { %80 = sbr.rel (!%p78_p5) target bundleno = 60 (0x3c), region = 329 }

</bundles_post_ra>
